<compile_context>
chip_gen: v7x
topology: tpu7x:2x2x1
jax: 0.10.0
libtpu: 0.0.40
codegen_flags: <defaults>
</compile_context>

<pallas_src>
import jax
import jax.numpy as jnp
from jax.experimental import pallas as pl
from jax.experimental.pallas import tpu as pltpu


def _sherlock_head_kernel(u_ref, f_ref, wc_ref, out_ref, acc_ref):
    """Grid = (hw_split, batch, pixel_tile).  Accumulates a (1, C) partial."""
    s = pl.program_id(0)            # HW split (parallel; feeds both TCs when B == 1)
    t = pl.program_id(2)            # pixel tile within this split (reduction axis)
    n_t = pl.num_programs(2)

    @pl.when(t == 0)
    def _init():
        acc_ref[...] = jnp.zeros_like(acc_ref)

    # u is fully VMEM-resident (DMA'd once, already in the feature dtype);
    # select this tile's row: (1, tile_pixels).
    u = u_ref[pl.ds(s * n_t + t, 1), :]
    # (1, tHW) @ (tHW, C) -> (1, C) on the MXU, f32 accumulation.
    acc_ref[...] += jnp.dot(u, f_ref[...], preferred_element_type=jnp.float32)

    @pl.when(t == n_t - 1)
    def _finish():
        # Apply the 1x1-classifier weight once per (split, batch) pair.
        out_ref[0, 0] = jnp.sum(acc_ref[...] * wc_ref[...], axis=-1, keepdims=True)


def sherlock_head(feat_nhwc, wc, bc, w1, b1, w2, b2, *, tile_pixels=8192,
                  hw_splits=None, vmem_limit_bytes=32 * 1024 * 1024):
    """feat_nhwc: (B, H, W, C) decode-head features (bf16 preferred, f32 exact).
    Returns (B,), matching Sherlock.forward's `output.view(-1)`."""
    B, H, W, C = feat_nhwc.shape
    HW = H * W
    tile_pixels = min(tile_pixels, HW)
    assert HW % tile_pixels == 0 and tile_pixels % 128 == 0 and C % 128 == 0
    n_tiles_total = HW // tile_pixels

    # Keep both v7x TensorCores fed for small-batch inference: when B == 1,
    # split the pixel range into two parallel halves and combine outside.
    if hw_splits is None:
        hw_splits = 2 if (B == 1 and n_tiles_total % 2 == 0) else 1
    assert n_tiles_total % hw_splits == 0
    tiles_per_split = n_tiles_total // hw_splits

    # Free dim-collapse only; NO dtype cast here -- features stream in whatever
    # dtype the caller provides (emit bf16 upstream for ~2x less HBM traffic).
    feat_flat = feat_nhwc.reshape(B, HW, C)
    feat_dtype = feat_flat.dtype

    f32 = jnp.float32
    wc_row = wc.reshape(1, C).astype(f32)                               # (1, C) lane-dense
    # Exact fold of W1 (over W) then W2 (over H): U[h*W + w] = w2[h] * w1[w].
    # Pre-cast to the feature dtype on the host (no per-step cast in the kernel),
    # laid out one row per pixel tile so it can be indexed dynamically in VMEM.
    u2d = (w2[:, None] * w1[None, :]).reshape(n_tiles_total, tile_pixels).astype(feat_dtype)
    const = (bc * jnp.sum(w1) * jnp.sum(w2) + b1 * jnp.sum(w2) + b2).astype(f32)

    grid_spec = pltpu.PrefetchScalarGridSpec(
        num_scalar_prefetch=0,
        grid=(hw_splits, B, tiles_per_split),
        in_specs=[
            # Fused spatial weight: constant index_map -> VMEM-resident, one DMA.
            pl.BlockSpec((n_tiles_total, tile_pixels), lambda s, b, t: (0, 0)),
            # Feature stream: the only real HBM traffic.
            pl.BlockSpec((None, tile_pixels, C),
                         lambda s, b, t: (b, s * tiles_per_split + t, 0)),
            # Classifier weight row.
            pl.BlockSpec((1, C), lambda s, b, t: (0, 0)),
        ],
        out_specs=pl.BlockSpec((1, 1, 1, 1), lambda s, b, t: (s, b, 0, 0)),
        scratch_shapes=[pltpu.VMEM((1, C), jnp.float32)],
    )

    feat_bytes = int(feat_flat.size) * feat_flat.dtype.itemsize
    cost = pl.CostEstimate(
        flops=2 * B * HW * C + 2 * B * C,
        transcendentals=0,
        bytes_accessed=(feat_bytes
                        + int(u2d.size) * u2d.dtype.itemsize   # resident: fetched once
                        + C * 4                                 # wc row
                        + hw_splits * B * 4),                   # scalar partials out
    )

    partials = pl.pallas_call(
        _sherlock_head_kernel,
        out_shape=jax.ShapeDtypeStruct((hw_splits, B, 1, 1), jnp.float32),
        grid_spec=grid_spec,
        compiler_params=pltpu.CompilerParams(
            dimension_semantics=("parallel", "parallel", "arbitrary"),
            vmem_limit_bytes=vmem_limit_bytes),
        cost_estimate=cost,
    )(u2d, feat_flat, wc_row)

    # Combine the parallel HW-split partials and add the folded bias constant.
    return jnp.sum(partials, axis=0).reshape(-1) + const   # == output.view(-1)


def sherlock_reference(feat_nhwc, wc, bc, w1, b1, w2, b2):
    """Literal (pure-JAX) mirror of the PyTorch op sequence."""
    # classifier Conv2d(C,1,1) -> logits (B,H,W); permute/squeeze; W1 over W; W2 over H
    logits = jnp.einsum('bhwc,c->bhw', feat_nhwc, wc) + bc        # (B, H, W)
    y1 = logits @ w1 + b1                                         # (B, H)
    return y1 @ w2 + b2                                           # (B,)


if __name__ == "__main__":
    # segFormerNumber=0 -> classifier in_channels = 256; mask_size = 128
    B, C, MASK = 2, 256, 128

    key = jax.random.PRNGKey(0)
    kf, kwc, kbc, kw1, kb1, kw2, kb2 = jax.random.split(key, 7)

    feat_f32 = jax.random.normal(kf, (B, MASK, MASK, C), jnp.float32) * 0.5
    wc = jax.random.uniform(kwc, (C,), jnp.float32, -1.0, 1.0) / jnp.sqrt(C)
    bc = jax.random.uniform(kbc, (), jnp.float32, -1.0, 1.0) / jnp.sqrt(C)
    w1 = jax.random.uniform(kw1, (MASK,), jnp.float32, -1.0, 1.0) / jnp.sqrt(MASK)
    b1 = jax.random.uniform(kb1, (), jnp.float32, -1.0, 1.0) / jnp.sqrt(MASK)
    w2 = jax.random.uniform(kw2, (MASK,), jnp.float32, -1.0, 1.0) / jnp.sqrt(MASK)
    b2 = jax.random.uniform(kb2, (), jnp.float32, -1.0, 1.0) / jnp.sqrt(MASK)

    ref = sherlock_reference(feat_f32, wc, bc, w1, b1, w2, b2)

    # Exact f32 streaming path (bit-faithful module semantics).
    out_f32 = jax.block_until_ready(sherlock_head(feat_f32, wc, bc, w1, b1, w2, b2))
    assert out_f32.shape == (B,), out_f32.shape
    assert jnp.allclose(out_f32, ref, rtol=1e-3, atol=1e-3), (out_f32, ref)

    # Default production path: bf16 feature stream (emit bf16 upstream of this
    # kernel; the cast below only synthesizes that input for the test).
    feat_bf16 = feat_f32.astype(jnp.bfloat16)
    out_bf16 = jax.block_until_ready(sherlock_head(feat_bf16, wc, bc, w1, b1, w2, b2))
    assert jnp.allclose(out_bf16, ref, rtol=5e-3, atol=5e-3), (out_bf16, ref)

    # B == 1 small-batch inference: HW splits across a size-2 parallel grid axis
    # so both v7x TensorCores stream features.
    ref_b1 = sherlock_reference(feat_f32[:1], wc, bc, w1, b1, w2, b2)
    out_b1 = jax.block_until_ready(sherlock_head(feat_bf16[:1], wc, bc, w1, b1, w2, b2))
    assert out_b1.shape == (1,), out_b1.shape
    assert jnp.allclose(out_b1, ref_b1, rtol=5e-3, atol=5e-3), (out_b1, ref_b1)

    print("KERNEL_OK")
</pallas_src>

<mosaic_0001>
module attributes {stable_mosaic.version = 11 : i64} {
  func.func @_sherlock_head_kernel(%arg0: i32, %arg1: i32, %arg2: i32, %arg3: memref<2x8192xf32, #tpu.memory_space<vmem>>, %arg4: memref<1x8192x256xf32, #tpu.memory_space<vmem>>, %arg5: memref<1x256xf32, #tpu.memory_space<vmem>>, %arg6: memref<1x1x1x1xf32, #tpu.memory_space<vmem>>, %arg7: memref<1x256xf32, #tpu.memory_space<vmem>>) attributes {dimension_semantics = [#tpu.dimension_semantics<parallel>, #tpu.dimension_semantics<parallel>, #tpu.dimension_semantics<arbitrary>], iteration_bounds = array<i64: 1, 2, 2>, scalar_prefetch = 0 : i64, scratch_operands = 1 : i64, tpu.core_type = #tpu.core_type<tc>, window_params = [{pipeline_mode = #tpu.pipeline_mode<synchronous>, transform_indices = @transform_0, window_bounds = array<i64: 2, 8192>}, {transform_indices = @transform_1, window_bounds = array<i64: 1, 8192, 256>}, {pipeline_mode = #tpu.pipeline_mode<synchronous>, transform_indices = @transform_2, window_bounds = array<i64: 1, 256>}, {transform_indices = @transform_3, window_bounds = array<i64: 1, 1, 1, 1>}]} {
    %c0_i32 = arith.constant 0 : i32
    %0 = arith.cmpi eq, %arg2, %c0_i32 : i32
    %1 = arith.extui %0 : i1 to i32
    %c0_i32_0 = arith.constant 0 : i32
    %2 = arith.cmpi ne, %1, %c0_i32_0 : i32
    scf.if %2 {
      %cst_9 = arith.constant 0.000000e+00 : f32
      %16 = vector.broadcast %cst_9 : f32 to vector<1x256xf32>
      %c0_10 = arith.constant 0 : index
      %c0_11 = arith.constant 0 : index
      %17 = vector.load %arg7[%c0_10, %c0_11] : memref<1x256xf32, #tpu.memory_space<vmem>>, vector<1x256xf32>
      tpu.vector_store %arg7[%c0_10, %c0_11], %16 {strides = array<i32>} : memref<1x256xf32, #tpu.memory_space<vmem>>, vector<1x256xf32>,
    } else {
    }
    %c2_i32 = arith.constant 2 : i32
    %3 = arith.muli %arg0, %c2_i32 : i32
    %4 = arith.addi %3, %arg2 : i32
    %5 = arith.index_cast %4 : i32 to index
    %c0 = arith.constant 0 : index
    %6 = vector.load %arg3[%5, %c0] : memref<2x8192xf32, #tpu.memory_space<vmem>>, vector<1x8192xf32>
    %c0_1 = arith.constant 0 : index
    %c0_2 = arith.constant 0 : index
    %7 = vector.load %arg7[%c0_1, %c0_2] : memref<1x256xf32, #tpu.memory_space<vmem>>, vector<1x256xf32>
    %c0_3 = arith.constant 0 : index
    %c0_4 = arith.constant 0 : index
    %c0_5 = arith.constant 0 : index
    %8 = vector.load %arg4[%c0_3, %c0_4, %c0_5] : memref<1x8192x256xf32, #tpu.memory_space<vmem>>, vector<1x8192x256xf32>
    %9 = vector.shape_cast %8 : vector<1x8192x256xf32> to vector<8192x256xf32>
    %cst = arith.constant dense<0.000000e+00> : vector<1x256xf32>
    %10 = tpu.matmul %6, %9, %cst {dimension_numbers = #tpu.dot_dimension_numbers<[1], [0], [0], [1], [0, 0, 1, 1], [], []>} : vector<1x8192xf32>, vector<8192x256xf32>, vector<1x256xf32> -> vector<1x256xf32>
    %11 = arith.addf %7, %10 : vector<1x256xf32>
    %c0_6 = arith.constant 0 : index
    %c0_7 = arith.constant 0 : index
    %12 = vector.load %arg7[%c0_6, %c0_7] : memref<1x256xf32, #tpu.memory_space<vmem>>, vector<1x256xf32>
    tpu.vector_store %arg7[%c0_6, %c0_7], %11 {strides = array<i32>} : memref<1x256xf32, #tpu.memory_space<vmem>>, vector<1x256xf32>,
    %c1_i32 = arith.constant 1 : i32
    %13 = arith.cmpi eq, %arg2, %c1_i32 : i32
    %14 = arith.extui %13 : i1 to i32
    %c0_i32_8 = arith.constant 0 : i32
    %15 = arith.cmpi ne, %14, %c0_i32_8 : i32
    scf.if %15 {
      %c0_9 = arith.constant 0 : index
      %c0_10 = arith.constant 0 : index
      %16 = vector.load %arg7[%c0_9, %c0_10] : memref<1x256xf32, #tpu.memory_space<vmem>>, vector<1x256xf32>
      %c0_11 = arith.constant 0 : index
      %c0_12 = arith.constant 0 : index
      %17 = vector.load %arg5[%c0_11, %c0_12] : memref<1x256xf32, #tpu.memory_space<vmem>>, vector<1x256xf32>
      %18 = arith.mulf %16, %17 : vector<1x256xf32>
      %cst_13 = arith.constant dense<0.000000e+00> : vector<1xf32>
      %19 = vector.multi_reduction <add>, %18, %cst_13 [1] : vector<1x256xf32> to vector<1xf32>
      %20 = vector.shape_cast %19 : vector<1xf32> to vector<1x1xf32>
      %c0_14 = arith.constant 0 : index
      %c0_15 = arith.constant 0 : index
      %c0_16 = arith.constant 0 : index
      %c0_17 = arith.constant 0 : index
      %21 = vector.load %arg6[%c0_14, %c0_15, %c0_16, %c0_17] : memref<1x1x1x1xf32, #tpu.memory_space<vmem>>, vector<1x1x1x1xf32>
      %22 = vector.shape_cast %21 : vector<1x1x1x1xf32> to vector<1x1xf32>
      %23 = vector.shape_cast %20 : vector<1x1xf32> to vector<1x1x1x1xf32>
      tpu.vector_store %arg6[%c0_14, %c0_15, %c0_16, %c0_17], %23 {strides = array<i32>} : memref<1x1x1x1xf32, #tpu.memory_space<vmem>>, vector<1x1x1x1xf32>,
    } else {
    }
    return
  }
  func.func @transform_0(%arg0: i32, %arg1: i32, %arg2: i32) -> (i32, i32) {
    %c0_i32 = arith.constant 0 : i32
    %c0_i32_0 = arith.constant 0 : i32
    %c0_i32_1 = arith.constant 0 : i32
    return %c0_i32, %c0_i32_0 : i32, i32
  }
  func.func @transform_1(%arg0: i32, %arg1: i32, %arg2: i32) -> (i32, i32, i32) {
    %c2_i32 = arith.constant 2 : i32
    %0 = arith.muli %arg0, %c2_i32 : i32
    %1 = arith.addi %0, %arg2 : i32
    %c0_i32 = arith.constant 0 : i32
    %c0_i32_0 = arith.constant 0 : i32
    return %arg1, %1, %c0_i32 : i32, i32, i32
  }
  func.func @transform_2(%arg0: i32, %arg1: i32, %arg2: i32) -> (i32, i32) {
    %c0_i32 = arith.constant 0 : i32
    %c0_i32_0 = arith.constant 0 : i32
    %c0_i32_1 = arith.constant 0 : i32
    return %c0_i32, %c0_i32_0 : i32, i32
  }
  func.func @transform_3(%arg0: i32, %arg1: i32, %arg2: i32) -> (i32, i32, i32, i32) {
    %c0_i32 = arith.constant 0 : i32
    %c0_i32_0 = arith.constant 0 : i32
    %c0_i32_1 = arith.constant 0 : i32
    return %arg0, %arg1, %c0_i32, %c0_i32_0 : i32, i32, i32, i32
  }
}

</mosaic_0001>

<bundles_post_ra>
// kernel: tpu_custom_call.1
= control target key start
LH: loop header
LB: loop body
LE: loop exit
PB: predicated region body
PF: predicated region fallthrough
CT: control target
= control target key end

     0   :  { %s10114_s0 = inlined_call_operand.hbm [shape: f32[2,8192], index: 0, kind: input, shape index: {}]   ;;  %s10115_s1 = inlined_call_operand.hbm [shape: f32[2,16384,256], index: 1, kind: input, shape index: {}]   ;;  %s10116_s2 = inlined_call_operand.hbm [shape: f32[1,256], index: 2, kind: input, shape index: {}]   ;;  %s10117_s3 = inlined_call_operand.vmem [shape: f32[1,2,1,1], index: 3, kind: output, shape index: {}]  }
   0x1   :  { %10124 = sst [smem:[#allocation11_spill]] %s10114_s0 }
   0x2   :  { %8 = vsyncpa [#allocation4], 0 }
   0x3   :  { %9 = vsyncpa [#allocation6], 0 }
   0x4   :  { %11 = vsyncpa [#allocation6 + $0x1], 0  ;;  %s7622_s12 = smov 0   ;;  %s7624_s13 = smov 0  }
   0x5   :  { %s7626_s14 = smov 0   ;;  %s7628_s15 = smov 0  }
   0x6   :  { %s7630_s16 = smov 0   ;;  %s7632_s17 = smov 0  }
   0x7   :  { %s7634_s18 = smov 0   ;;  %s7636_s19 = smov 0  }
   0x8 LB: > { %s10123_s20 = sadd.s32 4294967295, %s7593_s19   ;;  %p77_p0 = scmp.ne.s32.totalorder %s7573_s14, %s7569_s13  ;;  %s7593_s19 = sphi %s7636_s19, %s17_s19   ;;  %s7589_s18 = sphi %s7634_s18, %s10144_s18   ;;  %s7585_s17 = sphi %s7632_s17, %s10143_s17   ;;  %s7581_s16 = sphi %s7630_s16, %s10142_s16   ;;  %s7577_s15 = sphi %s7628_s15, %s10141_s15   ;;  %s7573_s14 = sphi %s7626_s14, %s10140_s14   ;;  %s7569_s13 = sphi %s7624_s13, %s10139_s13   ;;  %s7565_s12 = sphi %s7622_s12, %s10138_s12  }
   0x9   : > { %p78_p1 = scmp.eq.s32.totalorder %s7593_s19, 0  ;;  %p83_p2 = scmp.ne.s32.totalorder %s7569_s13, %s7565_s12 }
   0xa   : > { %p7668_p3 = scmp.eq.s32.totalorder %s10123_s20, 0  ;;  %p5164_p5 = scmp.ge.s32.totalorder %s7593_s19, 1 }
   0xb   : > { %p79_p4 = por %p78_p1, %p77_p0  ;;  %p143_p7 = scmp.lt.s32.totalorder %s7593_s19, 5 }
   0xc   : > { %s10125_s22 = scalar_select %p7668_p3, 1, 0 }
   0xd   : > { %p7675_p6 = por %p7668_p3, %p83_p2  ;;  %p7680_p8 = pnand %p5164_p5, %p143_p7 }
   0xe   : > { %s7595_s25 = smov [#allocation7]   ;;  %p7346_p10 = scmp.lt.s32.totalorder %s7593_s19, 4 }
   0xf   : > { %s10126_s23 = scalar_select %p7675_p6, 1, 0 }
  0x10   : > { %s10127_s24 = scalar_select %p7680_p8, 1, 0 }
  0x11   : > { %s167_s26 = sshll.u32 %s7595_s25, 4  ;;  %p7333_p9 = pneg %p7680_p8  ;;  %s168_s26 = int_to_ptr.vmem [resolvable:$true] %s167_s26 }
  0x12   : > { %p7693_p12 = pnand %p7346_p10, %p79_p4  ;;  %s7433_s4 = scalar_lea.hbm %s10116_s2, 32 }
  0x13   : > { %p7689_p11 = pnand %p7333_p9, %p7668_p3  ;;  %p7434_p13 = scmp.ne.s32.totalorder %s10116_s2, %s7433_s4 }
  0x14   : > { %s10129_s28 = scalar_select %p7693_p12, 1, 0 }
  0x15   : > { %p7435_p0 = pneg %p7689_p11  ;;  %p7440_p4 = scmp.lt.u32.totalorder %s7433_s4, %s10116_s2 }
  0x17   : > { %p7436_p1 = pnand %p7435_p0, %p7434_p13 }
  0x19   : > { %p7437_p2 = pneg %p7436_p1 }
  0x1b   : > { %p7442_p5 = pnand %p7440_p4, %p7437_p2 }
  0x1d   : > { %7445 = shalt.err (!%p7442_p5)
}
  0x1e   : > { %s7446_s9 = scalar_lea.vmem %s168_s26, 32  ;;  %p7454_p6 = scmp.lt.s32.totalorder %s168_s26, %s168_s26 }
  0x1f   : > { %p7447_p7 = scmp.ne.s32.totalorder %s168_s26, %s7446_s9  ;;  %p7455_p3 = scmp.lt.s32.totalorder %s7446_s9, %s7446_s9 }
  0x21   : > { %p7449_p9 = pnand %p7447_p7, %p7435_p0  ;;  %p7456_p8 = por %p7455_p3, %p7454_p6 }
  0x23   : > { %p7450_p10 = pneg %p7449_p9 }
  0x25   : > { %p7457_p12 = pnand %p7456_p8, %p7450_p10 }
  0x27   : > { %7460 = shalt.err (!%p7457_p12)
}
  0x28   : > { %7339 = dma.hbm_to_vmem [thread:$0]  (!%p7689_p11), %s10116_s2, 32, %s168_s26, [#allocation6]  }
  0x29   : > { %s7596_s12 = smov [#allocation3]   ;;  %s10130_s0 = sld [smem:[#allocation11_spill]] }
  0x2a   : > { %s156_s25 = sshll.u32 %s7596_s12, 4  ;;  %s157_s25 = int_to_ptr.vmem [resolvable:$true] %s156_s25 }
  0x2f   : > { %s7461_s4 = scalar_lea.hbm %s10130_s0, 2048 }
  0x30   : > { %p7462_p3 = scmp.ne.s32.totalorder %s10130_s0, %s7461_s4  ;;  %p7468_p12 = scmp.lt.u32.totalorder %s7461_s4, %s10130_s0 }
  0x32   : > { %p7464_p6 = pnand %p7462_p3, %p7435_p0 }
  0x34   : > { %p7465_p8 = pneg %p7464_p6 }
  0x36   : > { %p7470_p13 = pnand %p7468_p12, %p7465_p8 }
  0x38   : > { %7473 = shalt.err (!%p7470_p13)
}
  0x39   : > { %s7474_s26 = scalar_lea.vmem %s157_s25, 2048  ;;  %p7482_p5 = scmp.lt.s32.totalorder %s157_s25, %s157_s25 }
  0x3a   : > { %p7475_p1 = scmp.ne.s32.totalorder %s157_s25, %s7474_s26  ;;  %p7483_p7 = scmp.lt.s32.totalorder %s7474_s26, %s7474_s26 }
  0x3c   : > { %p7477_p2 = pnand %p7475_p1, %p7435_p0  ;;  %p7484_p9 = por %p7483_p7, %p7482_p5 }
  0x3e   : > { %p7478_p4 = pneg %p7477_p2 }
  0x40   : > { %p7485_p10 = pnand %p7484_p9, %p7478_p4 }
  0x42   : > { %7488 = shalt.err (!%p7485_p10)
}
  0x43   : > { %7336 = dma.hbm_to_vmem [thread:$0]  (!%p7689_p11), %s10130_s0, 2048, %s157_s25, [#allocation4]  }
  0x44   : > { %s32_s11 = sadd.s32 1, %s7589_s18  ;;  %s29_s12 = sadd.s32 1, %s7585_s17 }
  0x45   : > { %s178_s29 = sand.u32 1, %s7593_s19   ;;  %p30_p0 = scmp.ge.s32.totalorder %s29_s12, 2 }
  0x46   : > { %s180_s30 = sand.u32 1, %s7573_s14   ;;  %s5204_s4 = sshll.u32 %s7585_s17, 11 }
  0x47   : > { %s10146_s12 = smov (%p30_p0, %s29_s12), 0  ;;  %s10148_s11 = smov (!%p30_p0, %s32_s11), %s7589_s18 }
  0x48   : > { %s66_s27 = ssub.s32 %s7585_s17, %s10146_s12  ;;  %s5168_s5 = sshll.u32 %s180_s30, 14 }
  0x49   : > { %p34_p3 = scmp.ge.s32.totalorder %s10148_s11, 2  ;;  %s5171_s6 = sshll.u32 %s7589_s18, 12 }
  0x4a   : > { %s182_s25 = scalar_lea.vmem [#allocation5], %s5168_s5  ;;  %s191_s8 = sadd.s32 %s5204_s4, %s5171_s6 }
  0x4b   : > { %s194_s7 = sshll.u32 %s182_s25, 4  ;;  %s10150_s11 = smov (%p34_p3, %s10148_s11), 0  ;;  %s7752_s7 = int_to_ptr.vmem [resolvable:$true] %s194_s7 }
  0x4c   : > { %s65_s26 = ssub.s32 %s7589_s18, %s10150_s11  ;;  %s5172_s9 = sshll.u32 %s191_s8, 7 }
  0x4d   : > { %s67_s10 = sor.u32 %s66_s27, %s65_s26  ;;  %s7759_s0 = scalar_lea.hbm %s10115_s1, %s5172_s9 }
  0x4e   : > { %p68_p11 = scmp.eq.s32.totalorder %s67_s10, 0  ;;  %s10131_s30 = sadd.s32 1, %s7573_s14 }
  0x4f   : > { %s7766_s25 = scalar_lea.sflag [#allocation6], %s178_s29  ;;  %s7489_s4 = scalar_lea.hbm %s7759_s0, 262144 }
  0x50   : > { %s7764_s5 = scalar_select %p68_p11, %s7573_s14, %s10131_s30  }
  0x51   : > { %p7490_p6 = scmp.ne.s32.totalorder %s7759_s0, %s7489_s4  ;;  %p10132_p8 = scmp.ne.s32.totalorder %s10129_s28, 0 }
  0x52   : > { %s7494_s27 = scalar_lea.hbm %s10115_s1, 1048576  ;;  %p7495_p2 = scmp.lt.u32.totalorder %s7759_s0, %s10115_s1 }
  0x53   : > { %p7491_p12 = pneg %p10132_p8  ;;  %p7496_p4 = scmp.lt.u32.totalorder %s7494_s27, %s7489_s4 }
  0x54   : > { %p7498_p7 = scmp.lt.u32.totalorder %s7489_s4, %s7759_s0 }
  0x55   : > { %p7492_p13 = pnand %p7491_p12, %p7490_p6  ;;  %p7497_p5 = por %p7496_p4, %p7495_p2 }
  0x57   : > { %p7493_p1 = pneg %p7492_p13  ;;  %p7499_p9 = por %p7498_p7, %p7497_p5 }
  0x59   : > { %p7500_p10 = pnand %p7499_p9, %p7493_p1 }
  0x5b   : > { %7503 = shalt.err (!%p7500_p10)
}
  0x5c   : > { %s7504_s29 = scalar_lea.vmem %s7752_s7, 262144  ;;  %s7597_s26 = smov [#allocation5]  }
  0x5d   : > { %p7505_p0 = scmp.ne.s32.totalorder %s7752_s7, %s7504_s29  ;;  %s7509_s9 = sshll.u32 %s7597_s26, 4  ;;  %s7510_s9 = int_to_ptr.vmem [resolvable:$false] %s7509_s9 }
  0x5e   : > { %s7511_s10 = scalar_lea.vmem %s7510_s9, 524288  ;;  %p7512_p6 = scmp.lt.s32.totalorder %s7752_s7, %s7510_s9 }
  0x5f   : > { %p7507_p3 = pnand %p7505_p0, %p7491_p12  ;;  %p7513_p13 = scmp.lt.s32.totalorder %s7511_s10, %s7504_s29 }
  0x61   : > { %p7508_p11 = pneg %p7507_p3  ;;  %p7514_p2 = por %p7513_p13, %p7512_p6 }
  0x63   : > { %p7515_p4 = pnand %p7514_p2, %p7508_p11 }
  0x65   : > { %7518 = shalt.err (!%p7515_p4)
}
  0x66   : > { %s7598_s30 = smov 256   ;;  %s7599_s4 = smov 16  }
  0x67   : > { %7343 = dma.hbm_to_vmem [thread:$0]  (!%p10132_p8), %s7759_s0, 262144, %s7752_s7, %s7766_s25, %s7598_s30, %s7598_s30, %s7599_s4  }
  0x68   : > { %p10133_p12 = scmp.ne.s32.totalorder %s10127_s24, 0 }
  0x69   : > { %p10134_p1 = scmp.ne.s32.totalorder (!%p10133_p12), %s10125_s22, 0 }
  0x6a   : > { %206 = sbr.rel (%p10133_p12) target bundleno = 1540 (0x604), region = 32 }
  0x71   : > { %7552 = dma.done.wait (%p10134_p1), [#allocation4], 2048  }
  0x72   : > { %7554 = vsyncadd (%p10134_p1), [#allocation4], 4294965248  ;;  %s10135_s20 = sadd.s32 4294967295, %s7593_s19   ;;  %s214_s27 = sand.u32 1, %s7569_s13  }
  0x73   : > { %s212_s21 = sand.u32 1, %s10135_s20   ;;  %s5175_s6 = sshll.u32 %s214_s27, 14 }
  0x74   : > { %s213_s8 = scalar_lea.sflag [#allocation6], %s212_s21  ;;  %s7803_s29 = scalar_lea.vmem [#allocation5], %s5175_s6 }
  0x75   : > { %p10136_p8 = scmp.ne.s32.totalorder %s10126_s23, 0 }
  0x77   : > { %7556 = dma.done.wait (%p10136_p8), %s213_s8, 262144  }
  0x78   : > { %7558 = vsyncadd (%p10136_p8), %s213_s8, 4294705152 }
  0x79   : > { %7560 = dma.done.wait (%p10134_p1), [#allocation6], 32  }
  0x7a   : > { %7562 = vsyncadd (%p10134_p1), [#allocation6], 4294967264  ;;  %p250_p5 = scmp.lt.s32.totalorder %s7581_s16, 1  ;;  %p5177_p7 = scmp.ne.s32.totalorder %s7577_s15, 0 }
  0x7b   : > { %v259_v0 = vlaneseq (!%p5177_p7)  ;;  %v7600_v1 = vmov (!%p5177_p7), 0.0  }
  0x7c   : > { %s10152_s16 = smov (!%p250_p5, %s7581_s16), 1  ;;  %258 = sbr.rel (%p5177_p7) target bundleno = 131 (0x83), region = 48 }
  0x7d   : > { %s254_s28 = scalar_lea.vmem %s10117_s3, %s10152_s16  ;;  %vm261_vm0 = vcmp.lt.s32.totalorder (!%p5177_p7), %v259_v0, 256 }
  0x7e   : > { %263 = vst.msk [vmem:[#allocation2] sm:$0x3] (!%p5177_p7), %vm261_vm0, %v7600_v1 }
  0x83 PF: > { %v312_v2 = vld [vmem:[%s7803_s29 + $0x8] sm:$0xff]  ;;  %v314_v3 = vld [vmem:[%s7803_s29 + $0x18] sm:$0xff]  ;;  %v311_v7 = vld [vmem:[%s7803_s29] sm:$0xff]  ;;  %s266_s22 = sshra.s32 %s7577_s15, 1  ;;  %s269_s23 = sand.u32 1, %s7577_s15 }
  0x84   : > { %v1336_v4 = vld [vmem:[%s7803_s29 + $0x2008] sm:$0xff]  ;;  %v5213_v5 = vpack.c.bf16 %v314_v3, %v312_v2  ;;  %v1338_v6 = vld [vmem:[%s7803_s29 + $0x2018] sm:$0xff]  ;;  %v313_v8 = vld [vmem:[%s7803_s29 + $0x10] sm:$0xff]  ;;  %s5205_s7 = sshll.u32 %s266_s22, 7  ;;  %p5201_p9 = scmp.ne.s32.totalorder %s7577_s15, 1 }
  0x85   : > { %v6237_v9 = vpack.c.bf16 %v1338_v6, %v1336_v4  ;;  %v5215_v10 = vpack.c.bf16 %v313_v8, %v311_v7  ;;  %v1335_v11 = vld [vmem:[%s7803_s29 + $0x2000] sm:$0xff]  ;;  %v1337_v12 = vld [vmem:[%s7803_s29 + $0x2010] sm:$0xff]  ;;  %v316_v13 = vld [vmem:[%s7803_s29 + $0x28] sm:$0xff]  ;;  %s7911_s25 = sadd.s32 %s5205_s7, %s269_s23  ;;  %vm5001_vm2 = vcmask (!%p5201_p9), 1040384   ;;  %vm5007_vm3 = vcmask (!%p5201_p9), 0  }
  0x86   : > { %5214 = vmatprep.subr.bf16.mxu1 %v5213_v5  ;;  %v6239_v14 = vpack.c.bf16 %v1337_v12, %v1335_v11  ;;  %v318_v15 = vld [vmem:[%s7803_s29 + $0x38] sm:$0xff]  ;;  %v1340_v16 = vld [vmem:[%s7803_s29 + $0x2028] sm:$0xff]  ;;  %v315_v20 = vld [vmem:[%s7803_s29 + $0x20] sm:$0xff]  ;;  %s7931_s26 = scalar_lea.vmem [#allocation3], %s7911_s25 }
  0x87   : > { %v1342_v17 = vld [vmem:[%s7803_s29 + $0x2038] sm:$0xff]  ;;  %6238 = vmatprep.subr.bf16.mxu0 %v6237_v9  ;;  %5216 = vmatpush1.bf16.msra.mxu1 %v5215_v10  ;;  %v5217_v18 = vpack.c.bf16 %v318_v15, %v316_v13  ;;  %v317_v21 = vld [vmem:[%s7803_s29 + $0x30] sm:$0xff]  ;;  %v1339_v22 = vld [vmem:[%s7803_s29 + $0x2020] sm:$0xff] }
  0x88   : > { %v6241_v19 = vpack.c.bf16 %v1342_v17, %v1340_v16  ;;  %6240 = vmatpush1.bf16.msra.mxu0 %v6239_v14  ;;  %v5219_v23 = vpack.c.bf16 %v317_v21, %v315_v20  ;;  %v1341_v24 = vld [vmem:[%s7803_s29 + $0x2030] sm:$0xff]  ;;  %v320_v25 = vld [vmem:[%s7803_s29 + $0x48] sm:$0xff]  ;;  %v322_v26 = vld [vmem:[%s7803_s29 + $0x58] sm:$0xff] }
  0x89   : > { %5218 = vmatprep.subr.bf16.mxu1 %v5217_v18  ;;  %v6243_v27 = vpack.c.bf16 %v1341_v24, %v1339_v22  ;;  %v5221_v28 = vpack.c.bf16 %v322_v26, %v320_v25  ;;  %v1344_v29 = vld [vmem:[%s7803_s29 + $0x2048] sm:$0xff]  ;;  %v1346_v30 = vld [vmem:[%s7803_s29 + $0x2058] sm:$0xff]  ;;  %v319_v31 = vld [vmem:[%s7803_s29 + $0x40] sm:$0xff] }
  0x8a   : > { %6242 = vmatprep.subr.bf16.mxu0 %v6241_v19  ;;  %v6245_v32 = vpack.c.bf16 %v1346_v30, %v1344_v29  ;;  %v321_v33 = vld [vmem:[%s7803_s29 + $0x50] sm:$0xff]  ;;  %v1343_v34 = vld [vmem:[%s7803_s29 + $0x2040] sm:$0xff]  ;;  %v324_v37 = vld [vmem:[%s7803_s29 + $0x68] sm:$0xff] }
  0x8b   : > { %v1345_v35 = vld [vmem:[%s7803_s29 + $0x2050] sm:$0xff]  ;;  %5220 = vmatpush1.bf16.msra.mxu1 %v5219_v23  ;;  %v5223_v36 = vpack.c.bf16 %v321_v33, %v319_v31  ;;  %v326_v38 = vld [vmem:[%s7803_s29 + $0x78] sm:$0xff]  ;;  %v1348_v39 = vld [vmem:[%s7803_s29 + $0x2068] sm:$0xff] }
  0x8c   : > { %6244 = vmatpush1.bf16.msra.mxu0 %v6243_v27  ;;  %5222 = vmatprep.subr.bf16.mxu1 %v5221_v28  ;;  %v6247_v40 = vpack.c.bf16 %v1345_v35, %v1343_v34  ;;  %v5225_v41 = vpack.c.bf16 %v326_v38, %v324_v37  ;;  %v1350_v42 = vld [vmem:[%s7803_s29 + $0x2078] sm:$0xff]  ;;  %v323_v43 = vld [vmem:[%s7803_s29 + $0x60] sm:$0xff]  ;;  %v325_v44 = vld [vmem:[%s7803_s29 + $0x70] sm:$0xff] }
  0x8d   : > { %6246 = vmatprep.subr.bf16.mxu0 %v6245_v32  ;;  %v6249_v45 = vpack.c.bf16 %v1350_v42, %v1348_v39  ;;  %v1347_v46 = vld [vmem:[%s7803_s29 + $0x2060] sm:$0xff]  ;;  %v1349_v47 = vld [vmem:[%s7803_s29 + $0x2070] sm:$0xff]  ;;  %v328_v48 = vld [vmem:[%s7803_s29 + $0x88] sm:$0xff]  ;;  %v5227_v52 = vpack.c.bf16 %v325_v44, %v323_v43 }
  0x8e   : > { %v330_v49 = vld [vmem:[%s7803_s29 + $0x98] sm:$0xff]  ;;  %v1352_v50 = vld [vmem:[%s7803_s29 + $0x2088] sm:$0xff]  ;;  %v6251_v53 = vpack.c.bf16 %v1349_v47, %v1347_v46  ;;  %v327_v55 = vld [vmem:[%s7803_s29 + $0x80] sm:$0xff] }
  0x8f   : > { %v1354_v51 = vld [vmem:[%s7803_s29 + $0x2098] sm:$0xff]  ;;  %5224 = vmatpush1.bf16.msra.mxu1 %v5223_v36  ;;  %v5229_v54 = vpack.c.bf16 %v330_v49, %v328_v48  ;;  %v329_v56 = vld [vmem:[%s7803_s29 + $0x90] sm:$0xff]  ;;  %v1351_v57 = vld [vmem:[%s7803_s29 + $0x2080] sm:$0xff]  ;;  %v2367_v48 = vlaneseq }
  0x90   : > { %6248 = vmatpush1.bf16.msra.mxu0 %v6247_v40  ;;  %5226 = vmatprep.subr.bf16.mxu1 %v5225_v41  ;;  %v6253_v58 = vpack.c.bf16 %v1354_v51, %v1352_v50  ;;  %v1353_v59 = vld [vmem:[%s7803_s29 + $0x2090] sm:$0xff]  ;;  %v332_v60 = vld [vmem:[%s7803_s29 + $0xa8] sm:$0xff]  ;;  %v334_v61 = vld [vmem:[%s7803_s29 + $0xb8] sm:$0xff]  ;;  %v5231_v0 = vpack.c.bf16 %v329_v56, %v327_v55 }
  0x91   : > { %6250 = vmatprep.subr.bf16.mxu0 %v6249_v45  ;;  %v1356_v62 = vld [vmem:[%s7803_s29 + $0x20a8] sm:$0xff]  ;;  %v1358_v63 = vld [vmem:[%s7803_s29 + $0x20b8] sm:$0xff]  ;;  %v6255_v1 = vpack.c.bf16 %v1353_v59, %v1351_v57  ;;  %v5233_v2 = vpack.c.bf16 %v334_v61, %v332_v60  ;;  %v331_v3 = vld [vmem:[%s7803_s29 + $0xa0] sm:$0xff]  ;;  %v7909_v61 = vshrl.u32 %v2367_v48, 7  ;;  %vm4980_vm1 = vcmp.lt.s32.totalorder %v2367_v48, 256 }
  0x92   : > { %v333_v4 = vld [vmem:[%s7803_s29 + $0xb0] sm:$0xff]  ;;  %v1355_v5 = vld [vmem:[%s7803_s29 + $0x20a0] sm:$0xff]  ;;  %v6257_v6 = vpack.c.bf16 %v1358_v63, %v1356_v62  ;;  %v336_v8 = vld [vmem:[%s7803_s29 + $0xc8] sm:$0xff] }
  0x93   : > { %5228 = vmatpush1.bf16.msra.mxu1 %v5227_v52  ;;  %v1357_v7 = vld [vmem:[%s7803_s29 + $0x20b0] sm:$0xff]  ;;  %v338_v9 = vld [vmem:[%s7803_s29 + $0xd8] sm:$0xff]  ;;  %v1360_v10 = vld [vmem:[%s7803_s29 + $0x20c8] sm:$0xff]  ;;  %v5235_v12 = vpack.c.bf16 %v333_v4, %v331_v3 }
  0x94   : > { %6252 = vmatpush1.bf16.msra.mxu0 %v6251_v53  ;;  %5230 = vmatprep.subr.bf16.mxu1 %v5229_v54  ;;  %v1362_v11 = vld [vmem:[%s7803_s29 + $0x20d8] sm:$0xff]  ;;  %v6259_v13 = vpack.c.bf16 %v1357_v7, %v1355_v5  ;;  %v5237_v14 = vpack.c.bf16 %v338_v9, %v336_v8  ;;  %v335_v15 = vld [vmem:[%s7803_s29 + $0xc0] sm:$0xff]  ;;  %v337_v16 = vld [vmem:[%s7803_s29 + $0xd0] sm:$0xff] }
  0x95   : > { %6254 = vmatprep.subr.bf16.mxu0 %v6253_v58  ;;  %v1359_v17 = vld [vmem:[%s7803_s29 + $0x20c0] sm:$0xff]  ;;  %v6261_v18 = vpack.c.bf16 %v1362_v11, %v1360_v10  ;;  %v1361_v19 = vld [vmem:[%s7803_s29 + $0x20d0] sm:$0xff]  ;;  %v340_v20 = vld [vmem:[%s7803_s29 + $0xe8] sm:$0xff]  ;;  %v5239_v24 = vpack.c.bf16 %v337_v16, %v335_v15  ;;  %v7922_v10 = vsub.s32 1, %v7909_v61 }
  0x96   : > { %v342_v21 = vld [vmem:[%s7803_s29 + $0xf8] sm:$0xff]  ;;  %v1364_v22 = vld [vmem:[%s7803_s29 + $0x20e8] sm:$0xff]  ;;  %v6263_v25 = vpack.c.bf16 %v1361_v19, %v1359_v17  ;;  %v339_v27 = vld [vmem:[%s7803_s29 + $0xe0] sm:$0xff] }
  0x97   : > { %5232 = vmatpush1.bf16.msra.mxu1 %v5231_v0  ;;  %v1366_v23 = vld [vmem:[%s7803_s29 + $0x20f8] sm:$0xff]  ;;  %v5241_v26 = vpack.c.bf16 %v342_v21, %v340_v20  ;;  %v341_v28 = vld [vmem:[%s7803_s29 + $0xf0] sm:$0xff]  ;;  %v1363_v29 = vld [vmem:[%s7803_s29 + $0x20e0] sm:$0xff] }
  0x98   : > { %6256 = vmatpush1.bf16.msra.mxu0 %v6255_v1  ;;  %5234 = vmatprep.subr.bf16.mxu1 %v5233_v2  ;;  %v6265_v30 = vpack.c.bf16 %v1366_v23, %v1364_v22  ;;  %v1365_v31 = vld [vmem:[%s7803_s29 + $0x20f0] sm:$0xff]  ;;  %v344_v32 = vld [vmem:[%s7803_s29 + $0x108] sm:$0xff]  ;;  %v346_v33 = vld [vmem:[%s7803_s29 + $0x118] sm:$0xff]  ;;  %v5243_v36 = vpack.c.bf16 %v341_v28, %v339_v27 }
  0x99   : > { %6258 = vmatprep.subr.bf16.mxu0 %v6257_v6  ;;  %v1368_v34 = vld [vmem:[%s7803_s29 + $0x2108] sm:$0xff]  ;;  %v1370_v35 = vld [vmem:[%s7803_s29 + $0x2118] sm:$0xff]  ;;  %v6267_v37 = vpack.c.bf16 %v1365_v31, %v1363_v29  ;;  %v5245_v38 = vpack.c.bf16 %v346_v33, %v344_v32  ;;  %v343_v39 = vld [vmem:[%s7803_s29 + $0x100] sm:$0xff] }
  0x9a   : > { %v345_v40 = vld [vmem:[%s7803_s29 + $0x110] sm:$0xff]  ;;  %v1367_v41 = vld [vmem:[%s7803_s29 + $0x2100] sm:$0xff]  ;;  %v6269_v42 = vpack.c.bf16 %v1370_v35, %v1368_v34  ;;  %v348_v44 = vld [vmem:[%s7803_s29 + $0x128] sm:$0xff] }
  0x9b   : > { %5236 = vmatpush1.bf16.msra.mxu1 %v5235_v12  ;;  %v1369_v43 = vld [vmem:[%s7803_s29 + $0x2110] sm:$0xff]  ;;  %v350_v45 = vld [vmem:[%s7803_s29 + $0x138] sm:$0xff]  ;;  %v1372_v46 = vld [vmem:[%s7803_s29 + $0x2128] sm:$0xff]  ;;  %v5247_v49 = vpack.c.bf16 %v345_v40, %v343_v39 }
  0x9c   : > { %6260 = vmatpush1.bf16.msra.mxu0 %v6259_v13  ;;  %5238 = vmatprep.subr.bf16.mxu1 %v5237_v14  ;;  %v1374_v47 = vld [vmem:[%s7803_s29 + $0x2138] sm:$0xff]  ;;  %v6271_v50 = vpack.c.bf16 %v1369_v43, %v1367_v41  ;;  %v5249_v51 = vpack.c.bf16 %v350_v45, %v348_v44  ;;  %v347_v52 = vld [vmem:[%s7803_s29 + $0x120] sm:$0xff]  ;;  %v349_v53 = vld [vmem:[%s7803_s29 + $0x130] sm:$0xff] }
  0x9d   : > { %6262 = vmatprep.subr.bf16.mxu0 %v6261_v18  ;;  %v1371_v54 = vld [vmem:[%s7803_s29 + $0x2120] sm:$0xff]  ;;  %v6273_v55 = vpack.c.bf16 %v1374_v47, %v1372_v46  ;;  %v1373_v56 = vld [vmem:[%s7803_s29 + $0x2130] sm:$0xff]  ;;  %v352_v57 = vld [vmem:[%s7803_s29 + $0x148] sm:$0xff]  ;;  %v5251_v62 = vpack.c.bf16 %v349_v53, %v347_v52 }
  0x9e   : > { %v354_v58 = vld [vmem:[%s7803_s29 + $0x158] sm:$0xff]  ;;  %v1376_v59 = vld [vmem:[%s7803_s29 + $0x2148] sm:$0xff]  ;;  %v6275_v63 = vpack.c.bf16 %v1373_v56, %v1371_v54  ;;  %v351_v1 = vld [vmem:[%s7803_s29 + $0x140] sm:$0xff] }
  0x9f   : > { %5240 = vmatpush1.bf16.msra.mxu1 %v5239_v24  ;;  %v1378_v60 = vld [vmem:[%s7803_s29 + $0x2158] sm:$0xff]  ;;  %v5253_v0 = vpack.c.bf16 %v354_v58, %v352_v57  ;;  %v353_v2 = vld [vmem:[%s7803_s29 + $0x150] sm:$0xff]  ;;  %v1375_v3 = vld [vmem:[%s7803_s29 + $0x2140] sm:$0xff] }
  0xa0   : > { %6264 = vmatpush1.bf16.msra.mxu0 %v6263_v25  ;;  %5242 = vmatprep.subr.bf16.mxu1 %v5241_v26  ;;  %v6277_v4 = vpack.c.bf16 %v1378_v60, %v1376_v59  ;;  %v1377_v5 = vld [vmem:[%s7803_s29 + $0x2150] sm:$0xff]  ;;  %v356_v6 = vld [vmem:[%s7803_s29 + $0x168] sm:$0xff]  ;;  %v358_v7 = vld [vmem:[%s7803_s29 + $0x178] sm:$0xff]  ;;  %v5255_v11 = vpack.c.bf16 %v353_v2, %v351_v1 }
  0xa1   : > { %6266 = vmatprep.subr.bf16.mxu0 %v6265_v30  ;;  %v1380_v8 = vld [vmem:[%s7803_s29 + $0x2168] sm:$0xff]  ;;  %v1382_v9 = vld [vmem:[%s7803_s29 + $0x2178] sm:$0xff]  ;;  %v355_v12 = vld [vmem:[%s7803_s29 + $0x160] sm:$0xff]  ;;  %v6279_v13 = vpack.c.bf16 %v1377_v5, %v1375_v3  ;;  %v5257_v14 = vpack.c.bf16 %v358_v7, %v356_v6 }
  0xa2   : > { %v357_v15 = vld [vmem:[%s7803_s29 + $0x170] sm:$0xff]  ;;  %v1379_v16 = vld [vmem:[%s7803_s29 + $0x2160] sm:$0xff]  ;;  %v6281_v18 = vpack.c.bf16 %v1382_v9, %v1380_v8  ;;  %v360_v19 = vld [vmem:[%s7803_s29 + $0x188] sm:$0xff] }
  0xa3   : > { %5244 = vmatpush1.bf16.msra.mxu1 %v5243_v36  ;;  %v1381_v17 = vld [vmem:[%s7803_s29 + $0x2170] sm:$0xff]  ;;  %v362_v20 = vld [vmem:[%s7803_s29 + $0x198] sm:$0xff]  ;;  %v1384_v22 = vld [vmem:[%s7803_s29 + $0x2188] sm:$0xff]  ;;  %v5259_v26 = vpack.c.bf16 %v357_v15, %v355_v12 }
  0xa4   : > { %6268 = vmatpush1.bf16.msra.mxu0 %v6267_v37  ;;  %5246 = vmatprep.subr.bf16.mxu1 %v5245_v38  ;;  %v7934_v21 = vld [vmem:[%s7931_s26] ss:$2 sm:$0xff]  ;;  %v6283_v28 = vpack.c.bf16 %v1381_v17, %v1379_v16  ;;  %v5261_v29 = vpack.c.bf16 %v362_v20, %v360_v19  ;;  %v361_v31 = vld [vmem:[%s7803_s29 + $0x190] sm:$0xff] }
  0xa5   : > { %6270 = vmatprep.subr.bf16.mxu0 %v6269_v42  ;;  %v1386_v23 = vld [vmem:[%s7803_s29 + $0x2198] sm:$0xff]  ;;  %v2374_v24 = vrot.slane %v7934_v21, %v7922_v10  ;;  %v359_v30 = vld [vmem:[%s7803_s29 + $0x180] sm:$0xff]  ;;  %v1385_v34 = vld [vmem:[%s7803_s29 + $0x2190] sm:$0xff] }
  0xa6   : > { %v7941_v25 = vld [vmem:[%s7931_s26 + $0x40] ss:$2 sm:$0xff]  ;;  %v6285_v33 = vpack.c.bf16 %v1386_v23, %v1384_v22  ;;  %v5263_v39 = vpack.c.bf16 %v361_v31, %v359_v30  ;;  %v365_v43 = vld [vmem:[%s7803_s29 + $0x1b0] sm:$0xff] }
  0xa7   : > { %5248 = vmatpush1.bf16.msra.mxu1 %v5247_v49  ;;  %v2502_v27 = vrot.slane %v7941_v25, %v7922_v10  ;;  %v1383_v32 = vld [vmem:[%s7803_s29 + $0x2180] sm:$0xff]  ;;  %v364_v35 = vld [vmem:[%s7803_s29 + $0x1a8] sm:$0xff]  ;;  %v366_v36 = vld [vmem:[%s7803_s29 + $0x1b8] sm:$0xff]  ;;  %2751 = vmatprep.mubr.f32.mxu1 %v2374_v24 }
  0xa8   : > { %6272 = vmatpush1.bf16.msra.mxu0 %v6271_v50  ;;  %5250 = vmatprep.subr.bf16.mxu1 %v5249_v51  ;;  %v1388_v37 = vld [vmem:[%s7803_s29 + $0x21a8] sm:$0xff]  ;;  %v1390_v38 = vld [vmem:[%s7803_s29 + $0x21b8] sm:$0xff]  ;;  %v6287_v40 = vpack.c.bf16 %v1385_v34, %v1383_v32  ;;  %v5265_v41 = vpack.c.bf16 %v366_v36, %v364_v35  ;;  %v363_v42 = vld [vmem:[%s7803_s29 + $0x1a0] sm:$0xff] }
  0xa9   : > { %6274 = vmatprep.subr.bf16.mxu0 %v6273_v55  ;;  %3887 = vmatprep.mubr.f32.mxu0 %v2502_v27  ;;  %v1387_v44 = vld [vmem:[%s7803_s29 + $0x21a0] sm:$0xff]  ;;  %v6289_v45 = vpack.c.bf16 %v1390_v38, %v1388_v37  ;;  %v1389_v46 = vld [vmem:[%s7803_s29 + $0x21b0] sm:$0xff]  ;;  %v368_v47 = vld [vmem:[%s7803_s29 + $0x1c8] sm:$0xff]  ;;  %v5267_v52 = vpack.c.bf16 %v365_v43, %v363_v42  ;;  %v7987_v27 = vsub.s32 3, %v7909_v61 }
  0xaa   : > { %v370_v49 = vld [vmem:[%s7803_s29 + $0x1d8] sm:$0xff]  ;;  %v1392_v50 = vld [vmem:[%s7803_s29 + $0x21c8] sm:$0xff]  ;;  %v6291_v53 = vpack.c.bf16 %v1389_v46, %v1387_v44  ;;  %v367_v55 = vld [vmem:[%s7803_s29 + $0x1c0] sm:$0xff] }
  0xab   : > { %5252 = vmatpush1.bf16.msra.mxu1 %v5251_v62  ;;  %v1394_v51 = vld [vmem:[%s7803_s29 + $0x21d8] sm:$0xff]  ;;  %v5269_v54 = vpack.c.bf16 %v370_v49, %v368_v47  ;;  %v369_v56 = vld [vmem:[%s7803_s29 + $0x1d0] sm:$0xff]  ;;  %v1391_v57 = vld [vmem:[%s7803_s29 + $0x21c0] sm:$0xff]  ;;  %v2382_v42 = vrot.slane %v7934_v21, %v7987_v27 }
  0xac   : > { %6276 = vmatpush1.bf16.msra.mxu0 %v6275_v63  ;;  %5254 = vmatprep.subr.bf16.mxu1 %v5253_v0  ;;  %v6293_v58 = vpack.c.bf16 %v1394_v51, %v1392_v50  ;;  %v1393_v59 = vld [vmem:[%s7803_s29 + $0x21d0] sm:$0xff]  ;;  %v372_v60 = vld [vmem:[%s7803_s29 + $0x1e8] sm:$0xff]  ;;  %v374_v62 = vld [vmem:[%s7803_s29 + $0x1f8] sm:$0xff]  ;;  %v5271_v1 = vpack.c.bf16 %v369_v56, %v367_v55 }
  0xad   : > { %6278 = vmatprep.subr.bf16.mxu0 %v6277_v4  ;;  %v1396_v63 = vld [vmem:[%s7803_s29 + $0x21e8] sm:$0xff]  ;;  %v1398_v0 = vld [vmem:[%s7803_s29 + $0x21f8] sm:$0xff]  ;;  %v6295_v2 = vpack.c.bf16 %v1393_v59, %v1391_v57  ;;  %v5273_v3 = vpack.c.bf16 %v374_v62, %v372_v60  ;;  %v371_v4 = vld [vmem:[%s7803_s29 + $0x1e0] sm:$0xff] }
  0xae   : > { %v373_v5 = vld [vmem:[%s7803_s29 + $0x1f0] sm:$0xff]  ;;  %v1395_v6 = vld [vmem:[%s7803_s29 + $0x21e0] sm:$0xff]  ;;  %v6297_v7 = vpack.c.bf16 %v1398_v0, %v1396_v63  ;;  %v376_v9 = vld [vmem:[%s7803_s29 + $0x208] sm:$0xff] }
  0xaf   : > { %5256 = vmatpush1.bf16.msra.mxu1 %v5255_v11  ;;  %v1397_v8 = vld [vmem:[%s7803_s29 + $0x21f0] sm:$0xff]  ;;  %v378_v11 = vld [vmem:[%s7803_s29 + $0x218] sm:$0xff]  ;;  %v1400_v12 = vld [vmem:[%s7803_s29 + $0x2208] sm:$0xff]  ;;  %v5275_v15 = vpack.c.bf16 %v373_v5, %v371_v4 }
  0xb0   : > { %6280 = vmatpush1.bf16.msra.mxu0 %v6279_v13  ;;  %5258 = vmatprep.subr.bf16.mxu1 %v5257_v14  ;;  %v1402_v13 = vld [vmem:[%s7803_s29 + $0x2218] sm:$0xff]  ;;  %v7978_v14 = vsub.s32 0, %v7909_v61  ;;  %v6299_v16 = vpack.c.bf16 %v1397_v8, %v1395_v6  ;;  %v5277_v17 = vpack.c.bf16 %v378_v11, %v376_v9  ;;  %v377_v19 = vld [vmem:[%s7803_s29 + $0x210] sm:$0xff]  ;;  %v1399_v20 = vld [vmem:[%s7803_s29 + $0x2200] sm:$0xff] }
  0xb1   : > { %6282 = vmatprep.subr.bf16.mxu0 %v6281_v18  ;;  %v375_v18 = vld [vmem:[%s7803_s29 + $0x200] sm:$0xff]  ;;  %v6301_v22 = vpack.c.bf16 %v1402_v13, %v1400_v12  ;;  %v1401_v23 = vld [vmem:[%s7803_s29 + $0x2210] sm:$0xff]  ;;  %v380_v24 = vld [vmem:[%s7803_s29 + $0x228] sm:$0xff] }
  0xb2   : > { %v1406_v30 = vld [vmem:[%s7803_s29 + $0x2238] sm:$0xff]  ;;  %v5279_v31 = vpack.c.bf16 %v377_v19, %v375_v18  ;;  %v2498_v32 = vrot.slane %v7941_v25, %v7978_v14  ;;  %v379_v35 = vld [vmem:[%s7803_s29 + $0x220] sm:$0xff]  ;;  %v381_v36 = vld [vmem:[%s7803_s29 + $0x230] sm:$0xff] }
  0xb3   : > { %5260 = vmatpush1.bf16.msra.mxu1 %v5259_v26  ;;  %v382_v26 = vld [vmem:[%s7803_s29 + $0x238] sm:$0xff]  ;;  %v1403_v37 = vld [vmem:[%s7803_s29 + $0x2220] sm:$0xff]  ;;  %v1408_v43 = vld [vmem:[%s7803_s29 + $0x2248] sm:$0xff]  ;;  %v5283_v46 = vpack.c.bf16 %v381_v36, %v379_v35 }
  0xb4   : > { %6284 = vmatpush1.bf16.msra.mxu0 %v6283_v28  ;;  %5262 = vmatprep.subr.bf16.mxu1 %v5261_v29  ;;  %v2370_v28 = vrot.slane %v7934_v21, %v7978_v14  ;;  %v1404_v29 = vld [vmem:[%s7803_s29 + $0x2228] sm:$0xff]  ;;  %v5281_v34 = vpack.c.bf16 %v382_v26, %v380_v24  ;;  %v1410_v44 = vld [vmem:[%s7803_s29 + $0x2258] sm:$0xff]  ;;  %v383_v50 = vld [vmem:[%s7803_s29 + $0x240] sm:$0xff] }
  0xb5   : > { %6286 = vmatprep.subr.bf16.mxu0 %v6285_v33  ;;  %v6303_v33 = vpack.c.bf16 %v1401_v23, %v1399_v20  ;;  %v6305_v38 = vpack.c.bf16 %v1406_v30, %v1404_v29  ;;  %v385_v51 = vld [vmem:[%s7803_s29 + $0x250] sm:$0xff]  ;;  %v388_v55 = vld [vmem:[%s7803_s29 + $0x268] sm:$0xff]  ;;  %v390_v56 = vld [vmem:[%s7803_s29 + $0x278] sm:$0xff] }
  0xb6   : > { %v1412_v57 = vld [vmem:[%s7803_s29 + $0x2268] sm:$0xff]  ;;  %v5287_v59 = vpack.c.bf16 %v385_v51, %v383_v50  ;;  %v5289_v62 = vpack.c.bf16 %v390_v56, %v388_v55  ;;  %v387_v63 = vld [vmem:[%s7803_s29 + $0x260] sm:$0xff]  ;;  %v389_v0 = vld [vmem:[%s7803_s29 + $0x270] sm:$0xff] }
  0xb7   : > { %5264 = vmatpush1.bf16.msra.mxu1 %v5263_v39  ;;  %v1405_v39 = vld [vmem:[%s7803_s29 + $0x2230] sm:$0xff]  ;;  %v392_v4 = vld [vmem:[%s7803_s29 + $0x288] sm:$0xff]  ;;  %v394_v5 = vld [vmem:[%s7803_s29 + $0x298] sm:$0xff]  ;;  %v5291_v8 = vpack.c.bf16 %v389_v0, %v387_v63 }
  0xb8   : > { %6288 = vmatpush1.bf16.msra.mxu0 %v6287_v40  ;;  %5266 = vmatprep.subr.bf16.mxu1 %v5265_v41  ;;  %v384_v40 = vld [vmem:[%s7803_s29 + $0x248] sm:$0xff]  ;;  %v386_v41 = vld [vmem:[%s7803_s29 + $0x258] sm:$0xff]  ;;  %v6307_v47 = vpack.c.bf16 %v1405_v39, %v1403_v37  ;;  %v5293_v11 = vpack.c.bf16 %v394_v5, %v392_v4  ;;  %v391_v12 = vld [vmem:[%s7803_s29 + $0x280] sm:$0xff] }
  0xb9   : > { %6290 = vmatprep.subr.bf16.mxu0 %v6289_v45  ;;  %v2510_v45 = vrot.slane %v7941_v25, %v7987_v27  ;;  %v5285_v49 = vpack.c.bf16 %v386_v41, %v384_v40  ;;  %v1416_v6 = vld [vmem:[%s7803_s29 + $0x2288] sm:$0xff]  ;;  %v393_v13 = vld [vmem:[%s7803_s29 + $0x290] sm:$0xff]  ;;  %v398_v19 = vld [vmem:[%s7803_s29 + $0x2b8] sm:$0xff] }
  0xba   : > { %v396_v18 = vld [vmem:[%s7803_s29 + $0x2a8] sm:$0xff]  ;;  %v5295_v23 = vpack.c.bf16 %v393_v13, %v391_v12  ;;  %v397_v29 = vld [vmem:[%s7803_s29 + $0x2b0] sm:$0xff]  ;;  %v1419_v30 = vld [vmem:[%s7803_s29 + $0x22a0] sm:$0xff] }
  0xbb   : > { %5268 = vmatpush1.bf16.msra.mxu1 %v5267_v52  ;;  %v1407_v52 = vld [vmem:[%s7803_s29 + $0x2240] sm:$0xff]  ;;  %v1420_v20 = vld [vmem:[%s7803_s29 + $0x22a8] sm:$0xff]  ;;  %v5297_v26 = vpack.c.bf16 %v398_v19, %v396_v18  ;;  %v1426_v36 = vld [vmem:[%s7803_s29 + $0x22d8] sm:$0xff] }
  0xbc   : > { %6292 = vmatpush1.bf16.msra.mxu0 %v6291_v53  ;;  %5270 = vmatprep.subr.bf16.mxu1 %v5269_v54  ;;  %v6309_v53 = vpack.c.bf16 %v1410_v44, %v1408_v43  ;;  %v1409_v54 = vld [vmem:[%s7803_s29 + $0x2250] sm:$0xff]  ;;  %v1424_v35 = vld [vmem:[%s7803_s29 + $0x22c8] sm:$0xff]  ;;  %v399_v40 = vld [vmem:[%s7803_s29 + $0x2c0] sm:$0xff] }
  0xbd   : > { %6294 = vmatprep.subr.bf16.mxu0 %v6293_v58  ;;  %v1414_v58 = vld [vmem:[%s7803_s29 + $0x2278] sm:$0xff]  ;;  %v6311_v60 = vpack.c.bf16 %v1409_v54, %v1407_v52  ;;  %v401_v41 = vld [vmem:[%s7803_s29 + $0x2d0] sm:$0xff]  ;;  %v6325_v43 = vpack.c.bf16 %v1426_v36, %v1424_v35  ;;  %v1427_v55 = vld [vmem:[%s7803_s29 + $0x22e0] sm:$0xff] }
  0xbe   : > { %v1425_v44 = vld [vmem:[%s7803_s29 + $0x22d0] sm:$0xff]  ;;  %v5303_v50 = vpack.c.bf16 %v401_v41, %v399_v40  ;;  %v1431_v4 = vld [vmem:[%s7803_s29 + $0x2300] sm:$0xff]  ;;  %v420_v36 = vld [vmem:[%s7803_s29 + $0x368] sm:$0xff] }
  0xbf   : > { %5272 = vmatpush1.bf16.msra.mxu1 %v5271_v1  ;;  %v1411_v1 = vld [vmem:[%s7803_s29 + $0x2260] sm:$0xff]  ;;  %v405_v54 = vld [vmem:[%s7803_s29 + $0x2f0] sm:$0xff] }
  0xc0   : > { %6296 = vmatpush1.bf16.msra.mxu0 %v6295_v2  ;;  %5274 = vmatprep.subr.bf16.mxu1 %v5273_v3  ;;  %v6313_v2 = vpack.c.bf16 %v1414_v58, %v1412_v57  ;;  %v1413_v3 = vld [vmem:[%s7803_s29 + $0x2270] sm:$0xff]  ;;  %v408_v58 = vld [vmem:[%s7803_s29 + $0x308] sm:$0xff]  ;;  %v1435_v18 = vld [vmem:[%s7803_s29 + $0x2320] sm:$0xff] }
  0xc1   : > { %6298 = vmatprep.subr.bf16.mxu0 %v6297_v7  ;;  %v1418_v7 = vld [vmem:[%s7803_s29 + $0x2298] sm:$0xff]  ;;  %v6315_v9 = vpack.c.bf16 %v1413_v3, %v1411_v1  ;;  %v1429_v57 = vld [vmem:[%s7803_s29 + $0x22f0] sm:$0xff] }
  0xc2   : > { %v6331_v0 = vpack.c.bf16 %v1429_v57, %v1427_v55  ;;  %v409_v3 = vld [vmem:[%s7803_s29 + $0x310] sm:$0xff] }
  0xc3   : > { %5276 = vmatpush1.bf16.msra.mxu1 %v5275_v15  ;;  %v1415_v15 = vld [vmem:[%s7803_s29 + $0x2280] sm:$0xff]  ;;  %v1441_v35 = vld [vmem:[%s7803_s29 + $0x2350] sm:$0xff] }
  0xc4   : > { %6300 = vmatpush1.bf16.msra.mxu0 %v6299_v16  ;;  %5278 = vmatprep.subr.bf16.mxu1 %v5277_v17  ;;  %v6317_v16 = vpack.c.bf16 %v1418_v7, %v1416_v6  ;;  %v1417_v17 = vld [vmem:[%s7803_s29 + $0x2290] sm:$0xff]  ;;  %v412_v7 = vld [vmem:[%s7803_s29 + $0x328] sm:$0xff] }
  0xc5   : > { %6302 = vmatprep.subr.bf16.mxu0 %v6301_v22  ;;  %v1422_v22 = vld [vmem:[%s7803_s29 + $0x22b8] sm:$0xff]  ;;  %v6319_v24 = vpack.c.bf16 %v1417_v17, %v1415_v15  ;;  %v1433_v6 = vld [vmem:[%s7803_s29 + $0x2310] sm:$0xff] }
  0xc6   : > { %2752 = vmatmul.mubr.f32.vlgmr.msra.gmra.mrb[0].mxu1 %v2370_v28  ;;  %v395_v28 = vld [vmem:[%s7803_s29 + $0x2a0] sm:$0xff]  ;;  %v6335_v13 = vpack.c.bf16 %v1433_v6, %v1431_v4  ;;  %v413_v17 = vld [vmem:[%s7803_s29 + $0x330] sm:$0xff] }
  0xc7   : > { %5280 = vmatpush1.bf16.msra.mxu1 %v5279_v31  ;;  %3888 = vmatmul.mubr.f32.vlgmr.msra.gmra.mrb[0].mxu0 %v2498_v32  ;;  %v6321_v31 = vpack.c.bf16 %v1422_v22, %v1420_v20  ;;  %v1421_v32 = vld [vmem:[%s7803_s29 + $0x22b0] sm:$0xff]  ;;  %v5299_v37 = vpack.c.bf16 %v397_v29, %v395_v28  ;;  %v416_v22 = vld [vmem:[%s7803_s29 + $0x348] sm:$0xff] }
  0xc8   : > { %6304 = vmatpush1.bf16.msra.mxu0 %v6303_v33  ;;  %5282 = vmatprep.subr.bf16.mxu1 %v5281_v34  ;;  %v400_v33 = vld [vmem:[%s7803_s29 + $0x2c8] sm:$0xff]  ;;  %v402_v34 = vld [vmem:[%s7803_s29 + $0x2d8] sm:$0xff]  ;;  %v1437_v20 = vld [vmem:[%s7803_s29 + $0x2330] sm:$0xff] }
  0xc9   : > { %6306 = vmatprep.subr.bf16.mxu0 %v6305_v38  ;;  %2822 = vmatprep.mubr.f32.mxu1 %v2382_v42  ;;  %v6323_v38 = vpack.c.bf16 %v1421_v32, %v1419_v30  ;;  %v5301_v39 = vpack.c.bf16 %v402_v34, %v400_v33  ;;  %v1423_v42 = vld [vmem:[%s7803_s29 + $0x22c0] sm:$0xff]  ;;  %v6339_v29 = vpack.c.bf16 %v1437_v20, %v1435_v18  ;;  %v417_v32 = vld [vmem:[%s7803_s29 + $0x350] sm:$0xff] }
  0xca   : > { %3958 = vmatprep.mubr.f32.mxu0 %v2510_v45  ;;  %v404_v45 = vld [vmem:[%s7803_s29 + $0x2e8] sm:$0xff]  ;;  %v6327_v51 = vpack.c.bf16 %v1425_v44, %v1423_v42  ;;  %v1439_v33 = vld [vmem:[%s7803_s29 + $0x2340] sm:$0xff]  ;;  %v421_v44 = vld [vmem:[%s7803_s29 + $0x370] sm:$0xff] }
  0xcb   : > { %5284 = vmatpush1.bf16.msra.mxu1 %v5283_v46  ;;  %v406_v46 = vld [vmem:[%s7803_s29 + $0x2f8] sm:$0xff]  ;;  %v6343_v41 = vpack.c.bf16 %v1441_v35, %v1439_v33  ;;  %v425_v57 = vld [vmem:[%s7803_s29 + $0x390] sm:$0xff] }
  0xcc   : > { %6308 = vmatpush1.bf16.msra.mxu0 %v6307_v47  ;;  %5286 = vmatprep.subr.bf16.mxu1 %v5285_v49  ;;  %v1428_v47 = vld [vmem:[%s7803_s29 + $0x22e8] sm:$0xff]  ;;  %v1430_v49 = vld [vmem:[%s7803_s29 + $0x22f8] sm:$0xff]  ;;  %v5305_v52 = vpack.c.bf16 %v406_v46, %v404_v45  ;;  %v1443_v45 = vld [vmem:[%s7803_s29 + $0x2360] sm:$0xff] }
  0xcd   : > { %6310 = vmatprep.subr.bf16.mxu0 %v6309_v53  ;;  %v403_v53 = vld [vmem:[%s7803_s29 + $0x2e0] sm:$0xff]  ;;  %v6329_v56 = vpack.c.bf16 %v1430_v49, %v1428_v47  ;;  %v1445_v47 = vld [vmem:[%s7803_s29 + $0x2370] sm:$0xff]  ;;  %v424_v49 = vld [vmem:[%s7803_s29 + $0x388] sm:$0xff] }
  0xce   : > { %v5307_v63 = vpack.c.bf16 %v405_v54, %v403_v53  ;;  %v6347_v54 = vpack.c.bf16 %v1445_v47, %v1443_v45  ;;  %v429_v6 = vld [vmem:[%s7803_s29 + $0x3b0] sm:$0xff]  ;;  %v439_v47 = vld [vmem:[%s7803_s29 + $0x400] sm:$0xff] }
  0xcf   : > { %5288 = vmatpush1.bf16.msra.mxu1 %v5287_v59  ;;  %v410_v59 = vld [vmem:[%s7803_s29 + $0x318] sm:$0xff]  ;;  %v433_v20 = vld [vmem:[%s7803_s29 + $0x3d0] sm:$0xff] }
  0xd0   : > { %6312 = vmatpush1.bf16.msra.mxu0 %v6311_v60  ;;  %5290 = vmatprep.subr.bf16.mxu1 %v5289_v62  ;;  %v1432_v60 = vld [vmem:[%s7803_s29 + $0x2308] sm:$0xff]  ;;  %v1434_v62 = vld [vmem:[%s7803_s29 + $0x2318] sm:$0xff]  ;;  %v5309_v1 = vpack.c.bf16 %v410_v59, %v408_v58  ;;  %v1447_v58 = vld [vmem:[%s7803_s29 + $0x2380] sm:$0xff] }
  0xd1   : > { %6314 = vmatprep.subr.bf16.mxu0 %v6313_v2  ;;  %v407_v2 = vld [vmem:[%s7803_s29 + $0x300] sm:$0xff]  ;;  %v6333_v5 = vpack.c.bf16 %v1434_v62, %v1432_v60  ;;  %v1449_v60 = vld [vmem:[%s7803_s29 + $0x2390] sm:$0xff]  ;;  %v428_v62 = vld [vmem:[%s7803_s29 + $0x3a8] sm:$0xff] }
  0xd2   : > { %v5311_v12 = vpack.c.bf16 %v409_v3, %v407_v2  ;;  %v6351_v3 = vpack.c.bf16 %v1449_v60, %v1447_v58  ;;  %v437_v35 = vld [vmem:[%s7803_s29 + $0x3f0] sm:$0xff]  ;;  %v1470_v58 = vld [vmem:[%s7803_s29 + $0x2438] sm:$0xff] }
  0xd3   : > { %5292 = vmatpush1.bf16.msra.mxu1 %v5291_v8  ;;  %v414_v8 = vld [vmem:[%s7803_s29 + $0x338] sm:$0xff] }
  0xd4   : > { %6316 = vmatpush1.bf16.msra.mxu0 %v6315_v9  ;;  %5294 = vmatprep.subr.bf16.mxu1 %v5293_v11  ;;  %v1436_v9 = vld [vmem:[%s7803_s29 + $0x2328] sm:$0xff]  ;;  %v1438_v11 = vld [vmem:[%s7803_s29 + $0x2338] sm:$0xff]  ;;  %v5313_v15 = vpack.c.bf16 %v414_v8, %v412_v7  ;;  %v1451_v7 = vld [vmem:[%s7803_s29 + $0x23a0] sm:$0xff] }
  0xd5   : > { %6318 = vmatprep.subr.bf16.mxu0 %v6317_v16  ;;  %v411_v16 = vld [vmem:[%s7803_s29 + $0x320] sm:$0xff]  ;;  %v6337_v19 = vpack.c.bf16 %v1438_v11, %v1436_v9  ;;  %v1453_v9 = vld [vmem:[%s7803_s29 + $0x23b0] sm:$0xff]  ;;  %v432_v11 = vld [vmem:[%s7803_s29 + $0x3c8] sm:$0xff] }
  0xd6   : > { %v5315_v28 = vpack.c.bf16 %v413_v17, %v411_v16  ;;  %v6355_v17 = vpack.c.bf16 %v1453_v9, %v1451_v7  ;;  %v1474_v9 = vld [vmem:[%s7803_s29 + $0x2458] sm:$0xff] }
  0xd7   : > { %5296 = vmatpush1.bf16.msra.mxu1 %v5295_v23  ;;  %v418_v23 = vld [vmem:[%s7803_s29 + $0x358] sm:$0xff] }
  0xd8   : > { %6320 = vmatpush1.bf16.msra.mxu0 %v6319_v24  ;;  %5298 = vmatprep.subr.bf16.mxu1 %v5297_v26  ;;  %v1440_v24 = vld [vmem:[%s7803_s29 + $0x2348] sm:$0xff]  ;;  %v1442_v26 = vld [vmem:[%s7803_s29 + $0x2358] sm:$0xff]  ;;  %v5317_v30 = vpack.c.bf16 %v418_v23, %v416_v22  ;;  %v1455_v22 = vld [vmem:[%s7803_s29 + $0x23c0] sm:$0xff] }
  0xd9   : > { %6322 = vmatprep.subr.bf16.mxu0 %v6321_v31  ;;  %v415_v31 = vld [vmem:[%s7803_s29 + $0x340] sm:$0xff]  ;;  %v6341_v34 = vpack.c.bf16 %v1442_v26, %v1440_v24  ;;  %v1457_v24 = vld [vmem:[%s7803_s29 + $0x23d0] sm:$0xff]  ;;  %v436_v26 = vld [vmem:[%s7803_s29 + $0x3e8] sm:$0xff] }
  0xda   : > { %v5319_v40 = vpack.c.bf16 %v417_v32, %v415_v31  ;;  %v6359_v32 = vpack.c.bf16 %v1457_v24, %v1455_v22  ;;  %v1476_v22 = vld [vmem:[%s7803_s29 + $0x2468] sm:$0xff] }
  0xdb   : > { %5300 = vmatpush1.bf16.msra.mxu1 %v5299_v37  ;;  %v422_v37 = vld [vmem:[%s7803_s29 + $0x378] sm:$0xff] }
  0xdc   : > { %6324 = vmatpush1.bf16.msra.mxu0 %v6323_v38  ;;  %5302 = vmatprep.subr.bf16.mxu1 %v5301_v39  ;;  %v1444_v38 = vld [vmem:[%s7803_s29 + $0x2368] sm:$0xff]  ;;  %v1446_v39 = vld [vmem:[%s7803_s29 + $0x2378] sm:$0xff]  ;;  %v5321_v42 = vpack.c.bf16 %v422_v37, %v420_v36  ;;  %v1459_v36 = vld [vmem:[%s7803_s29 + $0x23e0] sm:$0xff] }
  0xdd   : > { %6326 = vmatprep.subr.bf16.mxu0 %v6325_v43  ;;  %v419_v43 = vld [vmem:[%s7803_s29 + $0x360] sm:$0xff]  ;;  %v6345_v46 = vpack.c.bf16 %v1446_v39, %v1444_v38  ;;  %v1461_v38 = vld [vmem:[%s7803_s29 + $0x23f0] sm:$0xff]  ;;  %v440_v39 = vld [vmem:[%s7803_s29 + $0x408] sm:$0xff] }
  0xde   : > { %v5323_v53 = vpack.c.bf16 %v421_v44, %v419_v43  ;;  %v8120_v43 = vsub.s32 2, %v7909_v61  ;;  %v6363_v45 = vpack.c.bf16 %v1461_v38, %v1459_v36  ;;  %v1480_v36 = vld [vmem:[%s7803_s29 + $0x2488] sm:$0xff] }
  0xdf   : > { %5304 = vmatpush1.bf16.msra.mxu1 %v5303_v50  ;;  %v426_v50 = vld [vmem:[%s7803_s29 + $0x398] sm:$0xff] }
  0xe0   : > { %6328 = vmatpush1.bf16.msra.mxu0 %v6327_v51  ;;  %5306 = vmatprep.subr.bf16.mxu1 %v5305_v52  ;;  %v1448_v51 = vld [vmem:[%s7803_s29 + $0x2388] sm:$0xff]  ;;  %v1450_v52 = vld [vmem:[%s7803_s29 + $0x2398] sm:$0xff]  ;;  %v5325_v55 = vpack.c.bf16 %v426_v50, %v424_v49  ;;  %v441_v49 = vld [vmem:[%s7803_s29 + $0x410] sm:$0xff]  ;;  %v2506_v60 = vrot.slane %v7941_v25, %v8120_v43 }
  0xe1   : > { %6330 = vmatprep.subr.bf16.mxu0 %v6329_v56  ;;  %v423_v56 = vld [vmem:[%s7803_s29 + $0x380] sm:$0xff]  ;;  %v6349_v59 = vpack.c.bf16 %v1450_v52, %v1448_v51  ;;  %v1465_v52 = vld [vmem:[%s7803_s29 + $0x2410] sm:$0xff] }
  0xe2   : > { %v5327_v2 = vpack.c.bf16 %v425_v57, %v423_v56  ;;  %v1463_v50 = vld [vmem:[%s7803_s29 + $0x2400] sm:$0xff]  ;;  %v2378_v56 = vrot.slane %v7934_v21, %v8120_v43  ;;  %v1468_v57 = vld [vmem:[%s7803_s29 + $0x2428] sm:$0xff] }
  0xe3   : > { %5308 = vmatpush1.bf16.msra.mxu1 %v5307_v63  ;;  %v430_v63 = vld [vmem:[%s7803_s29 + $0x3b8] sm:$0xff] }
  0xe4   : > { %6332 = vmatpush1.bf16.msra.mxu0 %v6331_v0  ;;  %5310 = vmatprep.subr.bf16.mxu1 %v5309_v1  ;;  %v1452_v0 = vld [vmem:[%s7803_s29 + $0x23a8] sm:$0xff]  ;;  %v1454_v1 = vld [vmem:[%s7803_s29 + $0x23b8] sm:$0xff]  ;;  %v5329_v4 = vpack.c.bf16 %v430_v63, %v428_v62  ;;  %v6367_v62 = vpack.c.bf16 %v1465_v52, %v1463_v50 }
  0xe5   : > { %6334 = vmatprep.subr.bf16.mxu0 %v6333_v5  ;;  %v427_v5 = vld [vmem:[%s7803_s29 + $0x3a0] sm:$0xff]  ;;  %v6353_v8 = vpack.c.bf16 %v1454_v1, %v1452_v0  ;;  %v445_v1 = vld [vmem:[%s7803_s29 + $0x430] sm:$0xff]  ;;  %v1484_v50 = vld [vmem:[%s7803_s29 + $0x24a8] sm:$0xff] }
  0xe6   : > { %v5331_v16 = vpack.c.bf16 %v429_v6, %v427_v5  ;;  %v443_v0 = vld [vmem:[%s7803_s29 + $0x420] sm:$0xff]  ;;  %v448_v5 = vld [vmem:[%s7803_s29 + $0x448] sm:$0xff]  ;;  %v450_v6 = vld [vmem:[%s7803_s29 + $0x458] sm:$0xff] }
  0xe7   : > { %5312 = vmatpush1.bf16.msra.mxu1 %v5311_v12  ;;  %v434_v12 = vld [vmem:[%s7803_s29 + $0x3d8] sm:$0xff] }
  0xe8   : > { %6336 = vmatpush1.bf16.msra.mxu0 %v6335_v13  ;;  %5314 = vmatprep.subr.bf16.mxu1 %v5313_v15  ;;  %v1456_v13 = vld [vmem:[%s7803_s29 + $0x23c8] sm:$0xff]  ;;  %v1458_v15 = vld [vmem:[%s7803_s29 + $0x23d8] sm:$0xff]  ;;  %v5333_v18 = vpack.c.bf16 %v434_v12, %v432_v11  ;;  %v5347_v12 = vpack.c.bf16 %v445_v1, %v443_v0 }
  0xe9   : > { %6338 = vmatprep.subr.bf16.mxu0 %v6337_v19  ;;  %v431_v19 = vld [vmem:[%s7803_s29 + $0x3c0] sm:$0xff]  ;;  %v6357_v23 = vpack.c.bf16 %v1458_v15, %v1456_v13  ;;  %v5349_v15 = vpack.c.bf16 %v450_v6, %v448_v5  ;;  %v1488_v0 = vld [vmem:[%s7803_s29 + $0x24c8] sm:$0xff]  ;;  %v1490_v1 = vld [vmem:[%s7803_s29 + $0x24d8] sm:$0xff] }
  0xea   : > { %v5335_v31 = vpack.c.bf16 %v433_v20, %v431_v19  ;;  %v1473_v19 = vld [vmem:[%s7803_s29 + $0x2450] sm:$0xff]  ;;  %v452_v20 = vld [vmem:[%s7803_s29 + $0x468] sm:$0xff]  ;;  %v463_v5 = vld [vmem:[%s7803_s29 + $0x4c0] sm:$0xff] }
  0xeb   : > { %5316 = vmatpush1.bf16.msra.mxu1 %v5315_v28  ;;  %v438_v28 = vld [vmem:[%s7803_s29 + $0x3f8] sm:$0xff]  ;;  %v465_v6 = vld [vmem:[%s7803_s29 + $0x4d0] sm:$0xff] }
  0xec   : > { %6340 = vmatpush1.bf16.msra.mxu0 %v6339_v29  ;;  %5318 = vmatprep.subr.bf16.mxu1 %v5317_v30  ;;  %v1460_v29 = vld [vmem:[%s7803_s29 + $0x23e8] sm:$0xff]  ;;  %v1462_v30 = vld [vmem:[%s7803_s29 + $0x23f8] sm:$0xff]  ;;  %v5337_v33 = vpack.c.bf16 %v438_v28, %v436_v26 }
  0xed   : > { %6342 = vmatprep.subr.bf16.mxu0 %v6341_v34  ;;  %v435_v34 = vld [vmem:[%s7803_s29 + $0x3e0] sm:$0xff]  ;;  %v6361_v37 = vpack.c.bf16 %v1462_v30, %v1460_v29  ;;  %v453_v30 = vld [vmem:[%s7803_s29 + $0x470] sm:$0xff] }
  0xee   : > { %v5339_v44 = vpack.c.bf16 %v437_v35, %v435_v34  ;;  %v451_v29 = vld [vmem:[%s7803_s29 + $0x460] sm:$0xff]  ;;  %v456_v34 = vld [vmem:[%s7803_s29 + $0x488] sm:$0xff]  ;;  %v458_v35 = vld [vmem:[%s7803_s29 + $0x498] sm:$0xff] }
  0xef   : > { %5320 = vmatpush1.bf16.msra.mxu1 %v5319_v40  ;;  %v442_v40 = vld [vmem:[%s7803_s29 + $0x418] sm:$0xff]  ;;  %v5355_v38 = vpack.c.bf16 %v453_v30, %v451_v29 }
  0xf0   : > { %6344 = vmatpush1.bf16.msra.mxu0 %v6343_v41  ;;  %5322 = vmatprep.subr.bf16.mxu1 %v5321_v42  ;;  %v1464_v41 = vld [vmem:[%s7803_s29 + $0x2408] sm:$0xff]  ;;  %v1466_v42 = vld [vmem:[%s7803_s29 + $0x2418] sm:$0xff] }
  0xf1   : > { %6346 = vmatprep.subr.bf16.mxu0 %v6345_v46  ;;  %v5341_v46 = vpack.c.bf16 %v442_v40, %v440_v39  ;;  %v6365_v51 = vpack.c.bf16 %v1466_v42, %v1464_v41  ;;  %v5357_v40 = vpack.c.bf16 %v458_v35, %v456_v34  ;;  %v455_v41 = vld [vmem:[%s7803_s29 + $0x480] sm:$0xff]  ;;  %v457_v42 = vld [vmem:[%s7803_s29 + $0x490] sm:$0xff] }
  0xf2   : > { %v5359_v52 = vpack.c.bf16 %v457_v42, %v455_v41  ;;  %v1495_v34 = vld [vmem:[%s7803_s29 + $0x2500] sm:$0xff] }
  0xf3   : > { %5324 = vmatpush1.bf16.msra.mxu1 %v5323_v53  ;;  %v444_v53 = vld [vmem:[%s7803_s29 + $0x428] sm:$0xff] }
  0xf4   : > { %6348 = vmatpush1.bf16.msra.mxu0 %v6347_v54  ;;  %5326 = vmatprep.subr.bf16.mxu1 %v5325_v55  ;;  %v446_v54 = vld [vmem:[%s7803_s29 + $0x438] sm:$0xff]  ;;  %v8129_v55 = vsub.s32 5, %v7909_v61 }
  0xf5   : > { %6350 = vmatprep.subr.bf16.mxu0 %v6349_v59  ;;  %v5343_v59 = vpack.c.bf16 %v441_v49, %v439_v47  ;;  %v5345_v63 = vpack.c.bf16 %v446_v54, %v444_v53  ;;  %v460_v47 = vld [vmem:[%s7803_s29 + $0x4a8] sm:$0xff]  ;;  %v462_v49 = vld [vmem:[%s7803_s29 + $0x4b8] sm:$0xff] }
  0xf6   : > { %v2390_v7 = vrot.slane %v7934_v21, %v8129_v55  ;;  %v2518_v11 = vrot.slane %v7941_v25, %v8129_v55  ;;  %v449_v21 = vld [vmem:[%s7803_s29 + $0x450] sm:$0xff]  ;;  %v454_v25 = vld [vmem:[%s7803_s29 + $0x478] sm:$0xff]  ;;  %v5361_v54 = vpack.c.bf16 %v462_v49, %v460_v47  ;;  %v1499_v47 = vld [vmem:[%s7803_s29 + $0x2520] sm:$0xff] }
  0xf7   : > { %5328 = vmatpush1.bf16.msra.mxu1 %v5327_v2  ;;  %v1467_v2 = vld [vmem:[%s7803_s29 + $0x2420] sm:$0xff]  ;;  %v5353_v28 = vpack.c.bf16 %v454_v25, %v452_v20 }
  0xf8   : > { %6352 = vmatpush1.bf16.msra.mxu0 %v6351_v3  ;;  %5330 = vmatprep.subr.bf16.mxu1 %v5329_v4  ;;  %v6369_v3 = vpack.c.bf16 %v1470_v58, %v1468_v57  ;;  %v1469_v4 = vld [vmem:[%s7803_s29 + $0x2430] sm:$0xff]  ;;  %v1483_v58 = vld [vmem:[%s7803_s29 + $0x24a0] sm:$0xff] }
  0xf9   : > { %6354 = vmatprep.subr.bf16.mxu0 %v6353_v8  ;;  %v1472_v8 = vld [vmem:[%s7803_s29 + $0x2448] sm:$0xff]  ;;  %v6371_v13 = vpack.c.bf16 %v1469_v4, %v1467_v2  ;;  %v461_v57 = vld [vmem:[%s7803_s29 + $0x4b0] sm:$0xff]  ;;  %v1491_v20 = vld [vmem:[%s7803_s29 + $0x24e0] sm:$0xff] }
  0xfb   : > { %5332 = vmatpush1.bf16.msra.mxu1 %v5331_v16  ;;  %v447_v16 = vld [vmem:[%s7803_s29 + $0x440] sm:$0xff] }
  0xfc   : > { %6356 = vmatpush1.bf16.msra.mxu0 %v6355_v17  ;;  %5334 = vmatprep.subr.bf16.mxu1 %v5333_v18  ;;  %v1471_v17 = vld [vmem:[%s7803_s29 + $0x2440] sm:$0xff]  ;;  %v6373_v18 = vpack.c.bf16 %v1474_v9, %v1472_v8  ;;  %v5351_v24 = vpack.c.bf16 %v449_v21, %v447_v16  ;;  %v6389_v8 = vpack.c.bf16 %v1490_v1, %v1488_v0  ;;  %v1489_v9 = vld [vmem:[%s7803_s29 + $0x24d0] sm:$0xff]  ;;  %v484_v1 = vld [vmem:[%s7803_s29 + $0x568] sm:$0xff] }
  0xfd   : > { %6358 = vmatprep.subr.bf16.mxu0 %v6357_v23  ;;  %v1478_v23 = vld [vmem:[%s7803_s29 + $0x2478] sm:$0xff]  ;;  %v6375_v26 = vpack.c.bf16 %v1473_v19, %v1471_v17  ;;  %v5367_v16 = vpack.c.bf16 %v465_v6, %v463_v5  ;;  %v469_v19 = vld [vmem:[%s7803_s29 + $0x4f0] sm:$0xff] }
  0xfe   : > { %v1505_v0 = vld [vmem:[%s7803_s29 + $0x2550] sm:$0xff] }
  0xff   : > { %5336 = vmatpush1.bf16.msra.mxu1 %v5335_v31  ;;  %v1475_v31 = vld [vmem:[%s7803_s29 + $0x2460] sm:$0xff] }
 0x100   : > { %6360 = vmatpush1.bf16.msra.mxu0 %v6359_v32  ;;  %5338 = vmatprep.subr.bf16.mxu1 %v5337_v33  ;;  %v6377_v32 = vpack.c.bf16 %v1478_v23, %v1476_v22  ;;  %v1477_v33 = vld [vmem:[%s7803_s29 + $0x2470] sm:$0xff]  ;;  %v472_v23 = vld [vmem:[%s7803_s29 + $0x508] sm:$0xff] }
 0x101   : > { %6362 = vmatprep.subr.bf16.mxu0 %v6361_v37  ;;  %v1482_v37 = vld [vmem:[%s7803_s29 + $0x2498] sm:$0xff]  ;;  %v6379_v39 = vpack.c.bf16 %v1477_v33, %v1475_v31  ;;  %v1493_v22 = vld [vmem:[%s7803_s29 + $0x24f0] sm:$0xff] }
 0x102   : > { %v6395_v30 = vpack.c.bf16 %v1493_v22, %v1491_v20  ;;  %v473_v33 = vld [vmem:[%s7803_s29 + $0x510] sm:$0xff] }
 0x103   : > { %5340 = vmatpush1.bf16.msra.mxu1 %v5339_v44  ;;  %v1479_v44 = vld [vmem:[%s7803_s29 + $0x2480] sm:$0xff]  ;;  %v489_v22 = vld [vmem:[%s7803_s29 + $0x590] sm:$0xff] }
 0x104   : > { %6364 = vmatpush1.bf16.msra.mxu0 %v6363_v45  ;;  %5342 = vmatprep.subr.bf16.mxu1 %v5341_v46  ;;  %v6381_v45 = vpack.c.bf16 %v1482_v37, %v1480_v36  ;;  %v1481_v46 = vld [vmem:[%s7803_s29 + $0x2490] sm:$0xff]  ;;  %v476_v37 = vld [vmem:[%s7803_s29 + $0x528] sm:$0xff] }
 0x105   : > { %6366 = vmatprep.subr.bf16.mxu0 %v6365_v51  ;;  %v1486_v51 = vld [vmem:[%s7803_s29 + $0x24b8] sm:$0xff]  ;;  %v6383_v53 = vpack.c.bf16 %v1481_v46, %v1479_v44  ;;  %v1497_v36 = vld [vmem:[%s7803_s29 + $0x2510] sm:$0xff] }
 0x106   : > { %2823 = vmatmul.mubr.f32.vlgmr.msra.gmra.mrb[0].mxu1 %v2378_v56  ;;  %v459_v56 = vld [vmem:[%s7803_s29 + $0x4a0] sm:$0xff]  ;;  %v6399_v42 = vpack.c.bf16 %v1497_v36, %v1495_v34  ;;  %v477_v46 = vld [vmem:[%s7803_s29 + $0x530] sm:$0xff] }
 0x107   : > { %5344 = vmatpush1.bf16.msra.mxu1 %v5343_v59  ;;  %3959 = vmatmul.mubr.f32.vlgmr.msra.gmra.mrb[0].mxu0 %v2506_v60  ;;  %v6385_v59 = vpack.c.bf16 %v1486_v51, %v1484_v50  ;;  %v1485_v60 = vld [vmem:[%s7803_s29 + $0x24b0] sm:$0xff]  ;;  %v5363_v2 = vpack.c.bf16 %v461_v57, %v459_v56  ;;  %v480_v51 = vld [vmem:[%s7803_s29 + $0x548] sm:$0xff] }
 0x108   : > { %6368 = vmatpush1.bf16.msra.mxu0 %v6367_v62  ;;  %5346 = vmatprep.subr.bf16.mxu1 %v5345_v63  ;;  %v464_v62 = vld [vmem:[%s7803_s29 + $0x4c8] sm:$0xff]  ;;  %v466_v63 = vld [vmem:[%s7803_s29 + $0x4d8] sm:$0xff]  ;;  %v1501_v50 = vld [vmem:[%s7803_s29 + $0x2530] sm:$0xff] }
 0x109   : > { %6370 = vmatprep.subr.bf16.mxu0 %v6369_v3  ;;  %2893 = vmatprep.mubr.f32.mxu1 %v2390_v7  ;;  %v6387_v3 = vpack.c.bf16 %v1485_v60, %v1483_v58  ;;  %v5365_v4 = vpack.c.bf16 %v466_v63, %v464_v62  ;;  %v1487_v7 = vld [vmem:[%s7803_s29 + $0x24c0] sm:$0xff]  ;;  %v6403_v57 = vpack.c.bf16 %v1501_v50, %v1499_v47  ;;  %v481_v60 = vld [vmem:[%s7803_s29 + $0x550] sm:$0xff] }
 0x10a   : > { %4029 = vmatprep.mubr.f32.mxu0 %v2518_v11  ;;  %v468_v11 = vld [vmem:[%s7803_s29 + $0x4e8] sm:$0xff]  ;;  %v6391_v21 = vpack.c.bf16 %v1489_v9, %v1487_v7  ;;  %v1503_v62 = vld [vmem:[%s7803_s29 + $0x2540] sm:$0xff]  ;;  %v485_v9 = vld [vmem:[%s7803_s29 + $0x570] sm:$0xff] }
 0x10b   : > { %5348 = vmatpush1.bf16.msra.mxu1 %v5347_v12  ;;  %v470_v12 = vld [vmem:[%s7803_s29 + $0x4f8] sm:$0xff]  ;;  %v6407_v6 = vpack.c.bf16 %v1505_v0, %v1503_v62  ;;  %v493_v36 = vld [vmem:[%s7803_s29 + $0x5b0] sm:$0xff] }
 0x10c   : > { %6372 = vmatpush1.bf16.msra.mxu0 %v6371_v13  ;;  %5350 = vmatprep.subr.bf16.mxu1 %v5349_v15  ;;  %v1492_v13 = vld [vmem:[%s7803_s29 + $0x24e8] sm:$0xff]  ;;  %v1494_v15 = vld [vmem:[%s7803_s29 + $0x24f8] sm:$0xff]  ;;  %v5369_v17 = vpack.c.bf16 %v470_v12, %v468_v11  ;;  %v1507_v11 = vld [vmem:[%s7803_s29 + $0x2560] sm:$0xff] }
 0x10d   : > { %6374 = vmatprep.subr.bf16.mxu0 %v6373_v18  ;;  %v467_v18 = vld [vmem:[%s7803_s29 + $0x4e0] sm:$0xff]  ;;  %v6393_v25 = vpack.c.bf16 %v1494_v15, %v1492_v13  ;;  %v1509_v13 = vld [vmem:[%s7803_s29 + $0x2570] sm:$0xff]  ;;  %v488_v15 = vld [vmem:[%s7803_s29 + $0x588] sm:$0xff] }
 0x10e   : > { %v5371_v29 = vpack.c.bf16 %v469_v19, %v467_v18  ;;  %v6411_v19 = vpack.c.bf16 %v1509_v13, %v1507_v11  ;;  %v497_v50 = vld [vmem:[%s7803_s29 + $0x5d0] sm:$0xff]  ;;  %v503_v13 = vld [vmem:[%s7803_s29 + $0x600] sm:$0xff] }
 0x10f   : > { %5352 = vmatpush1.bf16.msra.mxu1 %v5351_v24  ;;  %v474_v24 = vld [vmem:[%s7803_s29 + $0x518] sm:$0xff]  ;;  %v501_v0 = vld [vmem:[%s7803_s29 + $0x5f0] sm:$0xff] }
 0x110   : > { %6376 = vmatpush1.bf16.msra.mxu0 %v6375_v26  ;;  %5354 = vmatprep.subr.bf16.mxu1 %v5353_v28  ;;  %v1496_v26 = vld [vmem:[%s7803_s29 + $0x2508] sm:$0xff]  ;;  %v1498_v28 = vld [vmem:[%s7803_s29 + $0x2518] sm:$0xff]  ;;  %v5373_v31 = vpack.c.bf16 %v474_v24, %v472_v23  ;;  %v1511_v23 = vld [vmem:[%s7803_s29 + $0x2580] sm:$0xff] }
 0x111   : > { %6378 = vmatprep.subr.bf16.mxu0 %v6377_v32  ;;  %v471_v32 = vld [vmem:[%s7803_s29 + $0x500] sm:$0xff]  ;;  %v6397_v35 = vpack.c.bf16 %v1498_v28, %v1496_v26  ;;  %v1513_v26 = vld [vmem:[%s7803_s29 + $0x2590] sm:$0xff]  ;;  %v492_v28 = vld [vmem:[%s7803_s29 + $0x5a8] sm:$0xff] }
 0x112   : > { %v5375_v41 = vpack.c.bf16 %v473_v33, %v471_v32  ;;  %v6415_v33 = vpack.c.bf16 %v1513_v26, %v1511_v23  ;;  %v1532_v23 = vld [vmem:[%s7803_s29 + $0x2628] sm:$0xff] }
 0x113   : > { %5356 = vmatpush1.bf16.msra.mxu1 %v5355_v38  ;;  %v478_v38 = vld [vmem:[%s7803_s29 + $0x538] sm:$0xff] }
 0x114   : > { %6380 = vmatpush1.bf16.msra.mxu0 %v6379_v39  ;;  %5358 = vmatprep.subr.bf16.mxu1 %v5357_v40  ;;  %v1500_v39 = vld [vmem:[%s7803_s29 + $0x2528] sm:$0xff]  ;;  %v1502_v40 = vld [vmem:[%s7803_s29 + $0x2538] sm:$0xff]  ;;  %v5377_v44 = vpack.c.bf16 %v478_v38, %v476_v37  ;;  %v1515_v37 = vld [vmem:[%s7803_s29 + $0x25a0] sm:$0xff] }
 0x115   : > { %6382 = vmatprep.subr.bf16.mxu0 %v6381_v45  ;;  %v475_v45 = vld [vmem:[%s7803_s29 + $0x520] sm:$0xff]  ;;  %v6401_v49 = vpack.c.bf16 %v1502_v40, %v1500_v39  ;;  %v1517_v39 = vld [vmem:[%s7803_s29 + $0x25b0] sm:$0xff]  ;;  %v496_v40 = vld [vmem:[%s7803_s29 + $0x5c8] sm:$0xff] }
 0x116   : > { %v5379_v56 = vpack.c.bf16 %v477_v46, %v475_v45  ;;  %v6419_v46 = vpack.c.bf16 %v1517_v39, %v1515_v37  ;;  %v512_v37 = vld [vmem:[%s7803_s29 + $0x648] sm:$0xff] }
 0x117   : > { %5360 = vmatpush1.bf16.msra.mxu1 %v5359_v52  ;;  %v482_v52 = vld [vmem:[%s7803_s29 + $0x558] sm:$0xff] }
 0x118   : > { %6384 = vmatpush1.bf16.msra.mxu0 %v6383_v53  ;;  %5362 = vmatprep.subr.bf16.mxu1 %v5361_v54  ;;  %v1504_v53 = vld [vmem:[%s7803_s29 + $0x2548] sm:$0xff]  ;;  %v1506_v54 = vld [vmem:[%s7803_s29 + $0x2558] sm:$0xff]  ;;  %v5381_v58 = vpack.c.bf16 %v482_v52, %v480_v51  ;;  %v1519_v51 = vld [vmem:[%s7803_s29 + $0x25c0] sm:$0xff] }
 0x119   : > { %6386 = vmatprep.subr.bf16.mxu0 %v6385_v59  ;;  %v479_v59 = vld [vmem:[%s7803_s29 + $0x540] sm:$0xff]  ;;  %v6405_v63 = vpack.c.bf16 %v1506_v54, %v1504_v53  ;;  %v1521_v53 = vld [vmem:[%s7803_s29 + $0x25d0] sm:$0xff]  ;;  %v500_v54 = vld [vmem:[%s7803_s29 + $0x5e8] sm:$0xff] }
 0x11a   : > { %v5383_v5 = vpack.c.bf16 %v481_v60, %v479_v59  ;;  %v6423_v60 = vpack.c.bf16 %v1521_v53, %v1519_v51  ;;  %v516_v53 = vld [vmem:[%s7803_s29 + $0x668] sm:$0xff] }
 0x11b   : > { %5364 = vmatpush1.bf16.msra.mxu1 %v5363_v2  ;;  %v486_v2 = vld [vmem:[%s7803_s29 + $0x578] sm:$0xff] }
 0x11c   : > { %6388 = vmatpush1.bf16.msra.mxu0 %v6387_v3  ;;  %5366 = vmatprep.subr.bf16.mxu1 %v5365_v4  ;;  %v1508_v3 = vld [vmem:[%s7803_s29 + $0x2568] sm:$0xff]  ;;  %v1510_v4 = vld [vmem:[%s7803_s29 + $0x2578] sm:$0xff]  ;;  %v5385_v7 = vpack.c.bf16 %v486_v2, %v484_v1  ;;  %v1523_v1 = vld [vmem:[%s7803_s29 + $0x25e0] sm:$0xff] }
 0x11d   : > { %6390 = vmatprep.subr.bf16.mxu0 %v6389_v8  ;;  %v483_v8 = vld [vmem:[%s7803_s29 + $0x560] sm:$0xff]  ;;  %v6409_v12 = vpack.c.bf16 %v1510_v4, %v1508_v3  ;;  %v1525_v3 = vld [vmem:[%s7803_s29 + $0x25f0] sm:$0xff]  ;;  %v504_v4 = vld [vmem:[%s7803_s29 + $0x608] sm:$0xff] }
 0x11e   : > { %v5387_v18 = vpack.c.bf16 %v485_v9, %v483_v8  ;;  %v8262_v8 = vsub.s32 4, %v7909_v61  ;;  %v6427_v11 = vpack.c.bf16 %v1525_v3, %v1523_v1  ;;  %v520_v3 = vld [vmem:[%s7803_s29 + $0x688] sm:$0xff] }
 0x11f   : > { %5368 = vmatpush1.bf16.msra.mxu1 %v5367_v16  ;;  %v490_v16 = vld [vmem:[%s7803_s29 + $0x598] sm:$0xff] }
 0x120   : > { %6392 = vmatpush1.bf16.msra.mxu0 %v6391_v21  ;;  %5370 = vmatprep.subr.bf16.mxu1 %v5369_v17  ;;  %v1512_v21 = vld [vmem:[%s7803_s29 + $0x2588] sm:$0xff]  ;;  %v1514_v17 = vld [vmem:[%s7803_s29 + $0x2598] sm:$0xff]  ;;  %v5389_v20 = vpack.c.bf16 %v490_v16, %v488_v15  ;;  %v505_v15 = vld [vmem:[%s7803_s29 + $0x610] sm:$0xff] }
 0x121   : > { %6394 = vmatprep.subr.bf16.mxu0 %v6393_v25  ;;  %v487_v25 = vld [vmem:[%s7803_s29 + $0x580] sm:$0xff]  ;;  %v6413_v24 = vpack.c.bf16 %v1514_v17, %v1512_v21  ;;  %v1529_v17 = vld [vmem:[%s7803_s29 + $0x2610] sm:$0xff]  ;;  %v5407_v26 = vpack.c.bf16 %v505_v15, %v503_v13 }
 0x122   : > { %v5391_v32 = vpack.c.bf16 %v489_v22, %v487_v25  ;;  %v1527_v16 = vld [vmem:[%s7803_s29 + $0x2600] sm:$0xff]  ;;  %v521_v13 = vld [vmem:[%s7803_s29 + $0x690] sm:$0xff] }
 0x123   : > { %5372 = vmatpush1.bf16.msra.mxu1 %v5371_v29  ;;  %v494_v29 = vld [vmem:[%s7803_s29 + $0x5b8] sm:$0xff]  ;;  %v1543_v15 = vld [vmem:[%s7803_s29 + $0x2680] sm:$0xff] }
 0x124   : > { %6396 = vmatpush1.bf16.msra.mxu0 %v6395_v30  ;;  %5374 = vmatprep.subr.bf16.mxu1 %v5373_v31  ;;  %v1516_v30 = vld [vmem:[%s7803_s29 + $0x25a8] sm:$0xff]  ;;  %v1518_v31 = vld [vmem:[%s7803_s29 + $0x25b8] sm:$0xff]  ;;  %v5393_v34 = vpack.c.bf16 %v494_v29, %v492_v28 }
 0x125   : > { %6398 = vmatprep.subr.bf16.mxu0 %v6397_v35  ;;  %v491_v35 = vld [vmem:[%s7803_s29 + $0x5a0] sm:$0xff]  ;;  %v6417_v38 = vpack.c.bf16 %v1518_v31, %v1516_v30  ;;  %v6431_v30 = vpack.c.bf16 %v1529_v17, %v1527_v16  ;;  %v524_v17 = vld [vmem:[%s7803_s29 + $0x6a8] sm:$0xff] }
 0x126   : > { %v5395_v45 = vpack.c.bf16 %v493_v36, %v491_v35  ;;  %v8274_v25 = vld [vmem:[%s7931_s26] ss:$2 sm:$0xff]  ;;  %v1533_v36 = vld [vmem:[%s7803_s29 + $0x2630] sm:$0xff] }
 0x127   : > { %5376 = vmatpush1.bf16.msra.mxu1 %v5375_v41  ;;  %v498_v41 = vld [vmem:[%s7803_s29 + $0x5d8] sm:$0xff]  ;;  %v2386_v22 = vrot.slane %v8274_v25, %v8262_v8 }
 0x128   : > { %6400 = vmatpush1.bf16.msra.mxu0 %v6399_v42  ;;  %5378 = vmatprep.subr.bf16.mxu1 %v5377_v44  ;;  %v1520_v42 = vld [vmem:[%s7803_s29 + $0x25c8] sm:$0xff]  ;;  %v1522_v44 = vld [vmem:[%s7803_s29 + $0x25d8] sm:$0xff]  ;;  %v5397_v47 = vpack.c.bf16 %v498_v41, %v496_v40 }
 0x129   : > { %6402 = vmatprep.subr.bf16.mxu0 %v6401_v49  ;;  %v495_v49 = vld [vmem:[%s7803_s29 + $0x5c0] sm:$0xff]  ;;  %v6421_v52 = vpack.c.bf16 %v1522_v44, %v1520_v42  ;;  %v1536_v40 = vld [vmem:[%s7803_s29 + $0x2648] sm:$0xff]  ;;  %v1538_v41 = vld [vmem:[%s7803_s29 + $0x2658] sm:$0xff] }
 0x12a   : > { %v5399_v59 = vpack.c.bf16 %v497_v50, %v495_v49  ;;  %v8281_v28 = vld [vmem:[%s7931_s26 + $0x40] ss:$2 sm:$0xff]  ;;  %v513_v49 = vld [vmem:[%s7803_s29 + $0x650] sm:$0xff]  ;;  %v6437_v51 = vpack.c.bf16 %v1538_v41, %v1536_v40 }
 0x12b   : > { %5380 = vmatpush1.bf16.msra.mxu1 %v5379_v56  ;;  %v502_v56 = vld [vmem:[%s7803_s29 + $0x5f8] sm:$0xff]  ;;  %v2514_v29 = vrot.slane %v8281_v28, %v8262_v8  ;;  %v1535_v50 = vld [vmem:[%s7803_s29 + $0x2640] sm:$0xff] }
 0x12c   : > { %6404 = vmatpush1.bf16.msra.mxu0 %v6403_v57  ;;  %5382 = vmatprep.subr.bf16.mxu1 %v5381_v58  ;;  %v1524_v57 = vld [vmem:[%s7803_s29 + $0x25e8] sm:$0xff]  ;;  %v1526_v58 = vld [vmem:[%s7803_s29 + $0x25f8] sm:$0xff]  ;;  %v5401_v62 = vpack.c.bf16 %v502_v56, %v500_v54  ;;  %v527_v41 = vld [vmem:[%s7803_s29 + $0x6c0] sm:$0xff] }
 0x12d   : > { %6406 = vmatprep.subr.bf16.mxu0 %v6405_v63  ;;  %v499_v63 = vld [vmem:[%s7803_s29 + $0x5e0] sm:$0xff]  ;;  %v6425_v2 = vpack.c.bf16 %v1526_v58, %v1524_v57  ;;  %v518_v54 = vld [vmem:[%s7803_s29 + $0x678] sm:$0xff]  ;;  %v1540_v56 = vld [vmem:[%s7803_s29 + $0x2668] sm:$0xff] }
 0x12e   : > { %v5403_v9 = vpack.c.bf16 %v501_v0, %v499_v63  ;;  %v1542_v57 = vld [vmem:[%s7803_s29 + $0x2678] sm:$0xff]  ;;  %v517_v63 = vld [vmem:[%s7803_s29 + $0x670] sm:$0xff]  ;;  %v1539_v0 = vld [vmem:[%s7803_s29 + $0x2660] sm:$0xff] }
 0x12f   : > { %5384 = vmatpush1.bf16.msra.mxu1 %v5383_v5  ;;  %v506_v5 = vld [vmem:[%s7803_s29 + $0x618] sm:$0xff]  ;;  %v6441_v1 = vpack.c.bf16 %v1542_v57, %v1540_v56  ;;  %v531_v56 = vld [vmem:[%s7803_s29 + $0x6e0] sm:$0xff]  ;;  %v533_v57 = vld [vmem:[%s7803_s29 + $0x6f0] sm:$0xff] }
 0x130   : > { %6408 = vmatpush1.bf16.msra.mxu0 %v6407_v6  ;;  %5386 = vmatprep.subr.bf16.mxu1 %v5385_v7  ;;  %v1528_v6 = vld [vmem:[%s7803_s29 + $0x2608] sm:$0xff]  ;;  %v1530_v7 = vld [vmem:[%s7803_s29 + $0x2618] sm:$0xff] }
 0x131   : > { %6410 = vmatprep.subr.bf16.mxu0 %v6409_v12  ;;  %v5405_v12 = vpack.c.bf16 %v506_v5, %v504_v4  ;;  %v6429_v21 = vpack.c.bf16 %v1530_v7, %v1528_v6  ;;  %v522_v4 = vld [vmem:[%s7803_s29 + $0x698] sm:$0xff]  ;;  %v1544_v5 = vld [vmem:[%s7803_s29 + $0x2688] sm:$0xff] }
 0x132   : > { %v1546_v6 = vld [vmem:[%s7803_s29 + $0x2698] sm:$0xff] }
 0x133   : > { %5388 = vmatpush1.bf16.msra.mxu1 %v5387_v18  ;;  %v508_v18 = vld [vmem:[%s7803_s29 + $0x628] sm:$0xff]  ;;  %v6445_v16 = vpack.c.bf16 %v1546_v6, %v1544_v5  ;;  %v535_v5 = vld [vmem:[%s7803_s29 + $0x700] sm:$0xff]  ;;  %v537_v6 = vld [vmem:[%s7803_s29 + $0x710] sm:$0xff] }
 0x134   : > { %6412 = vmatpush1.bf16.msra.mxu0 %v6411_v19  ;;  %5390 = vmatprep.subr.bf16.mxu1 %v5389_v20  ;;  %v510_v19 = vld [vmem:[%s7803_s29 + $0x638] sm:$0xff]  ;;  %v8271_v20 = vsub.s32 7, %v7909_v61 }
 0x135   : > { %6414 = vmatprep.subr.bf16.mxu0 %v6413_v24  ;;  %v1534_v24 = vld [vmem:[%s7803_s29 + $0x2638] sm:$0xff]  ;;  %v5409_v31 = vpack.c.bf16 %v510_v19, %v508_v18  ;;  %v1548_v19 = vld [vmem:[%s7803_s29 + $0x26a8] sm:$0xff] }
 0x136   : > { %v6433_v35 = vpack.c.bf16 %v1534_v24, %v1532_v23  ;;  %v2398_v39 = vrot.slane %v8274_v25, %v8271_v20  ;;  %v2526_v42 = vrot.slane %v8281_v28, %v8271_v20  ;;  %v526_v18 = vld [vmem:[%s7803_s29 + $0x6b8] sm:$0xff] }
 0x137   : > { %5392 = vmatpush1.bf16.msra.mxu1 %v5391_v32  ;;  %v507_v32 = vld [vmem:[%s7803_s29 + $0x620] sm:$0xff] }
 0x138   : > { %6416 = vmatpush1.bf16.msra.mxu0 %v6415_v33  ;;  %5394 = vmatprep.subr.bf16.mxu1 %v5393_v34  ;;  %v509_v33 = vld [vmem:[%s7803_s29 + $0x630] sm:$0xff]  ;;  %v1531_v34 = vld [vmem:[%s7803_s29 + $0x2620] sm:$0xff] }
 0x139   : > { %6418 = vmatprep.subr.bf16.mxu0 %v6417_v38  ;;  %v514_v38 = vld [vmem:[%s7803_s29 + $0x658] sm:$0xff]  ;;  %v5411_v44 = vpack.c.bf16 %v509_v33, %v507_v32  ;;  %v1549_v33 = vld [vmem:[%s7803_s29 + $0x26b0] sm:$0xff] }
 0x13b   : > { %5396 = vmatpush1.bf16.msra.mxu1 %v5395_v45  ;;  %v6435_v45 = vpack.c.bf16 %v1533_v36, %v1531_v34  ;;  %v528_v34 = vld [vmem:[%s7803_s29 + $0x6c8] sm:$0xff] }
 0x13c   : > { %6420 = vmatpush1.bf16.msra.mxu0 %v6419_v46  ;;  %5398 = vmatprep.subr.bf16.mxu1 %v5397_v47  ;;  %v5413_v46 = vpack.c.bf16 %v514_v38, %v512_v37  ;;  %v511_v47 = vld [vmem:[%s7803_s29 + $0x640] sm:$0xff]  ;;  %v1552_v36 = vld [vmem:[%s7803_s29 + $0x26c8] sm:$0xff]  ;;  %v1554_v37 = vld [vmem:[%s7803_s29 + $0x26d8] sm:$0xff] }
 0x13d   : > { %6422 = vmatprep.subr.bf16.mxu0 %v6421_v52  ;;  %v1537_v52 = vld [vmem:[%s7803_s29 + $0x2650] sm:$0xff]  ;;  %v5415_v58 = vpack.c.bf16 %v513_v49, %v511_v47  ;;  %v532_v47 = vld [vmem:[%s7803_s29 + $0x6e8] sm:$0xff]  ;;  %v534_v49 = vld [vmem:[%s7803_s29 + $0x6f8] sm:$0xff] }
 0x13f   : > { %5400 = vmatpush1.bf16.msra.mxu1 %v5399_v59  ;;  %v6439_v59 = vpack.c.bf16 %v1537_v52, %v1535_v50  ;;  %v1556_v50 = vld [vmem:[%s7803_s29 + $0x26e8] sm:$0xff] }
 0x140   : > { %6424 = vmatpush1.bf16.msra.mxu0 %v6423_v60  ;;  %5402 = vmatprep.subr.bf16.mxu1 %v5401_v62  ;;  %v5417_v60 = vpack.c.bf16 %v518_v54, %v516_v53  ;;  %v515_v62 = vld [vmem:[%s7803_s29 + $0x660] sm:$0xff]  ;;  %v5433_v54 = vpack.c.bf16 %v534_v49, %v532_v47 }
 0x141   : > { %6426 = vmatprep.subr.bf16.mxu0 %v6425_v2  ;;  %v1541_v2 = vld [vmem:[%s7803_s29 + $0x2670] sm:$0xff]  ;;  %v5419_v7 = vpack.c.bf16 %v517_v63, %v515_v62  ;;  %v536_v62 = vld [vmem:[%s7803_s29 + $0x708] sm:$0xff]  ;;  %v538_v63 = vld [vmem:[%s7803_s29 + $0x718] sm:$0xff] }
 0x143   : > { %5404 = vmatpush1.bf16.msra.mxu1 %v5403_v9  ;;  %v6443_v9 = vpack.c.bf16 %v1541_v2, %v1539_v0  ;;  %v1560_v0 = vld [vmem:[%s7803_s29 + $0x2708] sm:$0xff]  ;;  %v5435_v2 = vpack.c.bf16 %v533_v57, %v531_v56  ;;  %v554_v57 = vld [vmem:[%s7803_s29 + $0x798] sm:$0xff] }
 0x144   : > { %6428 = vmatpush1.bf16.msra.mxu0 %v6427_v11  ;;  %5406 = vmatprep.subr.bf16.mxu1 %v5405_v12  ;;  %v5421_v11 = vpack.c.bf16 %v522_v4, %v520_v3  ;;  %v519_v12 = vld [vmem:[%s7803_s29 + $0x680] sm:$0xff]  ;;  %v5437_v4 = vpack.c.bf16 %v538_v63, %v536_v62  ;;  %v552_v56 = vld [vmem:[%s7803_s29 + $0x788] sm:$0xff] }
 0x145   : > { %6430 = vmatprep.subr.bf16.mxu0 %v6429_v21  ;;  %v1545_v21 = vld [vmem:[%s7803_s29 + $0x2690] sm:$0xff]  ;;  %v5423_v23 = vpack.c.bf16 %v521_v13, %v519_v12  ;;  %v540_v12 = vld [vmem:[%s7803_s29 + $0x728] sm:$0xff]  ;;  %v542_v13 = vld [vmem:[%s7803_s29 + $0x738] sm:$0xff]  ;;  %v5453_v63 = vpack.c.bf16 %v554_v57, %v552_v56 }
 0x146   : > { %2894 = vmatmul.mubr.f32.vlgmr.msra.gmra.mrb[0].mxu1 %v2386_v22  ;;  %v1550_v22 = vld [vmem:[%s7803_s29 + $0x26b8] sm:$0xff]  ;;  %v6447_v24 = vpack.c.bf16 %v1545_v21, %v1543_v15  ;;  %v1564_v15 = vld [vmem:[%s7803_s29 + $0x2728] sm:$0xff]  ;;  %v5439_v21 = vpack.c.bf16 %v537_v6, %v535_v5 }
 0x147   : > { %5408 = vmatpush1.bf16.msra.mxu1 %v5407_v26  ;;  %4030 = vmatmul.mubr.f32.vlgmr.msra.gmra.mrb[0].mxu0 %v2514_v29  ;;  %v5425_v26 = vpack.c.bf16 %v526_v18, %v524_v17  ;;  %v523_v29 = vld [vmem:[%s7803_s29 + $0x6a0] sm:$0xff]  ;;  %v6449_v32 = vpack.c.bf16 %v1550_v22, %v1548_v19  ;;  %v5441_v18 = vpack.c.bf16 %v542_v13, %v540_v12  ;;  %v541_v22 = vld [vmem:[%s7803_s29 + $0x730] sm:$0xff]  ;;  %v556_v5 = vld [vmem:[%s7803_s29 + $0x7a8] sm:$0xff] }
 0x148   : > { %6432 = vmatpush1.bf16.msra.mxu0 %v6431_v30  ;;  %5410 = vmatprep.subr.bf16.mxu1 %v5409_v31  ;;  %v525_v30 = vld [vmem:[%s7803_s29 + $0x6b0] sm:$0xff]  ;;  %v1547_v31 = vld [vmem:[%s7803_s29 + $0x26a0] sm:$0xff]  ;;  %v558_v6 = vld [vmem:[%s7803_s29 + $0x7b8] sm:$0xff] }
 0x149   : > { %6434 = vmatprep.subr.bf16.mxu0 %v6433_v35  ;;  %2964 = vmatprep.mubr.f32.mxu1 %v2398_v39  ;;  %v530_v35 = vld [vmem:[%s7803_s29 + $0x6d8] sm:$0xff]  ;;  %v5427_v38 = vpack.c.bf16 %v525_v30, %v523_v29  ;;  %v6451_v39 = vpack.c.bf16 %v1549_v33, %v1547_v31  ;;  %v539_v19 = vld [vmem:[%s7803_s29 + $0x720] sm:$0xff]  ;;  %v544_v29 = vld [vmem:[%s7803_s29 + $0x748] sm:$0xff]  ;;  %v5457_v13 = vpack.c.bf16 %v558_v6, %v556_v5 }
 0x14a   : > { %4100 = vmatprep.mubr.f32.mxu0 %v2526_v42  ;;  %v5429_v40 = vpack.c.bf16 %v530_v35, %v528_v34  ;;  %v529_v42 = vld [vmem:[%s7803_s29 + $0x6d0] sm:$0xff]  ;;  %v546_v30 = vld [vmem:[%s7803_s29 + $0x758] sm:$0xff]  ;;  %v1568_v31 = vld [vmem:[%s7803_s29 + $0x2748] sm:$0xff]  ;;  %v5443_v33 = vpack.c.bf16 %v541_v22, %v539_v19 }
 0x14b   : > { %5412 = vmatpush1.bf16.msra.mxu1 %v5411_v44  ;;  %v1551_v44 = vld [vmem:[%s7803_s29 + $0x26c0] sm:$0xff]  ;;  %v5431_v52 = vpack.c.bf16 %v529_v42, %v527_v41  ;;  %v5445_v35 = vpack.c.bf16 %v546_v30, %v544_v29  ;;  %v548_v41 = vld [vmem:[%s7803_s29 + $0x768] sm:$0xff]  ;;  %v550_v42 = vld [vmem:[%s7803_s29 + $0x778] sm:$0xff] }
 0x14c   : > { %6436 = vmatpush1.bf16.msra.mxu0 %v6435_v45  ;;  %5414 = vmatprep.subr.bf16.mxu1 %v5413_v46  ;;  %v6453_v45 = vpack.c.bf16 %v1554_v37, %v1552_v36  ;;  %v1553_v46 = vld [vmem:[%s7803_s29 + $0x26d0] sm:$0xff]  ;;  %v543_v36 = vld [vmem:[%s7803_s29 + $0x740] sm:$0xff]  ;;  %v5449_v49 = vpack.c.bf16 %v550_v42, %v548_v41  ;;  %v560_v19 = vld [vmem:[%s7803_s29 + $0x7c8] sm:$0xff] }
 0x14d   : > { %6438 = vmatprep.subr.bf16.mxu0 %v6437_v51  ;;  %v1558_v51 = vld [vmem:[%s7803_s29 + $0x26f8] sm:$0xff]  ;;  %v6455_v53 = vpack.c.bf16 %v1553_v46, %v1551_v44  ;;  %v545_v37 = vld [vmem:[%s7803_s29 + $0x750] sm:$0xff]  ;;  %v1572_v44 = vld [vmem:[%s7803_s29 + $0x2768] sm:$0xff] }
 0x14e   : > { %v5447_v46 = vpack.c.bf16 %v545_v37, %v543_v36  ;;  %v562_v22 = vld [vmem:[%s7803_s29 + $0x7d8] sm:$0xff]  ;;  %v564_v36 = vld [vmem:[%s7803_s29 + $0x7e8] sm:$0xff] }
 0x14f   : > { %5416 = vmatpush1.bf16.msra.mxu1 %v5415_v58  ;;  %v1555_v58 = vld [vmem:[%s7803_s29 + $0x26e0] sm:$0xff]  ;;  %v5461_v30 = vpack.c.bf16 %v562_v22, %v560_v19  ;;  %v566_v37 = vld [vmem:[%s7803_s29 + $0x7f8] sm:$0xff]  ;;  %v1600_v22 = vld [vmem:[%s7803_s29 + $0x2848] sm:$0xff] }
 0x150   : > { %6440 = vmatpush1.bf16.msra.mxu0 %v6439_v59  ;;  %5418 = vmatprep.subr.bf16.mxu1 %v5417_v60  ;;  %v6457_v59 = vpack.c.bf16 %v1558_v51, %v1556_v50  ;;  %v1557_v60 = vld [vmem:[%s7803_s29 + $0x26f0] sm:$0xff]  ;;  %v547_v50 = vld [vmem:[%s7803_s29 + $0x760] sm:$0xff]  ;;  %v5465_v42 = vpack.c.bf16 %v566_v37, %v564_v36  ;;  %v1598_v5 = vld [vmem:[%s7803_s29 + $0x2838] sm:$0xff] }
 0x151   : > { %6442 = vmatprep.subr.bf16.mxu0 %v6441_v1  ;;  %v1562_v1 = vld [vmem:[%s7803_s29 + $0x2718] sm:$0xff]  ;;  %v6459_v3 = vpack.c.bf16 %v1557_v60, %v1555_v58  ;;  %v549_v51 = vld [vmem:[%s7803_s29 + $0x770] sm:$0xff]  ;;  %v1576_v58 = vld [vmem:[%s7803_s29 + $0x2788] sm:$0xff] }
 0x152   : > { %v5451_v60 = vpack.c.bf16 %v549_v51, %v547_v50  ;;  %v568_v50 = vld [vmem:[%s7803_s29 + $0x808] sm:$0xff]  ;;  %v570_v51 = vld [vmem:[%s7803_s29 + $0x818] sm:$0xff] }
 0x153   : > { %5420 = vmatpush1.bf16.msra.mxu1 %v5419_v7  ;;  %v1559_v7 = vld [vmem:[%s7803_s29 + $0x2700] sm:$0xff]  ;;  %v8423_v6 = vld [vmem:[%s7931_s26 + $0x10] ss:$2 sm:$0xff] }
 0x154   : > { %6444 = vmatpush1.bf16.msra.mxu0 %v6443_v9  ;;  %5422 = vmatprep.subr.bf16.mxu1 %v5421_v11  ;;  %v6461_v9 = vpack.c.bf16 %v1562_v1, %v1560_v0  ;;  %v1561_v11 = vld [vmem:[%s7803_s29 + $0x2710] sm:$0xff]  ;;  %v551_v0 = vld [vmem:[%s7803_s29 + $0x780] sm:$0xff]  ;;  %v578_v19 = vld [vmem:[%s7803_s29 + $0x858] sm:$0xff] }
 0x155   : > { %6446 = vmatprep.subr.bf16.mxu0 %v6445_v16  ;;  %v1566_v16 = vld [vmem:[%s7803_s29 + $0x2738] sm:$0xff]  ;;  %v6463_v17 = vpack.c.bf16 %v1561_v11, %v1559_v7  ;;  %v553_v1 = vld [vmem:[%s7803_s29 + $0x790] sm:$0xff]  ;;  %v1580_v7 = vld [vmem:[%s7803_s29 + $0x27a8] sm:$0xff] }
 0x156   : > { %v5455_v11 = vpack.c.bf16 %v553_v1, %v551_v0  ;;  %v1593_v0 = vld [vmem:[%s7803_s29 + $0x2810] sm:$0xff]  ;;  %v572_v1 = vld [vmem:[%s7803_s29 + $0x828] sm:$0xff]  ;;  %v582_v37 = vld [vmem:[%s7803_s29 + $0x878] sm:$0xff] }
 0x157   : > { %5424 = vmatpush1.bf16.msra.mxu1 %v5423_v23  ;;  %v1563_v23 = vld [vmem:[%s7803_s29 + $0x2720] sm:$0xff]  ;;  %v580_v36 = vld [vmem:[%s7803_s29 + $0x868] sm:$0xff] }
 0x158   : > { %6448 = vmatpush1.bf16.msra.mxu0 %v6447_v24  ;;  %5426 = vmatprep.subr.bf16.mxu1 %v5425_v26  ;;  %v6465_v24 = vpack.c.bf16 %v1566_v16, %v1564_v15  ;;  %v1565_v26 = vld [vmem:[%s7803_s29 + $0x2730] sm:$0xff]  ;;  %v555_v15 = vld [vmem:[%s7803_s29 + $0x7a0] sm:$0xff] }
 0x159   : > { %6450 = vmatprep.subr.bf16.mxu0 %v6449_v32  ;;  %v1570_v32 = vld [vmem:[%s7803_s29 + $0x2758] sm:$0xff]  ;;  %v6467_v34 = vpack.c.bf16 %v1565_v26, %v1563_v23  ;;  %v557_v16 = vld [vmem:[%s7803_s29 + $0x7b0] sm:$0xff]  ;;  %v1584_v23 = vld [vmem:[%s7803_s29 + $0x27c8] sm:$0xff] }
 0x15a   : > { %v5459_v26 = vpack.c.bf16 %v557_v16, %v555_v15  ;;  %v573_v15 = vld [vmem:[%s7803_s29 + $0x830] sm:$0xff]  ;;  %v1595_v16 = vld [vmem:[%s7803_s29 + $0x2820] sm:$0xff] }
 0x15b   : > { %5428 = vmatpush1.bf16.msra.mxu1 %v5427_v38  ;;  %v1567_v38 = vld [vmem:[%s7803_s29 + $0x2740] sm:$0xff] }
 0x15c   : > { %6452 = vmatpush1.bf16.msra.mxu0 %v6451_v39  ;;  %5430 = vmatprep.subr.bf16.mxu1 %v5429_v40  ;;  %v6469_v39 = vpack.c.bf16 %v1570_v32, %v1568_v31  ;;  %v1569_v40 = vld [vmem:[%s7803_s29 + $0x2750] sm:$0xff]  ;;  %v559_v31 = vld [vmem:[%s7803_s29 + $0x7c0] sm:$0xff] }
 0x15d   : > { %6454 = vmatprep.subr.bf16.mxu0 %v6453_v45  ;;  %v1574_v45 = vld [vmem:[%s7803_s29 + $0x2778] sm:$0xff]  ;;  %v6471_v47 = vpack.c.bf16 %v1569_v40, %v1567_v38  ;;  %v561_v32 = vld [vmem:[%s7803_s29 + $0x7d0] sm:$0xff]  ;;  %v1588_v38 = vld [vmem:[%s7803_s29 + $0x27e8] sm:$0xff] }
 0x15e   : > { %v5463_v40 = vpack.c.bf16 %v561_v32, %v559_v31  ;;  %v575_v31 = vld [vmem:[%s7803_s29 + $0x840] sm:$0xff]  ;;  %v577_v32 = vld [vmem:[%s7803_s29 + $0x850] sm:$0xff] }
 0x15f   : > { %5432 = vmatpush1.bf16.msra.mxu1 %v5431_v52  ;;  %v1571_v52 = vld [vmem:[%s7803_s29 + $0x2760] sm:$0xff] }
 0x160   : > { %6456 = vmatpush1.bf16.msra.mxu0 %v6455_v53  ;;  %5434 = vmatprep.subr.bf16.mxu1 %v5433_v54  ;;  %v6473_v53 = vpack.c.bf16 %v1574_v45, %v1572_v44  ;;  %v1573_v54 = vld [vmem:[%s7803_s29 + $0x2770] sm:$0xff]  ;;  %v563_v44 = vld [vmem:[%s7803_s29 + $0x7e0] sm:$0xff] }
 0x161   : > { %6458 = vmatprep.subr.bf16.mxu0 %v6457_v59  ;;  %v1578_v59 = vld [vmem:[%s7803_s29 + $0x2798] sm:$0xff]  ;;  %v6475_v62 = vpack.c.bf16 %v1573_v54, %v1571_v52  ;;  %v565_v45 = vld [vmem:[%s7803_s29 + $0x7f0] sm:$0xff]  ;;  %v1592_v52 = vld [vmem:[%s7803_s29 + $0x2808] sm:$0xff]  ;;  %v8410_v54 = vsub.s32 6, %v7909_v61 }
 0x162   : > { %v5467_v56 = vpack.c.bf16 %v565_v45, %v563_v44  ;;  %v579_v44 = vld [vmem:[%s7803_s29 + $0x860] sm:$0xff]  ;;  %v581_v45 = vld [vmem:[%s7803_s29 + $0x870] sm:$0xff] }
 0x163   : > { %5436 = vmatpush1.bf16.msra.mxu1 %v5435_v2  ;;  %v1575_v2 = vld [vmem:[%s7803_s29 + $0x2780] sm:$0xff] }
 0x164   : > { %6460 = vmatpush1.bf16.msra.mxu0 %v6459_v3  ;;  %5438 = vmatprep.subr.bf16.mxu1 %v5437_v4  ;;  %v6477_v3 = vpack.c.bf16 %v1578_v59, %v1576_v58  ;;  %v1577_v4 = vld [vmem:[%s7803_s29 + $0x2790] sm:$0xff]  ;;  %v5469_v58 = vpack.c.bf16 %v570_v51, %v568_v50  ;;  %v567_v59 = vld [vmem:[%s7803_s29 + $0x800] sm:$0xff]  ;;  %v584_v50 = vld [vmem:[%s7803_s29 + $0x888] sm:$0xff] }
 0x165   : > { %6462 = vmatprep.subr.bf16.mxu0 %v6461_v9  ;;  %v1582_v9 = vld [vmem:[%s7803_s29 + $0x27b8] sm:$0xff]  ;;  %v6479_v12 = vpack.c.bf16 %v1577_v4, %v1575_v2  ;;  %v1596_v4 = vld [vmem:[%s7803_s29 + $0x2828] sm:$0xff] }
 0x166   : > { %v574_v2 = vld [vmem:[%s7803_s29 + $0x838] sm:$0xff] }
 0x167   : > { %5440 = vmatpush1.bf16.msra.mxu1 %v5439_v21  ;;  %v1579_v21 = vld [vmem:[%s7803_s29 + $0x27a0] sm:$0xff]  ;;  %v586_v51 = vld [vmem:[%s7803_s29 + $0x898] sm:$0xff] }
 0x168   : > { %6464 = vmatpush1.bf16.msra.mxu0 %v6463_v17  ;;  %5442 = vmatprep.subr.bf16.mxu1 %v5441_v18  ;;  %v6481_v17 = vpack.c.bf16 %v1582_v9, %v1580_v7  ;;  %v1581_v18 = vld [vmem:[%s7803_s29 + $0x27b0] sm:$0xff]  ;;  %v2522_v9 = vrot.slane %v8281_v28, %v8410_v54  ;;  %v2406_v28 = vrot.slane %v8423_v6, %v7922_v10 }
 0x169   : > { %6466 = vmatprep.subr.bf16.mxu0 %v6465_v24  ;;  %v1586_v24 = vld [vmem:[%s7803_s29 + $0x27d8] sm:$0xff]  ;;  %v6483_v29 = vpack.c.bf16 %v1581_v18, %v1579_v21  ;;  %v6497_v21 = vpack.c.bf16 %v1598_v5, %v1596_v4  ;;  %v576_v18 = vld [vmem:[%s7803_s29 + $0x848] sm:$0xff] }
 0x16a   : > { %v1614_v4 = vld [vmem:[%s7803_s29 + $0x28b8] sm:$0xff] }
 0x16b   : > { %5444 = vmatpush1.bf16.msra.mxu1 %v5443_v33  ;;  %v1583_v33 = vld [vmem:[%s7803_s29 + $0x27c0] sm:$0xff] }
 0x16c   : > { %6468 = vmatpush1.bf16.msra.mxu0 %v6467_v34  ;;  %5446 = vmatprep.subr.bf16.mxu1 %v5445_v35  ;;  %v6485_v34 = vpack.c.bf16 %v1586_v24, %v1584_v23  ;;  %v1585_v35 = vld [vmem:[%s7803_s29 + $0x27d0] sm:$0xff]  ;;  %v1602_v23 = vld [vmem:[%s7803_s29 + $0x2858] sm:$0xff] }
 0x16d   : > { %6470 = vmatprep.subr.bf16.mxu0 %v6469_v39  ;;  %v1590_v39 = vld [vmem:[%s7803_s29 + $0x27f8] sm:$0xff]  ;;  %v6487_v41 = vpack.c.bf16 %v1585_v35, %v1583_v33  ;;  %v1599_v33 = vld [vmem:[%s7803_s29 + $0x2840] sm:$0xff]  ;;  %v1601_v35 = vld [vmem:[%s7803_s29 + $0x2850] sm:$0xff] }
 0x16f   : > { %5448 = vmatpush1.bf16.msra.mxu1 %v5447_v46  ;;  %v1587_v46 = vld [vmem:[%s7803_s29 + $0x27e0] sm:$0xff] }
 0x170   : > { %6472 = vmatpush1.bf16.msra.mxu0 %v6471_v47  ;;  %5450 = vmatprep.subr.bf16.mxu1 %v5449_v49  ;;  %v6489_v47 = vpack.c.bf16 %v1590_v39, %v1588_v38  ;;  %v1589_v49 = vld [vmem:[%s7803_s29 + $0x27f0] sm:$0xff]  ;;  %v1604_v38 = vld [vmem:[%s7803_s29 + $0x2868] sm:$0xff]  ;;  %v1606_v39 = vld [vmem:[%s7803_s29 + $0x2878] sm:$0xff] }
 0x171   : > { %6474 = vmatprep.subr.bf16.mxu0 %v6473_v53  ;;  %v1594_v53 = vld [vmem:[%s7803_s29 + $0x2818] sm:$0xff]  ;;  %v6491_v57 = vpack.c.bf16 %v1589_v49, %v1587_v46  ;;  %v1603_v46 = vld [vmem:[%s7803_s29 + $0x2860] sm:$0xff]  ;;  %v1605_v49 = vld [vmem:[%s7803_s29 + $0x2870] sm:$0xff] }
 0x173   : > { %5452 = vmatpush1.bf16.msra.mxu1 %v5451_v60  ;;  %v569_v60 = vld [vmem:[%s7803_s29 + $0x810] sm:$0xff] }
 0x174   : > { %6476 = vmatpush1.bf16.msra.mxu0 %v6475_v62  ;;  %5454 = vmatprep.subr.bf16.mxu1 %v5453_v63  ;;  %v1591_v62 = vld [vmem:[%s7803_s29 + $0x2800] sm:$0xff]  ;;  %v6493_v63 = vpack.c.bf16 %v1594_v53, %v1592_v52  ;;  %v5471_v7 = vpack.c.bf16 %v569_v60, %v567_v59  ;;  %v1608_v52 = vld [vmem:[%s7803_s29 + $0x2888] sm:$0xff]  ;;  %v1610_v53 = vld [vmem:[%s7803_s29 + $0x2898] sm:$0xff] }
 0x175   : > { %6478 = vmatprep.subr.bf16.mxu0 %v6477_v3  ;;  %v2394_v3 = vrot.slane %v8274_v25, %v8410_v54  ;;  %v5473_v25 = vpack.c.bf16 %v574_v2, %v572_v1  ;;  %v583_v59 = vld [vmem:[%s7803_s29 + $0x880] sm:$0xff]  ;;  %v585_v60 = vld [vmem:[%s7803_s29 + $0x890] sm:$0xff]  ;;  %v588_v1 = vld [vmem:[%s7803_s29 + $0x8a8] sm:$0xff] }
 0x176   : > { %v590_v2 = vld [vmem:[%s7803_s29 + $0x8b8] sm:$0xff]  ;;  %v5487_v5 = vpack.c.bf16 %v585_v60, %v583_v59  ;;  %v1625_v59 = vld [vmem:[%s7803_s29 + $0x2910] sm:$0xff]  ;;  %v604_v60 = vld [vmem:[%s7803_s29 + $0x928] sm:$0xff] }
 0x177   : > { %5456 = vmatpush1.bf16.msra.mxu1 %v5455_v11  ;;  %v8428_v11 = vld [vmem:[%s7931_s26 + $0x50] ss:$2 sm:$0xff] }
 0x178   : > { %6480 = vmatpush1.bf16.msra.mxu0 %v6479_v12  ;;  %5458 = vmatprep.subr.bf16.mxu1 %v5457_v13  ;;  %v6495_v12 = vpack.c.bf16 %v1593_v0, %v1591_v62  ;;  %v571_v13 = vld [vmem:[%s7803_s29 + $0x820] sm:$0xff]  ;;  %v2534_v24 = vrot.slane %v8428_v11, %v7922_v10  ;;  %v1609_v0 = vld [vmem:[%s7803_s29 + $0x2890] sm:$0xff] }
 0x179   : > { %6482 = vmatprep.subr.bf16.mxu0 %v6481_v17  ;;  %v1597_v17 = vld [vmem:[%s7803_s29 + $0x2830] sm:$0xff]  ;;  %v1607_v62 = vld [vmem:[%s7803_s29 + $0x2880] sm:$0xff] }
 0x17b   : > { %5460 = vmatpush1.bf16.msra.mxu1 %v5459_v26  ;;  %v5475_v26 = vpack.c.bf16 %v573_v15, %v571_v13  ;;  %v1611_v13 = vld [vmem:[%s7803_s29 + $0x28a0] sm:$0xff] }
 0x17c   : > { %6484 = vmatpush1.bf16.msra.mxu0 %v6483_v29  ;;  %5462 = vmatprep.subr.bf16.mxu1 %v5461_v30  ;;  %v6499_v29 = vpack.c.bf16 %v1597_v17, %v1595_v16  ;;  %v5477_v30 = vpack.c.bf16 %v578_v19, %v576_v18  ;;  %v1613_v16 = vld [vmem:[%s7803_s29 + $0x28b0] sm:$0xff]  ;;  %v594_v17 = vld [vmem:[%s7803_s29 + $0x8d8] sm:$0xff]  ;;  %v1616_v18 = vld [vmem:[%s7803_s29 + $0x28c8] sm:$0xff] }
 0x17d   : > { %6486 = vmatprep.subr.bf16.mxu0 %v6485_v34  ;;  %v6501_v34 = vpack.c.bf16 %v1602_v23, %v1600_v22  ;;  %v1618_v19 = vld [vmem:[%s7803_s29 + $0x28d8] sm:$0xff]  ;;  %v6515_v22 = vpack.c.bf16 %v1613_v16, %v1611_v13 }
 0x17e   : > { %v610_v13 = vld [vmem:[%s7803_s29 + $0x958] sm:$0xff] }
 0x17f   : > { %5464 = vmatpush1.bf16.msra.mxu1 %v5463_v40  ;;  %v5479_v40 = vpack.c.bf16 %v577_v32, %v575_v31  ;;  %v1617_v31 = vld [vmem:[%s7803_s29 + $0x28d0] sm:$0xff]  ;;  %v596_v32 = vld [vmem:[%s7803_s29 + $0x8e8] sm:$0xff]  ;;  %v1634_v16 = vld [vmem:[%s7803_s29 + $0x2958] sm:$0xff] }
 0x180   : > { %6488 = vmatpush1.bf16.msra.mxu0 %v6487_v41  ;;  %5466 = vmatprep.subr.bf16.mxu1 %v5465_v42  ;;  %v6503_v41 = vpack.c.bf16 %v1601_v35, %v1599_v33  ;;  %v5481_v42 = vpack.c.bf16 %v582_v37, %v580_v36  ;;  %v598_v33 = vld [vmem:[%s7803_s29 + $0x8f8] sm:$0xff] }
 0x181   : > { %6490 = vmatprep.subr.bf16.mxu0 %v6489_v47  ;;  %v6505_v47 = vpack.c.bf16 %v1606_v39, %v1604_v38  ;;  %v1622_v35 = vld [vmem:[%s7803_s29 + $0x28f8] sm:$0xff]  ;;  %v5497_v38 = vpack.c.bf16 %v598_v33, %v596_v32  ;;  %v595_v39 = vld [vmem:[%s7803_s29 + $0x8e0] sm:$0xff] }
 0x183   : > { %5468 = vmatpush1.bf16.msra.mxu1 %v5467_v56  ;;  %v5483_v56 = vpack.c.bf16 %v581_v45, %v579_v44  ;;  %v1621_v44 = vld [vmem:[%s7803_s29 + $0x28f0] sm:$0xff]  ;;  %v600_v45 = vld [vmem:[%s7803_s29 + $0x908] sm:$0xff] }
 0x184   : > { %6492 = vmatpush1.bf16.msra.mxu0 %v6491_v57  ;;  %5470 = vmatprep.subr.bf16.mxu1 %v5469_v58  ;;  %v6507_v57 = vpack.c.bf16 %v1605_v49, %v1603_v46  ;;  %v5485_v58 = vpack.c.bf16 %v586_v51, %v584_v50  ;;  %v602_v46 = vld [vmem:[%s7803_s29 + $0x918] sm:$0xff] }
 0x185   : > { %6494 = vmatprep.subr.bf16.mxu0 %v6493_v63  ;;  %v6509_v63 = vpack.c.bf16 %v1610_v53, %v1608_v52  ;;  %v1626_v49 = vld [vmem:[%s7803_s29 + $0x2918] sm:$0xff]  ;;  %v5501_v52 = vpack.c.bf16 %v602_v46, %v600_v45  ;;  %v599_v53 = vld [vmem:[%s7803_s29 + $0x900] sm:$0xff] }
 0x186   : > { %2965 = vmatmul.mubr.f32.vlgmr.msra.gmra.mrb[0].mxu1 %v2394_v3  ;;  %v1612_v3 = vld [vmem:[%s7803_s29 + $0x28a8] sm:$0xff] }
 0x187   : > { %5472 = vmatpush1.bf16.msra.mxu1 %v5471_v7  ;;  %4101 = vmatmul.mubr.f32.vlgmr.msra.gmra.mrb[0].mxu0 %v2522_v9  ;;  %v6511_v7 = vpack.c.bf16 %v1609_v0, %v1607_v62  ;;  %v5489_v9 = vpack.c.bf16 %v590_v2, %v588_v1  ;;  %v6513_v15 = vpack.c.bf16 %v1614_v4, %v1612_v3  ;;  %v606_v62 = vld [vmem:[%s7803_s29 + $0x938] sm:$0xff]  ;;  %v603_v4 = vld [vmem:[%s7803_s29 + $0x920] sm:$0xff] }
 0x188   : > { %6496 = vmatpush1.bf16.msra.mxu0 %v6495_v12  ;;  %5474 = vmatprep.subr.bf16.mxu1 %v5473_v25  ;;  %v587_v12 = vld [vmem:[%s7803_s29 + $0x8a0] sm:$0xff]  ;;  %v589_v25 = vld [vmem:[%s7803_s29 + $0x8b0] sm:$0xff]  ;;  %v1630_v0 = vld [vmem:[%s7803_s29 + $0x2938] sm:$0xff]  ;;  %v5505_v3 = vpack.c.bf16 %v606_v62, %v604_v60 }
 0x189   : > { %6498 = vmatprep.subr.bf16.mxu0 %v6497_v21  ;;  %3035 = vmatprep.mubr.f32.mxu1 %v2406_v28  ;;  %v592_v21 = vld [vmem:[%s7803_s29 + $0x8c8] sm:$0xff]  ;;  %v5491_v28 = vpack.c.bf16 %v589_v25, %v587_v12  ;;  %v1629_v12 = vld [vmem:[%s7803_s29 + $0x2930] sm:$0xff] }
 0x18a   : > { %4171 = vmatprep.mubr.f32.mxu0 %v2534_v24  ;;  %v5493_v23 = vpack.c.bf16 %v594_v17, %v592_v21  ;;  %v591_v24 = vld [vmem:[%s7803_s29 + $0x8c0] sm:$0xff]  ;;  %v608_v25 = vld [vmem:[%s7803_s29 + $0x948] sm:$0xff] }
 0x18b   : > { %5476 = vmatpush1.bf16.msra.mxu1 %v5475_v26  ;;  %v593_v26 = vld [vmem:[%s7803_s29 + $0x8d0] sm:$0xff] }
 0x18c   : > { %6500 = vmatpush1.bf16.msra.mxu0 %v6499_v29  ;;  %5478 = vmatprep.subr.bf16.mxu1 %v5477_v30  ;;  %v1615_v29 = vld [vmem:[%s7803_s29 + $0x28c0] sm:$0xff]  ;;  %v6517_v30 = vpack.c.bf16 %v1618_v19, %v1616_v18  ;;  %v5495_v36 = vpack.c.bf16 %v593_v26, %v591_v24  ;;  %v5509_v18 = vpack.c.bf16 %v610_v13, %v608_v25  ;;  %v1633_v24 = vld [vmem:[%s7803_s29 + $0x2950] sm:$0xff]  ;;  %v612_v26 = vld [vmem:[%s7803_s29 + $0x968] sm:$0xff] }
 0x18d   : > { %6502 = vmatprep.subr.bf16.mxu0 %v6501_v34  ;;  %v1620_v34 = vld [vmem:[%s7803_s29 + $0x28e8] sm:$0xff]  ;;  %v6519_v37 = vpack.c.bf16 %v1617_v31, %v1615_v29  ;;  %v607_v19 = vld [vmem:[%s7803_s29 + $0x940] sm:$0xff]  ;;  %v614_v29 = vld [vmem:[%s7803_s29 + $0x978] sm:$0xff] }
 0x18e   : > { %v1638_v31 = vld [vmem:[%s7803_s29 + $0x2978] sm:$0xff] }
 0x18f   : > { %5480 = vmatpush1.bf16.msra.mxu1 %v5479_v40  ;;  %v597_v40 = vld [vmem:[%s7803_s29 + $0x8f0] sm:$0xff] }
 0x190   : > { %6504 = vmatpush1.bf16.msra.mxu0 %v6503_v41  ;;  %5482 = vmatprep.subr.bf16.mxu1 %v5481_v42  ;;  %v1619_v41 = vld [vmem:[%s7803_s29 + $0x28e0] sm:$0xff]  ;;  %v6521_v42 = vpack.c.bf16 %v1622_v35, %v1620_v34  ;;  %v5499_v50 = vpack.c.bf16 %v597_v40, %v595_v39  ;;  %v5513_v34 = vpack.c.bf16 %v614_v29, %v612_v26  ;;  %v1637_v39 = vld [vmem:[%s7803_s29 + $0x2970] sm:$0xff]  ;;  %v616_v40 = vld [vmem:[%s7803_s29 + $0x988] sm:$0xff] }
 0x191   : > { %6506 = vmatprep.subr.bf16.mxu0 %v6505_v47  ;;  %v1624_v47 = vld [vmem:[%s7803_s29 + $0x2908] sm:$0xff]  ;;  %v6523_v51 = vpack.c.bf16 %v1621_v44, %v1619_v41  ;;  %v611_v35 = vld [vmem:[%s7803_s29 + $0x960] sm:$0xff]  ;;  %v618_v41 = vld [vmem:[%s7803_s29 + $0x998] sm:$0xff] }
 0x192   : > { %v1642_v44 = vld [vmem:[%s7803_s29 + $0x2998] sm:$0xff] }
 0x193   : > { %5484 = vmatpush1.bf16.msra.mxu1 %v5483_v56  ;;  %v601_v56 = vld [vmem:[%s7803_s29 + $0x910] sm:$0xff] }
 0x194   : > { %6508 = vmatpush1.bf16.msra.mxu0 %v6507_v57  ;;  %5486 = vmatprep.subr.bf16.mxu1 %v5485_v58  ;;  %v1623_v57 = vld [vmem:[%s7803_s29 + $0x2900] sm:$0xff]  ;;  %v6525_v58 = vpack.c.bf16 %v1626_v49, %v1624_v47  ;;  %v5503_v1 = vpack.c.bf16 %v601_v56, %v599_v53  ;;  %v5517_v47 = vpack.c.bf16 %v618_v41, %v616_v40  ;;  %v1641_v53 = vld [vmem:[%s7803_s29 + $0x2990] sm:$0xff]  ;;  %v620_v56 = vld [vmem:[%s7803_s29 + $0x9a8] sm:$0xff] }
 0x195   : > { %6510 = vmatprep.subr.bf16.mxu0 %v6509_v63  ;;  %v1628_v63 = vld [vmem:[%s7803_s29 + $0x2928] sm:$0xff]  ;;  %v6527_v2 = vpack.c.bf16 %v1625_v59, %v1623_v57  ;;  %v615_v49 = vld [vmem:[%s7803_s29 + $0x980] sm:$0xff]  ;;  %v622_v57 = vld [vmem:[%s7803_s29 + $0x9b8] sm:$0xff] }
 0x196   : > { %v1646_v59 = vld [vmem:[%s7803_s29 + $0x29b8] sm:$0xff] }
 0x197   : > { %5488 = vmatpush1.bf16.msra.mxu1 %v5487_v5  ;;  %v605_v5 = vld [vmem:[%s7803_s29 + $0x930] sm:$0xff] }
 0x198   : > { %6512 = vmatpush1.bf16.msra.mxu0 %v6511_v7  ;;  %5490 = vmatprep.subr.bf16.mxu1 %v5489_v9  ;;  %v1627_v7 = vld [vmem:[%s7803_s29 + $0x2920] sm:$0xff]  ;;  %v6529_v9 = vpack.c.bf16 %v1630_v0, %v1628_v63  ;;  %v5507_v21 = vpack.c.bf16 %v605_v5, %v603_v4  ;;  %v5521_v63 = vpack.c.bf16 %v622_v57, %v620_v56  ;;  %v1645_v4 = vld [vmem:[%s7803_s29 + $0x29b0] sm:$0xff]  ;;  %v624_v5 = vld [vmem:[%s7803_s29 + $0x9c8] sm:$0xff] }
 0x199   : > { %6514 = vmatprep.subr.bf16.mxu0 %v6513_v15  ;;  %v1632_v15 = vld [vmem:[%s7803_s29 + $0x2948] sm:$0xff]  ;;  %v6531_v17 = vpack.c.bf16 %v1629_v12, %v1627_v7  ;;  %v619_v0 = vld [vmem:[%s7803_s29 + $0x9a0] sm:$0xff]  ;;  %v626_v7 = vld [vmem:[%s7803_s29 + $0x9d8] sm:$0xff] }
 0x19a   : > { %v1650_v12 = vld [vmem:[%s7803_s29 + $0x29d8] sm:$0xff] }
 0x19b   : > { %5492 = vmatpush1.bf16.msra.mxu1 %v5491_v28  ;;  %v609_v28 = vld [vmem:[%s7803_s29 + $0x950] sm:$0xff]  ;;  %v1662_v56 = vld [vmem:[%s7803_s29 + $0x2a38] sm:$0xff] }
 0x19c   : > { %6516 = vmatpush1.bf16.msra.mxu0 %v6515_v22  ;;  %5494 = vmatprep.subr.bf16.mxu1 %v5493_v23  ;;  %v1631_v22 = vld [vmem:[%s7803_s29 + $0x2940] sm:$0xff]  ;;  %v6533_v23 = vpack.c.bf16 %v1634_v16, %v1632_v15  ;;  %v5511_v32 = vpack.c.bf16 %v609_v28, %v607_v19  ;;  %v5525_v15 = vpack.c.bf16 %v626_v7, %v624_v5  ;;  %v1649_v19 = vld [vmem:[%s7803_s29 + $0x29d0] sm:$0xff]  ;;  %v628_v28 = vld [vmem:[%s7803_s29 + $0x9e8] sm:$0xff] }
 0x19d   : > { %6518 = vmatprep.subr.bf16.mxu0 %v6517_v30  ;;  %v1636_v30 = vld [vmem:[%s7803_s29 + $0x2968] sm:$0xff]  ;;  %v6535_v33 = vpack.c.bf16 %v1633_v24, %v1631_v22  ;;  %v623_v16 = vld [vmem:[%s7803_s29 + $0x9c0] sm:$0xff]  ;;  %v630_v22 = vld [vmem:[%s7803_s29 + $0x9f8] sm:$0xff]  ;;  %v2414_v5 = vrot.slane %v8423_v6, %v7987_v27 }
 0x19e   : > { %v1654_v24 = vld [vmem:[%s7803_s29 + $0x29f8] sm:$0xff]  ;;  %v1664_v7 = vld [vmem:[%s7803_s29 + $0x2a48] sm:$0xff] }
 0x19f   : > { %5496 = vmatpush1.bf16.msra.mxu1 %v5495_v36  ;;  %v613_v36 = vld [vmem:[%s7803_s29 + $0x970] sm:$0xff] }
 0x1a0   : > { %6520 = vmatpush1.bf16.msra.mxu0 %v6519_v37  ;;  %5498 = vmatprep.subr.bf16.mxu1 %v5497_v38  ;;  %v1635_v37 = vld [vmem:[%s7803_s29 + $0x2960] sm:$0xff]  ;;  %v6537_v38 = vpack.c.bf16 %v1638_v31, %v1636_v30  ;;  %v5515_v45 = vpack.c.bf16 %v613_v36, %v611_v35  ;;  %v5529_v30 = vpack.c.bf16 %v630_v22, %v628_v28  ;;  %v1653_v35 = vld [vmem:[%s7803_s29 + $0x29f0] sm:$0xff]  ;;  %v632_v36 = vld [vmem:[%s7803_s29 + $0xa08] sm:$0xff] }
 0x1a1   : > { %6522 = vmatprep.subr.bf16.mxu0 %v6521_v42  ;;  %v1640_v42 = vld [vmem:[%s7803_s29 + $0x2988] sm:$0xff]  ;;  %v6539_v46 = vpack.c.bf16 %v1637_v39, %v1635_v37  ;;  %v627_v31 = vld [vmem:[%s7803_s29 + $0x9e0] sm:$0xff]  ;;  %v634_v37 = vld [vmem:[%s7803_s29 + $0xa18] sm:$0xff] }
 0x1a2   : > { %v1658_v39 = vld [vmem:[%s7803_s29 + $0x2a18] sm:$0xff]  ;;  %v1668_v28 = vld [vmem:[%s7803_s29 + $0x2a68] sm:$0xff] }
 0x1a3   : > { %5500 = vmatpush1.bf16.msra.mxu1 %v5499_v50  ;;  %v617_v50 = vld [vmem:[%s7803_s29 + $0x990] sm:$0xff]  ;;  %v1670_v22 = vld [vmem:[%s7803_s29 + $0x2a78] sm:$0xff] }
 0x1a4   : > { %6524 = vmatpush1.bf16.msra.mxu0 %v6523_v51  ;;  %5502 = vmatprep.subr.bf16.mxu1 %v5501_v52  ;;  %v1639_v51 = vld [vmem:[%s7803_s29 + $0x2980] sm:$0xff]  ;;  %v6541_v52 = vpack.c.bf16 %v1642_v44, %v1640_v42  ;;  %v5519_v60 = vpack.c.bf16 %v617_v50, %v615_v49  ;;  %v5533_v42 = vpack.c.bf16 %v634_v37, %v632_v36  ;;  %v1657_v49 = vld [vmem:[%s7803_s29 + $0x2a10] sm:$0xff]  ;;  %v636_v50 = vld [vmem:[%s7803_s29 + $0xa28] sm:$0xff] }
 0x1a5   : > { %6526 = vmatprep.subr.bf16.mxu0 %v6525_v58  ;;  %v1644_v58 = vld [vmem:[%s7803_s29 + $0x29a8] sm:$0xff]  ;;  %v6543_v62 = vpack.c.bf16 %v1641_v53, %v1639_v51  ;;  %v631_v44 = vld [vmem:[%s7803_s29 + $0xa00] sm:$0xff]  ;;  %v638_v51 = vld [vmem:[%s7803_s29 + $0xa38] sm:$0xff] }
 0x1a6   : > { %v1660_v53 = vld [vmem:[%s7803_s29 + $0x2a28] sm:$0xff]  ;;  %v1674_v37 = vld [vmem:[%s7803_s29 + $0x2a98] sm:$0xff] }
 0x1a7   : > { %5504 = vmatpush1.bf16.msra.mxu1 %v5503_v1  ;;  %v621_v1 = vld [vmem:[%s7803_s29 + $0x9b0] sm:$0xff]  ;;  %v1672_v36 = vld [vmem:[%s7803_s29 + $0x2a88] sm:$0xff] }
 0x1a8   : > { %6528 = vmatpush1.bf16.msra.mxu0 %v6527_v2  ;;  %5506 = vmatprep.subr.bf16.mxu1 %v5505_v3  ;;  %v1643_v2 = vld [vmem:[%s7803_s29 + $0x29a0] sm:$0xff]  ;;  %v6545_v3 = vpack.c.bf16 %v1646_v59, %v1644_v58  ;;  %v5523_v25 = vpack.c.bf16 %v621_v1, %v619_v0  ;;  %v2530_v58 = vrot.slane %v8428_v11, %v7978_v14 }
 0x1a9   : > { %6530 = vmatprep.subr.bf16.mxu0 %v6529_v9  ;;  %v1648_v9 = vld [vmem:[%s7803_s29 + $0x29c8] sm:$0xff]  ;;  %v6547_v13 = vpack.c.bf16 %v1645_v4, %v1643_v2  ;;  %v1659_v0 = vld [vmem:[%s7803_s29 + $0x2a20] sm:$0xff]  ;;  %v6561_v1 = vpack.c.bf16 %v1662_v56, %v1660_v53  ;;  %v1661_v2 = vld [vmem:[%s7803_s29 + $0x2a30] sm:$0xff] }
 0x1aa   : > { %v642_v4 = vld [vmem:[%s7803_s29 + $0xa58] sm:$0xff] }
 0x1ab   : > { %5508 = vmatpush1.bf16.msra.mxu1 %v5507_v21  ;;  %v625_v21 = vld [vmem:[%s7803_s29 + $0x9d0] sm:$0xff] }
 0x1ac   : > { %6532 = vmatpush1.bf16.msra.mxu0 %v6531_v17  ;;  %5510 = vmatprep.subr.bf16.mxu1 %v5509_v18  ;;  %v1647_v17 = vld [vmem:[%s7803_s29 + $0x29c0] sm:$0xff]  ;;  %v6549_v18 = vpack.c.bf16 %v1650_v12, %v1648_v9  ;;  %v5527_v26 = vpack.c.bf16 %v625_v21, %v623_v16  ;;  %v1666_v9 = vld [vmem:[%s7803_s29 + $0x2a58] sm:$0xff]  ;;  %v2542_v12 = vrot.slane %v8428_v11, %v7987_v27 }
 0x1ad   : > { %6534 = vmatprep.subr.bf16.mxu0 %v6533_v23  ;;  %v1652_v23 = vld [vmem:[%s7803_s29 + $0x29e8] sm:$0xff]  ;;  %v6551_v29 = vpack.c.bf16 %v1649_v19, %v1647_v17  ;;  %v639_v16 = vld [vmem:[%s7803_s29 + $0xa40] sm:$0xff]  ;;  %v6565_v17 = vpack.c.bf16 %v1666_v9, %v1664_v7  ;;  %v646_v11 = vld [vmem:[%s7803_s29 + $0xa78] sm:$0xff] }
 0x1ae   : > { %v1663_v21 = vld [vmem:[%s7803_s29 + $0x2a40] sm:$0xff]  ;;  %v644_v19 = vld [vmem:[%s7803_s29 + $0xa68] sm:$0xff]  ;;  %v657_v9 = vld [vmem:[%s7803_s29 + $0xad0] sm:$0xff] }
 0x1af   : > { %5512 = vmatpush1.bf16.msra.mxu1 %v5511_v32  ;;  %v629_v32 = vld [vmem:[%s7803_s29 + $0x9f0] sm:$0xff]  ;;  %v655_v7 = vld [vmem:[%s7803_s29 + $0xac0] sm:$0xff] }
 0x1b0   : > { %6536 = vmatpush1.bf16.msra.mxu0 %v6535_v33  ;;  %5514 = vmatprep.subr.bf16.mxu1 %v5513_v34  ;;  %v1651_v33 = vld [vmem:[%s7803_s29 + $0x29e0] sm:$0xff]  ;;  %v6553_v34 = vpack.c.bf16 %v1654_v24, %v1652_v23  ;;  %v5531_v40 = vpack.c.bf16 %v629_v32, %v627_v31  ;;  %v6569_v32 = vpack.c.bf16 %v1670_v22, %v1668_v28  ;;  %v661_v28 = vld [vmem:[%s7803_s29 + $0xaf0] sm:$0xff] }
 0x1b1   : > { %6538 = vmatprep.subr.bf16.mxu0 %v6537_v38  ;;  %v1656_v38 = vld [vmem:[%s7803_s29 + $0x2a08] sm:$0xff]  ;;  %v6555_v41 = vpack.c.bf16 %v1653_v35, %v1651_v33  ;;  %v1667_v31 = vld [vmem:[%s7803_s29 + $0x2a60] sm:$0xff]  ;;  %v1669_v33 = vld [vmem:[%s7803_s29 + $0x2a70] sm:$0xff] }
 0x1b2   : > { %v650_v35 = vld [vmem:[%s7803_s29 + $0xa98] sm:$0xff]  ;;  %v1683_v22 = vld [vmem:[%s7803_s29 + $0x2ae0] sm:$0xff] }
 0x1b3   : > { %5516 = vmatpush1.bf16.msra.mxu1 %v5515_v45  ;;  %v633_v45 = vld [vmem:[%s7803_s29 + $0xa10] sm:$0xff] }
 0x1b4   : > { %6540 = vmatpush1.bf16.msra.mxu0 %v6539_v46  ;;  %5518 = vmatprep.subr.bf16.mxu1 %v5517_v47  ;;  %v1655_v46 = vld [vmem:[%s7803_s29 + $0x2a00] sm:$0xff]  ;;  %v6557_v47 = vpack.c.bf16 %v1658_v39, %v1656_v38  ;;  %v5535_v57 = vpack.c.bf16 %v633_v45, %v631_v44  ;;  %v6571_v39 = vpack.c.bf16 %v1669_v33, %v1667_v31  ;;  %v1690_v31 = vld [vmem:[%s7803_s29 + $0x2b18] sm:$0xff] }
 0x1b5   : > { %6542 = vmatprep.subr.bf16.mxu0 %v6541_v52  ;;  %v2402_v52 = vrot.slane %v8423_v6, %v7978_v14  ;;  %v6559_v59 = vpack.c.bf16 %v1657_v49, %v1655_v46  ;;  %v641_v6 = vld [vmem:[%s7803_s29 + $0xa50] sm:$0xff]  ;;  %v1671_v44 = vld [vmem:[%s7803_s29 + $0x2a80] sm:$0xff]  ;;  %v6573_v45 = vpack.c.bf16 %v1674_v37, %v1672_v36  ;;  %v654_v49 = vld [vmem:[%s7803_s29 + $0xab8] sm:$0xff] }
 0x1b6   : > { %v5543_v23 = vpack.c.bf16 %v641_v6, %v639_v16  ;;  %v1673_v46 = vld [vmem:[%s7803_s29 + $0x2a90] sm:$0xff]  ;;  %v662_v16 = vld [vmem:[%s7803_s29 + $0xaf8] sm:$0xff]  ;;  %v1684_v6 = vld [vmem:[%s7803_s29 + $0x2ae8] sm:$0xff] }
 0x1b7   : > { %5520 = vmatpush1.bf16.msra.mxu1 %v5519_v60  ;;  %v5537_v60 = vpack.c.bf16 %v638_v51, %v636_v50  ;;  %v1676_v50 = vld [vmem:[%s7803_s29 + $0x2aa8] sm:$0xff]  ;;  %v1678_v51 = vld [vmem:[%s7803_s29 + $0x2ab8] sm:$0xff]  ;;  %v6575_v53 = vpack.c.bf16 %v1673_v46, %v1671_v44  ;;  %v665_v36 = vld [vmem:[%s7803_s29 + $0xb10] sm:$0xff] }
 0x1b8   : > { %6544 = vmatpush1.bf16.msra.mxu0 %v6543_v62  ;;  %5522 = vmatprep.subr.bf16.mxu1 %v5521_v63  ;;  %v635_v62 = vld [vmem:[%s7803_s29 + $0xa20] sm:$0xff]  ;;  %v637_v63 = vld [vmem:[%s7803_s29 + $0xa30] sm:$0xff]  ;;  %v1694_v44 = vld [vmem:[%s7803_s29 + $0x2b38] sm:$0xff] }
 0x1b9   : > { %6546 = vmatprep.subr.bf16.mxu0 %v6545_v3  ;;  %v640_v3 = vld [vmem:[%s7803_s29 + $0xa48] sm:$0xff]  ;;  %v1687_v37 = vld [vmem:[%s7803_s29 + $0x2b00] sm:$0xff] }
 0x1bb   : > { %5524 = vmatpush1.bf16.msra.mxu1 %v5523_v25  ;;  %v5539_v25 = vpack.c.bf16 %v637_v63, %v635_v62  ;;  %v1677_v62 = vld [vmem:[%s7803_s29 + $0x2ab0] sm:$0xff]  ;;  %v656_v63 = vld [vmem:[%s7803_s29 + $0xac8] sm:$0xff] }
 0x1bc   : > { %6548 = vmatpush1.bf16.msra.mxu0 %v6547_v13  ;;  %5526 = vmatprep.subr.bf16.mxu1 %v5525_v15  ;;  %v6563_v13 = vpack.c.bf16 %v1661_v2, %v1659_v0  ;;  %v5541_v15 = vpack.c.bf16 %v642_v4, %v640_v3  ;;  %v658_v0 = vld [vmem:[%s7803_s29 + $0xad8] sm:$0xff] }
 0x1bd   : > { %6550 = vmatprep.subr.bf16.mxu0 %v6549_v18  ;;  %v1665_v18 = vld [vmem:[%s7803_s29 + $0x2a50] sm:$0xff]  ;;  %v1682_v2 = vld [vmem:[%s7803_s29 + $0x2ad8] sm:$0xff] }
 0x1be   : > { %v6567_v24 = vpack.c.bf16 %v1665_v18, %v1663_v21  ;;  %v1686_v21 = vld [vmem:[%s7803_s29 + $0x2af8] sm:$0xff] }
 0x1bf   : > { %5528 = vmatpush1.bf16.msra.mxu1 %v5527_v26  ;;  %v5545_v26 = vpack.c.bf16 %v646_v11, %v644_v19  ;;  %v659_v11 = vld [vmem:[%s7803_s29 + $0xae0] sm:$0xff] }
 0x1c0   : > { %6552 = vmatpush1.bf16.msra.mxu0 %v6551_v29  ;;  %5530 = vmatprep.subr.bf16.mxu1 %v5529_v30  ;;  %v643_v29 = vld [vmem:[%s7803_s29 + $0xa60] sm:$0xff]  ;;  %v645_v30 = vld [vmem:[%s7803_s29 + $0xa70] sm:$0xff] }
 0x1c1   : > { %6554 = vmatprep.subr.bf16.mxu0 %v6553_v34  ;;  %v648_v34 = vld [vmem:[%s7803_s29 + $0xa88] sm:$0xff]  ;;  %v5547_v38 = vpack.c.bf16 %v645_v30, %v643_v29  ;;  %v666_v29 = vld [vmem:[%s7803_s29 + $0xb18] sm:$0xff] }
 0x1c2   : > { %v1688_v30 = vld [vmem:[%s7803_s29 + $0x2b08] sm:$0xff] }
 0x1c3   : > { %5532 = vmatpush1.bf16.msra.mxu1 %v5531_v40  ;;  %v5549_v40 = vpack.c.bf16 %v650_v35, %v648_v34  ;;  %v663_v35 = vld [vmem:[%s7803_s29 + $0xb00] sm:$0xff] }
 0x1c4   : > { %6556 = vmatpush1.bf16.msra.mxu0 %v6555_v41  ;;  %5534 = vmatprep.subr.bf16.mxu1 %v5533_v42  ;;  %v647_v41 = vld [vmem:[%s7803_s29 + $0xa80] sm:$0xff]  ;;  %v649_v42 = vld [vmem:[%s7803_s29 + $0xa90] sm:$0xff] }
 0x1c5   : > { %6558 = vmatprep.subr.bf16.mxu0 %v6557_v47  ;;  %v652_v47 = vld [vmem:[%s7803_s29 + $0xaa8] sm:$0xff] }
 0x1c6   : > { %3036 = vmatmul.mubr.f32.vlgmr.msra.gmra.mrb[0].mxu1 %v2402_v52  ;;  %v5551_v52 = vpack.c.bf16 %v649_v42, %v647_v41  ;;  %v5553_v56 = vpack.c.bf16 %v654_v49, %v652_v47  ;;  %v670_v41 = vld [vmem:[%s7803_s29 + $0xb38] sm:$0xff]  ;;  %v1692_v42 = vld [vmem:[%s7803_s29 + $0x2b28] sm:$0xff]  ;;  %v667_v49 = vld [vmem:[%s7803_s29 + $0xb20] sm:$0xff] }
 0x1c7   : > { %5536 = vmatpush1.bf16.msra.mxu1 %v5535_v57  ;;  %4172 = vmatmul.mubr.f32.vlgmr.msra.gmra.mrb[0].mxu0 %v2530_v58  ;;  %v651_v57 = vld [vmem:[%s7803_s29 + $0xaa0] sm:$0xff]  ;;  %v653_v58 = vld [vmem:[%s7803_s29 + $0xab0] sm:$0xff] }
 0x1c8   : > { %6560 = vmatpush1.bf16.msra.mxu0 %v6559_v59  ;;  %5538 = vmatprep.subr.bf16.mxu1 %v5537_v60  ;;  %v1675_v59 = vld [vmem:[%s7803_s29 + $0x2aa0] sm:$0xff]  ;;  %v6577_v60 = vpack.c.bf16 %v1678_v51, %v1676_v50  ;;  %v5555_v3 = vpack.c.bf16 %v653_v58, %v651_v57  ;;  %v669_v50 = vld [vmem:[%s7803_s29 + $0xb30] sm:$0xff]  ;;  %v674_v57 = vld [vmem:[%s7803_s29 + $0xb58] sm:$0xff] }
 0x1c9   : > { %6562 = vmatprep.subr.bf16.mxu0 %v6561_v1  ;;  %3106 = vmatprep.mubr.f32.mxu1 %v2414_v5  ;;  %v1680_v1 = vld [vmem:[%s7803_s29 + $0x2ac8] sm:$0xff]  ;;  %v6579_v4 = vpack.c.bf16 %v1677_v62, %v1675_v59  ;;  %v5557_v5 = vpack.c.bf16 %v658_v0, %v656_v63  ;;  %v1691_v51 = vld [vmem:[%s7803_s29 + $0x2b20] sm:$0xff]  ;;  %v1698_v59 = vld [vmem:[%s7803_s29 + $0x2b58] sm:$0xff] }
 0x1ca   : > { %4242 = vmatprep.mubr.f32.mxu0 %v2542_v12  ;;  %v1679_v12 = vld [vmem:[%s7803_s29 + $0x2ac0] sm:$0xff]  ;;  %v1696_v58 = vld [vmem:[%s7803_s29 + $0x2b48] sm:$0xff] }
 0x1cb   : > { %5540 = vmatpush1.bf16.msra.mxu1 %v5539_v25  ;;  %v6581_v25 = vpack.c.bf16 %v1682_v2, %v1680_v1  ;;  %v671_v0 = vld [vmem:[%s7803_s29 + $0xb40] sm:$0xff]  ;;  %v673_v1 = vld [vmem:[%s7803_s29 + $0xb50] sm:$0xff] }
 0x1cc   : > { %6564 = vmatpush1.bf16.msra.mxu0 %v6563_v13  ;;  %5542 = vmatprep.subr.bf16.mxu1 %v5541_v15  ;;  %v1681_v13 = vld [vmem:[%s7803_s29 + $0x2ad0] sm:$0xff]  ;;  %v660_v15 = vld [vmem:[%s7803_s29 + $0xae8] sm:$0xff]  ;;  %v1695_v2 = vld [vmem:[%s7803_s29 + $0x2b40] sm:$0xff] }
 0x1cd   : > { %6566 = vmatprep.subr.bf16.mxu0 %v6565_v17  ;;  %v5559_v17 = vpack.c.bf16 %v657_v9, %v655_v7  ;;  %v6583_v18 = vpack.c.bf16 %v1681_v13, %v1679_v12  ;;  %v5561_v19 = vpack.c.bf16 %v662_v16, %v660_v15  ;;  %v678_v7 = vld [vmem:[%s7803_s29 + $0xb78] sm:$0xff]  ;;  %v1700_v9 = vld [vmem:[%s7803_s29 + $0x2b68] sm:$0xff]  ;;  %v675_v16 = vld [vmem:[%s7803_s29 + $0xb60] sm:$0xff] }
 0x1ce   : > { %v1702_v12 = vld [vmem:[%s7803_s29 + $0x2b78] sm:$0xff] }
 0x1cf   : > { %5544 = vmatpush1.bf16.msra.mxu1 %v5543_v23  ;;  %v6585_v23 = vpack.c.bf16 %v1686_v21, %v1684_v6  ;;  %v677_v6 = vld [vmem:[%s7803_s29 + $0xb70] sm:$0xff]  ;;  %v1699_v21 = vld [vmem:[%s7803_s29 + $0x2b60] sm:$0xff] }
 0x1d0   : > { %6568 = vmatpush1.bf16.msra.mxu0 %v6567_v24  ;;  %5546 = vmatprep.subr.bf16.mxu1 %v5545_v26  ;;  %v1685_v24 = vld [vmem:[%s7803_s29 + $0x2af0] sm:$0xff]  ;;  %v664_v26 = vld [vmem:[%s7803_s29 + $0xb08] sm:$0xff] }
 0x1d1   : > { %6570 = vmatprep.subr.bf16.mxu0 %v6569_v32  ;;  %v5563_v32 = vpack.c.bf16 %v661_v28, %v659_v11  ;;  %v6587_v33 = vpack.c.bf16 %v1685_v24, %v1683_v22  ;;  %v5565_v34 = vpack.c.bf16 %v666_v29, %v664_v26  ;;  %v682_v11 = vld [vmem:[%s7803_s29 + $0xb98] sm:$0xff]  ;;  %v1704_v28 = vld [vmem:[%s7803_s29 + $0x2b88] sm:$0xff]  ;;  %v679_v29 = vld [vmem:[%s7803_s29 + $0xb80] sm:$0xff] }
 0x1d2   : > { %v1706_v22 = vld [vmem:[%s7803_s29 + $0x2b98] sm:$0xff] }
 0x1d3   : > { %5548 = vmatpush1.bf16.msra.mxu1 %v5547_v38  ;;  %v6589_v38 = vpack.c.bf16 %v1690_v31, %v1688_v30  ;;  %v681_v30 = vld [vmem:[%s7803_s29 + $0xb90] sm:$0xff]  ;;  %v1703_v31 = vld [vmem:[%s7803_s29 + $0x2b80] sm:$0xff] }
 0x1d4   : > { %6572 = vmatpush1.bf16.msra.mxu0 %v6571_v39  ;;  %5550 = vmatprep.subr.bf16.mxu1 %v5549_v40  ;;  %v1689_v39 = vld [vmem:[%s7803_s29 + $0x2b10] sm:$0xff]  ;;  %v668_v40 = vld [vmem:[%s7803_s29 + $0xb28] sm:$0xff] }
 0x1d5   : > { %6574 = vmatprep.subr.bf16.mxu0 %v6573_v45  ;;  %v5567_v45 = vpack.c.bf16 %v665_v36, %v663_v35  ;;  %v6591_v46 = vpack.c.bf16 %v1689_v39, %v1687_v37  ;;  %v5569_v47 = vpack.c.bf16 %v670_v41, %v668_v40  ;;  %v686_v35 = vld [vmem:[%s7803_s29 + $0xbb8] sm:$0xff]  ;;  %v1708_v36 = vld [vmem:[%s7803_s29 + $0x2ba8] sm:$0xff]  ;;  %v683_v41 = vld [vmem:[%s7803_s29 + $0xba0] sm:$0xff] }
 0x1d6   : > { %v1710_v37 = vld [vmem:[%s7803_s29 + $0x2bb8] sm:$0xff] }
 0x1d7   : > { %5552 = vmatpush1.bf16.msra.mxu1 %v5551_v52  ;;  %v6593_v52 = vpack.c.bf16 %v1694_v44, %v1692_v42  ;;  %v685_v42 = vld [vmem:[%s7803_s29 + $0xbb0] sm:$0xff]  ;;  %v1707_v44 = vld [vmem:[%s7803_s29 + $0x2ba0] sm:$0xff] }
 0x1d8   : > { %6576 = vmatpush1.bf16.msra.mxu0 %v6575_v53  ;;  %5554 = vmatprep.subr.bf16.mxu1 %v5553_v56  ;;  %v1693_v53 = vld [vmem:[%s7803_s29 + $0x2b30] sm:$0xff]  ;;  %v672_v56 = vld [vmem:[%s7803_s29 + $0xb48] sm:$0xff] }
 0x1d9   : > { %6578 = vmatprep.subr.bf16.mxu0 %v6577_v60  ;;  %v5571_v60 = vpack.c.bf16 %v669_v50, %v667_v49  ;;  %v6595_v62 = vpack.c.bf16 %v1693_v53, %v1691_v51  ;;  %v5573_v63 = vpack.c.bf16 %v674_v57, %v672_v56  ;;  %v690_v49 = vld [vmem:[%s7803_s29 + $0xbd8] sm:$0xff]  ;;  %v1712_v50 = vld [vmem:[%s7803_s29 + $0x2bc8] sm:$0xff]  ;;  %v687_v57 = vld [vmem:[%s7803_s29 + $0xbc0] sm:$0xff] }
 0x1da   : > { %v1714_v51 = vld [vmem:[%s7803_s29 + $0x2bd8] sm:$0xff] }
 0x1db   : > { %5556 = vmatpush1.bf16.msra.mxu1 %v5555_v3  ;;  %v6597_v3 = vpack.c.bf16 %v1698_v59, %v1696_v58  ;;  %v689_v58 = vld [vmem:[%s7803_s29 + $0xbd0] sm:$0xff]  ;;  %v1711_v59 = vld [vmem:[%s7803_s29 + $0x2bc0] sm:$0xff] }
 0x1dc   : > { %6580 = vmatpush1.bf16.msra.mxu0 %v6579_v4  ;;  %5558 = vmatprep.subr.bf16.mxu1 %v5557_v5  ;;  %v1697_v4 = vld [vmem:[%s7803_s29 + $0x2b50] sm:$0xff]  ;;  %v676_v5 = vld [vmem:[%s7803_s29 + $0xb68] sm:$0xff] }
 0x1dd   : > { %6582 = vmatprep.subr.bf16.mxu0 %v6581_v25  ;;  %v5575_v25 = vpack.c.bf16 %v673_v1, %v671_v0  ;;  %v6599_v13 = vpack.c.bf16 %v1697_v4, %v1695_v2  ;;  %v5577_v15 = vpack.c.bf16 %v678_v7, %v676_v5  ;;  %v694_v0 = vld [vmem:[%s7803_s29 + $0xbf8] sm:$0xff]  ;;  %v1716_v1 = vld [vmem:[%s7803_s29 + $0x2be8] sm:$0xff]  ;;  %v691_v7 = vld [vmem:[%s7803_s29 + $0xbe0] sm:$0xff] }
 0x1de   : > { %v1718_v2 = vld [vmem:[%s7803_s29 + $0x2bf8] sm:$0xff] }
 0x1df   : > { %5560 = vmatpush1.bf16.msra.mxu1 %v5559_v17  ;;  %v6601_v17 = vpack.c.bf16 %v1702_v12, %v1700_v9  ;;  %v693_v9 = vld [vmem:[%s7803_s29 + $0xbf0] sm:$0xff]  ;;  %v1715_v12 = vld [vmem:[%s7803_s29 + $0x2be0] sm:$0xff] }
 0x1e0   : > { %6584 = vmatpush1.bf16.msra.mxu0 %v6583_v18  ;;  %5562 = vmatprep.subr.bf16.mxu1 %v5561_v19  ;;  %v1701_v18 = vld [vmem:[%s7803_s29 + $0x2b70] sm:$0xff]  ;;  %v680_v19 = vld [vmem:[%s7803_s29 + $0xb88] sm:$0xff] }
 0x1e1   : > { %6586 = vmatprep.subr.bf16.mxu0 %v6585_v23  ;;  %v5579_v23 = vpack.c.bf16 %v677_v6, %v675_v16  ;;  %v6603_v24 = vpack.c.bf16 %v1701_v18, %v1699_v21  ;;  %v5581_v26 = vpack.c.bf16 %v682_v11, %v680_v19  ;;  %v698_v16 = vld [vmem:[%s7803_s29 + $0xc18] sm:$0xff]  ;;  %v1720_v6 = vld [vmem:[%s7803_s29 + $0x2c08] sm:$0xff]  ;;  %v695_v11 = vld [vmem:[%s7803_s29 + $0xc00] sm:$0xff] }
 0x1e2   : > { %v1722_v21 = vld [vmem:[%s7803_s29 + $0x2c18] sm:$0xff] }
 0x1e3   : > { %5564 = vmatpush1.bf16.msra.mxu1 %v5563_v32  ;;  %v6605_v32 = vpack.c.bf16 %v1706_v22, %v1704_v28  ;;  %v697_v28 = vld [vmem:[%s7803_s29 + $0xc10] sm:$0xff]  ;;  %v1719_v22 = vld [vmem:[%s7803_s29 + $0x2c00] sm:$0xff] }
 0x1e4   : > { %6588 = vmatpush1.bf16.msra.mxu0 %v6587_v33  ;;  %5566 = vmatprep.subr.bf16.mxu1 %v5565_v34  ;;  %v1705_v33 = vld [vmem:[%s7803_s29 + $0x2b90] sm:$0xff]  ;;  %v684_v34 = vld [vmem:[%s7803_s29 + $0xba8] sm:$0xff] }
 0x1e5   : > { %6590 = vmatprep.subr.bf16.mxu0 %v6589_v38  ;;  %v5583_v38 = vpack.c.bf16 %v681_v30, %v679_v29  ;;  %v6607_v39 = vpack.c.bf16 %v1705_v33, %v1703_v31  ;;  %v5585_v40 = vpack.c.bf16 %v686_v35, %v684_v34  ;;  %v702_v29 = vld [vmem:[%s7803_s29 + $0xc38] sm:$0xff]  ;;  %v5599_v34 = vpack.c.bf16 %v697_v28, %v695_v11  ;;  %v711_v11 = vld [vmem:[%s7803_s29 + $0xc80] sm:$0xff]  ;;  %v713_v28 = vld [vmem:[%s7803_s29 + $0xc90] sm:$0xff] }
 0x1e6   : > { %v8697_v30 = vld [vmem:[%s7931_s26 + $0x10] ss:$2 sm:$0xff] }
 0x1e7   : > { %5568 = vmatpush1.bf16.msra.mxu1 %v5567_v45  ;;  %v6609_v45 = vpack.c.bf16 %v1710_v37, %v1708_v36  ;;  %v2410_v31 = vrot.slane %v8697_v30, %v8120_v43  ;;  %v1726_v33 = vld [vmem:[%s7803_s29 + $0x2c38] sm:$0xff] }
 0x1e8   : > { %6592 = vmatpush1.bf16.msra.mxu0 %v6591_v46  ;;  %5570 = vmatprep.subr.bf16.mxu1 %v5569_v47  ;;  %v1709_v46 = vld [vmem:[%s7803_s29 + $0x2bb0] sm:$0xff]  ;;  %v688_v47 = vld [vmem:[%s7803_s29 + $0xbc8] sm:$0xff] }
 0x1e9   : > { %6594 = vmatprep.subr.bf16.mxu0 %v6593_v52  ;;  %v5587_v52 = vpack.c.bf16 %v685_v42, %v683_v41  ;;  %v6611_v53 = vpack.c.bf16 %v1709_v46, %v1707_v44  ;;  %v5589_v56 = vpack.c.bf16 %v690_v49, %v688_v47  ;;  %v8704_v35 = vld [vmem:[%s7931_s26 + $0x50] ss:$2 sm:$0xff]  ;;  %v1723_v41 = vld [vmem:[%s7803_s29 + $0x2c20] sm:$0xff]  ;;  %v2422_v47 = vrot.slane %v8697_v30, %v8129_v55 }
 0x1ea   : > { %v2538_v36 = vrot.slane %v8704_v35, %v8120_v43  ;;  %v1725_v44 = vld [vmem:[%s7803_s29 + $0x2c30] sm:$0xff]  ;;  %v706_v46 = vld [vmem:[%s7803_s29 + $0xc58] sm:$0xff]  ;;  %v1728_v49 = vld [vmem:[%s7803_s29 + $0x2c48] sm:$0xff] }
 0x1eb   : > { %5572 = vmatpush1.bf16.msra.mxu1 %v5571_v60  ;;  %v6613_v60 = vpack.c.bf16 %v1714_v51, %v1712_v50  ;;  %v1730_v50 = vld [vmem:[%s7803_s29 + $0x2c58] sm:$0xff]  ;;  %v2550_v51 = vrot.slane %v8704_v35, %v8129_v55 }
 0x1ec   : > { %6596 = vmatpush1.bf16.msra.mxu0 %v6595_v62  ;;  %5574 = vmatprep.subr.bf16.mxu1 %v5573_v63  ;;  %v1713_v62 = vld [vmem:[%s7803_s29 + $0x2bd0] sm:$0xff]  ;;  %v692_v63 = vld [vmem:[%s7803_s29 + $0xbe8] sm:$0xff] }
 0x1ed   : > { %6598 = vmatprep.subr.bf16.mxu0 %v6597_v3  ;;  %v5591_v3 = vpack.c.bf16 %v689_v58, %v687_v57  ;;  %v6615_v4 = vpack.c.bf16 %v1713_v62, %v1711_v59  ;;  %v5593_v5 = vpack.c.bf16 %v694_v0, %v692_v63  ;;  %v703_v57 = vld [vmem:[%s7803_s29 + $0xc40] sm:$0xff]  ;;  %v705_v58 = vld [vmem:[%s7803_s29 + $0xc50] sm:$0xff]  ;;  %v708_v63 = vld [vmem:[%s7803_s29 + $0xc68] sm:$0xff] }
 0x1ee   : > { %v1727_v59 = vld [vmem:[%s7803_s29 + $0x2c40] sm:$0xff]  ;;  %v1729_v62 = vld [vmem:[%s7803_s29 + $0x2c50] sm:$0xff]  ;;  %v710_v0 = vld [vmem:[%s7803_s29 + $0xc78] sm:$0xff] }
 0x1ef   : > { %5576 = vmatpush1.bf16.msra.mxu1 %v5575_v25  ;;  %v6617_v25 = vpack.c.bf16 %v1718_v2, %v1716_v1  ;;  %v1732_v1 = vld [vmem:[%s7803_s29 + $0x2c68] sm:$0xff]  ;;  %v1734_v2 = vld [vmem:[%s7803_s29 + $0x2c78] sm:$0xff] }
 0x1f0   : > { %6600 = vmatpush1.bf16.msra.mxu0 %v6599_v13  ;;  %5578 = vmatprep.subr.bf16.mxu1 %v5577_v15  ;;  %v1717_v13 = vld [vmem:[%s7803_s29 + $0x2bf0] sm:$0xff]  ;;  %v696_v15 = vld [vmem:[%s7803_s29 + $0xc08] sm:$0xff] }
 0x1f1   : > { %6602 = vmatprep.subr.bf16.mxu0 %v6601_v17  ;;  %v5595_v17 = vpack.c.bf16 %v693_v9, %v691_v7  ;;  %v6619_v18 = vpack.c.bf16 %v1717_v13, %v1715_v12  ;;  %v5597_v19 = vpack.c.bf16 %v698_v16, %v696_v15  ;;  %v707_v7 = vld [vmem:[%s7803_s29 + $0xc60] sm:$0xff]  ;;  %v709_v9 = vld [vmem:[%s7803_s29 + $0xc70] sm:$0xff]  ;;  %v712_v15 = vld [vmem:[%s7803_s29 + $0xc88] sm:$0xff] }
 0x1f2   : > { %v1731_v12 = vld [vmem:[%s7803_s29 + $0x2c60] sm:$0xff]  ;;  %v1733_v13 = vld [vmem:[%s7803_s29 + $0x2c70] sm:$0xff]  ;;  %v714_v16 = vld [vmem:[%s7803_s29 + $0xc98] sm:$0xff] }
 0x1f3   : > { %5580 = vmatpush1.bf16.msra.mxu1 %v5579_v23  ;;  %v6621_v23 = vpack.c.bf16 %v1722_v21, %v1720_v6  ;;  %v1736_v6 = vld [vmem:[%s7803_s29 + $0x2c88] sm:$0xff]  ;;  %v1738_v21 = vld [vmem:[%s7803_s29 + $0x2c98] sm:$0xff] }
 0x1f4   : > { %6604 = vmatpush1.bf16.msra.mxu0 %v6603_v24  ;;  %5582 = vmatprep.subr.bf16.mxu1 %v5581_v26  ;;  %v1721_v24 = vld [vmem:[%s7803_s29 + $0x2c10] sm:$0xff]  ;;  %v700_v26 = vld [vmem:[%s7803_s29 + $0xc28] sm:$0xff] }
 0x1f5   : > { %6606 = vmatprep.subr.bf16.mxu0 %v6605_v32  ;;  %v1724_v32 = vld [vmem:[%s7803_s29 + $0x2c28] sm:$0xff]  ;;  %v6623_v37 = vpack.c.bf16 %v1721_v24, %v1719_v22  ;;  %v1735_v22 = vld [vmem:[%s7803_s29 + $0x2c80] sm:$0xff]  ;;  %v1737_v24 = vld [vmem:[%s7803_s29 + $0x2c90] sm:$0xff] }
 0x1f6   : > { %v6625_v42 = vpack.c.bf16 %v1726_v33, %v1724_v32  ;;  %v1742_v32 = vld [vmem:[%s7803_s29 + $0x2cb8] sm:$0xff]  ;;  %v5615_v33 = vpack.c.bf16 %v713_v28, %v711_v11  ;;  %v1753_v11 = vld [vmem:[%s7803_s29 + $0x2d10] sm:$0xff]  ;;  %v732_v28 = vld [vmem:[%s7803_s29 + $0xd28] sm:$0xff] }
 0x1f7   : > { %5584 = vmatpush1.bf16.msra.mxu1 %v5583_v38  ;;  %v5601_v38 = vpack.c.bf16 %v702_v29, %v700_v26  ;;  %v716_v26 = vld [vmem:[%s7803_s29 + $0xca8] sm:$0xff]  ;;  %v718_v29 = vld [vmem:[%s7803_s29 + $0xcb8] sm:$0xff] }
 0x1f8   : > { %6608 = vmatpush1.bf16.msra.mxu0 %v6607_v39  ;;  %5586 = vmatprep.subr.bf16.mxu1 %v5585_v40  ;;  %v699_v39 = vld [vmem:[%s7803_s29 + $0xc20] sm:$0xff]  ;;  %v701_v40 = vld [vmem:[%s7803_s29 + $0xc30] sm:$0xff] }
 0x1f9   : > { %6610 = vmatprep.subr.bf16.mxu0 %v6609_v45  ;;  %v704_v45 = vld [vmem:[%s7803_s29 + $0xc48] sm:$0xff] }
 0x1fb   : > { %5588 = vmatpush1.bf16.msra.mxu1 %v5587_v52  ;;  %v5603_v52 = vpack.c.bf16 %v701_v40, %v699_v39  ;;  %v1739_v39 = vld [vmem:[%s7803_s29 + $0x2ca0] sm:$0xff] }
 0x1fc   : > { %6612 = vmatpush1.bf16.msra.mxu0 %v6611_v53  ;;  %5590 = vmatprep.subr.bf16.mxu1 %v5589_v56  ;;  %v6627_v53 = vpack.c.bf16 %v1725_v44, %v1723_v41  ;;  %v5605_v56 = vpack.c.bf16 %v706_v46, %v704_v45  ;;  %v1741_v41 = vld [vmem:[%s7803_s29 + $0x2cb0] sm:$0xff]  ;;  %v722_v44 = vld [vmem:[%s7803_s29 + $0xcd8] sm:$0xff]  ;;  %v1744_v45 = vld [vmem:[%s7803_s29 + $0x2cc8] sm:$0xff] }
 0x1fd   : > { %6614 = vmatprep.subr.bf16.mxu0 %v6613_v60  ;;  %v6629_v60 = vpack.c.bf16 %v1730_v50, %v1728_v49  ;;  %v1746_v46 = vld [vmem:[%s7803_s29 + $0x2cd8] sm:$0xff]  ;;  %v6643_v49 = vpack.c.bf16 %v1741_v41, %v1739_v39 }
 0x1fe   : > { %v738_v39 = vld [vmem:[%s7803_s29 + $0xd58] sm:$0xff] }
 0x1ff   : > { %5592 = vmatpush1.bf16.msra.mxu1 %v5591_v3  ;;  %v5607_v3 = vpack.c.bf16 %v705_v58, %v703_v57  ;;  %v1745_v57 = vld [vmem:[%s7803_s29 + $0x2cd0] sm:$0xff]  ;;  %v724_v58 = vld [vmem:[%s7803_s29 + $0xce8] sm:$0xff]  ;;  %v1762_v41 = vld [vmem:[%s7803_s29 + $0x2d58] sm:$0xff] }
 0x200   : > { %6616 = vmatpush1.bf16.msra.mxu0 %v6615_v4  ;;  %5594 = vmatprep.subr.bf16.mxu1 %v5593_v5  ;;  %v6631_v4 = vpack.c.bf16 %v1729_v62, %v1727_v59  ;;  %v5609_v5 = vpack.c.bf16 %v710_v0, %v708_v63  ;;  %v726_v59 = vld [vmem:[%s7803_s29 + $0xcf8] sm:$0xff] }
 0x201   : > { %6618 = vmatprep.subr.bf16.mxu0 %v6617_v25  ;;  %v6633_v25 = vpack.c.bf16 %v1734_v2, %v1732_v1  ;;  %v1750_v62 = vld [vmem:[%s7803_s29 + $0x2cf8] sm:$0xff]  ;;  %v5625_v1 = vpack.c.bf16 %v726_v59, %v724_v58  ;;  %v723_v2 = vld [vmem:[%s7803_s29 + $0xce0] sm:$0xff] }
 0x203   : > { %5596 = vmatpush1.bf16.msra.mxu1 %v5595_v17  ;;  %v5611_v17 = vpack.c.bf16 %v709_v9, %v707_v7  ;;  %v1749_v7 = vld [vmem:[%s7803_s29 + $0x2cf0] sm:$0xff]  ;;  %v728_v9 = vld [vmem:[%s7803_s29 + $0xd08] sm:$0xff] }
 0x204   : > { %6620 = vmatpush1.bf16.msra.mxu0 %v6619_v18  ;;  %5598 = vmatprep.subr.bf16.mxu1 %v5597_v19  ;;  %v6635_v18 = vpack.c.bf16 %v1733_v13, %v1731_v12  ;;  %v5613_v19 = vpack.c.bf16 %v714_v16, %v712_v15  ;;  %v730_v12 = vld [vmem:[%s7803_s29 + $0xd18] sm:$0xff] }
 0x205   : > { %6622 = vmatprep.subr.bf16.mxu0 %v6621_v23  ;;  %v6637_v23 = vpack.c.bf16 %v1738_v21, %v1736_v6  ;;  %v1754_v13 = vld [vmem:[%s7803_s29 + $0x2d18] sm:$0xff]  ;;  %v5629_v6 = vpack.c.bf16 %v730_v12, %v728_v9  ;;  %v727_v21 = vld [vmem:[%s7803_s29 + $0xd00] sm:$0xff] }
 0x206   : > { %3107 = vmatmul.mubr.f32.vlgmr.msra.gmra.mrb[0].mxu1 %v2410_v31  ;;  %v1740_v31 = vld [vmem:[%s7803_s29 + $0x2ca8] sm:$0xff] }
 0x207   : > { %5600 = vmatpush1.bf16.msra.mxu1 %v5599_v34  ;;  %4243 = vmatmul.mubr.f32.vlgmr.msra.gmra.mrb[0].mxu0 %v2538_v36  ;;  %v6639_v34 = vpack.c.bf16 %v1737_v24, %v1735_v22  ;;  %v5617_v36 = vpack.c.bf16 %v718_v29, %v716_v26  ;;  %v6641_v40 = vpack.c.bf16 %v1742_v32, %v1740_v31  ;;  %v734_v22 = vld [vmem:[%s7803_s29 + $0xd38] sm:$0xff]  ;;  %v731_v32 = vld [vmem:[%s7803_s29 + $0xd20] sm:$0xff] }
 0x208   : > { %6624 = vmatpush1.bf16.msra.mxu0 %v6623_v37  ;;  %5602 = vmatprep.subr.bf16.mxu1 %v5601_v38  ;;  %v715_v37 = vld [vmem:[%s7803_s29 + $0xca0] sm:$0xff]  ;;  %v717_v38 = vld [vmem:[%s7803_s29 + $0xcb0] sm:$0xff]  ;;  %v1758_v24 = vld [vmem:[%s7803_s29 + $0x2d38] sm:$0xff]  ;;  %v5633_v31 = vpack.c.bf16 %v734_v22, %v732_v28 }
 0x209   : > { %6626 = vmatprep.subr.bf16.mxu0 %v6625_v42  ;;  %3177 = vmatprep.mubr.f32.mxu1 %v2422_v47  ;;  %v720_v42 = vld [vmem:[%s7803_s29 + $0xcc8] sm:$0xff]  ;;  %v5619_v47 = vpack.c.bf16 %v717_v38, %v715_v37  ;;  %v1757_v37 = vld [vmem:[%s7803_s29 + $0x2d30] sm:$0xff] }
 0x20a   : > { %4313 = vmatprep.mubr.f32.mxu0 %v2550_v51  ;;  %v5621_v50 = vpack.c.bf16 %v722_v44, %v720_v42  ;;  %v719_v51 = vld [vmem:[%s7803_s29 + $0xcc0] sm:$0xff]  ;;  %v736_v38 = vld [vmem:[%s7803_s29 + $0xd48] sm:$0xff] }
 0x20b   : > { %5604 = vmatpush1.bf16.msra.mxu1 %v5603_v52  ;;  %v721_v52 = vld [vmem:[%s7803_s29 + $0xcd0] sm:$0xff] }
 0x20c   : > { %6628 = vmatpush1.bf16.msra.mxu0 %v6627_v53  ;;  %5606 = vmatprep.subr.bf16.mxu1 %v5605_v56  ;;  %v1743_v53 = vld [vmem:[%s7803_s29 + $0x2cc0] sm:$0xff]  ;;  %v6645_v56 = vpack.c.bf16 %v1746_v46, %v1744_v45  ;;  %v5623_v63 = vpack.c.bf16 %v721_v52, %v719_v51  ;;  %v5637_v45 = vpack.c.bf16 %v738_v39, %v736_v38  ;;  %v1761_v51 = vld [vmem:[%s7803_s29 + $0x2d50] sm:$0xff]  ;;  %v740_v52 = vld [vmem:[%s7803_s29 + $0xd68] sm:$0xff] }
 0x20d   : > { %6630 = vmatprep.subr.bf16.mxu0 %v6629_v60  ;;  %v1748_v60 = vld [vmem:[%s7803_s29 + $0x2ce8] sm:$0xff]  ;;  %v6647_v0 = vpack.c.bf16 %v1745_v57, %v1743_v53  ;;  %v735_v46 = vld [vmem:[%s7803_s29 + $0xd40] sm:$0xff]  ;;  %v742_v53 = vld [vmem:[%s7803_s29 + $0xd78] sm:$0xff] }
 0x20e   : > { %v1766_v57 = vld [vmem:[%s7803_s29 + $0x2d78] sm:$0xff] }
 0x20f   : > { %5608 = vmatpush1.bf16.msra.mxu1 %v5607_v3  ;;  %v725_v3 = vld [vmem:[%s7803_s29 + $0xcf0] sm:$0xff] }
 0x210   : > { %6632 = vmatpush1.bf16.msra.mxu0 %v6631_v4  ;;  %5610 = vmatprep.subr.bf16.mxu1 %v5609_v5  ;;  %v1747_v4 = vld [vmem:[%s7803_s29 + $0x2ce0] sm:$0xff]  ;;  %v6649_v5 = vpack.c.bf16 %v1750_v62, %v1748_v60  ;;  %v5627_v15 = vpack.c.bf16 %v725_v3, %v723_v2  ;;  %v5641_v60 = vpack.c.bf16 %v742_v53, %v740_v52  ;;  %v1765_v2 = vld [vmem:[%s7803_s29 + $0x2d70] sm:$0xff]  ;;  %v744_v3 = vld [vmem:[%s7803_s29 + $0xd88] sm:$0xff] }
 0x211   : > { %6634 = vmatprep.subr.bf16.mxu0 %v6633_v25  ;;  %v1752_v25 = vld [vmem:[%s7803_s29 + $0x2d08] sm:$0xff]  ;;  %v6651_v16 = vpack.c.bf16 %v1749_v7, %v1747_v4  ;;  %v739_v62 = vld [vmem:[%s7803_s29 + $0xd60] sm:$0xff]  ;;  %v746_v4 = vld [vmem:[%s7803_s29 + $0xd98] sm:$0xff] }
 0x212   : > { %v1770_v7 = vld [vmem:[%s7803_s29 + $0x2d98] sm:$0xff] }
 0x213   : > { %5612 = vmatpush1.bf16.msra.mxu1 %v5611_v17  ;;  %v729_v17 = vld [vmem:[%s7803_s29 + $0xd10] sm:$0xff] }
 0x214   : > { %6636 = vmatpush1.bf16.msra.mxu0 %v6635_v18  ;;  %5614 = vmatprep.subr.bf16.mxu1 %v5613_v19  ;;  %v1751_v18 = vld [vmem:[%s7803_s29 + $0x2d00] sm:$0xff]  ;;  %v6653_v19 = vpack.c.bf16 %v1754_v13, %v1752_v25  ;;  %v5631_v26 = vpack.c.bf16 %v729_v17, %v727_v21  ;;  %v5645_v25 = vpack.c.bf16 %v746_v4, %v744_v3  ;;  %v1769_v21 = vld [vmem:[%s7803_s29 + $0x2d90] sm:$0xff]  ;;  %v748_v17 = vld [vmem:[%s7803_s29 + $0xda8] sm:$0xff] }
 0x215   : > { %6638 = vmatprep.subr.bf16.mxu0 %v6637_v23  ;;  %v1756_v23 = vld [vmem:[%s7803_s29 + $0x2d28] sm:$0xff]  ;;  %v6655_v29 = vpack.c.bf16 %v1753_v11, %v1751_v18  ;;  %v743_v13 = vld [vmem:[%s7803_s29 + $0xd80] sm:$0xff]  ;;  %v750_v18 = vld [vmem:[%s7803_s29 + $0xdb8] sm:$0xff] }
 0x216   : > { %v1774_v11 = vld [vmem:[%s7803_s29 + $0x2db8] sm:$0xff] }
 0x217   : > { %5616 = vmatpush1.bf16.msra.mxu1 %v5615_v33  ;;  %v733_v33 = vld [vmem:[%s7803_s29 + $0xd30] sm:$0xff] }
 0x218   : > { %6640 = vmatpush1.bf16.msra.mxu0 %v6639_v34  ;;  %5618 = vmatprep.subr.bf16.mxu1 %v5617_v36  ;;  %v1755_v34 = vld [vmem:[%s7803_s29 + $0x2d20] sm:$0xff]  ;;  %v6657_v36 = vpack.c.bf16 %v1758_v24, %v1756_v23  ;;  %v5635_v42 = vpack.c.bf16 %v733_v33, %v731_v32  ;;  %v5649_v23 = vpack.c.bf16 %v750_v18, %v748_v17  ;;  %v1773_v32 = vld [vmem:[%s7803_s29 + $0x2db0] sm:$0xff]  ;;  %v752_v33 = vld [vmem:[%s7803_s29 + $0xdc8] sm:$0xff] }
 0x219   : > { %6642 = vmatprep.subr.bf16.mxu0 %v6641_v40  ;;  %v1760_v40 = vld [vmem:[%s7803_s29 + $0x2d48] sm:$0xff]  ;;  %v6659_v44 = vpack.c.bf16 %v1757_v37, %v1755_v34  ;;  %v747_v24 = vld [vmem:[%s7803_s29 + $0xda0] sm:$0xff]  ;;  %v754_v34 = vld [vmem:[%s7803_s29 + $0xdd8] sm:$0xff] }
 0x21a   : > { %v1778_v37 = vld [vmem:[%s7803_s29 + $0x2dd8] sm:$0xff] }
 0x21b   : > { %5620 = vmatpush1.bf16.msra.mxu1 %v5619_v47  ;;  %v737_v47 = vld [vmem:[%s7803_s29 + $0xd50] sm:$0xff]  ;;  %v1790_v17 = vld [vmem:[%s7803_s29 + $0x2e38] sm:$0xff] }
 0x21c   : > { %6644 = vmatpush1.bf16.msra.mxu0 %v6643_v49  ;;  %5622 = vmatprep.subr.bf16.mxu1 %v5621_v50  ;;  %v1759_v49 = vld [vmem:[%s7803_s29 + $0x2d40] sm:$0xff]  ;;  %v6661_v50 = vpack.c.bf16 %v1762_v41, %v1760_v40  ;;  %v5639_v58 = vpack.c.bf16 %v737_v47, %v735_v46  ;;  %v5653_v40 = vpack.c.bf16 %v754_v34, %v752_v33  ;;  %v1777_v46 = vld [vmem:[%s7803_s29 + $0x2dd0] sm:$0xff]  ;;  %v756_v47 = vld [vmem:[%s7803_s29 + $0xde8] sm:$0xff] }
 0x21d   : > { %6646 = vmatprep.subr.bf16.mxu0 %v6645_v56  ;;  %v1764_v56 = vld [vmem:[%s7803_s29 + $0x2d68] sm:$0xff]  ;;  %v6663_v59 = vpack.c.bf16 %v1761_v51, %v1759_v49  ;;  %v751_v41 = vld [vmem:[%s7803_s29 + $0xdc0] sm:$0xff]  ;;  %v758_v49 = vld [vmem:[%s7803_s29 + $0xdf8] sm:$0xff]  ;;  %v2430_v33 = vrot.slane %v8697_v30, %v8271_v20 }
 0x21e   : > { %v1782_v51 = vld [vmem:[%s7803_s29 + $0x2df8] sm:$0xff]  ;;  %v1792_v34 = vld [vmem:[%s7803_s29 + $0x2e48] sm:$0xff] }
 0x21f   : > { %5624 = vmatpush1.bf16.msra.mxu1 %v5623_v63  ;;  %v741_v63 = vld [vmem:[%s7803_s29 + $0xd70] sm:$0xff] }
 0x220   : > { %6648 = vmatpush1.bf16.msra.mxu0 %v6647_v0  ;;  %5626 = vmatprep.subr.bf16.mxu1 %v5625_v1  ;;  %v1763_v0 = vld [vmem:[%s7803_s29 + $0x2d60] sm:$0xff]  ;;  %v6665_v1 = vpack.c.bf16 %v1766_v57, %v1764_v56  ;;  %v5643_v9 = vpack.c.bf16 %v741_v63, %v739_v62  ;;  %v5657_v56 = vpack.c.bf16 %v758_v49, %v756_v47  ;;  %v1781_v62 = vld [vmem:[%s7803_s29 + $0x2df0] sm:$0xff]  ;;  %v760_v63 = vld [vmem:[%s7803_s29 + $0xe08] sm:$0xff] }
 0x221   : > { %6650 = vmatprep.subr.bf16.mxu0 %v6649_v5  ;;  %v1768_v5 = vld [vmem:[%s7803_s29 + $0x2d88] sm:$0xff]  ;;  %v6667_v12 = vpack.c.bf16 %v1765_v2, %v1763_v0  ;;  %v755_v57 = vld [vmem:[%s7803_s29 + $0xde0] sm:$0xff]  ;;  %v762_v0 = vld [vmem:[%s7803_s29 + $0xe18] sm:$0xff] }
 0x222   : > { %v1786_v2 = vld [vmem:[%s7803_s29 + $0x2e18] sm:$0xff]  ;;  %v1796_v47 = vld [vmem:[%s7803_s29 + $0x2e68] sm:$0xff] }
 0x223   : > { %5628 = vmatpush1.bf16.msra.mxu1 %v5627_v15  ;;  %v745_v15 = vld [vmem:[%s7803_s29 + $0xd90] sm:$0xff]  ;;  %v1798_v49 = vld [vmem:[%s7803_s29 + $0x2e78] sm:$0xff] }
 0x224   : > { %6652 = vmatpush1.bf16.msra.mxu0 %v6651_v16  ;;  %5630 = vmatprep.subr.bf16.mxu1 %v5629_v6  ;;  %v1767_v16 = vld [vmem:[%s7803_s29 + $0x2d80] sm:$0xff]  ;;  %v6669_v6 = vpack.c.bf16 %v1770_v7, %v1768_v5  ;;  %v5647_v28 = vpack.c.bf16 %v745_v15, %v743_v13  ;;  %v5661_v5 = vpack.c.bf16 %v762_v0, %v760_v63  ;;  %v1785_v13 = vld [vmem:[%s7803_s29 + $0x2e10] sm:$0xff]  ;;  %v764_v15 = vld [vmem:[%s7803_s29 + $0xe28] sm:$0xff] }
 0x225   : > { %6654 = vmatprep.subr.bf16.mxu0 %v6653_v19  ;;  %v1772_v19 = vld [vmem:[%s7803_s29 + $0x2da8] sm:$0xff]  ;;  %v6671_v22 = vpack.c.bf16 %v1769_v21, %v1767_v16  ;;  %v759_v7 = vld [vmem:[%s7803_s29 + $0xe00] sm:$0xff]  ;;  %v766_v16 = vld [vmem:[%s7803_s29 + $0xe38] sm:$0xff] }
 0x226   : > { %v1788_v21 = vld [vmem:[%s7803_s29 + $0x2e28] sm:$0xff]  ;;  %v1802_v0 = vld [vmem:[%s7803_s29 + $0x2e98] sm:$0xff] }
 0x227   : > { %5632 = vmatpush1.bf16.msra.mxu1 %v5631_v26  ;;  %v749_v26 = vld [vmem:[%s7803_s29 + $0xdb0] sm:$0xff]  ;;  %v1800_v63 = vld [vmem:[%s7803_s29 + $0x2e88] sm:$0xff] }
 0x228   : > { %6656 = vmatpush1.bf16.msra.mxu0 %v6655_v29  ;;  %5634 = vmatprep.subr.bf16.mxu1 %v5633_v31  ;;  %v1771_v29 = vld [vmem:[%s7803_s29 + $0x2da0] sm:$0xff]  ;;  %v6673_v31 = vpack.c.bf16 %v1774_v11, %v1772_v19  ;;  %v5651_v38 = vpack.c.bf16 %v749_v26, %v747_v24  ;;  %v2546_v19 = vrot.slane %v8704_v35, %v8262_v8 }
 0x229   : > { %6658 = vmatprep.subr.bf16.mxu0 %v6657_v36  ;;  %v1776_v36 = vld [vmem:[%s7803_s29 + $0x2dc8] sm:$0xff]  ;;  %v6675_v39 = vpack.c.bf16 %v1773_v32, %v1771_v29  ;;  %v1787_v24 = vld [vmem:[%s7803_s29 + $0x2e20] sm:$0xff]  ;;  %v6689_v26 = vpack.c.bf16 %v1790_v17, %v1788_v21  ;;  %v1789_v29 = vld [vmem:[%s7803_s29 + $0x2e30] sm:$0xff] }
 0x22a   : > { %v770_v32 = vld [vmem:[%s7803_s29 + $0xe58] sm:$0xff] }
 0x22b   : > { %5636 = vmatpush1.bf16.msra.mxu1 %v5635_v42  ;;  %v753_v42 = vld [vmem:[%s7803_s29 + $0xdd0] sm:$0xff] }
 0x22c   : > { %6660 = vmatpush1.bf16.msra.mxu0 %v6659_v44  ;;  %5638 = vmatprep.subr.bf16.mxu1 %v5637_v45  ;;  %v1775_v44 = vld [vmem:[%s7803_s29 + $0x2dc0] sm:$0xff]  ;;  %v6677_v45 = vpack.c.bf16 %v1778_v37, %v1776_v36  ;;  %v5655_v52 = vpack.c.bf16 %v753_v42, %v751_v41  ;;  %v1794_v36 = vld [vmem:[%s7803_s29 + $0x2e58] sm:$0xff]  ;;  %v2558_v37 = vrot.slane %v8704_v35, %v8271_v20 }
 0x22d   : > { %6662 = vmatprep.subr.bf16.mxu0 %v6661_v50  ;;  %v1780_v50 = vld [vmem:[%s7803_s29 + $0x2de8] sm:$0xff]  ;;  %v6679_v53 = vpack.c.bf16 %v1777_v46, %v1775_v44  ;;  %v767_v41 = vld [vmem:[%s7803_s29 + $0xe40] sm:$0xff]  ;;  %v6693_v44 = vpack.c.bf16 %v1794_v36, %v1792_v34  ;;  %v774_v35 = vld [vmem:[%s7803_s29 + $0xe78] sm:$0xff] }
 0x22e   : > { %v1791_v42 = vld [vmem:[%s7803_s29 + $0x2e40] sm:$0xff]  ;;  %v772_v46 = vld [vmem:[%s7803_s29 + $0xe68] sm:$0xff]  ;;  %v785_v36 = vld [vmem:[%s7803_s29 + $0xed0] sm:$0xff] }
 0x22f   : > { %5640 = vmatpush1.bf16.msra.mxu1 %v5639_v58  ;;  %v757_v58 = vld [vmem:[%s7803_s29 + $0xdf0] sm:$0xff]  ;;  %v783_v34 = vld [vmem:[%s7803_s29 + $0xec0] sm:$0xff] }
 0x230   : > { %6664 = vmatpush1.bf16.msra.mxu0 %v6663_v59  ;;  %5642 = vmatprep.subr.bf16.mxu1 %v5641_v60  ;;  %v1779_v59 = vld [vmem:[%s7803_s29 + $0x2de0] sm:$0xff]  ;;  %v6681_v60 = vpack.c.bf16 %v1782_v51, %v1780_v50  ;;  %v5659_v3 = vpack.c.bf16 %v757_v58, %v755_v57  ;;  %v6697_v58 = vpack.c.bf16 %v1798_v49, %v1796_v47  ;;  %v789_v47 = vld [vmem:[%s7803_s29 + $0xef0] sm:$0xff] }
 0x231   : > { %6666 = vmatprep.subr.bf16.mxu0 %v6665_v1  ;;  %v1784_v1 = vld [vmem:[%s7803_s29 + $0x2e08] sm:$0xff]  ;;  %v6683_v4 = vpack.c.bf16 %v1781_v62, %v1779_v59  ;;  %v1795_v57 = vld [vmem:[%s7803_s29 + $0x2e60] sm:$0xff]  ;;  %v1797_v59 = vld [vmem:[%s7803_s29 + $0x2e70] sm:$0xff] }
 0x232   : > { %v778_v62 = vld [vmem:[%s7803_s29 + $0xe98] sm:$0xff]  ;;  %v1811_v49 = vld [vmem:[%s7803_s29 + $0x2ee0] sm:$0xff] }
 0x233   : > { %5644 = vmatpush1.bf16.msra.mxu1 %v5643_v9  ;;  %v761_v9 = vld [vmem:[%s7803_s29 + $0xe10] sm:$0xff] }
 0x234   : > { %6668 = vmatpush1.bf16.msra.mxu0 %v6667_v12  ;;  %5646 = vmatprep.subr.bf16.mxu1 %v5645_v25  ;;  %v1783_v12 = vld [vmem:[%s7803_s29 + $0x2e00] sm:$0xff]  ;;  %v6685_v25 = vpack.c.bf16 %v1786_v2, %v1784_v1  ;;  %v5663_v18 = vpack.c.bf16 %v761_v9, %v759_v7  ;;  %v6699_v2 = vpack.c.bf16 %v1797_v59, %v1795_v57  ;;  %v1818_v57 = vld [vmem:[%s7803_s29 + $0x2f18] sm:$0xff] }
 0x235   : > { %6670 = vmatprep.subr.bf16.mxu0 %v6669_v6  ;;  %v2418_v6 = vrot.slane %v8697_v30, %v8262_v8  ;;  %v6687_v11 = vpack.c.bf16 %v1785_v13, %v1783_v12  ;;  %v769_v30 = vld [vmem:[%s7803_s29 + $0xe50] sm:$0xff]  ;;  %v1799_v7 = vld [vmem:[%s7803_s29 + $0x2e80] sm:$0xff]  ;;  %v6701_v9 = vpack.c.bf16 %v1802_v0, %v1800_v63  ;;  %v782_v13 = vld [vmem:[%s7803_s29 + $0xeb8] sm:$0xff] }
 0x236   : > { %v5671_v50 = vpack.c.bf16 %v769_v30, %v767_v41  ;;  %v1801_v12 = vld [vmem:[%s7803_s29 + $0x2e90] sm:$0xff]  ;;  %v790_v41 = vld [vmem:[%s7803_s29 + $0xef8] sm:$0xff]  ;;  %v1812_v30 = vld [vmem:[%s7803_s29 + $0x2ee8] sm:$0xff] }
 0x237   : > { %5648 = vmatpush1.bf16.msra.mxu1 %v5647_v28  ;;  %v5665_v28 = vpack.c.bf16 %v766_v16, %v764_v15  ;;  %v1804_v15 = vld [vmem:[%s7803_s29 + $0x2ea8] sm:$0xff]  ;;  %v1806_v16 = vld [vmem:[%s7803_s29 + $0x2eb8] sm:$0xff]  ;;  %v6703_v21 = vpack.c.bf16 %v1801_v12, %v1799_v7  ;;  %v793_v63 = vld [vmem:[%s7803_s29 + $0xf10] sm:$0xff] }
 0x238   : > { %6672 = vmatpush1.bf16.msra.mxu0 %v6671_v22  ;;  %5650 = vmatprep.subr.bf16.mxu1 %v5649_v23  ;;  %v763_v22 = vld [vmem:[%s7803_s29 + $0xe20] sm:$0xff]  ;;  %v765_v23 = vld [vmem:[%s7803_s29 + $0xe30] sm:$0xff]  ;;  %v1822_v7 = vld [vmem:[%s7803_s29 + $0x2f38] sm:$0xff] }
 0x239   : > { %6674 = vmatprep.subr.bf16.mxu0 %v6673_v31  ;;  %v768_v31 = vld [vmem:[%s7803_s29 + $0xe48] sm:$0xff]  ;;  %v1815_v0 = vld [vmem:[%s7803_s29 + $0x2f00] sm:$0xff] }
 0x23b   : > { %5652 = vmatpush1.bf16.msra.mxu1 %v5651_v38  ;;  %v5667_v38 = vpack.c.bf16 %v765_v23, %v763_v22  ;;  %v1805_v22 = vld [vmem:[%s7803_s29 + $0x2eb0] sm:$0xff]  ;;  %v784_v23 = vld [vmem:[%s7803_s29 + $0xec8] sm:$0xff] }
 0x23c   : > { %6676 = vmatpush1.bf16.msra.mxu0 %v6675_v39  ;;  %5654 = vmatprep.subr.bf16.mxu1 %v5653_v40  ;;  %v6691_v39 = vpack.c.bf16 %v1789_v29, %v1787_v24  ;;  %v5669_v40 = vpack.c.bf16 %v770_v32, %v768_v31  ;;  %v786_v24 = vld [vmem:[%s7803_s29 + $0xed8] sm:$0xff] }
 0x23d   : > { %6678 = vmatprep.subr.bf16.mxu0 %v6677_v45  ;;  %v1793_v45 = vld [vmem:[%s7803_s29 + $0x2e50] sm:$0xff]  ;;  %v1810_v29 = vld [vmem:[%s7803_s29 + $0x2ed8] sm:$0xff] }
 0x23e   : > { %v6695_v51 = vpack.c.bf16 %v1793_v45, %v1791_v42  ;;  %v1814_v42 = vld [vmem:[%s7803_s29 + $0x2ef8] sm:$0xff] }
 0x23f   : > { %5656 = vmatpush1.bf16.msra.mxu1 %v5655_v52  ;;  %v5673_v52 = vpack.c.bf16 %v774_v35, %v772_v46  ;;  %v787_v35 = vld [vmem:[%s7803_s29 + $0xee0] sm:$0xff] }
 0x240   : > { %6680 = vmatpush1.bf16.msra.mxu0 %v6679_v53  ;;  %5658 = vmatprep.subr.bf16.mxu1 %v5657_v56  ;;  %v771_v53 = vld [vmem:[%s7803_s29 + $0xe60] sm:$0xff]  ;;  %v773_v56 = vld [vmem:[%s7803_s29 + $0xe70] sm:$0xff] }
 0x241   : > { %6682 = vmatprep.subr.bf16.mxu0 %v6681_v60  ;;  %v776_v60 = vld [vmem:[%s7803_s29 + $0xe88] sm:$0xff]  ;;  %v5675_v1 = vpack.c.bf16 %v773_v56, %v771_v53  ;;  %v794_v53 = vld [vmem:[%s7803_s29 + $0xf18] sm:$0xff] }
 0x242   : > { %v1816_v56 = vld [vmem:[%s7803_s29 + $0x2f08] sm:$0xff] }
 0x243   : > { %5660 = vmatpush1.bf16.msra.mxu1 %v5659_v3  ;;  %v5677_v3 = vpack.c.bf16 %v778_v62, %v776_v60  ;;  %v791_v62 = vld [vmem:[%s7803_s29 + $0xf00] sm:$0xff] }
 0x244   : > { %6684 = vmatpush1.bf16.msra.mxu0 %v6683_v4  ;;  %5662 = vmatprep.subr.bf16.mxu1 %v5661_v5  ;;  %v775_v4 = vld [vmem:[%s7803_s29 + $0xe80] sm:$0xff]  ;;  %v777_v5 = vld [vmem:[%s7803_s29 + $0xe90] sm:$0xff] }
 0x245   : > { %6686 = vmatprep.subr.bf16.mxu0 %v6685_v25  ;;  %v780_v25 = vld [vmem:[%s7803_s29 + $0xea8] sm:$0xff] }
 0x246   : > { %3178 = vmatmul.mubr.f32.vlgmr.msra.gmra.mrb[0].mxu1 %v2418_v6  ;;  %v5679_v6 = vpack.c.bf16 %v777_v5, %v775_v4  ;;  %v5681_v17 = vpack.c.bf16 %v782_v13, %v780_v25  ;;  %v798_v4 = vld [vmem:[%s7803_s29 + $0xf38] sm:$0xff]  ;;  %v1820_v5 = vld [vmem:[%s7803_s29 + $0x2f28] sm:$0xff]  ;;  %v795_v13 = vld [vmem:[%s7803_s29 + $0xf20] sm:$0xff] }
 0x247   : > { %5664 = vmatpush1.bf16.msra.mxu1 %v5663_v18  ;;  %4314 = vmatmul.mubr.f32.vlgmr.msra.gmra.mrb[0].mxu0 %v2546_v19  ;;  %v779_v18 = vld [vmem:[%s7803_s29 + $0xea0] sm:$0xff]  ;;  %v781_v19 = vld [vmem:[%s7803_s29 + $0xeb0] sm:$0xff] }
 0x248   : > { %6688 = vmatpush1.bf16.msra.mxu0 %v6687_v11  ;;  %5666 = vmatprep.subr.bf16.mxu1 %v5665_v28  ;;  %v1803_v11 = vld [vmem:[%s7803_s29 + $0x2ea0] sm:$0xff]  ;;  %v6705_v28 = vpack.c.bf16 %v1806_v16, %v1804_v15  ;;  %v5683_v31 = vpack.c.bf16 %v781_v19, %v779_v18  ;;  %v797_v15 = vld [vmem:[%s7803_s29 + $0xf30] sm:$0xff]  ;;  %v802_v18 = vld [vmem:[%s7803_s29 + $0xf58] sm:$0xff] }
 0x249   : > { %6690 = vmatprep.subr.bf16.mxu0 %v6689_v26  ;;  %3248 = vmatprep.mubr.f32.mxu1 %v2430_v33  ;;  %v1808_v26 = vld [vmem:[%s7803_s29 + $0x2ec8] sm:$0xff]  ;;  %v6707_v32 = vpack.c.bf16 %v1805_v22, %v1803_v11  ;;  %v5685_v33 = vpack.c.bf16 %v786_v24, %v784_v23  ;;  %v1819_v16 = vld [vmem:[%s7803_s29 + $0x2f20] sm:$0xff]  ;;  %v1826_v11 = vld [vmem:[%s7803_s29 + $0x2f58] sm:$0xff] }
 0x24a   : > { %4384 = vmatprep.mubr.f32.mxu0 %v2558_v37  ;;  %v1807_v37 = vld [vmem:[%s7803_s29 + $0x2ec0] sm:$0xff]  ;;  %v1824_v19 = vld [vmem:[%s7803_s29 + $0x2f48] sm:$0xff] }
 0x24b   : > { %5668 = vmatpush1.bf16.msra.mxu1 %v5667_v38  ;;  %v6709_v38 = vpack.c.bf16 %v1810_v29, %v1808_v26  ;;  %v799_v24 = vld [vmem:[%s7803_s29 + $0xf40] sm:$0xff]  ;;  %v801_v26 = vld [vmem:[%s7803_s29 + $0xf50] sm:$0xff] }
 0x24c   : > { %6692 = vmatpush1.bf16.msra.mxu0 %v6691_v39  ;;  %5670 = vmatprep.subr.bf16.mxu1 %v5669_v40  ;;  %v1809_v39 = vld [vmem:[%s7803_s29 + $0x2ed0] sm:$0xff]  ;;  %v788_v40 = vld [vmem:[%s7803_s29 + $0xee8] sm:$0xff]  ;;  %v1823_v29 = vld [vmem:[%s7803_s29 + $0x2f40] sm:$0xff] }
 0x24d   : > { %6694 = vmatprep.subr.bf16.mxu0 %v6693_v44  ;;  %v5687_v44 = vpack.c.bf16 %v785_v36, %v783_v34  ;;  %v6711_v45 = vpack.c.bf16 %v1809_v39, %v1807_v37  ;;  %v5689_v46 = vpack.c.bf16 %v790_v41, %v788_v40  ;;  %v806_v34 = vld [vmem:[%s7803_s29 + $0xf78] sm:$0xff]  ;;  %v1828_v36 = vld [vmem:[%s7803_s29 + $0x2f68] sm:$0xff]  ;;  %v803_v41 = vld [vmem:[%s7803_s29 + $0xf60] sm:$0xff] }
 0x24e   : > { %v1830_v37 = vld [vmem:[%s7803_s29 + $0x2f78] sm:$0xff] }
 0x24f   : > { %5672 = vmatpush1.bf16.msra.mxu1 %v5671_v50  ;;  %v6713_v50 = vpack.c.bf16 %v1814_v42, %v1812_v30  ;;  %v805_v30 = vld [vmem:[%s7803_s29 + $0xf70] sm:$0xff]  ;;  %v1827_v42 = vld [vmem:[%s7803_s29 + $0x2f60] sm:$0xff] }
 0x250   : > { %6696 = vmatpush1.bf16.msra.mxu0 %v6695_v51  ;;  %5674 = vmatprep.subr.bf16.mxu1 %v5673_v52  ;;  %v1813_v51 = vld [vmem:[%s7803_s29 + $0x2ef0] sm:$0xff]  ;;  %v792_v52 = vld [vmem:[%s7803_s29 + $0xf08] sm:$0xff] }
 0x251   : > { %6698 = vmatprep.subr.bf16.mxu0 %v6697_v58  ;;  %v5691_v58 = vpack.c.bf16 %v789_v47, %v787_v35  ;;  %v6715_v59 = vpack.c.bf16 %v1813_v51, %v1811_v49  ;;  %v5693_v60 = vpack.c.bf16 %v794_v53, %v792_v52  ;;  %v810_v35 = vld [vmem:[%s7803_s29 + $0xf98] sm:$0xff]  ;;  %v1832_v47 = vld [vmem:[%s7803_s29 + $0x2f88] sm:$0xff]  ;;  %v807_v53 = vld [vmem:[%s7803_s29 + $0xf80] sm:$0xff] }
 0x252   : > { %v1834_v49 = vld [vmem:[%s7803_s29 + $0x2f98] sm:$0xff] }
 0x253   : > { %5676 = vmatpush1.bf16.msra.mxu1 %v5675_v1  ;;  %v6717_v1 = vpack.c.bf16 %v1818_v57, %v1816_v56  ;;  %v809_v56 = vld [vmem:[%s7803_s29 + $0xf90] sm:$0xff]  ;;  %v1831_v57 = vld [vmem:[%s7803_s29 + $0x2f80] sm:$0xff] }
 0x254   : > { %6700 = vmatpush1.bf16.msra.mxu0 %v6699_v2  ;;  %5678 = vmatprep.subr.bf16.mxu1 %v5677_v3  ;;  %v1817_v2 = vld [vmem:[%s7803_s29 + $0x2f10] sm:$0xff]  ;;  %v796_v3 = vld [vmem:[%s7803_s29 + $0xf28] sm:$0xff] }
 0x255   : > { %6702 = vmatprep.subr.bf16.mxu0 %v6701_v9  ;;  %v5695_v9 = vpack.c.bf16 %v793_v63, %v791_v62  ;;  %v6719_v12 = vpack.c.bf16 %v1817_v2, %v1815_v0  ;;  %v5697_v25 = vpack.c.bf16 %v798_v4, %v796_v3  ;;  %v814_v62 = vld [vmem:[%s7803_s29 + $0xfb8] sm:$0xff]  ;;  %v1836_v63 = vld [vmem:[%s7803_s29 + $0x2fa8] sm:$0xff]  ;;  %v811_v4 = vld [vmem:[%s7803_s29 + $0xfa0] sm:$0xff] }
 0x256   : > { %v1838_v0 = vld [vmem:[%s7803_s29 + $0x2fb8] sm:$0xff] }
 0x257   : > { %5680 = vmatpush1.bf16.msra.mxu1 %v5679_v6  ;;  %v6721_v6 = vpack.c.bf16 %v1822_v7, %v1820_v5  ;;  %v813_v5 = vld [vmem:[%s7803_s29 + $0xfb0] sm:$0xff]  ;;  %v1835_v7 = vld [vmem:[%s7803_s29 + $0x2fa0] sm:$0xff] }
 0x258   : > { %6704 = vmatpush1.bf16.msra.mxu0 %v6703_v21  ;;  %5682 = vmatprep.subr.bf16.mxu1 %v5681_v17  ;;  %v1821_v21 = vld [vmem:[%s7803_s29 + $0x2f30] sm:$0xff]  ;;  %v800_v17 = vld [vmem:[%s7803_s29 + $0xf48] sm:$0xff] }
 0x259   : > { %6706 = vmatprep.subr.bf16.mxu0 %v6705_v28  ;;  %v5699_v28 = vpack.c.bf16 %v797_v15, %v795_v13  ;;  %v6723_v22 = vpack.c.bf16 %v1821_v21, %v1819_v16  ;;  %v5701_v23 = vpack.c.bf16 %v802_v18, %v800_v17  ;;  %v818_v13 = vld [vmem:[%s7803_s29 + $0xfd8] sm:$0xff]  ;;  %v1840_v15 = vld [vmem:[%s7803_s29 + $0x2fc8] sm:$0xff]  ;;  %v815_v18 = vld [vmem:[%s7803_s29 + $0xfc0] sm:$0xff] }
 0x25a   : > { %v1842_v16 = vld [vmem:[%s7803_s29 + $0x2fd8] sm:$0xff] }
 0x25b   : > { %5684 = vmatpush1.bf16.msra.mxu1 %v5683_v31  ;;  %v6725_v31 = vpack.c.bf16 %v1826_v11, %v1824_v19  ;;  %v817_v19 = vld [vmem:[%s7803_s29 + $0xfd0] sm:$0xff]  ;;  %v1839_v11 = vld [vmem:[%s7803_s29 + $0x2fc0] sm:$0xff] }
 0x25c   : > { %6708 = vmatpush1.bf16.msra.mxu0 %v6707_v32  ;;  %5686 = vmatprep.subr.bf16.mxu1 %v5685_v33  ;;  %v1825_v32 = vld [vmem:[%s7803_s29 + $0x2f50] sm:$0xff]  ;;  %v804_v33 = vld [vmem:[%s7803_s29 + $0xf68] sm:$0xff] }
 0x25d   : > { %6710 = vmatprep.subr.bf16.mxu0 %v6709_v38  ;;  %v5703_v38 = vpack.c.bf16 %v801_v26, %v799_v24  ;;  %v6727_v39 = vpack.c.bf16 %v1825_v32, %v1823_v29  ;;  %v5705_v40 = vpack.c.bf16 %v806_v34, %v804_v33  ;;  %v822_v24 = vld [vmem:[%s7803_s29 + $0xff8] sm:$0xff]  ;;  %v1844_v26 = vld [vmem:[%s7803_s29 + $0x2fe8] sm:$0xff]  ;;  %v819_v34 = vld [vmem:[%s7803_s29 + $0xfe0] sm:$0xff] }
 0x25e   : > { %v1846_v29 = vld [vmem:[%s7803_s29 + $0x2ff8] sm:$0xff] }
 0x25f   : > { %5688 = vmatpush1.bf16.msra.mxu1 %v5687_v44  ;;  %v6729_v44 = vpack.c.bf16 %v1830_v37, %v1828_v36  ;;  %v821_v36 = vld [vmem:[%s7803_s29 + $0xff0] sm:$0xff]  ;;  %v1843_v37 = vld [vmem:[%s7803_s29 + $0x2fe0] sm:$0xff] }
 0x260   : > { %6712 = vmatpush1.bf16.msra.mxu0 %v6711_v45  ;;  %5690 = vmatprep.subr.bf16.mxu1 %v5689_v46  ;;  %v1829_v45 = vld [vmem:[%s7803_s29 + $0x2f70] sm:$0xff]  ;;  %v808_v46 = vld [vmem:[%s7803_s29 + $0xf88] sm:$0xff] }
 0x261   : > { %6714 = vmatprep.subr.bf16.mxu0 %v6713_v50  ;;  %v5707_v50 = vpack.c.bf16 %v805_v30, %v803_v41  ;;  %v6731_v51 = vpack.c.bf16 %v1829_v45, %v1827_v42  ;;  %v5709_v52 = vpack.c.bf16 %v810_v35, %v808_v46  ;;  %v826_v41 = vld [vmem:[%s7803_s29 + $0x1018] sm:$0xff]  ;;  %v1848_v30 = vld [vmem:[%s7803_s29 + $0x3008] sm:$0xff]  ;;  %v823_v35 = vld [vmem:[%s7803_s29 + $0x1000] sm:$0xff] }
 0x262   : > { %v1850_v42 = vld [vmem:[%s7803_s29 + $0x3018] sm:$0xff] }
 0x263   : > { %5692 = vmatpush1.bf16.msra.mxu1 %v5691_v58  ;;  %v6733_v58 = vpack.c.bf16 %v1834_v49, %v1832_v47  ;;  %v825_v47 = vld [vmem:[%s7803_s29 + $0x1010] sm:$0xff]  ;;  %v1847_v49 = vld [vmem:[%s7803_s29 + $0x3000] sm:$0xff] }
 0x264   : > { %6716 = vmatpush1.bf16.msra.mxu0 %v6715_v59  ;;  %5694 = vmatprep.subr.bf16.mxu1 %v5693_v60  ;;  %v1833_v59 = vld [vmem:[%s7803_s29 + $0x2f90] sm:$0xff]  ;;  %v812_v60 = vld [vmem:[%s7803_s29 + $0xfa8] sm:$0xff] }
 0x265   : > { %6718 = vmatprep.subr.bf16.mxu0 %v6717_v1  ;;  %v5711_v1 = vpack.c.bf16 %v809_v56, %v807_v53  ;;  %v6735_v2 = vpack.c.bf16 %v1833_v59, %v1831_v57  ;;  %v5713_v3 = vpack.c.bf16 %v814_v62, %v812_v60  ;;  %v830_v53 = vld [vmem:[%s7803_s29 + $0x1038] sm:$0xff]  ;;  %v5727_v62 = vpack.c.bf16 %v825_v47, %v823_v35 }
 0x266   : > { %v7423_v56 = vld [vmem:[%s7931_s26 + $0x10] ss:$2 sm:$0xff]  ;;  %v8979_v60 = vld [vmem:[%s7931_s26 + $0x20] ss:$2 sm:$0xff] }
 0x267   : > { %5696 = vmatpush1.bf16.msra.mxu1 %v5695_v9  ;;  %v6737_v9 = vpack.c.bf16 %v1838_v0, %v1836_v63  ;;  %v2426_v57 = vrot.slane %v7423_v56, %v8410_v54  ;;  %v1854_v59 = vld [vmem:[%s7803_s29 + $0x3038] sm:$0xff]  ;;  %v844_v56 = vld [vmem:[%s7803_s29 + $0x10a8] sm:$0xff] }
 0x268   : > { %6720 = vmatpush1.bf16.msra.mxu0 %v6719_v12  ;;  %5698 = vmatprep.subr.bf16.mxu1 %v5697_v25  ;;  %v1837_v12 = vld [vmem:[%s7803_s29 + $0x2fb0] sm:$0xff]  ;;  %v816_v25 = vld [vmem:[%s7803_s29 + $0xfc8] sm:$0xff] }
 0x269   : > { %6722 = vmatprep.subr.bf16.mxu0 %v6721_v6  ;;  %v5715_v6 = vpack.c.bf16 %v813_v5, %v811_v4  ;;  %v6739_v21 = vpack.c.bf16 %v1837_v12, %v1835_v7  ;;  %v5717_v17 = vpack.c.bf16 %v818_v13, %v816_v25  ;;  %v7424_v63 = vld [vmem:[%s7931_s26 + $0x50] ss:$2 sm:$0xff]  ;;  %v827_v4 = vld [vmem:[%s7803_s29 + $0x1020] sm:$0xff] }
 0x26a   : > { %v2554_v0 = vrot.slane %v7424_v63, %v8410_v54  ;;  %v829_v5 = vld [vmem:[%s7803_s29 + $0x1030] sm:$0xff]  ;;  %v1851_v7 = vld [vmem:[%s7803_s29 + $0x3020] sm:$0xff]  ;;  %v832_v25 = vld [vmem:[%s7803_s29 + $0x1048] sm:$0xff] }
 0x26b   : > { %5700 = vmatpush1.bf16.msra.mxu1 %v5699_v28  ;;  %v6741_v28 = vpack.c.bf16 %v1842_v16, %v1840_v15  ;;  %v1853_v12 = vld [vmem:[%s7803_s29 + $0x3030] sm:$0xff]  ;;  %v834_v13 = vld [vmem:[%s7803_s29 + $0x1058] sm:$0xff]  ;;  %v2438_v15 = vrot.slane %v8979_v60, %v7922_v10  ;;  %v1856_v16 = vld [vmem:[%s7803_s29 + $0x3048] sm:$0xff] }
 0x26c   : > { %6724 = vmatpush1.bf16.msra.mxu0 %v6723_v22  ;;  %5702 = vmatprep.subr.bf16.mxu1 %v5701_v23  ;;  %v1841_v22 = vld [vmem:[%s7803_s29 + $0x2fd0] sm:$0xff]  ;;  %v820_v23 = vld [vmem:[%s7803_s29 + $0xfe8] sm:$0xff] }
 0x26d   : > { %6726 = vmatprep.subr.bf16.mxu0 %v6725_v31  ;;  %v5719_v31 = vpack.c.bf16 %v817_v19, %v815_v18  ;;  %v6743_v32 = vpack.c.bf16 %v1841_v22, %v1839_v11  ;;  %v5721_v33 = vpack.c.bf16 %v822_v24, %v820_v23  ;;  %v6755_v18 = vpack.c.bf16 %v1853_v12, %v1851_v7  ;;  %v831_v11 = vld [vmem:[%s7803_s29 + $0x1040] sm:$0xff]  ;;  %v1857_v24 = vld [vmem:[%s7803_s29 + $0x3050] sm:$0xff]  ;;  %v850_v12 = vld [vmem:[%s7803_s29 + $0x10d8] sm:$0xff] }
 0x26e   : > { %v5733_v19 = vpack.c.bf16 %v834_v13, %v832_v25  ;;  %v1855_v22 = vld [vmem:[%s7803_s29 + $0x3040] sm:$0xff]  ;;  %v1869_v7 = vld [vmem:[%s7803_s29 + $0x30b0] sm:$0xff]  ;;  %v1872_v25 = vld [vmem:[%s7803_s29 + $0x30c8] sm:$0xff] }
 0x26f   : > { %5704 = vmatpush1.bf16.msra.mxu1 %v5703_v38  ;;  %v6745_v38 = vpack.c.bf16 %v1846_v29, %v1844_v26  ;;  %v836_v26 = vld [vmem:[%s7803_s29 + $0x1068] sm:$0xff]  ;;  %v838_v29 = vld [vmem:[%s7803_s29 + $0x1078] sm:$0xff] }
 0x270   : > { %6728 = vmatpush1.bf16.msra.mxu0 %v6727_v39  ;;  %5706 = vmatprep.subr.bf16.mxu1 %v5705_v40  ;;  %v1845_v39 = vld [vmem:[%s7803_s29 + $0x2ff0] sm:$0xff]  ;;  %v824_v40 = vld [vmem:[%s7803_s29 + $0x1008] sm:$0xff]  ;;  %v1874_v13 = vld [vmem:[%s7803_s29 + $0x30d8] sm:$0xff] }
 0x271   : > { %6730 = vmatprep.subr.bf16.mxu0 %v6729_v44  ;;  %v5723_v44 = vpack.c.bf16 %v821_v36, %v819_v34  ;;  %v6747_v45 = vpack.c.bf16 %v1845_v39, %v1843_v37  ;;  %v5725_v46 = vpack.c.bf16 %v826_v41, %v824_v40  ;;  %v6759_v34 = vpack.c.bf16 %v1857_v24, %v1855_v22  ;;  %v835_v37 = vld [vmem:[%s7803_s29 + $0x1060] sm:$0xff]  ;;  %v1861_v41 = vld [vmem:[%s7803_s29 + $0x3070] sm:$0xff]  ;;  %v854_v22 = vld [vmem:[%s7803_s29 + $0x10f8] sm:$0xff] }
 0x272   : > { %v5737_v36 = vpack.c.bf16 %v838_v29, %v836_v26  ;;  %v1859_v39 = vld [vmem:[%s7803_s29 + $0x3060] sm:$0xff]  ;;  %v1878_v24 = vld [vmem:[%s7803_s29 + $0x30f8] sm:$0xff] }
 0x273   : > { %5708 = vmatpush1.bf16.msra.mxu1 %v5707_v50  ;;  %v6749_v50 = vpack.c.bf16 %v1850_v42, %v1848_v30  ;;  %v840_v30 = vld [vmem:[%s7803_s29 + $0x1088] sm:$0xff]  ;;  %v842_v42 = vld [vmem:[%s7803_s29 + $0x1098] sm:$0xff]  ;;  %v6763_v35 = vpack.c.bf16 %v1861_v41, %v1859_v39 }
 0x274   : > { %6732 = vmatpush1.bf16.msra.mxu0 %v6731_v51  ;;  %5710 = vmatprep.subr.bf16.mxu1 %v5709_v52  ;;  %v1849_v51 = vld [vmem:[%s7803_s29 + $0x3010] sm:$0xff]  ;;  %v828_v52 = vld [vmem:[%s7803_s29 + $0x1028] sm:$0xff]  ;;  %v5741_v47 = vpack.c.bf16 %v842_v42, %v840_v30  ;;  %v858_v39 = vld [vmem:[%s7803_s29 + $0x1118] sm:$0xff] }
 0x275   : > { %6734 = vmatprep.subr.bf16.mxu0 %v6733_v58  ;;  %v1852_v58 = vld [vmem:[%s7803_s29 + $0x3028] sm:$0xff]  ;;  %v1882_v41 = vld [vmem:[%s7803_s29 + $0x3118] sm:$0xff] }
 0x277   : > { %5712 = vmatpush1.bf16.msra.mxu1 %v5711_v1  ;;  %v8984_v1 = vld [vmem:[%s7931_s26 + $0x60] ss:$2 sm:$0xff] }
 0x278   : > { %6736 = vmatpush1.bf16.msra.mxu0 %v6735_v2  ;;  %5714 = vmatprep.subr.bf16.mxu1 %v5713_v3  ;;  %v6751_v2 = vpack.c.bf16 %v1849_v51, %v1847_v49  ;;  %v5729_v3 = vpack.c.bf16 %v830_v53, %v828_v52  ;;  %v839_v49 = vld [vmem:[%s7803_s29 + $0x1080] sm:$0xff]  ;;  %v1865_v53 = vld [vmem:[%s7803_s29 + $0x3090] sm:$0xff] }
 0x279   : > { %6738 = vmatprep.subr.bf16.mxu0 %v6737_v9  ;;  %v6753_v9 = vpack.c.bf16 %v1854_v59, %v1852_v58  ;;  %v1863_v51 = vld [vmem:[%s7803_s29 + $0x3080] sm:$0xff]  ;;  %v1868_v58 = vld [vmem:[%s7803_s29 + $0x30a8] sm:$0xff]  ;;  %v1870_v59 = vld [vmem:[%s7803_s29 + $0x30b8] sm:$0xff] }
 0x27a   : > { %v6767_v63 = vpack.c.bf16 %v1865_v53, %v1863_v51  ;;  %v862_v51 = vld [vmem:[%s7803_s29 + $0x1138] sm:$0xff] }
 0x27b   : > { %5716 = vmatpush1.bf16.msra.mxu1 %v5715_v6  ;;  %v1858_v6 = vld [vmem:[%s7803_s29 + $0x3058] sm:$0xff] }
 0x27c   : > { %6740 = vmatpush1.bf16.msra.mxu0 %v6739_v21  ;;  %5718 = vmatprep.subr.bf16.mxu1 %v5717_v17  ;;  %v2566_v21 = vrot.slane %v8984_v1, %v7922_v10  ;;  %v5731_v17 = vpack.c.bf16 %v829_v5, %v827_v4  ;;  %v6757_v23 = vpack.c.bf16 %v1858_v6, %v1856_v16  ;;  %v1867_v4 = vld [vmem:[%s7803_s29 + $0x30a0] sm:$0xff]  ;;  %v1886_v53 = vld [vmem:[%s7803_s29 + $0x3138] sm:$0xff] }
 0x27d   : > { %6742 = vmatprep.subr.bf16.mxu0 %v6741_v28  ;;  %v833_v28 = vld [vmem:[%s7803_s29 + $0x1050] sm:$0xff]  ;;  %v6769_v5 = vpack.c.bf16 %v1870_v59, %v1868_v58  ;;  %v6771_v16 = vpack.c.bf16 %v1869_v7, %v1867_v4  ;;  %v859_v59 = vld [vmem:[%s7803_s29 + $0x1120] sm:$0xff]  ;;  %v866_v4 = vld [vmem:[%s7803_s29 + $0x1158] sm:$0xff] }
 0x27e   : > { %v1890_v7 = vld [vmem:[%s7803_s29 + $0x3158] sm:$0xff] }
 0x27f   : > { %5720 = vmatpush1.bf16.msra.mxu1 %v5719_v31  ;;  %v1860_v31 = vld [vmem:[%s7803_s29 + $0x3068] sm:$0xff] }
 0x280   : > { %6744 = vmatpush1.bf16.msra.mxu0 %v6743_v32  ;;  %5722 = vmatprep.subr.bf16.mxu1 %v5721_v33  ;;  %v1862_v32 = vld [vmem:[%s7803_s29 + $0x3078] sm:$0xff]  ;;  %v5735_v33 = vpack.c.bf16 %v833_v28, %v831_v11  ;;  %v1873_v11 = vld [vmem:[%s7803_s29 + $0x30d0] sm:$0xff]  ;;  %v852_v28 = vld [vmem:[%s7803_s29 + $0x10e8] sm:$0xff] }
 0x281   : > { %6746 = vmatprep.subr.bf16.mxu0 %v6745_v38  ;;  %v837_v38 = vld [vmem:[%s7803_s29 + $0x1070] sm:$0xff]  ;;  %v6761_v40 = vpack.c.bf16 %v1862_v32, %v1860_v31  ;;  %v5753_v31 = vpack.c.bf16 %v854_v22, %v852_v28  ;;  %v851_v32 = vld [vmem:[%s7803_s29 + $0x10e0] sm:$0xff] }
 0x283   : > { %5724 = vmatpush1.bf16.msra.mxu1 %v5723_v44  ;;  %v1864_v44 = vld [vmem:[%s7803_s29 + $0x3088] sm:$0xff] }
 0x284   : > { %6748 = vmatpush1.bf16.msra.mxu0 %v6747_v45  ;;  %5726 = vmatprep.subr.bf16.mxu1 %v5725_v46  ;;  %v1866_v45 = vld [vmem:[%s7803_s29 + $0x3098] sm:$0xff]  ;;  %v5739_v46 = vpack.c.bf16 %v837_v38, %v835_v37  ;;  %v1877_v37 = vld [vmem:[%s7803_s29 + $0x30f0] sm:$0xff]  ;;  %v856_v38 = vld [vmem:[%s7803_s29 + $0x1108] sm:$0xff] }
 0x285   : > { %6750 = vmatprep.subr.bf16.mxu0 %v6749_v50  ;;  %v841_v50 = vld [vmem:[%s7803_s29 + $0x1090] sm:$0xff]  ;;  %v6765_v52 = vpack.c.bf16 %v1866_v45, %v1864_v44  ;;  %v5757_v44 = vpack.c.bf16 %v858_v39, %v856_v38  ;;  %v855_v45 = vld [vmem:[%s7803_s29 + $0x1100] sm:$0xff] }
 0x286   : > { %3249 = vmatmul.mubr.f32.vlgmr.msra.gmra.mrb[0].mxu1 %v2426_v57  ;;  %v846_v57 = vld [vmem:[%s7803_s29 + $0x10b8] sm:$0xff] }
 0x287   : > { %5728 = vmatpush1.bf16.msra.mxu1 %v5727_v62  ;;  %4385 = vmatmul.mubr.f32.vlgmr.msra.gmra.mrb[0].mxu0 %v2554_v0  ;;  %v5743_v62 = vpack.c.bf16 %v841_v50, %v839_v49  ;;  %v5745_v0 = vpack.c.bf16 %v846_v57, %v844_v56  ;;  %v1881_v49 = vld [vmem:[%s7803_s29 + $0x3110] sm:$0xff]  ;;  %v860_v50 = vld [vmem:[%s7803_s29 + $0x1128] sm:$0xff] }
 0x288   : > { %6752 = vmatpush1.bf16.msra.mxu0 %v6751_v2  ;;  %5730 = vmatprep.subr.bf16.mxu1 %v5729_v3  ;;  %v843_v2 = vld [vmem:[%s7803_s29 + $0x10a0] sm:$0xff]  ;;  %v845_v3 = vld [vmem:[%s7803_s29 + $0x10b0] sm:$0xff]  ;;  %v5761_v58 = vpack.c.bf16 %v862_v51, %v860_v50 }
 0x289   : > { %6754 = vmatprep.subr.bf16.mxu0 %v6753_v9  ;;  %3319 = vmatprep.mubr.f32.mxu1 %v2438_v15  ;;  %v848_v9 = vld [vmem:[%s7803_s29 + $0x10c8] sm:$0xff]  ;;  %v5747_v15 = vpack.c.bf16 %v845_v3, %v843_v2  ;;  %v1885_v2 = vld [vmem:[%s7803_s29 + $0x3130] sm:$0xff] }
 0x28a   : > { %4455 = vmatprep.mubr.f32.mxu0 %v2566_v21  ;;  %v5749_v6 = vpack.c.bf16 %v850_v12, %v848_v9  ;;  %v847_v21 = vld [vmem:[%s7803_s29 + $0x10c0] sm:$0xff]  ;;  %v864_v3 = vld [vmem:[%s7803_s29 + $0x1148] sm:$0xff] }
 0x28b   : > { %5732 = vmatpush1.bf16.msra.mxu1 %v5731_v17  ;;  %v849_v17 = vld [vmem:[%s7803_s29 + $0x10d0] sm:$0xff] }
 0x28c   : > { %6756 = vmatpush1.bf16.msra.mxu0 %v6755_v18  ;;  %5734 = vmatprep.subr.bf16.mxu1 %v5733_v19  ;;  %v1871_v18 = vld [vmem:[%s7803_s29 + $0x30c0] sm:$0xff]  ;;  %v6773_v19 = vpack.c.bf16 %v1874_v13, %v1872_v25  ;;  %v5751_v26 = vpack.c.bf16 %v849_v17, %v847_v21  ;;  %v5765_v25 = vpack.c.bf16 %v866_v4, %v864_v3  ;;  %v1889_v21 = vld [vmem:[%s7803_s29 + $0x3150] sm:$0xff]  ;;  %v868_v17 = vld [vmem:[%s7803_s29 + $0x1168] sm:$0xff] }
 0x28d   : > { %6758 = vmatprep.subr.bf16.mxu0 %v6757_v23  ;;  %v1876_v23 = vld [vmem:[%s7803_s29 + $0x30e8] sm:$0xff]  ;;  %v6775_v29 = vpack.c.bf16 %v1873_v11, %v1871_v18  ;;  %v863_v13 = vld [vmem:[%s7803_s29 + $0x1140] sm:$0xff]  ;;  %v870_v18 = vld [vmem:[%s7803_s29 + $0x1178] sm:$0xff] }
 0x28e   : > { %v1894_v11 = vld [vmem:[%s7803_s29 + $0x3178] sm:$0xff] }
 0x28f   : > { %5736 = vmatpush1.bf16.msra.mxu1 %v5735_v33  ;;  %v853_v33 = vld [vmem:[%s7803_s29 + $0x10f0] sm:$0xff] }
 0x290   : > { %6760 = vmatpush1.bf16.msra.mxu0 %v6759_v34  ;;  %5738 = vmatprep.subr.bf16.mxu1 %v5737_v36  ;;  %v1875_v34 = vld [vmem:[%s7803_s29 + $0x30e0] sm:$0xff]  ;;  %v6777_v36 = vpack.c.bf16 %v1878_v24, %v1876_v23  ;;  %v5755_v30 = vpack.c.bf16 %v853_v33, %v851_v32  ;;  %v5769_v23 = vpack.c.bf16 %v870_v18, %v868_v17  ;;  %v1893_v32 = vld [vmem:[%s7803_s29 + $0x3170] sm:$0xff]  ;;  %v872_v33 = vld [vmem:[%s7803_s29 + $0x1188] sm:$0xff] }
 0x291   : > { %6762 = vmatprep.subr.bf16.mxu0 %v6761_v40  ;;  %v1880_v40 = vld [vmem:[%s7803_s29 + $0x3108] sm:$0xff]  ;;  %v6779_v42 = vpack.c.bf16 %v1877_v37, %v1875_v34  ;;  %v867_v24 = vld [vmem:[%s7803_s29 + $0x1160] sm:$0xff]  ;;  %v874_v34 = vld [vmem:[%s7803_s29 + $0x1198] sm:$0xff] }
 0x292   : > { %v1898_v37 = vld [vmem:[%s7803_s29 + $0x3198] sm:$0xff] }
 0x293   : > { %5740 = vmatpush1.bf16.msra.mxu1 %v5739_v46  ;;  %v857_v46 = vld [vmem:[%s7803_s29 + $0x1110] sm:$0xff] }
 0x294   : > { %6764 = vmatpush1.bf16.msra.mxu0 %v6763_v35  ;;  %5742 = vmatprep.subr.bf16.mxu1 %v5741_v47  ;;  %v1879_v35 = vld [vmem:[%s7803_s29 + $0x3100] sm:$0xff]  ;;  %v6781_v47 = vpack.c.bf16 %v1882_v41, %v1880_v40  ;;  %v5759_v56 = vpack.c.bf16 %v857_v46, %v855_v45  ;;  %v5773_v40 = vpack.c.bf16 %v874_v34, %v872_v33  ;;  %v1897_v45 = vld [vmem:[%s7803_s29 + $0x3190] sm:$0xff]  ;;  %v876_v46 = vld [vmem:[%s7803_s29 + $0x11a8] sm:$0xff] }
 0x295   : > { %6766 = vmatprep.subr.bf16.mxu0 %v6765_v52  ;;  %v1884_v52 = vld [vmem:[%s7803_s29 + $0x3128] sm:$0xff]  ;;  %v6783_v57 = vpack.c.bf16 %v1881_v49, %v1879_v35  ;;  %v871_v41 = vld [vmem:[%s7803_s29 + $0x1180] sm:$0xff]  ;;  %v878_v35 = vld [vmem:[%s7803_s29 + $0x11b8] sm:$0xff] }
 0x296   : > { %v1902_v49 = vld [vmem:[%s7803_s29 + $0x31b8] sm:$0xff] }
 0x297   : > { %5744 = vmatpush1.bf16.msra.mxu1 %v5743_v62  ;;  %v861_v62 = vld [vmem:[%s7803_s29 + $0x1130] sm:$0xff] }
 0x298   : > { %6768 = vmatpush1.bf16.msra.mxu0 %v6767_v63  ;;  %5746 = vmatprep.subr.bf16.mxu1 %v5745_v0  ;;  %v1883_v63 = vld [vmem:[%s7803_s29 + $0x3120] sm:$0xff]  ;;  %v6785_v0 = vpack.c.bf16 %v1886_v53, %v1884_v52  ;;  %v5763_v9 = vpack.c.bf16 %v861_v62, %v859_v59  ;;  %v5777_v52 = vpack.c.bf16 %v878_v35, %v876_v46  ;;  %v1901_v59 = vld [vmem:[%s7803_s29 + $0x31b0] sm:$0xff]  ;;  %v880_v62 = vld [vmem:[%s7803_s29 + $0x11c8] sm:$0xff] }
 0x299   : > { %6770 = vmatprep.subr.bf16.mxu0 %v6769_v5  ;;  %v1888_v5 = vld [vmem:[%s7803_s29 + $0x3148] sm:$0xff]  ;;  %v6787_v12 = vpack.c.bf16 %v1885_v2, %v1883_v63  ;;  %v875_v53 = vld [vmem:[%s7803_s29 + $0x11a0] sm:$0xff]  ;;  %v882_v63 = vld [vmem:[%s7803_s29 + $0x11d8] sm:$0xff] }
 0x29a   : > { %v1906_v2 = vld [vmem:[%s7803_s29 + $0x31d8] sm:$0xff] }
 0x29b   : > { %5748 = vmatpush1.bf16.msra.mxu1 %v5747_v15  ;;  %v865_v15 = vld [vmem:[%s7803_s29 + $0x1150] sm:$0xff]  ;;  %v1918_v46 = vld [vmem:[%s7803_s29 + $0x3238] sm:$0xff] }
 0x29c   : > { %6772 = vmatpush1.bf16.msra.mxu0 %v6771_v16  ;;  %5750 = vmatprep.subr.bf16.mxu1 %v5749_v6  ;;  %v1887_v16 = vld [vmem:[%s7803_s29 + $0x3140] sm:$0xff]  ;;  %v6789_v6 = vpack.c.bf16 %v1890_v7, %v1888_v5  ;;  %v5767_v28 = vpack.c.bf16 %v865_v15, %v863_v13  ;;  %v5781_v5 = vpack.c.bf16 %v882_v63, %v880_v62  ;;  %v1905_v13 = vld [vmem:[%s7803_s29 + $0x31d0] sm:$0xff]  ;;  %v884_v15 = vld [vmem:[%s7803_s29 + $0x11e8] sm:$0xff] }
 0x29d   : > { %6774 = vmatprep.subr.bf16.mxu0 %v6773_v19  ;;  %v1892_v19 = vld [vmem:[%s7803_s29 + $0x3168] sm:$0xff]  ;;  %v6791_v22 = vpack.c.bf16 %v1889_v21, %v1887_v16  ;;  %v879_v7 = vld [vmem:[%s7803_s29 + $0x11c0] sm:$0xff]  ;;  %v886_v16 = vld [vmem:[%s7803_s29 + $0x11f8] sm:$0xff]  ;;  %v2446_v62 = vrot.slane %v8979_v60, %v7987_v27 }
 0x29e   : > { %v1910_v21 = vld [vmem:[%s7803_s29 + $0x31f8] sm:$0xff]  ;;  %v1920_v63 = vld [vmem:[%s7803_s29 + $0x3248] sm:$0xff] }
 0x29f   : > { %5752 = vmatpush1.bf16.msra.mxu1 %v5751_v26  ;;  %v869_v26 = vld [vmem:[%s7803_s29 + $0x1170] sm:$0xff] }
 0x2a0   : > { %6776 = vmatpush1.bf16.msra.mxu0 %v6775_v29  ;;  %5754 = vmatprep.subr.bf16.mxu1 %v5753_v31  ;;  %v1891_v29 = vld [vmem:[%s7803_s29 + $0x3160] sm:$0xff]  ;;  %v6793_v31 = vpack.c.bf16 %v1894_v11, %v1892_v19  ;;  %v5771_v38 = vpack.c.bf16 %v869_v26, %v867_v24  ;;  %v5785_v19 = vpack.c.bf16 %v886_v16, %v884_v15  ;;  %v1909_v24 = vld [vmem:[%s7803_s29 + $0x31f0] sm:$0xff]  ;;  %v888_v26 = vld [vmem:[%s7803_s29 + $0x1208] sm:$0xff] }
 0x2a1   : > { %6778 = vmatprep.subr.bf16.mxu0 %v6777_v36  ;;  %v1896_v36 = vld [vmem:[%s7803_s29 + $0x3188] sm:$0xff]  ;;  %v6795_v39 = vpack.c.bf16 %v1893_v32, %v1891_v29  ;;  %v883_v11 = vld [vmem:[%s7803_s29 + $0x11e0] sm:$0xff]  ;;  %v890_v29 = vld [vmem:[%s7803_s29 + $0x1218] sm:$0xff] }
 0x2a2   : > { %v1914_v32 = vld [vmem:[%s7803_s29 + $0x3218] sm:$0xff]  ;;  %v1924_v15 = vld [vmem:[%s7803_s29 + $0x3268] sm:$0xff] }
 0x2a3   : > { %5756 = vmatpush1.bf16.msra.mxu1 %v5755_v30  ;;  %v873_v30 = vld [vmem:[%s7803_s29 + $0x1190] sm:$0xff]  ;;  %v1926_v16 = vld [vmem:[%s7803_s29 + $0x3278] sm:$0xff] }
 0x2a4   : > { %6780 = vmatpush1.bf16.msra.mxu0 %v6779_v42  ;;  %5758 = vmatprep.subr.bf16.mxu1 %v5757_v44  ;;  %v1895_v42 = vld [vmem:[%s7803_s29 + $0x3180] sm:$0xff]  ;;  %v6797_v44 = vpack.c.bf16 %v1898_v37, %v1896_v36  ;;  %v5775_v50 = vpack.c.bf16 %v873_v30, %v871_v41  ;;  %v5789_v36 = vpack.c.bf16 %v890_v29, %v888_v26  ;;  %v1913_v41 = vld [vmem:[%s7803_s29 + $0x3210] sm:$0xff]  ;;  %v892_v30 = vld [vmem:[%s7803_s29 + $0x1228] sm:$0xff] }
 0x2a5   : > { %6782 = vmatprep.subr.bf16.mxu0 %v6781_v47  ;;  %v1900_v47 = vld [vmem:[%s7803_s29 + $0x31a8] sm:$0xff]  ;;  %v6799_v51 = vpack.c.bf16 %v1897_v45, %v1895_v42  ;;  %v887_v37 = vld [vmem:[%s7803_s29 + $0x1200] sm:$0xff]  ;;  %v894_v42 = vld [vmem:[%s7803_s29 + $0x1238] sm:$0xff] }
 0x2a6   : > { %v1916_v45 = vld [vmem:[%s7803_s29 + $0x3228] sm:$0xff]  ;;  %v1930_v29 = vld [vmem:[%s7803_s29 + $0x3298] sm:$0xff] }
 0x2a7   : > { %5760 = vmatpush1.bf16.msra.mxu1 %v5759_v56  ;;  %v877_v56 = vld [vmem:[%s7803_s29 + $0x11b0] sm:$0xff]  ;;  %v1928_v26 = vld [vmem:[%s7803_s29 + $0x3288] sm:$0xff] }
 0x2a8   : > { %6784 = vmatpush1.bf16.msra.mxu0 %v6783_v57  ;;  %5762 = vmatprep.subr.bf16.mxu1 %v5761_v58  ;;  %v1899_v57 = vld [vmem:[%s7803_s29 + $0x31a0] sm:$0xff]  ;;  %v6801_v58 = vpack.c.bf16 %v1902_v49, %v1900_v47  ;;  %v5779_v3 = vpack.c.bf16 %v877_v56, %v875_v53  ;;  %v2562_v47 = vrot.slane %v8984_v1, %v7978_v14 }
 0x2a9   : > { %6786 = vmatprep.subr.bf16.mxu0 %v6785_v0  ;;  %v1904_v0 = vld [vmem:[%s7803_s29 + $0x31c8] sm:$0xff]  ;;  %v6803_v4 = vpack.c.bf16 %v1901_v59, %v1899_v57  ;;  %v1915_v53 = vld [vmem:[%s7803_s29 + $0x3220] sm:$0xff]  ;;  %v6817_v56 = vpack.c.bf16 %v1918_v46, %v1916_v45  ;;  %v1917_v57 = vld [vmem:[%s7803_s29 + $0x3230] sm:$0xff] }
 0x2aa   : > { %v898_v59 = vld [vmem:[%s7803_s29 + $0x1258] sm:$0xff] }
 0x2ab   : > { %5764 = vmatpush1.bf16.msra.mxu1 %v5763_v9  ;;  %v881_v9 = vld [vmem:[%s7803_s29 + $0x11d0] sm:$0xff] }
 0x2ac   : > { %6788 = vmatpush1.bf16.msra.mxu0 %v6787_v12  ;;  %5766 = vmatprep.subr.bf16.mxu1 %v5765_v25  ;;  %v1903_v12 = vld [vmem:[%s7803_s29 + $0x31c0] sm:$0xff]  ;;  %v6805_v25 = vpack.c.bf16 %v1906_v2, %v1904_v0  ;;  %v5783_v17 = vpack.c.bf16 %v881_v9, %v879_v7  ;;  %v1922_v0 = vld [vmem:[%s7803_s29 + $0x3258] sm:$0xff]  ;;  %v2574_v2 = vrot.slane %v8984_v1, %v7987_v27 }
 0x2ad   : > { %6790 = vmatprep.subr.bf16.mxu0 %v6789_v6  ;;  %v1908_v6 = vld [vmem:[%s7803_s29 + $0x31e8] sm:$0xff]  ;;  %v6807_v18 = vpack.c.bf16 %v1905_v13, %v1903_v12  ;;  %v895_v7 = vld [vmem:[%s7803_s29 + $0x1240] sm:$0xff]  ;;  %v6821_v12 = vpack.c.bf16 %v1922_v0, %v1920_v63  ;;  %v902_v1 = vld [vmem:[%s7803_s29 + $0x1278] sm:$0xff] }
 0x2ae   : > { %v1919_v9 = vld [vmem:[%s7803_s29 + $0x3240] sm:$0xff]  ;;  %v900_v13 = vld [vmem:[%s7803_s29 + $0x1268] sm:$0xff]  ;;  %v913_v0 = vld [vmem:[%s7803_s29 + $0x12d0] sm:$0xff] }
 0x2af   : > { %5768 = vmatpush1.bf16.msra.mxu1 %v5767_v28  ;;  %v885_v28 = vld [vmem:[%s7803_s29 + $0x11f0] sm:$0xff]  ;;  %v911_v63 = vld [vmem:[%s7803_s29 + $0x12c0] sm:$0xff] }
 0x2b0   : > { %6792 = vmatpush1.bf16.msra.mxu0 %v6791_v22  ;;  %5770 = vmatprep.subr.bf16.mxu1 %v5769_v23  ;;  %v1907_v22 = vld [vmem:[%s7803_s29 + $0x31e0] sm:$0xff]  ;;  %v6809_v23 = vpack.c.bf16 %v1910_v21, %v1908_v6  ;;  %v5787_v33 = vpack.c.bf16 %v885_v28, %v883_v11  ;;  %v6825_v28 = vpack.c.bf16 %v1926_v16, %v1924_v15  ;;  %v917_v15 = vld [vmem:[%s7803_s29 + $0x12f0] sm:$0xff] }
 0x2b1   : > { %6794 = vmatprep.subr.bf16.mxu0 %v6793_v31  ;;  %v1912_v31 = vld [vmem:[%s7803_s29 + $0x3208] sm:$0xff]  ;;  %v6811_v34 = vpack.c.bf16 %v1909_v24, %v1907_v22  ;;  %v1923_v11 = vld [vmem:[%s7803_s29 + $0x3260] sm:$0xff]  ;;  %v1925_v22 = vld [vmem:[%s7803_s29 + $0x3270] sm:$0xff] }
 0x2b2   : > { %v906_v24 = vld [vmem:[%s7803_s29 + $0x1298] sm:$0xff]  ;;  %v1939_v16 = vld [vmem:[%s7803_s29 + $0x32e0] sm:$0xff] }
 0x2b3   : > { %5772 = vmatpush1.bf16.msra.mxu1 %v5771_v38  ;;  %v889_v38 = vld [vmem:[%s7803_s29 + $0x1210] sm:$0xff] }
 0x2b4   : > { %6796 = vmatpush1.bf16.msra.mxu0 %v6795_v39  ;;  %5774 = vmatprep.subr.bf16.mxu1 %v5773_v40  ;;  %v1911_v39 = vld [vmem:[%s7803_s29 + $0x3200] sm:$0xff]  ;;  %v6813_v40 = vpack.c.bf16 %v1914_v32, %v1912_v31  ;;  %v5791_v35 = vpack.c.bf16 %v889_v38, %v887_v37  ;;  %v6827_v32 = vpack.c.bf16 %v1925_v22, %v1923_v11  ;;  %v1946_v11 = vld [vmem:[%s7803_s29 + $0x3318] sm:$0xff] }
 0x2b5   : > { %6798 = vmatprep.subr.bf16.mxu0 %v6797_v44  ;;  %v2434_v44 = vrot.slane %v8979_v60, %v7978_v14  ;;  %v6815_v49 = vpack.c.bf16 %v1913_v41, %v1911_v39  ;;  %v897_v60 = vld [vmem:[%s7803_s29 + $0x1250] sm:$0xff]  ;;  %v1927_v37 = vld [vmem:[%s7803_s29 + $0x3280] sm:$0xff]  ;;  %v6829_v38 = vpack.c.bf16 %v1930_v29, %v1928_v26  ;;  %v910_v41 = vld [vmem:[%s7803_s29 + $0x12b8] sm:$0xff] }
 0x2b6   : > { %v5799_v6 = vpack.c.bf16 %v897_v60, %v895_v7  ;;  %v1929_v39 = vld [vmem:[%s7803_s29 + $0x3290] sm:$0xff]  ;;  %v918_v7 = vld [vmem:[%s7803_s29 + $0x12f8] sm:$0xff]  ;;  %v1940_v60 = vld [vmem:[%s7803_s29 + $0x32e8] sm:$0xff] }
 0x2b7   : > { %5776 = vmatpush1.bf16.msra.mxu1 %v5775_v50  ;;  %v5793_v50 = vpack.c.bf16 %v894_v42, %v892_v30  ;;  %v1932_v30 = vld [vmem:[%s7803_s29 + $0x32a8] sm:$0xff]  ;;  %v1934_v42 = vld [vmem:[%s7803_s29 + $0x32b8] sm:$0xff]  ;;  %v6831_v45 = vpack.c.bf16 %v1929_v39, %v1927_v37  ;;  %v921_v26 = vld [vmem:[%s7803_s29 + $0x1310] sm:$0xff] }
 0x2b8   : > { %6800 = vmatpush1.bf16.msra.mxu0 %v6799_v51  ;;  %5778 = vmatprep.subr.bf16.mxu1 %v5777_v52  ;;  %v891_v51 = vld [vmem:[%s7803_s29 + $0x1220] sm:$0xff]  ;;  %v893_v52 = vld [vmem:[%s7803_s29 + $0x1230] sm:$0xff]  ;;  %v1950_v37 = vld [vmem:[%s7803_s29 + $0x3338] sm:$0xff] }
 0x2b9   : > { %6802 = vmatprep.subr.bf16.mxu0 %v6801_v58  ;;  %v896_v58 = vld [vmem:[%s7803_s29 + $0x1248] sm:$0xff]  ;;  %v1943_v29 = vld [vmem:[%s7803_s29 + $0x3300] sm:$0xff] }
 0x2bb   : > { %5780 = vmatpush1.bf16.msra.mxu1 %v5779_v3  ;;  %v5795_v3 = vpack.c.bf16 %v893_v52, %v891_v51  ;;  %v1933_v51 = vld [vmem:[%s7803_s29 + $0x32b0] sm:$0xff]  ;;  %v912_v52 = vld [vmem:[%s7803_s29 + $0x12c8] sm:$0xff] }
 0x2bc   : > { %6804 = vmatpush1.bf16.msra.mxu0 %v6803_v4  ;;  %5782 = vmatprep.subr.bf16.mxu1 %v5781_v5  ;;  %v6819_v4 = vpack.c.bf16 %v1917_v57, %v1915_v53  ;;  %v5797_v5 = vpack.c.bf16 %v898_v59, %v896_v58  ;;  %v914_v53 = vld [vmem:[%s7803_s29 + $0x12d8] sm:$0xff] }
 0x2bd   : > { %6806 = vmatprep.subr.bf16.mxu0 %v6805_v25  ;;  %v1921_v25 = vld [vmem:[%s7803_s29 + $0x3250] sm:$0xff]  ;;  %v1938_v57 = vld [vmem:[%s7803_s29 + $0x32d8] sm:$0xff] }
 0x2be   : > { %v6823_v21 = vpack.c.bf16 %v1921_v25, %v1919_v9  ;;  %v1942_v9 = vld [vmem:[%s7803_s29 + $0x32f8] sm:$0xff] }
 0x2bf   : > { %5784 = vmatpush1.bf16.msra.mxu1 %v5783_v17  ;;  %v5801_v17 = vpack.c.bf16 %v902_v1, %v900_v13  ;;  %v915_v1 = vld [vmem:[%s7803_s29 + $0x12e0] sm:$0xff] }
 0x2c0   : > { %6808 = vmatpush1.bf16.msra.mxu0 %v6807_v18  ;;  %5786 = vmatprep.subr.bf16.mxu1 %v5785_v19  ;;  %v899_v18 = vld [vmem:[%s7803_s29 + $0x1260] sm:$0xff]  ;;  %v901_v19 = vld [vmem:[%s7803_s29 + $0x1270] sm:$0xff] }
 0x2c1   : > { %6810 = vmatprep.subr.bf16.mxu0 %v6809_v23  ;;  %v904_v23 = vld [vmem:[%s7803_s29 + $0x1288] sm:$0xff]  ;;  %v5803_v31 = vpack.c.bf16 %v901_v19, %v899_v18  ;;  %v922_v18 = vld [vmem:[%s7803_s29 + $0x1318] sm:$0xff] }
 0x2c2   : > { %v1944_v19 = vld [vmem:[%s7803_s29 + $0x3308] sm:$0xff] }
 0x2c3   : > { %5788 = vmatpush1.bf16.msra.mxu1 %v5787_v33  ;;  %v5805_v33 = vpack.c.bf16 %v906_v24, %v904_v23  ;;  %v919_v24 = vld [vmem:[%s7803_s29 + $0x1300] sm:$0xff] }
 0x2c4   : > { %6812 = vmatpush1.bf16.msra.mxu0 %v6811_v34  ;;  %5790 = vmatprep.subr.bf16.mxu1 %v5789_v36  ;;  %v903_v34 = vld [vmem:[%s7803_s29 + $0x1280] sm:$0xff]  ;;  %v905_v36 = vld [vmem:[%s7803_s29 + $0x1290] sm:$0xff] }
 0x2c5   : > { %6814 = vmatprep.subr.bf16.mxu0 %v6813_v40  ;;  %v908_v40 = vld [vmem:[%s7803_s29 + $0x12a8] sm:$0xff] }
 0x2c6   : > { %3320 = vmatmul.mubr.f32.vlgmr.msra.gmra.mrb[0].mxu1 %v2434_v44  ;;  %v5807_v44 = vpack.c.bf16 %v905_v36, %v903_v34  ;;  %v5809_v46 = vpack.c.bf16 %v910_v41, %v908_v40  ;;  %v926_v34 = vld [vmem:[%s7803_s29 + $0x1338] sm:$0xff]  ;;  %v1948_v36 = vld [vmem:[%s7803_s29 + $0x3328] sm:$0xff]  ;;  %v923_v41 = vld [vmem:[%s7803_s29 + $0x1320] sm:$0xff] }
 0x2c7   : > { %5792 = vmatpush1.bf16.msra.mxu1 %v5791_v35  ;;  %4456 = vmatmul.mubr.f32.vlgmr.msra.gmra.mrb[0].mxu0 %v2562_v47  ;;  %v907_v35 = vld [vmem:[%s7803_s29 + $0x12a0] sm:$0xff]  ;;  %v909_v47 = vld [vmem:[%s7803_s29 + $0x12b0] sm:$0xff] }
 0x2c8   : > { %6816 = vmatpush1.bf16.msra.mxu0 %v6815_v49  ;;  %5794 = vmatprep.subr.bf16.mxu1 %v5793_v50  ;;  %v1931_v49 = vld [vmem:[%s7803_s29 + $0x32a0] sm:$0xff]  ;;  %v6833_v50 = vpack.c.bf16 %v1934_v42, %v1932_v30  ;;  %v5811_v58 = vpack.c.bf16 %v909_v47, %v907_v35  ;;  %v925_v30 = vld [vmem:[%s7803_s29 + $0x1330] sm:$0xff]  ;;  %v930_v35 = vld [vmem:[%s7803_s29 + $0x1358] sm:$0xff] }
 0x2c9   : > { %6818 = vmatprep.subr.bf16.mxu0 %v6817_v56  ;;  %3390 = vmatprep.mubr.f32.mxu1 %v2446_v62  ;;  %v1936_v56 = vld [vmem:[%s7803_s29 + $0x32c8] sm:$0xff]  ;;  %v6835_v59 = vpack.c.bf16 %v1933_v51, %v1931_v49  ;;  %v5813_v62 = vpack.c.bf16 %v914_v53, %v912_v52  ;;  %v1947_v42 = vld [vmem:[%s7803_s29 + $0x3320] sm:$0xff]  ;;  %v1954_v49 = vld [vmem:[%s7803_s29 + $0x3358] sm:$0xff] }
 0x2ca   : > { %4526 = vmatprep.mubr.f32.mxu0 %v2574_v2  ;;  %v1935_v2 = vld [vmem:[%s7803_s29 + $0x32c0] sm:$0xff]  ;;  %v1952_v47 = vld [vmem:[%s7803_s29 + $0x3348] sm:$0xff] }
 0x2cb   : > { %5796 = vmatpush1.bf16.msra.mxu1 %v5795_v3  ;;  %v6837_v3 = vpack.c.bf16 %v1938_v57, %v1936_v56  ;;  %v927_v53 = vld [vmem:[%s7803_s29 + $0x1340] sm:$0xff]  ;;  %v929_v56 = vld [vmem:[%s7803_s29 + $0x1350] sm:$0xff] }
 0x2cc   : > { %6820 = vmatpush1.bf16.msra.mxu0 %v6819_v4  ;;  %5798 = vmatprep.subr.bf16.mxu1 %v5797_v5  ;;  %v1937_v4 = vld [vmem:[%s7803_s29 + $0x32d0] sm:$0xff]  ;;  %v916_v5 = vld [vmem:[%s7803_s29 + $0x12e8] sm:$0xff]  ;;  %v1951_v57 = vld [vmem:[%s7803_s29 + $0x3340] sm:$0xff] }
 0x2cd   : > { %6822 = vmatprep.subr.bf16.mxu0 %v6821_v12  ;;  %v5815_v12 = vpack.c.bf16 %v913_v0, %v911_v63  ;;  %v6839_v25 = vpack.c.bf16 %v1937_v4, %v1935_v2  ;;  %v5817_v13 = vpack.c.bf16 %v918_v7, %v916_v5  ;;  %v934_v63 = vld [vmem:[%s7803_s29 + $0x1378] sm:$0xff]  ;;  %v1956_v0 = vld [vmem:[%s7803_s29 + $0x3368] sm:$0xff]  ;;  %v931_v7 = vld [vmem:[%s7803_s29 + $0x1360] sm:$0xff] }
 0x2ce   : > { %v1958_v2 = vld [vmem:[%s7803_s29 + $0x3378] sm:$0xff] }
 0x2cf   : > { %5800 = vmatpush1.bf16.msra.mxu1 %v5799_v6  ;;  %v6841_v6 = vpack.c.bf16 %v1942_v9, %v1940_v60  ;;  %v933_v60 = vld [vmem:[%s7803_s29 + $0x1370] sm:$0xff]  ;;  %v1955_v9 = vld [vmem:[%s7803_s29 + $0x3360] sm:$0xff] }
 0x2d0   : > { %6824 = vmatpush1.bf16.msra.mxu0 %v6823_v21  ;;  %5802 = vmatprep.subr.bf16.mxu1 %v5801_v17  ;;  %v1941_v21 = vld [vmem:[%s7803_s29 + $0x32f0] sm:$0xff]  ;;  %v920_v17 = vld [vmem:[%s7803_s29 + $0x1308] sm:$0xff] }
 0x2d1   : > { %6826 = vmatprep.subr.bf16.mxu0 %v6825_v28  ;;  %v5819_v28 = vpack.c.bf16 %v917_v15, %v915_v1  ;;  %v6843_v22 = vpack.c.bf16 %v1941_v21, %v1939_v16  ;;  %v5821_v23 = vpack.c.bf16 %v922_v18, %v920_v17  ;;  %v938_v1 = vld [vmem:[%s7803_s29 + $0x1398] sm:$0xff]  ;;  %v1960_v15 = vld [vmem:[%s7803_s29 + $0x3388] sm:$0xff]  ;;  %v935_v18 = vld [vmem:[%s7803_s29 + $0x1380] sm:$0xff] }
 0x2d2   : > { %v1962_v16 = vld [vmem:[%s7803_s29 + $0x3398] sm:$0xff] }
 0x2d3   : > { %5804 = vmatpush1.bf16.msra.mxu1 %v5803_v31  ;;  %v6845_v31 = vpack.c.bf16 %v1946_v11, %v1944_v19  ;;  %v937_v19 = vld [vmem:[%s7803_s29 + $0x1390] sm:$0xff]  ;;  %v1959_v11 = vld [vmem:[%s7803_s29 + $0x3380] sm:$0xff] }
 0x2d4   : > { %6828 = vmatpush1.bf16.msra.mxu0 %v6827_v32  ;;  %5806 = vmatprep.subr.bf16.mxu1 %v5805_v33  ;;  %v1945_v32 = vld [vmem:[%s7803_s29 + $0x3310] sm:$0xff]  ;;  %v924_v33 = vld [vmem:[%s7803_s29 + $0x1328] sm:$0xff] }
 0x2d5   : > { %6830 = vmatprep.subr.bf16.mxu0 %v6829_v38  ;;  %v5823_v38 = vpack.c.bf16 %v921_v26, %v919_v24  ;;  %v6847_v39 = vpack.c.bf16 %v1945_v32, %v1943_v29  ;;  %v5825_v40 = vpack.c.bf16 %v926_v34, %v924_v33  ;;  %v942_v24 = vld [vmem:[%s7803_s29 + $0x13b8] sm:$0xff]  ;;  %v1964_v26 = vld [vmem:[%s7803_s29 + $0x33a8] sm:$0xff]  ;;  %v939_v34 = vld [vmem:[%s7803_s29 + $0x13a0] sm:$0xff] }
 0x2d6   : > { %v1966_v29 = vld [vmem:[%s7803_s29 + $0x33b8] sm:$0xff] }
 0x2d7   : > { %5808 = vmatpush1.bf16.msra.mxu1 %v5807_v44  ;;  %v6849_v44 = vpack.c.bf16 %v1950_v37, %v1948_v36  ;;  %v941_v36 = vld [vmem:[%s7803_s29 + $0x13b0] sm:$0xff]  ;;  %v1963_v37 = vld [vmem:[%s7803_s29 + $0x33a0] sm:$0xff] }
 0x2d8   : > { %6832 = vmatpush1.bf16.msra.mxu0 %v6831_v45  ;;  %5810 = vmatprep.subr.bf16.mxu1 %v5809_v46  ;;  %v1949_v45 = vld [vmem:[%s7803_s29 + $0x3330] sm:$0xff]  ;;  %v928_v46 = vld [vmem:[%s7803_s29 + $0x1348] sm:$0xff] }
 0x2d9   : > { %6834 = vmatprep.subr.bf16.mxu0 %v6833_v50  ;;  %v5827_v50 = vpack.c.bf16 %v925_v30, %v923_v41  ;;  %v6851_v51 = vpack.c.bf16 %v1949_v45, %v1947_v42  ;;  %v5829_v52 = vpack.c.bf16 %v930_v35, %v928_v46  ;;  %v946_v41 = vld [vmem:[%s7803_s29 + $0x13d8] sm:$0xff]  ;;  %v1968_v30 = vld [vmem:[%s7803_s29 + $0x33c8] sm:$0xff]  ;;  %v943_v35 = vld [vmem:[%s7803_s29 + $0x13c0] sm:$0xff] }
 0x2da   : > { %v1970_v42 = vld [vmem:[%s7803_s29 + $0x33d8] sm:$0xff] }
 0x2db   : > { %5812 = vmatpush1.bf16.msra.mxu1 %v5811_v58  ;;  %v6853_v58 = vpack.c.bf16 %v1954_v49, %v1952_v47  ;;  %v945_v47 = vld [vmem:[%s7803_s29 + $0x13d0] sm:$0xff]  ;;  %v1967_v49 = vld [vmem:[%s7803_s29 + $0x33c0] sm:$0xff] }
 0x2dc   : > { %6836 = vmatpush1.bf16.msra.mxu0 %v6835_v59  ;;  %5814 = vmatprep.subr.bf16.mxu1 %v5813_v62  ;;  %v1953_v59 = vld [vmem:[%s7803_s29 + $0x3350] sm:$0xff]  ;;  %v932_v62 = vld [vmem:[%s7803_s29 + $0x1368] sm:$0xff] }
 0x2dd   : > { %6838 = vmatprep.subr.bf16.mxu0 %v6837_v3  ;;  %v5831_v3 = vpack.c.bf16 %v929_v56, %v927_v53  ;;  %v6855_v4 = vpack.c.bf16 %v1953_v59, %v1951_v57  ;;  %v5833_v5 = vpack.c.bf16 %v934_v63, %v932_v62  ;;  %v950_v53 = vld [vmem:[%s7803_s29 + $0x13f8] sm:$0xff]  ;;  %v1972_v56 = vld [vmem:[%s7803_s29 + $0x33e8] sm:$0xff]  ;;  %v947_v63 = vld [vmem:[%s7803_s29 + $0x13e0] sm:$0xff] }
 0x2de   : > { %v1974_v57 = vld [vmem:[%s7803_s29 + $0x33f8] sm:$0xff] }
 0x2df   : > { %5816 = vmatpush1.bf16.msra.mxu1 %v5815_v12  ;;  %v6857_v12 = vpack.c.bf16 %v1958_v2, %v1956_v0  ;;  %v949_v0 = vld [vmem:[%s7803_s29 + $0x13f0] sm:$0xff]  ;;  %v1971_v2 = vld [vmem:[%s7803_s29 + $0x33e0] sm:$0xff] }
 0x2e0   : > { %6840 = vmatpush1.bf16.msra.mxu0 %v6839_v25  ;;  %5818 = vmatprep.subr.bf16.mxu1 %v5817_v13  ;;  %v1957_v25 = vld [vmem:[%s7803_s29 + $0x3370] sm:$0xff]  ;;  %v936_v13 = vld [vmem:[%s7803_s29 + $0x1388] sm:$0xff] }
 0x2e1   : > { %6842 = vmatprep.subr.bf16.mxu0 %v6841_v6  ;;  %v5835_v6 = vpack.c.bf16 %v933_v60, %v931_v7  ;;  %v6859_v21 = vpack.c.bf16 %v1957_v25, %v1955_v9  ;;  %v5837_v17 = vpack.c.bf16 %v938_v1, %v936_v13  ;;  %v954_v7 = vld [vmem:[%s7803_s29 + $0x1418] sm:$0xff]  ;;  %v1976_v60 = vld [vmem:[%s7803_s29 + $0x3408] sm:$0xff]  ;;  %v951_v1 = vld [vmem:[%s7803_s29 + $0x1400] sm:$0xff] }
 0x2e2   : > { %v1978_v9 = vld [vmem:[%s7803_s29 + $0x3418] sm:$0xff] }
 0x2e3   : > { %5820 = vmatpush1.bf16.msra.mxu1 %v5819_v28  ;;  %v6861_v28 = vpack.c.bf16 %v1962_v16, %v1960_v15  ;;  %v953_v15 = vld [vmem:[%s7803_s29 + $0x1410] sm:$0xff]  ;;  %v1975_v16 = vld [vmem:[%s7803_s29 + $0x3400] sm:$0xff] }
 0x2e4   : > { %6844 = vmatpush1.bf16.msra.mxu0 %v6843_v22  ;;  %5822 = vmatprep.subr.bf16.mxu1 %v5821_v23  ;;  %v1961_v22 = vld [vmem:[%s7803_s29 + $0x3390] sm:$0xff]  ;;  %v940_v23 = vld [vmem:[%s7803_s29 + $0x13a8] sm:$0xff] }
 0x2e5   : > { %6846 = vmatprep.subr.bf16.mxu0 %v6845_v31  ;;  %v5839_v31 = vpack.c.bf16 %v937_v19, %v935_v18  ;;  %v6863_v32 = vpack.c.bf16 %v1961_v22, %v1959_v11  ;;  %v5841_v33 = vpack.c.bf16 %v942_v24, %v940_v23  ;;  %v958_v18 = vld [vmem:[%s7803_s29 + $0x1438] sm:$0xff]  ;;  %v5855_v23 = vpack.c.bf16 %v953_v15, %v951_v1  ;;  %v967_v1 = vld [vmem:[%s7803_s29 + $0x1480] sm:$0xff]  ;;  %v969_v15 = vld [vmem:[%s7803_s29 + $0x1490] sm:$0xff] }
 0x2e6   : > { %v9253_v19 = vld [vmem:[%s7931_s26 + $0x20] ss:$2 sm:$0xff] }
 0x2e7   : > { %5824 = vmatpush1.bf16.msra.mxu1 %v5823_v38  ;;  %v6865_v38 = vpack.c.bf16 %v1966_v29, %v1964_v26  ;;  %v2442_v11 = vrot.slane %v9253_v19, %v8120_v43  ;;  %v1982_v22 = vld [vmem:[%s7803_s29 + $0x3438] sm:$0xff] }
 0x2e8   : > { %6848 = vmatpush1.bf16.msra.mxu0 %v6847_v39  ;;  %5826 = vmatprep.subr.bf16.mxu1 %v5825_v40  ;;  %v1965_v39 = vld [vmem:[%s7803_s29 + $0x33b0] sm:$0xff]  ;;  %v944_v40 = vld [vmem:[%s7803_s29 + $0x13c8] sm:$0xff] }
 0x2e9   : > { %6850 = vmatprep.subr.bf16.mxu0 %v6849_v44  ;;  %v5843_v44 = vpack.c.bf16 %v941_v36, %v939_v34  ;;  %v6867_v45 = vpack.c.bf16 %v1965_v39, %v1963_v37  ;;  %v5845_v46 = vpack.c.bf16 %v946_v41, %v944_v40  ;;  %v9260_v24 = vld [vmem:[%s7931_s26 + $0x60] ss:$2 sm:$0xff]  ;;  %v1981_v37 = vld [vmem:[%s7803_s29 + $0x3430] sm:$0xff]  ;;  %v2454_v40 = vrot.slane %v9253_v19, %v8129_v55 }
 0x2ea   : > { %v2570_v26 = vrot.slane %v9260_v24, %v8120_v43  ;;  %v1979_v34 = vld [vmem:[%s7803_s29 + $0x3420] sm:$0xff]  ;;  %v962_v39 = vld [vmem:[%s7803_s29 + $0x1458] sm:$0xff]  ;;  %v1984_v41 = vld [vmem:[%s7803_s29 + $0x3448] sm:$0xff] }
 0x2eb   : > { %5828 = vmatpush1.bf16.msra.mxu1 %v5827_v50  ;;  %v6869_v50 = vpack.c.bf16 %v1970_v42, %v1968_v30  ;;  %v1986_v30 = vld [vmem:[%s7803_s29 + $0x3458] sm:$0xff]  ;;  %v2582_v42 = vrot.slane %v9260_v24, %v8129_v55 }
 0x2ec   : > { %6852 = vmatpush1.bf16.msra.mxu0 %v6851_v51  ;;  %5830 = vmatprep.subr.bf16.mxu1 %v5829_v52  ;;  %v1969_v51 = vld [vmem:[%s7803_s29 + $0x33d0] sm:$0xff]  ;;  %v948_v52 = vld [vmem:[%s7803_s29 + $0x13e8] sm:$0xff] }
 0x2ed   : > { %6854 = vmatprep.subr.bf16.mxu0 %v6853_v58  ;;  %v5847_v58 = vpack.c.bf16 %v945_v47, %v943_v35  ;;  %v6871_v59 = vpack.c.bf16 %v1969_v51, %v1967_v49  ;;  %v5849_v62 = vpack.c.bf16 %v950_v53, %v948_v52  ;;  %v959_v35 = vld [vmem:[%s7803_s29 + $0x1440] sm:$0xff]  ;;  %v961_v47 = vld [vmem:[%s7803_s29 + $0x1450] sm:$0xff]  ;;  %v964_v52 = vld [vmem:[%s7803_s29 + $0x1468] sm:$0xff] }
 0x2ee   : > { %v1983_v49 = vld [vmem:[%s7803_s29 + $0x3440] sm:$0xff]  ;;  %v1985_v51 = vld [vmem:[%s7803_s29 + $0x3450] sm:$0xff]  ;;  %v966_v53 = vld [vmem:[%s7803_s29 + $0x1478] sm:$0xff] }
 0x2ef   : > { %5832 = vmatpush1.bf16.msra.mxu1 %v5831_v3  ;;  %v6873_v3 = vpack.c.bf16 %v1974_v57, %v1972_v56  ;;  %v1988_v56 = vld [vmem:[%s7803_s29 + $0x3468] sm:$0xff]  ;;  %v1990_v57 = vld [vmem:[%s7803_s29 + $0x3478] sm:$0xff] }
 0x2f0   : > { %6856 = vmatpush1.bf16.msra.mxu0 %v6855_v4  ;;  %5834 = vmatprep.subr.bf16.mxu1 %v5833_v5  ;;  %v1973_v4 = vld [vmem:[%s7803_s29 + $0x33f0] sm:$0xff]  ;;  %v952_v5 = vld [vmem:[%s7803_s29 + $0x1408] sm:$0xff] }
 0x2f1   : > { %6858 = vmatprep.subr.bf16.mxu0 %v6857_v12  ;;  %v5851_v12 = vpack.c.bf16 %v949_v0, %v947_v63  ;;  %v6875_v25 = vpack.c.bf16 %v1973_v4, %v1971_v2  ;;  %v5853_v13 = vpack.c.bf16 %v954_v7, %v952_v5  ;;  %v963_v63 = vld [vmem:[%s7803_s29 + $0x1460] sm:$0xff]  ;;  %v965_v0 = vld [vmem:[%s7803_s29 + $0x1470] sm:$0xff]  ;;  %v968_v5 = vld [vmem:[%s7803_s29 + $0x1488] sm:$0xff] }
 0x2f2   : > { %v1987_v2 = vld [vmem:[%s7803_s29 + $0x3460] sm:$0xff]  ;;  %v1989_v4 = vld [vmem:[%s7803_s29 + $0x3470] sm:$0xff]  ;;  %v970_v7 = vld [vmem:[%s7803_s29 + $0x1498] sm:$0xff] }
 0x2f3   : > { %5836 = vmatpush1.bf16.msra.mxu1 %v5835_v6  ;;  %v6877_v6 = vpack.c.bf16 %v1978_v9, %v1976_v60  ;;  %v1992_v60 = vld [vmem:[%s7803_s29 + $0x3488] sm:$0xff]  ;;  %v1994_v9 = vld [vmem:[%s7803_s29 + $0x3498] sm:$0xff] }
 0x2f4   : > { %6860 = vmatpush1.bf16.msra.mxu0 %v6859_v21  ;;  %5838 = vmatprep.subr.bf16.mxu1 %v5837_v17  ;;  %v1977_v21 = vld [vmem:[%s7803_s29 + $0x3410] sm:$0xff]  ;;  %v956_v17 = vld [vmem:[%s7803_s29 + $0x1428] sm:$0xff] }
 0x2f5   : > { %6862 = vmatprep.subr.bf16.mxu0 %v6861_v28  ;;  %v1980_v28 = vld [vmem:[%s7803_s29 + $0x3428] sm:$0xff]  ;;  %v6879_v29 = vpack.c.bf16 %v1977_v21, %v1975_v16  ;;  %v1991_v16 = vld [vmem:[%s7803_s29 + $0x3480] sm:$0xff]  ;;  %v1993_v21 = vld [vmem:[%s7803_s29 + $0x3490] sm:$0xff] }
 0x2f6   : > { %v6881_v36 = vpack.c.bf16 %v1982_v22, %v1980_v28  ;;  %v1998_v28 = vld [vmem:[%s7803_s29 + $0x34b8] sm:$0xff]  ;;  %v5871_v22 = vpack.c.bf16 %v969_v15, %v967_v1  ;;  %v2009_v1 = vld [vmem:[%s7803_s29 + $0x3510] sm:$0xff]  ;;  %v988_v15 = vld [vmem:[%s7803_s29 + $0x1528] sm:$0xff] }
 0x2f7   : > { %5840 = vmatpush1.bf16.msra.mxu1 %v5839_v31  ;;  %v5857_v31 = vpack.c.bf16 %v958_v18, %v956_v17  ;;  %v972_v17 = vld [vmem:[%s7803_s29 + $0x14a8] sm:$0xff]  ;;  %v974_v18 = vld [vmem:[%s7803_s29 + $0x14b8] sm:$0xff] }
 0x2f8   : > { %6864 = vmatpush1.bf16.msra.mxu0 %v6863_v32  ;;  %5842 = vmatprep.subr.bf16.mxu1 %v5841_v33  ;;  %v955_v32 = vld [vmem:[%s7803_s29 + $0x1420] sm:$0xff]  ;;  %v957_v33 = vld [vmem:[%s7803_s29 + $0x1430] sm:$0xff] }
 0x2f9   : > { %6866 = vmatprep.subr.bf16.mxu0 %v6865_v38  ;;  %v960_v38 = vld [vmem:[%s7803_s29 + $0x1448] sm:$0xff] }
 0x2fb   : > { %5844 = vmatpush1.bf16.msra.mxu1 %v5843_v44  ;;  %v5859_v44 = vpack.c.bf16 %v957_v33, %v955_v32  ;;  %v1995_v32 = vld [vmem:[%s7803_s29 + $0x34a0] sm:$0xff] }
 0x2fc   : > { %6868 = vmatpush1.bf16.msra.mxu0 %v6867_v45  ;;  %5846 = vmatprep.subr.bf16.mxu1 %v5845_v46  ;;  %v6883_v45 = vpack.c.bf16 %v1981_v37, %v1979_v34  ;;  %v5861_v46 = vpack.c.bf16 %v962_v39, %v960_v38  ;;  %v1997_v34 = vld [vmem:[%s7803_s29 + $0x34b0] sm:$0xff]  ;;  %v978_v37 = vld [vmem:[%s7803_s29 + $0x14d8] sm:$0xff]  ;;  %v2000_v38 = vld [vmem:[%s7803_s29 + $0x34c8] sm:$0xff] }
 0x2fd   : > { %6870 = vmatprep.subr.bf16.mxu0 %v6869_v50  ;;  %v6885_v50 = vpack.c.bf16 %v1986_v30, %v1984_v41  ;;  %v2002_v39 = vld [vmem:[%s7803_s29 + $0x34d8] sm:$0xff]  ;;  %v6899_v41 = vpack.c.bf16 %v1997_v34, %v1995_v32 }
 0x2fe   : > { %v994_v32 = vld [vmem:[%s7803_s29 + $0x1558] sm:$0xff] }
 0x2ff   : > { %5848 = vmatpush1.bf16.msra.mxu1 %v5847_v58  ;;  %v5863_v58 = vpack.c.bf16 %v961_v47, %v959_v35  ;;  %v2001_v35 = vld [vmem:[%s7803_s29 + $0x34d0] sm:$0xff]  ;;  %v980_v47 = vld [vmem:[%s7803_s29 + $0x14e8] sm:$0xff]  ;;  %v2018_v34 = vld [vmem:[%s7803_s29 + $0x3558] sm:$0xff] }
 0x300   : > { %6872 = vmatpush1.bf16.msra.mxu0 %v6871_v59  ;;  %5850 = vmatprep.subr.bf16.mxu1 %v5849_v62  ;;  %v6887_v59 = vpack.c.bf16 %v1985_v51, %v1983_v49  ;;  %v5865_v62 = vpack.c.bf16 %v966_v53, %v964_v52  ;;  %v982_v49 = vld [vmem:[%s7803_s29 + $0x14f8] sm:$0xff] }
 0x301   : > { %6874 = vmatprep.subr.bf16.mxu0 %v6873_v3  ;;  %v6889_v3 = vpack.c.bf16 %v1990_v57, %v1988_v56  ;;  %v2006_v51 = vld [vmem:[%s7803_s29 + $0x34f8] sm:$0xff]  ;;  %v5881_v56 = vpack.c.bf16 %v982_v49, %v980_v47  ;;  %v979_v57 = vld [vmem:[%s7803_s29 + $0x14e0] sm:$0xff] }
 0x303   : > { %5852 = vmatpush1.bf16.msra.mxu1 %v5851_v12  ;;  %v5867_v12 = vpack.c.bf16 %v965_v0, %v963_v63  ;;  %v2005_v63 = vld [vmem:[%s7803_s29 + $0x34f0] sm:$0xff]  ;;  %v984_v0 = vld [vmem:[%s7803_s29 + $0x1508] sm:$0xff] }
 0x304   : > { %6876 = vmatpush1.bf16.msra.mxu0 %v6875_v25  ;;  %5854 = vmatprep.subr.bf16.mxu1 %v5853_v13  ;;  %v6891_v25 = vpack.c.bf16 %v1989_v4, %v1987_v2  ;;  %v5869_v13 = vpack.c.bf16 %v970_v7, %v968_v5  ;;  %v986_v2 = vld [vmem:[%s7803_s29 + $0x1518] sm:$0xff] }
 0x305   : > { %6878 = vmatprep.subr.bf16.mxu0 %v6877_v6  ;;  %v6893_v6 = vpack.c.bf16 %v1994_v9, %v1992_v60  ;;  %v2010_v4 = vld [vmem:[%s7803_s29 + $0x3518] sm:$0xff]  ;;  %v5885_v60 = vpack.c.bf16 %v986_v2, %v984_v0  ;;  %v983_v9 = vld [vmem:[%s7803_s29 + $0x1500] sm:$0xff] }
 0x306   : > { %3391 = vmatmul.mubr.f32.vlgmr.msra.gmra.mrb[0].mxu1 %v2442_v11  ;;  %v1996_v11 = vld [vmem:[%s7803_s29 + $0x34a8] sm:$0xff] }
 0x307   : > { %5856 = vmatpush1.bf16.msra.mxu1 %v5855_v23  ;;  %4527 = vmatmul.mubr.f32.vlgmr.msra.gmra.mrb[0].mxu0 %v2570_v26  ;;  %v6895_v23 = vpack.c.bf16 %v1993_v21, %v1991_v16  ;;  %v5873_v26 = vpack.c.bf16 %v974_v18, %v972_v17  ;;  %v6897_v33 = vpack.c.bf16 %v1998_v28, %v1996_v11  ;;  %v990_v16 = vld [vmem:[%s7803_s29 + $0x1538] sm:$0xff]  ;;  %v987_v28 = vld [vmem:[%s7803_s29 + $0x1520] sm:$0xff] }
 0x308   : > { %6880 = vmatpush1.bf16.msra.mxu0 %v6879_v29  ;;  %5858 = vmatprep.subr.bf16.mxu1 %v5857_v31  ;;  %v971_v29 = vld [vmem:[%s7803_s29 + $0x14a0] sm:$0xff]  ;;  %v973_v31 = vld [vmem:[%s7803_s29 + $0x14b0] sm:$0xff]  ;;  %v2014_v21 = vld [vmem:[%s7803_s29 + $0x3538] sm:$0xff]  ;;  %v5889_v11 = vpack.c.bf16 %v990_v16, %v988_v15 }
 0x309   : > { %6882 = vmatprep.subr.bf16.mxu0 %v6881_v36  ;;  %3461 = vmatprep.mubr.f32.mxu1 %v2454_v40  ;;  %v976_v36 = vld [vmem:[%s7803_s29 + $0x14c8] sm:$0xff]  ;;  %v5875_v40 = vpack.c.bf16 %v973_v31, %v971_v29  ;;  %v2013_v29 = vld [vmem:[%s7803_s29 + $0x3530] sm:$0xff] }
 0x30a   : > { %4597 = vmatprep.mubr.f32.mxu0 %v2582_v42  ;;  %v5877_v30 = vpack.c.bf16 %v978_v37, %v976_v36  ;;  %v975_v42 = vld [vmem:[%s7803_s29 + $0x14c0] sm:$0xff]  ;;  %v992_v31 = vld [vmem:[%s7803_s29 + $0x1548] sm:$0xff] }
 0x30b   : > { %5860 = vmatpush1.bf16.msra.mxu1 %v5859_v44  ;;  %v977_v44 = vld [vmem:[%s7803_s29 + $0x14d0] sm:$0xff] }
 0x30c   : > { %6884 = vmatpush1.bf16.msra.mxu0 %v6883_v45  ;;  %5862 = vmatprep.subr.bf16.mxu1 %v5861_v46  ;;  %v1999_v45 = vld [vmem:[%s7803_s29 + $0x34c0] sm:$0xff]  ;;  %v6901_v46 = vpack.c.bf16 %v2002_v39, %v2000_v38  ;;  %v5879_v52 = vpack.c.bf16 %v977_v44, %v975_v42  ;;  %v5893_v38 = vpack.c.bf16 %v994_v32, %v992_v31  ;;  %v2017_v42 = vld [vmem:[%s7803_s29 + $0x3550] sm:$0xff]  ;;  %v996_v44 = vld [vmem:[%s7803_s29 + $0x1568] sm:$0xff] }
 0x30d   : > { %6886 = vmatprep.subr.bf16.mxu0 %v6885_v50  ;;  %v2004_v50 = vld [vmem:[%s7803_s29 + $0x34e8] sm:$0xff]  ;;  %v6903_v53 = vpack.c.bf16 %v2001_v35, %v1999_v45  ;;  %v991_v39 = vld [vmem:[%s7803_s29 + $0x1540] sm:$0xff]  ;;  %v998_v45 = vld [vmem:[%s7803_s29 + $0x1578] sm:$0xff] }
 0x30e   : > { %v2022_v35 = vld [vmem:[%s7803_s29 + $0x3578] sm:$0xff] }
 0x30f   : > { %5864 = vmatpush1.bf16.msra.mxu1 %v5863_v58  ;;  %v981_v58 = vld [vmem:[%s7803_s29 + $0x14f0] sm:$0xff] }
 0x310   : > { %6888 = vmatpush1.bf16.msra.mxu0 %v6887_v59  ;;  %5866 = vmatprep.subr.bf16.mxu1 %v5865_v62  ;;  %v2003_v59 = vld [vmem:[%s7803_s29 + $0x34e0] sm:$0xff]  ;;  %v6905_v62 = vpack.c.bf16 %v2006_v51, %v2004_v50  ;;  %v5883_v5 = vpack.c.bf16 %v981_v58, %v979_v57  ;;  %v5897_v50 = vpack.c.bf16 %v998_v45, %v996_v44  ;;  %v2021_v57 = vld [vmem:[%s7803_s29 + $0x3570] sm:$0xff]  ;;  %v1000_v58 = vld [vmem:[%s7803_s29 + $0x1588] sm:$0xff] }
 0x311   : > { %6890 = vmatprep.subr.bf16.mxu0 %v6889_v3  ;;  %v2008_v3 = vld [vmem:[%s7803_s29 + $0x3508] sm:$0xff]  ;;  %v6907_v7 = vpack.c.bf16 %v2005_v63, %v2003_v59  ;;  %v995_v51 = vld [vmem:[%s7803_s29 + $0x1560] sm:$0xff]  ;;  %v1002_v59 = vld [vmem:[%s7803_s29 + $0x1598] sm:$0xff] }
 0x312   : > { %v2026_v63 = vld [vmem:[%s7803_s29 + $0x3598] sm:$0xff] }
 0x313   : > { %5868 = vmatpush1.bf16.msra.mxu1 %v5867_v12  ;;  %v985_v12 = vld [vmem:[%s7803_s29 + $0x1510] sm:$0xff] }
 0x314   : > { %6892 = vmatpush1.bf16.msra.mxu0 %v6891_v25  ;;  %5870 = vmatprep.subr.bf16.mxu1 %v5869_v13  ;;  %v2007_v25 = vld [vmem:[%s7803_s29 + $0x3500] sm:$0xff]  ;;  %v6909_v13 = vpack.c.bf16 %v2010_v4, %v2008_v3  ;;  %v5887_v17 = vpack.c.bf16 %v985_v12, %v983_v9  ;;  %v5901_v3 = vpack.c.bf16 %v1002_v59, %v1000_v58  ;;  %v2025_v9 = vld [vmem:[%s7803_s29 + $0x3590] sm:$0xff]  ;;  %v1004_v12 = vld [vmem:[%s7803_s29 + $0x15a8] sm:$0xff] }
 0x315   : > { %6894 = vmatprep.subr.bf16.mxu0 %v6893_v6  ;;  %v2012_v6 = vld [vmem:[%s7803_s29 + $0x3528] sm:$0xff]  ;;  %v6911_v18 = vpack.c.bf16 %v2009_v1, %v2007_v25  ;;  %v999_v4 = vld [vmem:[%s7803_s29 + $0x1580] sm:$0xff]  ;;  %v1006_v25 = vld [vmem:[%s7803_s29 + $0x15b8] sm:$0xff] }
 0x316   : > { %v2030_v1 = vld [vmem:[%s7803_s29 + $0x35b8] sm:$0xff] }
 0x317   : > { %5872 = vmatpush1.bf16.msra.mxu1 %v5871_v22  ;;  %v989_v22 = vld [vmem:[%s7803_s29 + $0x1530] sm:$0xff] }
 0x318   : > { %6896 = vmatpush1.bf16.msra.mxu0 %v6895_v23  ;;  %5874 = vmatprep.subr.bf16.mxu1 %v5873_v26  ;;  %v2011_v23 = vld [vmem:[%s7803_s29 + $0x3520] sm:$0xff]  ;;  %v6913_v26 = vpack.c.bf16 %v2014_v21, %v2012_v6  ;;  %v5891_v36 = vpack.c.bf16 %v989_v22, %v987_v28  ;;  %v5905_v6 = vpack.c.bf16 %v1006_v25, %v1004_v12  ;;  %v2029_v28 = vld [vmem:[%s7803_s29 + $0x35b0] sm:$0xff]  ;;  %v1008_v22 = vld [vmem:[%s7803_s29 + $0x15c8] sm:$0xff] }
 0x319   : > { %6898 = vmatprep.subr.bf16.mxu0 %v6897_v33  ;;  %v2016_v33 = vld [vmem:[%s7803_s29 + $0x3548] sm:$0xff]  ;;  %v6915_v37 = vpack.c.bf16 %v2013_v29, %v2011_v23  ;;  %v1003_v21 = vld [vmem:[%s7803_s29 + $0x15a0] sm:$0xff]  ;;  %v1010_v23 = vld [vmem:[%s7803_s29 + $0x15d8] sm:$0xff] }
 0x31a   : > { %v2034_v29 = vld [vmem:[%s7803_s29 + $0x35d8] sm:$0xff] }
 0x31b   : > { %5876 = vmatpush1.bf16.msra.mxu1 %v5875_v40  ;;  %v993_v40 = vld [vmem:[%s7803_s29 + $0x1550] sm:$0xff]  ;;  %v2046_v12 = vld [vmem:[%s7803_s29 + $0x3638] sm:$0xff] }
 0x31c   : > { %6900 = vmatpush1.bf16.msra.mxu0 %v6899_v41  ;;  %5878 = vmatprep.subr.bf16.mxu1 %v5877_v30  ;;  %v2015_v41 = vld [vmem:[%s7803_s29 + $0x3540] sm:$0xff]  ;;  %v6917_v30 = vpack.c.bf16 %v2018_v34, %v2016_v33  ;;  %v5895_v47 = vpack.c.bf16 %v993_v40, %v991_v39  ;;  %v5909_v33 = vpack.c.bf16 %v1010_v23, %v1008_v22  ;;  %v2033_v39 = vld [vmem:[%s7803_s29 + $0x35d0] sm:$0xff]  ;;  %v1012_v40 = vld [vmem:[%s7803_s29 + $0x15e8] sm:$0xff] }
 0x31d   : > { %6902 = vmatprep.subr.bf16.mxu0 %v6901_v46  ;;  %v2020_v46 = vld [vmem:[%s7803_s29 + $0x3568] sm:$0xff]  ;;  %v6919_v49 = vpack.c.bf16 %v2017_v42, %v2015_v41  ;;  %v1007_v34 = vld [vmem:[%s7803_s29 + $0x15c0] sm:$0xff]  ;;  %v1014_v41 = vld [vmem:[%s7803_s29 + $0x15f8] sm:$0xff]  ;;  %v2462_v22 = vrot.slane %v9253_v19, %v8271_v20 }
 0x31e   : > { %v2038_v42 = vld [vmem:[%s7803_s29 + $0x35f8] sm:$0xff]  ;;  %v2048_v23 = vld [vmem:[%s7803_s29 + $0x3648] sm:$0xff] }
 0x31f   : > { %5880 = vmatpush1.bf16.msra.mxu1 %v5879_v52  ;;  %v997_v52 = vld [vmem:[%s7803_s29 + $0x1570] sm:$0xff] }
 0x320   : > { %6904 = vmatpush1.bf16.msra.mxu0 %v6903_v53  ;;  %5882 = vmatprep.subr.bf16.mxu1 %v5881_v56  ;;  %v2019_v53 = vld [vmem:[%s7803_s29 + $0x3560] sm:$0xff]  ;;  %v6921_v56 = vpack.c.bf16 %v2022_v35, %v2020_v46  ;;  %v5899_v0 = vpack.c.bf16 %v997_v52, %v995_v51  ;;  %v5913_v46 = vpack.c.bf16 %v1014_v41, %v1012_v40  ;;  %v2037_v51 = vld [vmem:[%s7803_s29 + $0x35f0] sm:$0xff]  ;;  %v1016_v52 = vld [vmem:[%s7803_s29 + $0x1608] sm:$0xff] }
 0x321   : > { %6906 = vmatprep.subr.bf16.mxu0 %v6905_v62  ;;  %v2024_v62 = vld [vmem:[%s7803_s29 + $0x3588] sm:$0xff]  ;;  %v6923_v2 = vpack.c.bf16 %v2021_v57, %v2019_v53  ;;  %v1011_v35 = vld [vmem:[%s7803_s29 + $0x15e0] sm:$0xff]  ;;  %v1018_v53 = vld [vmem:[%s7803_s29 + $0x1618] sm:$0xff] }
 0x322   : > { %v2042_v57 = vld [vmem:[%s7803_s29 + $0x3618] sm:$0xff]  ;;  %v2052_v40 = vld [vmem:[%s7803_s29 + $0x3668] sm:$0xff] }
 0x323   : > { %5884 = vmatpush1.bf16.msra.mxu1 %v5883_v5  ;;  %v1001_v5 = vld [vmem:[%s7803_s29 + $0x1590] sm:$0xff]  ;;  %v2054_v41 = vld [vmem:[%s7803_s29 + $0x3678] sm:$0xff] }
 0x324   : > { %6908 = vmatpush1.bf16.msra.mxu0 %v6907_v7  ;;  %5886 = vmatprep.subr.bf16.mxu1 %v5885_v60  ;;  %v2023_v7 = vld [vmem:[%s7803_s29 + $0x3580] sm:$0xff]  ;;  %v6925_v60 = vpack.c.bf16 %v2026_v63, %v2024_v62  ;;  %v5903_v15 = vpack.c.bf16 %v1001_v5, %v999_v4  ;;  %v5917_v62 = vpack.c.bf16 %v1018_v53, %v1016_v52  ;;  %v2041_v4 = vld [vmem:[%s7803_s29 + $0x3610] sm:$0xff]  ;;  %v1020_v5 = vld [vmem:[%s7803_s29 + $0x1628] sm:$0xff] }
 0x325   : > { %6910 = vmatprep.subr.bf16.mxu0 %v6909_v13  ;;  %v2028_v13 = vld [vmem:[%s7803_s29 + $0x35a8] sm:$0xff]  ;;  %v6927_v16 = vpack.c.bf16 %v2025_v9, %v2023_v7  ;;  %v1015_v63 = vld [vmem:[%s7803_s29 + $0x1600] sm:$0xff]  ;;  %v1022_v7 = vld [vmem:[%s7803_s29 + $0x1638] sm:$0xff] }
 0x326   : > { %v2044_v9 = vld [vmem:[%s7803_s29 + $0x3628] sm:$0xff]  ;;  %v2058_v53 = vld [vmem:[%s7803_s29 + $0x3698] sm:$0xff] }
 0x327   : > { %5888 = vmatpush1.bf16.msra.mxu1 %v5887_v17  ;;  %v1005_v17 = vld [vmem:[%s7803_s29 + $0x15b0] sm:$0xff]  ;;  %v2056_v52 = vld [vmem:[%s7803_s29 + $0x3688] sm:$0xff] }
 0x328   : > { %6912 = vmatpush1.bf16.msra.mxu0 %v6911_v18  ;;  %5890 = vmatprep.subr.bf16.mxu1 %v5889_v11  ;;  %v2027_v18 = vld [vmem:[%s7803_s29 + $0x35a0] sm:$0xff]  ;;  %v6929_v11 = vpack.c.bf16 %v2030_v1, %v2028_v13  ;;  %v5907_v31 = vpack.c.bf16 %v1005_v17, %v1003_v21  ;;  %v2578_v13 = vrot.slane %v9260_v24, %v8262_v8 }
 0x329   : > { %6914 = vmatprep.subr.bf16.mxu0 %v6913_v26  ;;  %v2032_v26 = vld [vmem:[%s7803_s29 + $0x35c8] sm:$0xff]  ;;  %v6931_v32 = vpack.c.bf16 %v2029_v28, %v2027_v18  ;;  %v2043_v21 = vld [vmem:[%s7803_s29 + $0x3620] sm:$0xff]  ;;  %v6945_v17 = vpack.c.bf16 %v2046_v12, %v2044_v9  ;;  %v2045_v18 = vld [vmem:[%s7803_s29 + $0x3630] sm:$0xff] }
 0x32a   : > { %v1026_v28 = vld [vmem:[%s7803_s29 + $0x1658] sm:$0xff] }
 0x32b   : > { %5892 = vmatpush1.bf16.msra.mxu1 %v5891_v36  ;;  %v1009_v36 = vld [vmem:[%s7803_s29 + $0x15d0] sm:$0xff] }
 0x32c   : > { %6916 = vmatpush1.bf16.msra.mxu0 %v6915_v37  ;;  %5894 = vmatprep.subr.bf16.mxu1 %v5893_v38  ;;  %v2031_v37 = vld [vmem:[%s7803_s29 + $0x35c0] sm:$0xff]  ;;  %v6933_v38 = vpack.c.bf16 %v2034_v29, %v2032_v26  ;;  %v5911_v44 = vpack.c.bf16 %v1009_v36, %v1007_v34  ;;  %v2050_v26 = vld [vmem:[%s7803_s29 + $0x3658] sm:$0xff]  ;;  %v2590_v29 = vrot.slane %v9260_v24, %v8271_v20 }
 0x32d   : > { %6918 = vmatprep.subr.bf16.mxu0 %v6917_v30  ;;  %v2036_v30 = vld [vmem:[%s7803_s29 + $0x35e8] sm:$0xff]  ;;  %v6935_v45 = vpack.c.bf16 %v2033_v39, %v2031_v37  ;;  %v1023_v34 = vld [vmem:[%s7803_s29 + $0x1640] sm:$0xff]  ;;  %v6949_v37 = vpack.c.bf16 %v2050_v26, %v2048_v23  ;;  %v1030_v24 = vld [vmem:[%s7803_s29 + $0x1678] sm:$0xff] }
 0x32e   : > { %v2047_v36 = vld [vmem:[%s7803_s29 + $0x3640] sm:$0xff]  ;;  %v1028_v39 = vld [vmem:[%s7803_s29 + $0x1668] sm:$0xff]  ;;  %v1041_v26 = vld [vmem:[%s7803_s29 + $0x16d0] sm:$0xff] }
 0x32f   : > { %5896 = vmatpush1.bf16.msra.mxu1 %v5895_v47  ;;  %v1013_v47 = vld [vmem:[%s7803_s29 + $0x15f0] sm:$0xff]  ;;  %v1039_v23 = vld [vmem:[%s7803_s29 + $0x16c0] sm:$0xff] }
 0x330   : > { %6920 = vmatpush1.bf16.msra.mxu0 %v6919_v49  ;;  %5898 = vmatprep.subr.bf16.mxu1 %v5897_v50  ;;  %v2035_v49 = vld [vmem:[%s7803_s29 + $0x35e0] sm:$0xff]  ;;  %v6937_v50 = vpack.c.bf16 %v2038_v42, %v2036_v30  ;;  %v5915_v58 = vpack.c.bf16 %v1013_v47, %v1011_v35  ;;  %v6953_v47 = vpack.c.bf16 %v2054_v41, %v2052_v40  ;;  %v1045_v40 = vld [vmem:[%s7803_s29 + $0x16f0] sm:$0xff] }
 0x331   : > { %6922 = vmatprep.subr.bf16.mxu0 %v6921_v56  ;;  %v2040_v56 = vld [vmem:[%s7803_s29 + $0x3608] sm:$0xff]  ;;  %v6939_v59 = vpack.c.bf16 %v2037_v51, %v2035_v49  ;;  %v2051_v35 = vld [vmem:[%s7803_s29 + $0x3660] sm:$0xff]  ;;  %v2053_v49 = vld [vmem:[%s7803_s29 + $0x3670] sm:$0xff] }
 0x332   : > { %v1034_v51 = vld [vmem:[%s7803_s29 + $0x1698] sm:$0xff]  ;;  %v2067_v41 = vld [vmem:[%s7803_s29 + $0x36e0] sm:$0xff] }
 0x333   : > { %5900 = vmatpush1.bf16.msra.mxu1 %v5899_v0  ;;  %v1017_v0 = vld [vmem:[%s7803_s29 + $0x1610] sm:$0xff] }
 0x334   : > { %6924 = vmatpush1.bf16.msra.mxu0 %v6923_v2  ;;  %5902 = vmatprep.subr.bf16.mxu1 %v5901_v3  ;;  %v2039_v2 = vld [vmem:[%s7803_s29 + $0x3600] sm:$0xff]  ;;  %v6941_v3 = vpack.c.bf16 %v2042_v57, %v2040_v56  ;;  %v5919_v25 = vpack.c.bf16 %v1017_v0, %v1015_v63  ;;  %v6955_v57 = vpack.c.bf16 %v2053_v49, %v2051_v35  ;;  %v2074_v35 = vld [vmem:[%s7803_s29 + $0x3718] sm:$0xff] }
 0x335   : > { %6926 = vmatprep.subr.bf16.mxu0 %v6925_v60  ;;  %v2450_v60 = vrot.slane %v9253_v19, %v8262_v8  ;;  %v6943_v1 = vpack.c.bf16 %v2041_v4, %v2039_v2  ;;  %v1025_v19 = vld [vmem:[%s7803_s29 + $0x1650] sm:$0xff]  ;;  %v2055_v63 = vld [vmem:[%s7803_s29 + $0x3680] sm:$0xff]  ;;  %v6957_v0 = vpack.c.bf16 %v2058_v53, %v2056_v52  ;;  %v1038_v4 = vld [vmem:[%s7803_s29 + $0x16b8] sm:$0xff] }
 0x336   : > { %v5927_v30 = vpack.c.bf16 %v1025_v19, %v1023_v34  ;;  %v2057_v2 = vld [vmem:[%s7803_s29 + $0x3690] sm:$0xff]  ;;  %v1046_v34 = vld [vmem:[%s7803_s29 + $0x16f8] sm:$0xff]  ;;  %v2068_v19 = vld [vmem:[%s7803_s29 + $0x36e8] sm:$0xff] }
 0x337   : > { %5904 = vmatpush1.bf16.msra.mxu1 %v5903_v15  ;;  %v5921_v15 = vpack.c.bf16 %v1022_v7, %v1020_v5  ;;  %v2060_v5 = vld [vmem:[%s7803_s29 + $0x36a8] sm:$0xff]  ;;  %v2062_v7 = vld [vmem:[%s7803_s29 + $0x36b8] sm:$0xff]  ;;  %v6959_v9 = vpack.c.bf16 %v2057_v2, %v2055_v63  ;;  %v1049_v52 = vld [vmem:[%s7803_s29 + $0x1710] sm:$0xff] }
 0x338   : > { %6928 = vmatpush1.bf16.msra.mxu0 %v6927_v16  ;;  %5906 = vmatprep.subr.bf16.mxu1 %v5905_v6  ;;  %v1019_v16 = vld [vmem:[%s7803_s29 + $0x1620] sm:$0xff]  ;;  %v1021_v6 = vld [vmem:[%s7803_s29 + $0x1630] sm:$0xff]  ;;  %v2078_v63 = vld [vmem:[%s7803_s29 + $0x3738] sm:$0xff] }
 0x339   : > { %6930 = vmatprep.subr.bf16.mxu0 %v6929_v11  ;;  %v1024_v11 = vld [vmem:[%s7803_s29 + $0x1648] sm:$0xff]  ;;  %v2071_v53 = vld [vmem:[%s7803_s29 + $0x3700] sm:$0xff] }
 0x33b   : > { %5908 = vmatpush1.bf16.msra.mxu1 %v5907_v31  ;;  %v5923_v31 = vpack.c.bf16 %v1021_v6, %v1019_v16  ;;  %v2061_v16 = vld [vmem:[%s7803_s29 + $0x36b0] sm:$0xff]  ;;  %v1040_v6 = vld [vmem:[%s7803_s29 + $0x16c8] sm:$0xff] }
 0x33c   : > { %6932 = vmatpush1.bf16.msra.mxu0 %v6931_v32  ;;  %5910 = vmatprep.subr.bf16.mxu1 %v5909_v33  ;;  %v6947_v32 = vpack.c.bf16 %v2045_v18, %v2043_v21  ;;  %v5925_v33 = vpack.c.bf16 %v1026_v28, %v1024_v11  ;;  %v1042_v21 = vld [vmem:[%s7803_s29 + $0x16d8] sm:$0xff] }
 0x33d   : > { %6934 = vmatprep.subr.bf16.mxu0 %v6933_v38  ;;  %v2049_v38 = vld [vmem:[%s7803_s29 + $0x3650] sm:$0xff]  ;;  %v2066_v18 = vld [vmem:[%s7803_s29 + $0x36d8] sm:$0xff] }
 0x33e   : > { %v6951_v42 = vpack.c.bf16 %v2049_v38, %v2047_v36  ;;  %v2070_v36 = vld [vmem:[%s7803_s29 + $0x36f8] sm:$0xff] }
 0x33f   : > { %5912 = vmatpush1.bf16.msra.mxu1 %v5911_v44  ;;  %v5929_v44 = vpack.c.bf16 %v1030_v24, %v1028_v39  ;;  %v1043_v24 = vld [vmem:[%s7803_s29 + $0x16e0] sm:$0xff] }
 0x340   : > { %6936 = vmatpush1.bf16.msra.mxu0 %v6935_v45  ;;  %5914 = vmatprep.subr.bf16.mxu1 %v5913_v46  ;;  %v1027_v45 = vld [vmem:[%s7803_s29 + $0x1660] sm:$0xff]  ;;  %v1029_v46 = vld [vmem:[%s7803_s29 + $0x1670] sm:$0xff] }
 0x341   : > { %6938 = vmatprep.subr.bf16.mxu0 %v6937_v50  ;;  %v1032_v50 = vld [vmem:[%s7803_s29 + $0x1688] sm:$0xff]  ;;  %v5931_v56 = vpack.c.bf16 %v1029_v46, %v1027_v45  ;;  %v1050_v45 = vld [vmem:[%s7803_s29 + $0x1718] sm:$0xff] }
 0x342   : > { %v2072_v46 = vld [vmem:[%s7803_s29 + $0x3708] sm:$0xff] }
 0x343   : > { %5916 = vmatpush1.bf16.msra.mxu1 %v5915_v58  ;;  %v5933_v58 = vpack.c.bf16 %v1034_v51, %v1032_v50  ;;  %v1047_v51 = vld [vmem:[%s7803_s29 + $0x1700] sm:$0xff] }
 0x344   : > { %6940 = vmatpush1.bf16.msra.mxu0 %v6939_v59  ;;  %5918 = vmatprep.subr.bf16.mxu1 %v5917_v62  ;;  %v1031_v59 = vld [vmem:[%s7803_s29 + $0x1680] sm:$0xff]  ;;  %v1033_v62 = vld [vmem:[%s7803_s29 + $0x1690] sm:$0xff] }
 0x345   : > { %6942 = vmatprep.subr.bf16.mxu0 %v6941_v3  ;;  %v1036_v3 = vld [vmem:[%s7803_s29 + $0x16a8] sm:$0xff] }
 0x346   : > { %3462 = vmatmul.mubr.f32.vlgmr.msra.gmra.mrb[0].mxu1 %v2450_v60  ;;  %v5935_v60 = vpack.c.bf16 %v1033_v62, %v1031_v59  ;;  %v5937_v12 = vpack.c.bf16 %v1038_v4, %v1036_v3  ;;  %v1054_v59 = vld [vmem:[%s7803_s29 + $0x1738] sm:$0xff]  ;;  %v2076_v62 = vld [vmem:[%s7803_s29 + $0x3728] sm:$0xff]  ;;  %v1051_v4 = vld [vmem:[%s7803_s29 + $0x1720] sm:$0xff] }
 0x347   : > { %5920 = vmatpush1.bf16.msra.mxu1 %v5919_v25  ;;  %4598 = vmatmul.mubr.f32.vlgmr.msra.gmra.mrb[0].mxu0 %v2578_v13  ;;  %v1035_v25 = vld [vmem:[%s7803_s29 + $0x16a0] sm:$0xff]  ;;  %v1037_v13 = vld [vmem:[%s7803_s29 + $0x16b0] sm:$0xff] }
 0x348   : > { %6944 = vmatpush1.bf16.msra.mxu0 %v6943_v1  ;;  %5922 = vmatprep.subr.bf16.mxu1 %v5921_v15  ;;  %v2059_v1 = vld [vmem:[%s7803_s29 + $0x36a0] sm:$0xff]  ;;  %v6961_v15 = vpack.c.bf16 %v2062_v7, %v2060_v5  ;;  %v5939_v11 = vpack.c.bf16 %v1037_v13, %v1035_v25  ;;  %v1053_v5 = vld [vmem:[%s7803_s29 + $0x1730] sm:$0xff]  ;;  %v1058_v25 = vld [vmem:[%s7803_s29 + $0x1758] sm:$0xff] }
 0x349   : > { %6946 = vmatprep.subr.bf16.mxu0 %v6945_v17  ;;  %3532 = vmatprep.mubr.f32.mxu1 %v2462_v22  ;;  %v2064_v17 = vld [vmem:[%s7803_s29 + $0x36c8] sm:$0xff]  ;;  %v6963_v28 = vpack.c.bf16 %v2061_v16, %v2059_v1  ;;  %v5941_v22 = vpack.c.bf16 %v1042_v21, %v1040_v6  ;;  %v2075_v7 = vld [vmem:[%s7803_s29 + $0x3720] sm:$0xff]  ;;  %v2082_v1 = vld [vmem:[%s7803_s29 + $0x3758] sm:$0xff] }
 0x34a   : > { %4668 = vmatprep.mubr.f32.mxu0 %v2590_v29  ;;  %v2063_v29 = vld [vmem:[%s7803_s29 + $0x36c0] sm:$0xff]  ;;  %v2080_v13 = vld [vmem:[%s7803_s29 + $0x3748] sm:$0xff] }
 0x34b   : > { %5924 = vmatpush1.bf16.msra.mxu1 %v5923_v31  ;;  %v6965_v31 = vpack.c.bf16 %v2066_v18, %v2064_v17  ;;  %v1055_v21 = vld [vmem:[%s7803_s29 + $0x1740] sm:$0xff]  ;;  %v1057_v17 = vld [vmem:[%s7803_s29 + $0x1750] sm:$0xff] }
 0x34c   : > { %6948 = vmatpush1.bf16.msra.mxu0 %v6947_v32  ;;  %5926 = vmatprep.subr.bf16.mxu1 %v5925_v33  ;;  %v2065_v32 = vld [vmem:[%s7803_s29 + $0x36d0] sm:$0xff]  ;;  %v1044_v33 = vld [vmem:[%s7803_s29 + $0x16e8] sm:$0xff]  ;;  %v2079_v18 = vld [vmem:[%s7803_s29 + $0x3740] sm:$0xff] }
 0x34d   : > { %6950 = vmatprep.subr.bf16.mxu0 %v6949_v37  ;;  %v5943_v37 = vpack.c.bf16 %v1041_v26, %v1039_v23  ;;  %v6967_v38 = vpack.c.bf16 %v2065_v32, %v2063_v29  ;;  %v5945_v39 = vpack.c.bf16 %v1046_v34, %v1044_v33  ;;  %v1062_v23 = vld [vmem:[%s7803_s29 + $0x1778] sm:$0xff]  ;;  %v2084_v26 = vld [vmem:[%s7803_s29 + $0x3768] sm:$0xff]  ;;  %v1059_v34 = vld [vmem:[%s7803_s29 + $0x1760] sm:$0xff] }
 0x34e   : > { %v2086_v29 = vld [vmem:[%s7803_s29 + $0x3778] sm:$0xff] }
 0x34f   : > { %5928 = vmatpush1.bf16.msra.mxu1 %v5927_v30  ;;  %v6969_v30 = vpack.c.bf16 %v2070_v36, %v2068_v19  ;;  %v1061_v19 = vld [vmem:[%s7803_s29 + $0x1770] sm:$0xff]  ;;  %v2083_v36 = vld [vmem:[%s7803_s29 + $0x3760] sm:$0xff] }
 0x350   : > { %6952 = vmatpush1.bf16.msra.mxu0 %v6951_v42  ;;  %5930 = vmatprep.subr.bf16.mxu1 %v5929_v44  ;;  %v2069_v42 = vld [vmem:[%s7803_s29 + $0x36f0] sm:$0xff]  ;;  %v1048_v44 = vld [vmem:[%s7803_s29 + $0x1708] sm:$0xff] }
 0x351   : > { %6954 = vmatprep.subr.bf16.mxu0 %v6953_v47  ;;  %v5947_v47 = vpack.c.bf16 %v1045_v40, %v1043_v24  ;;  %v6971_v49 = vpack.c.bf16 %v2069_v42, %v2067_v41  ;;  %v5949_v50 = vpack.c.bf16 %v1050_v45, %v1048_v44  ;;  %v1066_v24 = vld [vmem:[%s7803_s29 + $0x1798] sm:$0xff]  ;;  %v2088_v40 = vld [vmem:[%s7803_s29 + $0x3788] sm:$0xff]  ;;  %v1063_v45 = vld [vmem:[%s7803_s29 + $0x1780] sm:$0xff] }
 0x352   : > { %v2090_v41 = vld [vmem:[%s7803_s29 + $0x3798] sm:$0xff] }
 0x353   : > { %5932 = vmatpush1.bf16.msra.mxu1 %v5931_v56  ;;  %v6973_v56 = vpack.c.bf16 %v2074_v35, %v2072_v46  ;;  %v1065_v46 = vld [vmem:[%s7803_s29 + $0x1790] sm:$0xff]  ;;  %v2087_v35 = vld [vmem:[%s7803_s29 + $0x3780] sm:$0xff] }
 0x354   : > { %6956 = vmatpush1.bf16.msra.mxu0 %v6955_v57  ;;  %5934 = vmatprep.subr.bf16.mxu1 %v5933_v58  ;;  %v2073_v57 = vld [vmem:[%s7803_s29 + $0x3710] sm:$0xff]  ;;  %v1052_v58 = vld [vmem:[%s7803_s29 + $0x1728] sm:$0xff] }
 0x355   : > { %6958 = vmatprep.subr.bf16.mxu0 %v6957_v0  ;;  %v5951_v0 = vpack.c.bf16 %v1049_v52, %v1047_v51  ;;  %v6975_v2 = vpack.c.bf16 %v2073_v57, %v2071_v53  ;;  %v5953_v3 = vpack.c.bf16 %v1054_v59, %v1052_v58  ;;  %v1070_v51 = vld [vmem:[%s7803_s29 + $0x17b8] sm:$0xff]  ;;  %v2092_v52 = vld [vmem:[%s7803_s29 + $0x37a8] sm:$0xff]  ;;  %v1067_v59 = vld [vmem:[%s7803_s29 + $0x17a0] sm:$0xff] }
 0x356   : > { %v2094_v53 = vld [vmem:[%s7803_s29 + $0x37b8] sm:$0xff] }
 0x357   : > { %5936 = vmatpush1.bf16.msra.mxu1 %v5935_v60  ;;  %v6977_v60 = vpack.c.bf16 %v2078_v63, %v2076_v62  ;;  %v1069_v62 = vld [vmem:[%s7803_s29 + $0x17b0] sm:$0xff]  ;;  %v2091_v63 = vld [vmem:[%s7803_s29 + $0x37a0] sm:$0xff] }
 0x358   : > { %6960 = vmatpush1.bf16.msra.mxu0 %v6959_v9  ;;  %5938 = vmatprep.subr.bf16.mxu1 %v5937_v12  ;;  %v2077_v9 = vld [vmem:[%s7803_s29 + $0x3730] sm:$0xff]  ;;  %v1056_v12 = vld [vmem:[%s7803_s29 + $0x1748] sm:$0xff] }
 0x359   : > { %6962 = vmatprep.subr.bf16.mxu0 %v6961_v15  ;;  %v5955_v15 = vpack.c.bf16 %v1053_v5, %v1051_v4  ;;  %v6979_v16 = vpack.c.bf16 %v2077_v9, %v2075_v7  ;;  %v5957_v6 = vpack.c.bf16 %v1058_v25, %v1056_v12  ;;  %v1074_v4 = vld [vmem:[%s7803_s29 + $0x17d8] sm:$0xff]  ;;  %v2096_v5 = vld [vmem:[%s7803_s29 + $0x37c8] sm:$0xff]  ;;  %v1071_v25 = vld [vmem:[%s7803_s29 + $0x17c0] sm:$0xff] }
 0x35a   : > { %v2098_v7 = vld [vmem:[%s7803_s29 + $0x37d8] sm:$0xff] }
 0x35b   : > { %5940 = vmatpush1.bf16.msra.mxu1 %v5939_v11  ;;  %v6981_v11 = vpack.c.bf16 %v2082_v1, %v2080_v13  ;;  %v1073_v13 = vld [vmem:[%s7803_s29 + $0x17d0] sm:$0xff]  ;;  %v2095_v1 = vld [vmem:[%s7803_s29 + $0x37c0] sm:$0xff] }
 0x35c   : > { %6964 = vmatpush1.bf16.msra.mxu0 %v6963_v28  ;;  %5942 = vmatprep.subr.bf16.mxu1 %v5941_v22  ;;  %v2081_v28 = vld [vmem:[%s7803_s29 + $0x3750] sm:$0xff]  ;;  %v1060_v22 = vld [vmem:[%s7803_s29 + $0x1768] sm:$0xff] }
 0x35d   : > { %6966 = vmatprep.subr.bf16.mxu0 %v6965_v31  ;;  %v5959_v31 = vpack.c.bf16 %v1057_v17, %v1055_v21  ;;  %v6983_v32 = vpack.c.bf16 %v2081_v28, %v2079_v18  ;;  %v5961_v33 = vpack.c.bf16 %v1062_v23, %v1060_v22  ;;  %v1078_v21 = vld [vmem:[%s7803_s29 + $0x17f8] sm:$0xff]  ;;  %v2100_v17 = vld [vmem:[%s7803_s29 + $0x37e8] sm:$0xff]  ;;  %v1075_v23 = vld [vmem:[%s7803_s29 + $0x17e0] sm:$0xff] }
 0x35e   : > { %v2102_v18 = vld [vmem:[%s7803_s29 + $0x37f8] sm:$0xff] }
 0x35f   : > { %5944 = vmatpush1.bf16.msra.mxu1 %v5943_v37  ;;  %v6985_v37 = vpack.c.bf16 %v2086_v29, %v2084_v26  ;;  %v1077_v26 = vld [vmem:[%s7803_s29 + $0x17f0] sm:$0xff]  ;;  %v2099_v29 = vld [vmem:[%s7803_s29 + $0x37e0] sm:$0xff] }
 0x360   : > { %6968 = vmatpush1.bf16.msra.mxu0 %v6967_v38  ;;  %5946 = vmatprep.subr.bf16.mxu1 %v5945_v39  ;;  %v2085_v38 = vld [vmem:[%s7803_s29 + $0x3770] sm:$0xff]  ;;  %v1064_v39 = vld [vmem:[%s7803_s29 + $0x1788] sm:$0xff] }
 0x361   : > { %6970 = vmatprep.subr.bf16.mxu0 %v6969_v30  ;;  %v5963_v30 = vpack.c.bf16 %v1061_v19, %v1059_v34  ;;  %v6987_v42 = vpack.c.bf16 %v2085_v38, %v2083_v36  ;;  %v5965_v44 = vpack.c.bf16 %v1066_v24, %v1064_v39  ;;  %v1082_v34 = vld [vmem:[%s7803_s29 + $0x1818] sm:$0xff]  ;;  %v2104_v19 = vld [vmem:[%s7803_s29 + $0x3808] sm:$0xff]  ;;  %v1079_v24 = vld [vmem:[%s7803_s29 + $0x1800] sm:$0xff] }
 0x362   : > { %v2106_v36 = vld [vmem:[%s7803_s29 + $0x3818] sm:$0xff] }
 0x363   : > { %5948 = vmatpush1.bf16.msra.mxu1 %v5947_v47  ;;  %v6989_v47 = vpack.c.bf16 %v2090_v41, %v2088_v40  ;;  %v1081_v40 = vld [vmem:[%s7803_s29 + $0x1810] sm:$0xff]  ;;  %v2103_v41 = vld [vmem:[%s7803_s29 + $0x3800] sm:$0xff] }
 0x364   : > { %6972 = vmatpush1.bf16.msra.mxu0 %v6971_v49  ;;  %5950 = vmatprep.subr.bf16.mxu1 %v5949_v50  ;;  %v2089_v49 = vld [vmem:[%s7803_s29 + $0x3790] sm:$0xff]  ;;  %v1068_v50 = vld [vmem:[%s7803_s29 + $0x17a8] sm:$0xff] }
 0x365   : > { %6974 = vmatprep.subr.bf16.mxu0 %v6973_v56  ;;  %v5967_v56 = vpack.c.bf16 %v1065_v46, %v1063_v45  ;;  %v6991_v57 = vpack.c.bf16 %v2089_v49, %v2087_v35  ;;  %v5969_v58 = vpack.c.bf16 %v1070_v51, %v1068_v50  ;;  %v1086_v45 = vld [vmem:[%s7803_s29 + $0x1838] sm:$0xff]  ;;  %v5983_v51 = vpack.c.bf16 %v1081_v40, %v1079_v24 }
 0x366   : > { %v7427_v46 = vld [vmem:[%s7931_s26 + $0x20] ss:$2 sm:$0xff]  ;;  %v9535_v50 = vld [vmem:[%s7931_s26 + $0x30] ss:$2 sm:$0xff] }
 0x367   : > { %5952 = vmatpush1.bf16.msra.mxu1 %v5951_v0  ;;  %v6993_v0 = vpack.c.bf16 %v2094_v53, %v2092_v52  ;;  %v2458_v35 = vrot.slane %v7427_v46, %v8410_v54  ;;  %v2110_v49 = vld [vmem:[%s7803_s29 + $0x3838] sm:$0xff]  ;;  %v1100_v46 = vld [vmem:[%s7803_s29 + $0x18a8] sm:$0xff] }
 0x368   : > { %6976 = vmatpush1.bf16.msra.mxu0 %v6975_v2  ;;  %5954 = vmatprep.subr.bf16.mxu1 %v5953_v3  ;;  %v2093_v2 = vld [vmem:[%s7803_s29 + $0x37b0] sm:$0xff]  ;;  %v1072_v3 = vld [vmem:[%s7803_s29 + $0x17c8] sm:$0xff] }
 0x369   : > { %6978 = vmatprep.subr.bf16.mxu0 %v6977_v60  ;;  %v5971_v60 = vpack.c.bf16 %v1069_v62, %v1067_v59  ;;  %v6995_v9 = vpack.c.bf16 %v2093_v2, %v2091_v63  ;;  %v5973_v12 = vpack.c.bf16 %v1074_v4, %v1072_v3  ;;  %v7428_v52 = vld [vmem:[%s7931_s26 + $0x60] ss:$2 sm:$0xff]  ;;  %v1085_v62 = vld [vmem:[%s7803_s29 + $0x1830] sm:$0xff] }
 0x36a   : > { %v2586_v53 = vrot.slane %v7428_v52, %v8410_v54  ;;  %v1083_v59 = vld [vmem:[%s7803_s29 + $0x1820] sm:$0xff]  ;;  %v2109_v2 = vld [vmem:[%s7803_s29 + $0x3830] sm:$0xff]  ;;  %v1088_v3 = vld [vmem:[%s7803_s29 + $0x1848] sm:$0xff] }
 0x36b   : > { %5956 = vmatpush1.bf16.msra.mxu1 %v5955_v15  ;;  %v6997_v15 = vpack.c.bf16 %v2098_v7, %v2096_v5  ;;  %v2107_v63 = vld [vmem:[%s7803_s29 + $0x3820] sm:$0xff]  ;;  %v1090_v4 = vld [vmem:[%s7803_s29 + $0x1858] sm:$0xff]  ;;  %v2470_v5 = vrot.slane %v9535_v50, %v7922_v10  ;;  %v2112_v7 = vld [vmem:[%s7803_s29 + $0x3848] sm:$0xff] }
 0x36c   : > { %6980 = vmatpush1.bf16.msra.mxu0 %v6979_v16  ;;  %5958 = vmatprep.subr.bf16.mxu1 %v5957_v6  ;;  %v2097_v16 = vld [vmem:[%s7803_s29 + $0x37d0] sm:$0xff]  ;;  %v1076_v6 = vld [vmem:[%s7803_s29 + $0x17e8] sm:$0xff] }
 0x36d   : > { %6982 = vmatprep.subr.bf16.mxu0 %v6981_v11  ;;  %v5975_v11 = vpack.c.bf16 %v1073_v13, %v1071_v25  ;;  %v6999_v28 = vpack.c.bf16 %v2097_v16, %v2095_v1  ;;  %v5977_v22 = vpack.c.bf16 %v1078_v21, %v1076_v6  ;;  %v7011_v25 = vpack.c.bf16 %v2109_v2, %v2107_v63  ;;  %v1087_v1 = vld [vmem:[%s7803_s29 + $0x1840] sm:$0xff]  ;;  %v2113_v21 = vld [vmem:[%s7803_s29 + $0x3850] sm:$0xff]  ;;  %v1106_v2 = vld [vmem:[%s7803_s29 + $0x18d8] sm:$0xff] }
 0x36e   : > { %v5989_v13 = vpack.c.bf16 %v1090_v4, %v1088_v3  ;;  %v2111_v16 = vld [vmem:[%s7803_s29 + $0x3840] sm:$0xff]  ;;  %v2125_v63 = vld [vmem:[%s7803_s29 + $0x38b0] sm:$0xff]  ;;  %v2128_v3 = vld [vmem:[%s7803_s29 + $0x38c8] sm:$0xff] }
 0x36f   : > { %5960 = vmatpush1.bf16.msra.mxu1 %v5959_v31  ;;  %v7001_v31 = vpack.c.bf16 %v2102_v18, %v2100_v17  ;;  %v1092_v17 = vld [vmem:[%s7803_s29 + $0x1868] sm:$0xff]  ;;  %v1094_v18 = vld [vmem:[%s7803_s29 + $0x1878] sm:$0xff] }
 0x370   : > { %6984 = vmatpush1.bf16.msra.mxu0 %v6983_v32  ;;  %5962 = vmatprep.subr.bf16.mxu1 %v5961_v33  ;;  %v2101_v32 = vld [vmem:[%s7803_s29 + $0x37f0] sm:$0xff]  ;;  %v1080_v33 = vld [vmem:[%s7803_s29 + $0x1808] sm:$0xff]  ;;  %v2130_v4 = vld [vmem:[%s7803_s29 + $0x38d8] sm:$0xff] }
 0x371   : > { %6986 = vmatprep.subr.bf16.mxu0 %v6985_v37  ;;  %v5979_v37 = vpack.c.bf16 %v1077_v26, %v1075_v23  ;;  %v7003_v38 = vpack.c.bf16 %v2101_v32, %v2099_v29  ;;  %v5981_v39 = vpack.c.bf16 %v1082_v34, %v1080_v33  ;;  %v7015_v23 = vpack.c.bf16 %v2113_v21, %v2111_v16  ;;  %v1091_v29 = vld [vmem:[%s7803_s29 + $0x1860] sm:$0xff]  ;;  %v2117_v34 = vld [vmem:[%s7803_s29 + $0x3870] sm:$0xff]  ;;  %v1110_v16 = vld [vmem:[%s7803_s29 + $0x18f8] sm:$0xff] }
 0x372   : > { %v5993_v26 = vpack.c.bf16 %v1094_v18, %v1092_v17  ;;  %v2115_v32 = vld [vmem:[%s7803_s29 + $0x3860] sm:$0xff]  ;;  %v2134_v21 = vld [vmem:[%s7803_s29 + $0x38f8] sm:$0xff] }
 0x373   : > { %5964 = vmatpush1.bf16.msra.mxu1 %v5963_v30  ;;  %v7005_v30 = vpack.c.bf16 %v2106_v36, %v2104_v19  ;;  %v1096_v19 = vld [vmem:[%s7803_s29 + $0x1888] sm:$0xff]  ;;  %v1098_v36 = vld [vmem:[%s7803_s29 + $0x1898] sm:$0xff]  ;;  %v7019_v24 = vpack.c.bf16 %v2117_v34, %v2115_v32 }
 0x374   : > { %6988 = vmatpush1.bf16.msra.mxu0 %v6987_v42  ;;  %5966 = vmatprep.subr.bf16.mxu1 %v5965_v44  ;;  %v2105_v42 = vld [vmem:[%s7803_s29 + $0x3810] sm:$0xff]  ;;  %v1084_v44 = vld [vmem:[%s7803_s29 + $0x1828] sm:$0xff]  ;;  %v5997_v40 = vpack.c.bf16 %v1098_v36, %v1096_v19  ;;  %v1114_v32 = vld [vmem:[%s7803_s29 + $0x1918] sm:$0xff] }
 0x375   : > { %6990 = vmatprep.subr.bf16.mxu0 %v6989_v47  ;;  %v2108_v47 = vld [vmem:[%s7803_s29 + $0x3828] sm:$0xff]  ;;  %v2138_v34 = vld [vmem:[%s7803_s29 + $0x3918] sm:$0xff] }
 0x377   : > { %5968 = vmatpush1.bf16.msra.mxu1 %v5967_v56  ;;  %v9540_v56 = vld [vmem:[%s7931_s26 + $0x70] ss:$2 sm:$0xff] }
 0x378   : > { %6992 = vmatpush1.bf16.msra.mxu0 %v6991_v57  ;;  %5970 = vmatprep.subr.bf16.mxu1 %v5969_v58  ;;  %v7007_v57 = vpack.c.bf16 %v2105_v42, %v2103_v41  ;;  %v5985_v58 = vpack.c.bf16 %v1086_v45, %v1084_v44  ;;  %v1095_v41 = vld [vmem:[%s7803_s29 + $0x1880] sm:$0xff]  ;;  %v2121_v45 = vld [vmem:[%s7803_s29 + $0x3890] sm:$0xff] }
 0x379   : > { %6994 = vmatprep.subr.bf16.mxu0 %v6993_v0  ;;  %v7009_v0 = vpack.c.bf16 %v2110_v49, %v2108_v47  ;;  %v2119_v42 = vld [vmem:[%s7803_s29 + $0x3880] sm:$0xff]  ;;  %v2124_v47 = vld [vmem:[%s7803_s29 + $0x38a8] sm:$0xff]  ;;  %v2126_v49 = vld [vmem:[%s7803_s29 + $0x38b8] sm:$0xff] }
 0x37a   : > { %v7023_v52 = vpack.c.bf16 %v2121_v45, %v2119_v42  ;;  %v1118_v42 = vld [vmem:[%s7803_s29 + $0x1938] sm:$0xff] }
 0x37b   : > { %5972 = vmatpush1.bf16.msra.mxu1 %v5971_v60  ;;  %v2114_v60 = vld [vmem:[%s7803_s29 + $0x3858] sm:$0xff] }
 0x37c   : > { %6996 = vmatpush1.bf16.msra.mxu0 %v6995_v9  ;;  %5974 = vmatprep.subr.bf16.mxu1 %v5973_v12  ;;  %v2598_v9 = vrot.slane %v9540_v56, %v7922_v10  ;;  %v5987_v12 = vpack.c.bf16 %v1085_v62, %v1083_v59  ;;  %v7013_v6 = vpack.c.bf16 %v2114_v60, %v2112_v7  ;;  %v2123_v59 = vld [vmem:[%s7803_s29 + $0x38a0] sm:$0xff]  ;;  %v2142_v45 = vld [vmem:[%s7803_s29 + $0x3938] sm:$0xff] }
 0x37d   : > { %6998 = vmatprep.subr.bf16.mxu0 %v6997_v15  ;;  %v1089_v15 = vld [vmem:[%s7803_s29 + $0x1850] sm:$0xff]  ;;  %v7025_v62 = vpack.c.bf16 %v2126_v49, %v2124_v47  ;;  %v7027_v7 = vpack.c.bf16 %v2125_v63, %v2123_v59  ;;  %v1115_v49 = vld [vmem:[%s7803_s29 + $0x1920] sm:$0xff]  ;;  %v1122_v59 = vld [vmem:[%s7803_s29 + $0x1958] sm:$0xff] }
 0x37e   : > { %v2146_v63 = vld [vmem:[%s7803_s29 + $0x3958] sm:$0xff] }
 0x37f   : > { %5976 = vmatpush1.bf16.msra.mxu1 %v5975_v11  ;;  %v2116_v11 = vld [vmem:[%s7803_s29 + $0x3868] sm:$0xff] }
 0x380   : > { %7000 = vmatpush1.bf16.msra.mxu0 %v6999_v28  ;;  %5978 = vmatprep.subr.bf16.mxu1 %v5977_v22  ;;  %v2118_v28 = vld [vmem:[%s7803_s29 + $0x3878] sm:$0xff]  ;;  %v5991_v22 = vpack.c.bf16 %v1089_v15, %v1087_v1  ;;  %v2129_v1 = vld [vmem:[%s7803_s29 + $0x38d0] sm:$0xff]  ;;  %v1108_v15 = vld [vmem:[%s7803_s29 + $0x18e8] sm:$0xff] }
 0x381   : > { %7002 = vmatprep.subr.bf16.mxu0 %v7001_v31  ;;  %v1093_v31 = vld [vmem:[%s7803_s29 + $0x1870] sm:$0xff]  ;;  %v7017_v33 = vpack.c.bf16 %v2118_v28, %v2116_v11  ;;  %v6009_v11 = vpack.c.bf16 %v1110_v16, %v1108_v15  ;;  %v1107_v28 = vld [vmem:[%s7803_s29 + $0x18e0] sm:$0xff] }
 0x383   : > { %5980 = vmatpush1.bf16.msra.mxu1 %v5979_v37  ;;  %v2120_v37 = vld [vmem:[%s7803_s29 + $0x3888] sm:$0xff] }
 0x384   : > { %7004 = vmatpush1.bf16.msra.mxu0 %v7003_v38  ;;  %5982 = vmatprep.subr.bf16.mxu1 %v5981_v39  ;;  %v2122_v38 = vld [vmem:[%s7803_s29 + $0x3898] sm:$0xff]  ;;  %v5995_v39 = vpack.c.bf16 %v1093_v31, %v1091_v29  ;;  %v2133_v29 = vld [vmem:[%s7803_s29 + $0x38f0] sm:$0xff]  ;;  %v1112_v31 = vld [vmem:[%s7803_s29 + $0x1908] sm:$0xff] }
 0x385   : > { %7006 = vmatprep.subr.bf16.mxu0 %v7005_v30  ;;  %v1097_v30 = vld [vmem:[%s7803_s29 + $0x1890] sm:$0xff]  ;;  %v7021_v44 = vpack.c.bf16 %v2122_v38, %v2120_v37  ;;  %v6013_v37 = vpack.c.bf16 %v1114_v32, %v1112_v31  ;;  %v1111_v38 = vld [vmem:[%s7803_s29 + $0x1900] sm:$0xff] }
 0x386   : > { %3533 = vmatmul.mubr.f32.vlgmr.msra.gmra.mrb[0].mxu1 %v2458_v35  ;;  %v1102_v35 = vld [vmem:[%s7803_s29 + $0x18b8] sm:$0xff] }
 0x387   : > { %5984 = vmatpush1.bf16.msra.mxu1 %v5983_v51  ;;  %4669 = vmatmul.mubr.f32.vlgmr.msra.gmra.mrb[0].mxu0 %v2586_v53  ;;  %v5999_v51 = vpack.c.bf16 %v1097_v30, %v1095_v41  ;;  %v6001_v53 = vpack.c.bf16 %v1102_v35, %v1100_v46  ;;  %v2137_v41 = vld [vmem:[%s7803_s29 + $0x3910] sm:$0xff]  ;;  %v1116_v30 = vld [vmem:[%s7803_s29 + $0x1928] sm:$0xff] }
 0x388   : > { %7008 = vmatpush1.bf16.msra.mxu0 %v7007_v57  ;;  %5986 = vmatprep.subr.bf16.mxu1 %v5985_v58  ;;  %v1099_v57 = vld [vmem:[%s7803_s29 + $0x18a0] sm:$0xff]  ;;  %v1101_v58 = vld [vmem:[%s7803_s29 + $0x18b0] sm:$0xff]  ;;  %v6017_v47 = vpack.c.bf16 %v1118_v42, %v1116_v30 }
 0x389   : > { %7010 = vmatprep.subr.bf16.mxu0 %v7009_v0  ;;  %3603 = vmatprep.mubr.f32.mxu1 %v2470_v5  ;;  %v1104_v0 = vld [vmem:[%s7803_s29 + $0x18c8] sm:$0xff]  ;;  %v6003_v5 = vpack.c.bf16 %v1101_v58, %v1099_v57  ;;  %v2141_v57 = vld [vmem:[%s7803_s29 + $0x3930] sm:$0xff] }
 0x38a   : > { %4739 = vmatprep.mubr.f32.mxu0 %v2598_v9  ;;  %v6005_v60 = vpack.c.bf16 %v1106_v2, %v1104_v0  ;;  %v1103_v9 = vld [vmem:[%s7803_s29 + $0x18c0] sm:$0xff]  ;;  %v1120_v58 = vld [vmem:[%s7803_s29 + $0x1948] sm:$0xff] }
 0x38b   : > { %5988 = vmatpush1.bf16.msra.mxu1 %v5987_v12  ;;  %v1105_v12 = vld [vmem:[%s7803_s29 + $0x18d0] sm:$0xff] }
 0x38c   : > { %7012 = vmatpush1.bf16.msra.mxu0 %v7011_v25  ;;  %5990 = vmatprep.subr.bf16.mxu1 %v5989_v13  ;;  %v2127_v25 = vld [vmem:[%s7803_s29 + $0x38c0] sm:$0xff]  ;;  %v7029_v13 = vpack.c.bf16 %v2130_v4, %v2128_v3  ;;  %v6007_v17 = vpack.c.bf16 %v1105_v12, %v1103_v9  ;;  %v6021_v3 = vpack.c.bf16 %v1122_v59, %v1120_v58  ;;  %v2145_v9 = vld [vmem:[%s7803_s29 + $0x3950] sm:$0xff]  ;;  %v1124_v12 = vld [vmem:[%s7803_s29 + $0x1968] sm:$0xff] }
 0x38d   : > { %7014 = vmatprep.subr.bf16.mxu0 %v7013_v6  ;;  %v2132_v6 = vld [vmem:[%s7803_s29 + $0x38e8] sm:$0xff]  ;;  %v7031_v18 = vpack.c.bf16 %v2129_v1, %v2127_v25  ;;  %v1119_v4 = vld [vmem:[%s7803_s29 + $0x1940] sm:$0xff]  ;;  %v1126_v25 = vld [vmem:[%s7803_s29 + $0x1978] sm:$0xff] }
 0x38e   : > { %v2150_v1 = vld [vmem:[%s7803_s29 + $0x3978] sm:$0xff] }
 0x38f   : > { %5992 = vmatpush1.bf16.msra.mxu1 %v5991_v22  ;;  %v1109_v22 = vld [vmem:[%s7803_s29 + $0x18f0] sm:$0xff] }
 0x390   : > { %7016 = vmatpush1.bf16.msra.mxu0 %v7015_v23  ;;  %5994 = vmatprep.subr.bf16.mxu1 %v5993_v26  ;;  %v2131_v23 = vld [vmem:[%s7803_s29 + $0x38e0] sm:$0xff]  ;;  %v7033_v26 = vpack.c.bf16 %v2134_v21, %v2132_v6  ;;  %v6011_v19 = vpack.c.bf16 %v1109_v22, %v1107_v28  ;;  %v6025_v6 = vpack.c.bf16 %v1126_v25, %v1124_v12  ;;  %v2149_v28 = vld [vmem:[%s7803_s29 + $0x3970] sm:$0xff]  ;;  %v1128_v22 = vld [vmem:[%s7803_s29 + $0x1988] sm:$0xff] }
 0x391   : > { %7018 = vmatprep.subr.bf16.mxu0 %v7017_v33  ;;  %v2136_v33 = vld [vmem:[%s7803_s29 + $0x3908] sm:$0xff]  ;;  %v7035_v36 = vpack.c.bf16 %v2133_v29, %v2131_v23  ;;  %v1123_v21 = vld [vmem:[%s7803_s29 + $0x1960] sm:$0xff]  ;;  %v1130_v23 = vld [vmem:[%s7803_s29 + $0x1998] sm:$0xff] }
 0x392   : > { %v2154_v29 = vld [vmem:[%s7803_s29 + $0x3998] sm:$0xff] }
 0x393   : > { %5996 = vmatpush1.bf16.msra.mxu1 %v5995_v39  ;;  %v1113_v39 = vld [vmem:[%s7803_s29 + $0x1910] sm:$0xff] }
 0x394   : > { %7020 = vmatpush1.bf16.msra.mxu0 %v7019_v24  ;;  %5998 = vmatprep.subr.bf16.mxu1 %v5997_v40  ;;  %v2135_v24 = vld [vmem:[%s7803_s29 + $0x3900] sm:$0xff]  ;;  %v7037_v40 = vpack.c.bf16 %v2138_v34, %v2136_v33  ;;  %v6015_v46 = vpack.c.bf16 %v1113_v39, %v1111_v38  ;;  %v6029_v33 = vpack.c.bf16 %v1130_v23, %v1128_v22  ;;  %v2153_v38 = vld [vmem:[%s7803_s29 + $0x3990] sm:$0xff]  ;;  %v1132_v39 = vld [vmem:[%s7803_s29 + $0x19a8] sm:$0xff] }
 0x395   : > { %7022 = vmatprep.subr.bf16.mxu0 %v7021_v44  ;;  %v2140_v44 = vld [vmem:[%s7803_s29 + $0x3928] sm:$0xff]  ;;  %v7039_v35 = vpack.c.bf16 %v2137_v41, %v2135_v24  ;;  %v1127_v34 = vld [vmem:[%s7803_s29 + $0x1980] sm:$0xff]  ;;  %v1134_v24 = vld [vmem:[%s7803_s29 + $0x19b8] sm:$0xff] }
 0x396   : > { %v2158_v41 = vld [vmem:[%s7803_s29 + $0x39b8] sm:$0xff] }
 0x397   : > { %6000 = vmatpush1.bf16.msra.mxu1 %v5999_v51  ;;  %v1117_v51 = vld [vmem:[%s7803_s29 + $0x1930] sm:$0xff] }
 0x398   : > { %7024 = vmatpush1.bf16.msra.mxu0 %v7023_v52  ;;  %6002 = vmatprep.subr.bf16.mxu1 %v6001_v53  ;;  %v2139_v52 = vld [vmem:[%s7803_s29 + $0x3920] sm:$0xff]  ;;  %v7041_v53 = vpack.c.bf16 %v2142_v45, %v2140_v44  ;;  %v6019_v0 = vpack.c.bf16 %v1117_v51, %v1115_v49  ;;  %v6033_v44 = vpack.c.bf16 %v1134_v24, %v1132_v39  ;;  %v2157_v49 = vld [vmem:[%s7803_s29 + $0x39b0] sm:$0xff]  ;;  %v1136_v51 = vld [vmem:[%s7803_s29 + $0x19c8] sm:$0xff] }
 0x399   : > { %7026 = vmatprep.subr.bf16.mxu0 %v7025_v62  ;;  %v2144_v62 = vld [vmem:[%s7803_s29 + $0x3948] sm:$0xff]  ;;  %v7043_v2 = vpack.c.bf16 %v2141_v57, %v2139_v52  ;;  %v1131_v45 = vld [vmem:[%s7803_s29 + $0x19a0] sm:$0xff]  ;;  %v1138_v52 = vld [vmem:[%s7803_s29 + $0x19d8] sm:$0xff] }
 0x39a   : > { %v2162_v57 = vld [vmem:[%s7803_s29 + $0x39d8] sm:$0xff] }
 0x39b   : > { %6004 = vmatpush1.bf16.msra.mxu1 %v6003_v5  ;;  %v1121_v5 = vld [vmem:[%s7803_s29 + $0x1950] sm:$0xff]  ;;  %v2174_v39 = vld [vmem:[%s7803_s29 + $0x3a38] sm:$0xff] }
 0x39c   : > { %7028 = vmatpush1.bf16.msra.mxu0 %v7027_v7  ;;  %6006 = vmatprep.subr.bf16.mxu1 %v6005_v60  ;;  %v2143_v7 = vld [vmem:[%s7803_s29 + $0x3940] sm:$0xff]  ;;  %v7045_v60 = vpack.c.bf16 %v2146_v63, %v2144_v62  ;;  %v6023_v15 = vpack.c.bf16 %v1121_v5, %v1119_v4  ;;  %v6037_v62 = vpack.c.bf16 %v1138_v52, %v1136_v51  ;;  %v2161_v4 = vld [vmem:[%s7803_s29 + $0x39d0] sm:$0xff]  ;;  %v1140_v5 = vld [vmem:[%s7803_s29 + $0x19e8] sm:$0xff] }
 0x39d   : > { %7030 = vmatprep.subr.bf16.mxu0 %v7029_v13  ;;  %v2148_v13 = vld [vmem:[%s7803_s29 + $0x3968] sm:$0xff]  ;;  %v7047_v16 = vpack.c.bf16 %v2145_v9, %v2143_v7  ;;  %v1135_v63 = vld [vmem:[%s7803_s29 + $0x19c0] sm:$0xff]  ;;  %v1142_v7 = vld [vmem:[%s7803_s29 + $0x19f8] sm:$0xff]  ;;  %v2478_v51 = vrot.slane %v9535_v50, %v7987_v27 }
 0x39e   : > { %v2166_v9 = vld [vmem:[%s7803_s29 + $0x39f8] sm:$0xff]  ;;  %v2176_v52 = vld [vmem:[%s7803_s29 + $0x3a48] sm:$0xff] }
 0x39f   : > { %6008 = vmatpush1.bf16.msra.mxu1 %v6007_v17  ;;  %v1125_v17 = vld [vmem:[%s7803_s29 + $0x1970] sm:$0xff] }
 0x3a0   : > { %7032 = vmatpush1.bf16.msra.mxu0 %v7031_v18  ;;  %6010 = vmatprep.subr.bf16.mxu1 %v6009_v11  ;;  %v2147_v18 = vld [vmem:[%s7803_s29 + $0x3960] sm:$0xff]  ;;  %v7049_v11 = vpack.c.bf16 %v2150_v1, %v2148_v13  ;;  %v6027_v31 = vpack.c.bf16 %v1125_v17, %v1123_v21  ;;  %v6041_v13 = vpack.c.bf16 %v1142_v7, %v1140_v5  ;;  %v2165_v21 = vld [vmem:[%s7803_s29 + $0x39f0] sm:$0xff]  ;;  %v1144_v17 = vld [vmem:[%s7803_s29 + $0x1a08] sm:$0xff] }
 0x3a1   : > { %7034 = vmatprep.subr.bf16.mxu0 %v7033_v26  ;;  %v2152_v26 = vld [vmem:[%s7803_s29 + $0x3988] sm:$0xff]  ;;  %v7051_v32 = vpack.c.bf16 %v2149_v28, %v2147_v18  ;;  %v1139_v1 = vld [vmem:[%s7803_s29 + $0x19e0] sm:$0xff]  ;;  %v1146_v18 = vld [vmem:[%s7803_s29 + $0x1a18] sm:$0xff] }
 0x3a2   : > { %v2170_v28 = vld [vmem:[%s7803_s29 + $0x3a18] sm:$0xff] }
 0x3a3   : > { %6012 = vmatpush1.bf16.msra.mxu1 %v6011_v19  ;;  %v1129_v19 = vld [vmem:[%s7803_s29 + $0x1990] sm:$0xff]  ;;  %v2182_v5 = vld [vmem:[%s7803_s29 + $0x3a78] sm:$0xff] }
 0x3a4   : > { %7036 = vmatpush1.bf16.msra.mxu0 %v7035_v36  ;;  %6014 = vmatprep.subr.bf16.mxu1 %v6013_v37  ;;  %v2151_v36 = vld [vmem:[%s7803_s29 + $0x3980] sm:$0xff]  ;;  %v7053_v37 = vpack.c.bf16 %v2154_v29, %v2152_v26  ;;  %v6031_v30 = vpack.c.bf16 %v1129_v19, %v1127_v34  ;;  %v6045_v26 = vpack.c.bf16 %v1146_v18, %v1144_v17  ;;  %v2169_v34 = vld [vmem:[%s7803_s29 + $0x3a10] sm:$0xff]  ;;  %v1148_v19 = vld [vmem:[%s7803_s29 + $0x1a28] sm:$0xff] }
 0x3a5   : > { %7038 = vmatprep.subr.bf16.mxu0 %v7037_v40  ;;  %v2156_v40 = vld [vmem:[%s7803_s29 + $0x39a8] sm:$0xff]  ;;  %v7055_v42 = vpack.c.bf16 %v2153_v38, %v2151_v36  ;;  %v1143_v29 = vld [vmem:[%s7803_s29 + $0x1a00] sm:$0xff]  ;;  %v1150_v36 = vld [vmem:[%s7803_s29 + $0x1a38] sm:$0xff] }
 0x3a6   : > { %v2172_v38 = vld [vmem:[%s7803_s29 + $0x3a28] sm:$0xff]  ;;  %v2186_v17 = vld [vmem:[%s7803_s29 + $0x3a98] sm:$0xff] }
 0x3a7   : > { %6016 = vmatpush1.bf16.msra.mxu1 %v6015_v46  ;;  %v1133_v46 = vld [vmem:[%s7803_s29 + $0x19b0] sm:$0xff] }
 0x3a8   : > { %7040 = vmatpush1.bf16.msra.mxu0 %v7039_v35  ;;  %6018 = vmatprep.subr.bf16.mxu1 %v6017_v47  ;;  %v2155_v35 = vld [vmem:[%s7803_s29 + $0x39a0] sm:$0xff]  ;;  %v7057_v47 = vpack.c.bf16 %v2158_v41, %v2156_v40  ;;  %v6035_v58 = vpack.c.bf16 %v1133_v46, %v1131_v45  ;;  %v2594_v40 = vrot.slane %v9540_v56, %v7978_v14 }
 0x3a9   : > { %7042 = vmatprep.subr.bf16.mxu0 %v7041_v53  ;;  %v2160_v53 = vld [vmem:[%s7803_s29 + $0x39c8] sm:$0xff]  ;;  %v7059_v59 = vpack.c.bf16 %v2157_v49, %v2155_v35  ;;  %v2171_v45 = vld [vmem:[%s7803_s29 + $0x3a20] sm:$0xff]  ;;  %v7073_v46 = vpack.c.bf16 %v2174_v39, %v2172_v38  ;;  %v2173_v35 = vld [vmem:[%s7803_s29 + $0x3a30] sm:$0xff] }
 0x3aa   : > { %v1154_v49 = vld [vmem:[%s7803_s29 + $0x1a58] sm:$0xff]  ;;  %v1163_v39 = vld [vmem:[%s7803_s29 + $0x1aa0] sm:$0xff] }
 0x3ab   : > { %6020 = vmatpush1.bf16.msra.mxu1 %v6019_v0  ;;  %v1137_v0 = vld [vmem:[%s7803_s29 + $0x19d0] sm:$0xff] }
 0x3ac   : > { %7044 = vmatpush1.bf16.msra.mxu0 %v7043_v2  ;;  %6022 = vmatprep.subr.bf16.mxu1 %v6021_v3  ;;  %v2159_v2 = vld [vmem:[%s7803_s29 + $0x39c0] sm:$0xff]  ;;  %v7061_v3 = vpack.c.bf16 %v2162_v57, %v2160_v53  ;;  %v6039_v12 = vpack.c.bf16 %v1137_v0, %v1135_v63  ;;  %v2178_v53 = vld [vmem:[%s7803_s29 + $0x3a58] sm:$0xff]  ;;  %v2606_v57 = vrot.slane %v9540_v56, %v7987_v27  ;;  %v2180_v56 = vld [vmem:[%s7803_s29 + $0x3a68] sm:$0xff] }
 0x3ad   : > { %7046 = vmatprep.subr.bf16.mxu0 %v7045_v60  ;;  %v2164_v60 = vld [vmem:[%s7803_s29 + $0x39e8] sm:$0xff]  ;;  %v7063_v25 = vpack.c.bf16 %v2161_v4, %v2159_v2  ;;  %v1151_v63 = vld [vmem:[%s7803_s29 + $0x1a40] sm:$0xff]  ;;  %v7077_v2 = vpack.c.bf16 %v2178_v53, %v2176_v52  ;;  %v1158_v27 = vld [vmem:[%s7803_s29 + $0x1a78] sm:$0xff] }
 0x3ae   : > { %v2175_v0 = vld [vmem:[%s7803_s29 + $0x3a40] sm:$0xff]  ;;  %v1156_v4 = vld [vmem:[%s7803_s29 + $0x1a68] sm:$0xff]  ;;  %v1169_v52 = vld [vmem:[%s7803_s29 + $0x1ad0] sm:$0xff] }
 0x3af   : > { %6024 = vmatpush1.bf16.msra.mxu1 %v6023_v15  ;;  %v1141_v15 = vld [vmem:[%s7803_s29 + $0x19f0] sm:$0xff]  ;;  %v2191_v53 = vld [vmem:[%s7803_s29 + $0x3ac0] sm:$0xff] }
 0x3b0   : > { %7048 = vmatpush1.bf16.msra.mxu0 %v7047_v16  ;;  %6026 = vmatprep.subr.bf16.mxu1 %v6025_v6  ;;  %v2163_v16 = vld [vmem:[%s7803_s29 + $0x39e0] sm:$0xff]  ;;  %v7065_v6 = vpack.c.bf16 %v2166_v9, %v2164_v60  ;;  %v6043_v22 = vpack.c.bf16 %v1141_v15, %v1139_v1  ;;  %v6057_v9 = vpack.c.bf16 %v1158_v27, %v1156_v4  ;;  %v2181_v15 = vld [vmem:[%s7803_s29 + $0x3a70] sm:$0xff] }
 0x3b1   : > { %7050 = vmatprep.subr.bf16.mxu0 %v7049_v11  ;;  %v2168_v11 = vld [vmem:[%s7803_s29 + $0x3a08] sm:$0xff]  ;;  %v7067_v23 = vpack.c.bf16 %v2165_v21, %v2163_v16  ;;  %v7081_v1 = vpack.c.bf16 %v2182_v5, %v2180_v56  ;;  %v1171_v4 = vld [vmem:[%s7803_s29 + $0x1ae0] sm:$0xff]  ;;  %v1173_v27 = vld [vmem:[%s7803_s29 + $0x1af0] sm:$0xff] }
 0x3b2   : > { %v1160_v16 = vld [vmem:[%s7803_s29 + $0x1a88] sm:$0xff]  ;;  %v2195_v56 = vld [vmem:[%s7803_s29 + $0x3ae0] sm:$0xff] }
 0x3b3   : > { %6028 = vmatpush1.bf16.msra.mxu1 %v6027_v31  ;;  %v1145_v31 = vld [vmem:[%s7803_s29 + $0x1a10] sm:$0xff]  ;;  %v2184_v21 = vld [vmem:[%s7803_s29 + $0x3a88] sm:$0xff] }
 0x3b4   : > { %7052 = vmatpush1.bf16.msra.mxu0 %v7051_v32  ;;  %6030 = vmatprep.subr.bf16.mxu1 %v6029_v33  ;;  %v2167_v32 = vld [vmem:[%s7803_s29 + $0x3a00] sm:$0xff]  ;;  %v7069_v33 = vpack.c.bf16 %v2170_v28, %v2168_v11  ;;  %v6047_v24 = vpack.c.bf16 %v1145_v31, %v1143_v29  ;;  %v7085_v29 = vpack.c.bf16 %v2186_v17, %v2184_v21  ;;  %v2185_v31 = vld [vmem:[%s7803_s29 + $0x3a90] sm:$0xff] }
 0x3b5   : > { %7054 = vmatprep.subr.bf16.mxu0 %v7053_v37  ;;  %v2466_v37 = vrot.slane %v9535_v50, %v7978_v14  ;;  %v7071_v41 = vpack.c.bf16 %v2169_v34, %v2167_v32  ;;  %v1153_v50 = vld [vmem:[%s7803_s29 + $0x1a50] sm:$0xff]  ;;  %v1164_v32 = vld [vmem:[%s7803_s29 + $0x1aa8] sm:$0xff]  ;;  %v2199_v21 = vld [vmem:[%s7803_s29 + $0x3b00] sm:$0xff] }
 0x3b6   : > { %v6055_v7 = vpack.c.bf16 %v1153_v50, %v1151_v63  ;;  %v2188_v34 = vld [vmem:[%s7803_s29 + $0x3aa8] sm:$0xff]  ;;  %v2198_v50 = vld [vmem:[%s7803_s29 + $0x3af8] sm:$0xff] }
 0x3b7   : > { %6032 = vmatpush1.bf16.msra.mxu1 %v6031_v30  ;;  %v6049_v30 = vpack.c.bf16 %v1150_v36, %v1148_v19  ;;  %v2190_v19 = vld [vmem:[%s7803_s29 + $0x3ab8] sm:$0xff]  ;;  %v2196_v63 = vld [vmem:[%s7803_s29 + $0x3ae8] sm:$0xff] }
 0x3b8   : > { %7056 = vmatpush1.bf16.msra.mxu0 %v7055_v42  ;;  %6034 = vmatprep.subr.bf16.mxu1 %v6033_v44  ;;  %v1147_v42 = vld [vmem:[%s7803_s29 + $0x1a20] sm:$0xff]  ;;  %v1149_v44 = vld [vmem:[%s7803_s29 + $0x1a30] sm:$0xff]  ;;  %v7097_v5 = vpack.c.bf16 %v2198_v50, %v2196_v63 }
 0x3b9   : > { %7058 = vmatprep.subr.bf16.mxu0 %v7057_v47  ;;  %v1152_v47 = vld [vmem:[%s7803_s29 + $0x1a48] sm:$0xff]  ;;  %v2211_v63 = vld [vmem:[%s7803_s29 + $0x3b60] sm:$0xff] }
 0x3bb   : > { %6036 = vmatpush1.bf16.msra.mxu1 %v6035_v58  ;;  %v6051_v58 = vpack.c.bf16 %v1149_v44, %v1147_v42  ;;  %v1168_v42 = vld [vmem:[%s7803_s29 + $0x1ac8] sm:$0xff]  ;;  %v1170_v44 = vld [vmem:[%s7803_s29 + $0x1ad8] sm:$0xff] }
 0x3bc   : > { %7060 = vmatpush1.bf16.msra.mxu0 %v7059_v59  ;;  %6038 = vmatprep.subr.bf16.mxu1 %v6037_v62  ;;  %v7075_v59 = vpack.c.bf16 %v2173_v35, %v2171_v45  ;;  %v6053_v62 = vpack.c.bf16 %v1154_v49, %v1152_v47  ;;  %v2192_v45 = vld [vmem:[%s7803_s29 + $0x3ac8] sm:$0xff]  ;;  %v6069_v49 = vpack.c.bf16 %v1170_v44, %v1168_v42  ;;  %v1183_v42 = vld [vmem:[%s7803_s29 + $0x1b40] sm:$0xff]  ;;  %v1185_v44 = vld [vmem:[%s7803_s29 + $0x1b50] sm:$0xff] }
 0x3bd   : > { %7062 = vmatprep.subr.bf16.mxu0 %v7061_v3  ;;  %v2177_v3 = vld [vmem:[%s7803_s29 + $0x3a50] sm:$0xff] }
 0x3be   : > { %v7079_v60 = vpack.c.bf16 %v2177_v3, %v2175_v0 }
 0x3bf   : > { %6040 = vmatpush1.bf16.msra.mxu1 %v6039_v12  ;;  %v1155_v12 = vld [vmem:[%s7803_s29 + $0x1a60] sm:$0xff] }
 0x3c0   : > { %7064 = vmatpush1.bf16.msra.mxu0 %v7063_v25  ;;  %6042 = vmatprep.subr.bf16.mxu1 %v6041_v13  ;;  %v1157_v25 = vld [vmem:[%s7803_s29 + $0x1a70] sm:$0xff]  ;;  %v2179_v13 = vld [vmem:[%s7803_s29 + $0x3a60] sm:$0xff] }
 0x3c1   : > { %7066 = vmatprep.subr.bf16.mxu0 %v7065_v6  ;;  %v1162_v6 = vld [vmem:[%s7803_s29 + $0x1a98] sm:$0xff]  ;;  %v6059_v18 = vpack.c.bf16 %v1157_v25, %v1155_v12  ;;  %v7083_v11 = vpack.c.bf16 %v2181_v15, %v2179_v13  ;;  %v2200_v12 = vld [vmem:[%s7803_s29 + $0x3b08] sm:$0xff]  ;;  %v6075_v13 = vpack.c.bf16 %v1173_v27, %v1171_v4 }
 0x3c2   : > { %v6061_v28 = vpack.c.bf16 %v1162_v6, %v1160_v16  ;;  %v2202_v25 = vld [vmem:[%s7803_s29 + $0x3b18] sm:$0xff]  ;;  %v1175_v16 = vld [vmem:[%s7803_s29 + $0x1b00] sm:$0xff]  ;;  %v1177_v6 = vld [vmem:[%s7803_s29 + $0x1b10] sm:$0xff] }
 0x3c3   : > { %6044 = vmatpush1.bf16.msra.mxu1 %v6043_v22  ;;  %v1159_v22 = vld [vmem:[%s7803_s29 + $0x1a80] sm:$0xff]  ;;  %v7101_v17 = vpack.c.bf16 %v2202_v25, %v2200_v12  ;;  %v2216_v4 = vld [vmem:[%s7803_s29 + $0x3b88] sm:$0xff]  ;;  %v2218_v27 = vld [vmem:[%s7803_s29 + $0x3b98] sm:$0xff] }
 0x3c4   : > { %7068 = vmatpush1.bf16.msra.mxu0 %v7067_v23  ;;  %6046 = vmatprep.subr.bf16.mxu1 %v6045_v26  ;;  %v1161_v23 = vld [vmem:[%s7803_s29 + $0x1a90] sm:$0xff]  ;;  %v2183_v26 = vld [vmem:[%s7803_s29 + $0x3a80] sm:$0xff]  ;;  %v7117_v25 = vpack.c.bf16 %v2218_v27, %v2216_v4 }
 0x3c5   : > { %7070 = vmatprep.subr.bf16.mxu0 %v7069_v33  ;;  %v1166_v33 = vld [vmem:[%s7803_s29 + $0x1ab8] sm:$0xff]  ;;  %v6063_v36 = vpack.c.bf16 %v1161_v23, %v1159_v22  ;;  %v2204_v22 = vld [vmem:[%s7803_s29 + $0x3b28] sm:$0xff]  ;;  %v2215_v12 = vld [vmem:[%s7803_s29 + $0x3b80] sm:$0xff] }
 0x3c6   : > { %3604 = vmatmul.mubr.f32.vlgmr.msra.gmra.mrb[0].mxu1 %v2466_v37  ;;  %v7087_v37 = vpack.c.bf16 %v2185_v31, %v2183_v26  ;;  %v6065_v38 = vpack.c.bf16 %v1166_v33, %v1164_v32  ;;  %v2206_v23 = vld [vmem:[%s7803_s29 + $0x3b38] sm:$0xff]  ;;  %v6079_v26 = vpack.c.bf16 %v1177_v6, %v1175_v16  ;;  %v1179_v32 = vld [vmem:[%s7803_s29 + $0x1b20] sm:$0xff]  ;;  %v1181_v33 = vld [vmem:[%s7803_s29 + $0x1b30] sm:$0xff] }
 0x3c7   : > { %6048 = vmatpush1.bf16.msra.mxu1 %v6047_v24  ;;  %4740 = vmatmul.mubr.f32.vlgmr.msra.gmra.mrb[0].mxu0 %v2594_v40  ;;  %v1165_v24 = vld [vmem:[%s7803_s29 + $0x1ab0] sm:$0xff]  ;;  %v2187_v40 = vld [vmem:[%s7803_s29 + $0x3aa0] sm:$0xff]  ;;  %v2220_v16 = vld [vmem:[%s7803_s29 + $0x3ba8] sm:$0xff] }
 0x3c8   : > { %7072 = vmatpush1.bf16.msra.mxu0 %v7071_v41  ;;  %6050 = vmatprep.subr.bf16.mxu1 %v6049_v30  ;;  %v7089_v41 = vpack.c.bf16 %v2190_v19, %v2188_v34  ;;  %v2189_v30 = vld [vmem:[%s7803_s29 + $0x3ab0] sm:$0xff]  ;;  %v6067_v35 = vpack.c.bf16 %v1165_v24, %v1163_v39  ;;  %v2203_v34 = vld [vmem:[%s7803_s29 + $0x3b20] sm:$0xff]  ;;  %v7105_v19 = vpack.c.bf16 %v2206_v23, %v2204_v22  ;;  %v2208_v39 = vld [vmem:[%s7803_s29 + $0x3b48] sm:$0xff] }
 0x3c9   : > { %7074 = vmatprep.subr.bf16.mxu0 %v7073_v46  ;;  %3674 = vmatprep.mubr.f32.mxu1 %v2478_v51  ;;  %v2194_v46 = vld [vmem:[%s7803_s29 + $0x3ad8] sm:$0xff]  ;;  %v7091_v47 = vpack.c.bf16 %v2189_v30, %v2187_v40  ;;  %v1167_v51 = vld [vmem:[%s7803_s29 + $0x1ac0] sm:$0xff]  ;;  %v6083_v40 = vpack.c.bf16 %v1181_v33, %v1179_v32  ;;  %v2224_v32 = vld [vmem:[%s7803_s29 + $0x3bc8] sm:$0xff] }
 0x3ca   : > { %4810 = vmatprep.mubr.f32.mxu0 %v2606_v57  ;;  %v7093_v57 = vpack.c.bf16 %v2194_v46, %v2192_v45  ;;  %v6071_v0 = vpack.c.bf16 %v1169_v52, %v1167_v51  ;;  %v2210_v24 = vld [vmem:[%s7803_s29 + $0x3b58] sm:$0xff]  ;;  %v2207_v45 = vld [vmem:[%s7803_s29 + $0x3b40] sm:$0xff]  ;;  %v2212_v51 = vld [vmem:[%s7803_s29 + $0x3b68] sm:$0xff] }
 0x3cb   : > { %6052 = vmatpush1.bf16.msra.mxu1 %v6051_v58  ;;  %v2193_v58 = vld [vmem:[%s7803_s29 + $0x3ad0] sm:$0xff]  ;;  %v7109_v46 = vpack.c.bf16 %v2210_v24, %v2208_v39  ;;  %v2214_v52 = vld [vmem:[%s7803_s29 + $0x3b78] sm:$0xff]  ;;  %v2219_v22 = vld [vmem:[%s7803_s29 + $0x3ba0] sm:$0xff] }
 0x3cc   : > { %7076 = vmatpush1.bf16.msra.mxu0 %v7075_v59  ;;  %6054 = vmatprep.subr.bf16.mxu1 %v6053_v62  ;;  %v1172_v59 = vld [vmem:[%s7803_s29 + $0x1ae8] sm:$0xff]  ;;  %v1174_v62 = vld [vmem:[%s7803_s29 + $0x1af8] sm:$0xff]  ;;  %v7113_v50 = vpack.c.bf16 %v2214_v52, %v2212_v51  ;;  %v2223_v39 = vld [vmem:[%s7803_s29 + $0x3bc0] sm:$0xff] }
 0x3cd   : > { %7078 = vmatprep.subr.bf16.mxu0 %v7077_v2  ;;  %v7095_v2 = vpack.c.bf16 %v2193_v58, %v2191_v53  ;;  %v6073_v3 = vpack.c.bf16 %v1174_v62, %v1172_v59  ;;  %v6087_v53 = vpack.c.bf16 %v1185_v44, %v1183_v42  ;;  %v1187_v59 = vld [vmem:[%s7803_s29 + $0x1b60] sm:$0xff]  ;;  %v1189_v62 = vld [vmem:[%s7803_s29 + $0x1b70] sm:$0xff]  ;;  %v2222_v6 = vld [vmem:[%s7803_s29 + $0x3bb8] sm:$0xff] }
 0x3ce   : > { %v7121_v23 = vpack.c.bf16 %v2222_v6, %v2220_v16  ;;  %v2226_v33 = vld [vmem:[%s7803_s29 + $0x3bd8] sm:$0xff]  ;;  %v2228_v42 = vld [vmem:[%s7803_s29 + $0x3be8] sm:$0xff]  ;;  %v2227_v51 = vld [vmem:[%s7803_s29 + $0x3be0] sm:$0xff] }
 0x3cf   : > { %6056 = vmatpush1.bf16.msra.mxu1 %v6055_v7  ;;  %v2197_v7 = vld [vmem:[%s7803_s29 + $0x3af0] sm:$0xff]  ;;  %v7125_v24 = vpack.c.bf16 %v2226_v33, %v2224_v32  ;;  %v2230_v44 = vld [vmem:[%s7803_s29 + $0x3bf8] sm:$0xff]  ;;  %v2231_v4 = vld [vmem:[%s7803_s29 + $0x3c00] sm:$0xff] }
 0x3d0   : > { %7080 = vmatpush1.bf16.msra.mxu0 %v7079_v60  ;;  %6058 = vmatprep.subr.bf16.mxu1 %v6057_v9  ;;  %v1176_v60 = vld [vmem:[%s7803_s29 + $0x1b08] sm:$0xff]  ;;  %v1178_v9 = vld [vmem:[%s7803_s29 + $0x1b18] sm:$0xff]  ;;  %v7129_v52 = vpack.c.bf16 %v2230_v44, %v2228_v42 }
 0x3d1   : > { %7082 = vmatprep.subr.bf16.mxu0 %v7081_v1  ;;  %v7099_v1 = vpack.c.bf16 %v2197_v7, %v2195_v56  ;;  %v6077_v15 = vpack.c.bf16 %v1178_v9, %v1176_v60  ;;  %v6091_v56 = vpack.c.bf16 %v1189_v62, %v1187_v59  ;;  %v1191_v60 = vld [vmem:[%s7803_s29 + $0x1b80] sm:$0xff]  ;;  %v1193_v9 = vld [vmem:[%s7803_s29 + $0x1b90] sm:$0xff]  ;;  %v2232_v59 = vld [vmem:[%s7803_s29 + $0x3c08] sm:$0xff] }
 0x3d2   : > { %v2234_v62 = vld [vmem:[%s7803_s29 + $0x3c18] sm:$0xff] }
 0x3d3   : > { %6060 = vmatpush1.bf16.msra.mxu1 %v6059_v18  ;;  %v2201_v18 = vld [vmem:[%s7803_s29 + $0x3b10] sm:$0xff]  ;;  %v7133_v27 = vpack.c.bf16 %v2234_v62, %v2232_v59 }
 0x3d4   : > { %7084 = vmatpush1.bf16.msra.mxu0 %v7083_v11  ;;  %6062 = vmatprep.subr.bf16.mxu1 %v6061_v28  ;;  %v1180_v11 = vld [vmem:[%s7803_s29 + $0x1b28] sm:$0xff]  ;;  %v1182_v28 = vld [vmem:[%s7803_s29 + $0x1b38] sm:$0xff] }
 0x3d5   : > { %7086 = vmatprep.subr.bf16.mxu0 %v7085_v29  ;;  %v7103_v29 = vpack.c.bf16 %v2201_v18, %v2199_v21  ;;  %v6081_v31 = vpack.c.bf16 %v1182_v28, %v1180_v11  ;;  %v6095_v21 = vpack.c.bf16 %v1193_v9, %v1191_v60  ;;  %v1195_v11 = vld [vmem:[%s7803_s29 + $0x1ba0] sm:$0xff]  ;;  %v1197_v28 = vld [vmem:[%s7803_s29 + $0x1bb0] sm:$0xff] }
 0x3d6   : > { %v9809_v60 = vld [vmem:[%s7931_s26 + $0x30] ss:$2 sm:$0xff] }
 0x3d7   : > { %6064 = vmatpush1.bf16.msra.mxu1 %v6063_v36  ;;  %v2205_v36 = vld [vmem:[%s7803_s29 + $0x3b30] sm:$0xff]  ;;  %v2474_v9 = vrot.slane %v9809_v60, %v8120_v43 }
 0x3d8   : > { %7088 = vmatpush1.bf16.msra.mxu0 %v7087_v37  ;;  %6066 = vmatprep.subr.bf16.mxu1 %v6065_v38  ;;  %v1184_v37 = vld [vmem:[%s7803_s29 + $0x1b48] sm:$0xff]  ;;  %v1186_v38 = vld [vmem:[%s7803_s29 + $0x1b58] sm:$0xff] }
 0x3d9   : > { %7090 = vmatprep.subr.bf16.mxu0 %v7089_v41  ;;  %v7107_v41 = vpack.c.bf16 %v2205_v36, %v2203_v34  ;;  %v6085_v30 = vpack.c.bf16 %v1186_v38, %v1184_v37  ;;  %v6099_v34 = vpack.c.bf16 %v1197_v28, %v1195_v11  ;;  %v1199_v37 = vld [vmem:[%s7803_s29 + $0x1bc0] sm:$0xff]  ;;  %v1201_v38 = vld [vmem:[%s7803_s29 + $0x1bd0] sm:$0xff] }
 0x3da   : > { %v2237_v28 = vld [vmem:[%s7803_s29 + $0x3c30] sm:$0xff] }
 0x3db   : > { %6068 = vmatpush1.bf16.msra.mxu1 %v6067_v35  ;;  %v2209_v35 = vld [vmem:[%s7803_s29 + $0x3b50] sm:$0xff] }
 0x3dc   : > { %7092 = vmatpush1.bf16.msra.mxu0 %v7091_v47  ;;  %6070 = vmatprep.subr.bf16.mxu1 %v6069_v49  ;;  %v1188_v47 = vld [vmem:[%s7803_s29 + $0x1b68] sm:$0xff]  ;;  %v1190_v49 = vld [vmem:[%s7803_s29 + $0x1b78] sm:$0xff] }
 0x3dd   : > { %7094 = vmatprep.subr.bf16.mxu0 %v7093_v57  ;;  %v7111_v57 = vpack.c.bf16 %v2209_v35, %v2207_v45  ;;  %v6089_v58 = vpack.c.bf16 %v1190_v49, %v1188_v47  ;;  %v6103_v45 = vpack.c.bf16 %v1201_v38, %v1199_v37  ;;  %v1203_v47 = vld [vmem:[%s7803_s29 + $0x1be0] sm:$0xff]  ;;  %v1205_v49 = vld [vmem:[%s7803_s29 + $0x1bf0] sm:$0xff] }
 0x3de   : > { %v2239_v37 = vld [vmem:[%s7803_s29 + $0x3c40] sm:$0xff] }
 0x3df   : > { %6072 = vmatpush1.bf16.msra.mxu1 %v6071_v0  ;;  %v2213_v0 = vld [vmem:[%s7803_s29 + $0x3b70] sm:$0xff] }
 0x3e0   : > { %7096 = vmatpush1.bf16.msra.mxu0 %v7095_v2  ;;  %6074 = vmatprep.subr.bf16.mxu1 %v6073_v3  ;;  %v1192_v2 = vld [vmem:[%s7803_s29 + $0x1b88] sm:$0xff]  ;;  %v1194_v3 = vld [vmem:[%s7803_s29 + $0x1b98] sm:$0xff] }
 0x3e1   : > { %7098 = vmatprep.subr.bf16.mxu0 %v7097_v5  ;;  %v7115_v5 = vpack.c.bf16 %v2213_v0, %v2211_v63  ;;  %v6093_v7 = vpack.c.bf16 %v1194_v3, %v1192_v2  ;;  %v6107_v63 = vpack.c.bf16 %v1205_v49, %v1203_v47  ;;  %v1207_v2 = vld [vmem:[%s7803_s29 + $0x1c00] sm:$0xff]  ;;  %v1209_v3 = vld [vmem:[%s7803_s29 + $0x1c10] sm:$0xff] }
 0x3e2   : > { %v2245_v49 = vld [vmem:[%s7803_s29 + $0x3c70] sm:$0xff] }
 0x3e3   : > { %6076 = vmatpush1.bf16.msra.mxu1 %v6075_v13  ;;  %v2217_v13 = vld [vmem:[%s7803_s29 + $0x3b90] sm:$0xff] }
 0x3e4   : > { %7100 = vmatpush1.bf16.msra.mxu0 %v7099_v1  ;;  %6078 = vmatprep.subr.bf16.mxu1 %v6077_v15  ;;  %v1196_v1 = vld [vmem:[%s7803_s29 + $0x1ba8] sm:$0xff]  ;;  %v1198_v15 = vld [vmem:[%s7803_s29 + $0x1bb8] sm:$0xff] }
 0x3e5   : > { %7102 = vmatprep.subr.bf16.mxu0 %v7101_v17  ;;  %v7119_v17 = vpack.c.bf16 %v2217_v13, %v2215_v12  ;;  %v6097_v18 = vpack.c.bf16 %v1198_v15, %v1196_v1  ;;  %v2236_v12 = vld [vmem:[%s7803_s29 + $0x3c28] sm:$0xff]  ;;  %v6111_v13 = vpack.c.bf16 %v1209_v3, %v1207_v2  ;;  %v2249_v3 = vld [vmem:[%s7803_s29 + $0x3c90] sm:$0xff] }
 0x3e6   : > { %v9816_v1 = vld [vmem:[%s7931_s26 + $0x70] ss:$2 sm:$0xff] }
 0x3e7   : > { %6080 = vmatpush1.bf16.msra.mxu1 %v6079_v26  ;;  %v2221_v26 = vld [vmem:[%s7803_s29 + $0x3bb0] sm:$0xff]  ;;  %v2602_v15 = vrot.slane %v9816_v1, %v8120_v43  ;;  %v2240_v43 = vld [vmem:[%s7803_s29 + $0x3c48] sm:$0xff] }
 0x3e8   : > { %7104 = vmatpush1.bf16.msra.mxu0 %v7103_v29  ;;  %6082 = vmatprep.subr.bf16.mxu1 %v6081_v31  ;;  %v1200_v29 = vld [vmem:[%s7803_s29 + $0x1bc8] sm:$0xff]  ;;  %v1202_v31 = vld [vmem:[%s7803_s29 + $0x1bd8] sm:$0xff] }
 0x3e9   : > { %7106 = vmatprep.subr.bf16.mxu0 %v7105_v19  ;;  %v7123_v19 = vpack.c.bf16 %v2221_v26, %v2219_v22  ;;  %v6101_v36 = vpack.c.bf16 %v1202_v31, %v1200_v29  ;;  %v1216_v22 = vld [vmem:[%s7803_s29 + $0x1c48] sm:$0xff]  ;;  %v2486_v26 = vrot.slane %v9809_v60, %v8129_v55  ;;  %v2242_v29 = vld [vmem:[%s7803_s29 + $0x3c58] sm:$0xff]  ;;  %v2614_v31 = vrot.slane %v9816_v1, %v8129_v55 }
 0x3ea   : > { %v7141_v38 = vpack.c.bf16 %v2242_v29, %v2240_v43  ;;  %v1222_v55 = vld [vmem:[%s7803_s29 + $0x1c78] sm:$0xff]  ;;  %v1233_v43 = vld [vmem:[%s7803_s29 + $0x1cd0] sm:$0xff]  ;;  %v2255_v29 = vld [vmem:[%s7803_s29 + $0x3cc0] sm:$0xff] }
 0x3eb   : > { %6084 = vmatpush1.bf16.msra.mxu1 %v6083_v40  ;;  %v2225_v40 = vld [vmem:[%s7803_s29 + $0x3bd0] sm:$0xff] }
 0x3ec   : > { %7108 = vmatpush1.bf16.msra.mxu0 %v7107_v41  ;;  %6086 = vmatprep.subr.bf16.mxu1 %v6085_v30  ;;  %v1204_v41 = vld [vmem:[%s7803_s29 + $0x1be8] sm:$0xff]  ;;  %v1206_v30 = vld [vmem:[%s7803_s29 + $0x1bf8] sm:$0xff] }
 0x3ed   : > { %7110 = vmatprep.subr.bf16.mxu0 %v7109_v46  ;;  %v7127_v46 = vpack.c.bf16 %v2225_v40, %v2223_v39  ;;  %v6105_v35 = vpack.c.bf16 %v1206_v30, %v1204_v41  ;;  %v2241_v39 = vld [vmem:[%s7803_s29 + $0x3c50] sm:$0xff]  ;;  %v2244_v40 = vld [vmem:[%s7803_s29 + $0x3c68] sm:$0xff]  ;;  %v2246_v41 = vld [vmem:[%s7803_s29 + $0x3c78] sm:$0xff] }
 0x3ee   : > { %v7143_v42 = vpack.c.bf16 %v2241_v39, %v2239_v37  ;;  %v7145_v47 = vpack.c.bf16 %v2246_v41, %v2244_v40  ;;  %v2259_v40 = vld [vmem:[%s7803_s29 + $0x3ce0] sm:$0xff] }
 0x3ef   : > { %6088 = vmatpush1.bf16.msra.mxu1 %v6087_v53  ;;  %v2229_v53 = vld [vmem:[%s7803_s29 + $0x3bf0] sm:$0xff] }
 0x3f0   : > { %7112 = vmatpush1.bf16.msra.mxu0 %v7111_v57  ;;  %6090 = vmatprep.subr.bf16.mxu1 %v6089_v58  ;;  %v1208_v57 = vld [vmem:[%s7803_s29 + $0x1c08] sm:$0xff]  ;;  %v1210_v58 = vld [vmem:[%s7803_s29 + $0x1c18] sm:$0xff] }
 0x3f1   : > { %7114 = vmatprep.subr.bf16.mxu0 %v7113_v50  ;;  %v7131_v50 = vpack.c.bf16 %v2229_v53, %v2227_v51  ;;  %v6109_v0 = vpack.c.bf16 %v1210_v58, %v1208_v57  ;;  %v1224_v51 = vld [vmem:[%s7803_s29 + $0x1c88] sm:$0xff]  ;;  %v2250_v57 = vld [vmem:[%s7803_s29 + $0x3c98] sm:$0xff] }
 0x3f2   : > { %v2248_v53 = vld [vmem:[%s7803_s29 + $0x3c88] sm:$0xff] }
 0x3f3   : > { %6092 = vmatpush1.bf16.msra.mxu1 %v6091_v56  ;;  %v2233_v56 = vld [vmem:[%s7803_s29 + $0x3c10] sm:$0xff]  ;;  %v7149_v2 = vpack.c.bf16 %v2250_v57, %v2248_v53  ;;  %v2263_v53 = vld [vmem:[%s7803_s29 + $0x3d00] sm:$0xff] }
 0x3f4   : > { %7116 = vmatpush1.bf16.msra.mxu0 %v7115_v5  ;;  %6094 = vmatprep.subr.bf16.mxu1 %v6093_v7  ;;  %v1212_v5 = vld [vmem:[%s7803_s29 + $0x1c28] sm:$0xff]  ;;  %v1214_v7 = vld [vmem:[%s7803_s29 + $0x1c38] sm:$0xff]  ;;  %v7135_v16 = vpack.c.bf16 %v2233_v56, %v2231_v4 }
 0x3f5   : > { %7118 = vmatprep.subr.bf16.mxu0 %v7117_v25  ;;  %v2238_v25 = vld [vmem:[%s7803_s29 + $0x3c38] sm:$0xff]  ;;  %v6113_v6 = vpack.c.bf16 %v1214_v7, %v1212_v5  ;;  %v1228_v4 = vld [vmem:[%s7803_s29 + $0x1ca8] sm:$0xff] }
 0x3f6   : > { %v7137_v11 = vpack.c.bf16 %v2238_v25, %v2236_v12  ;;  %v2252_v56 = vld [vmem:[%s7803_s29 + $0x3ca8] sm:$0xff]  ;;  %v2254_v5 = vld [vmem:[%s7803_s29 + $0x3cb8] sm:$0xff]  ;;  %v1227_v25 = vld [vmem:[%s7803_s29 + $0x1ca0] sm:$0xff] }
 0x3f7   : > { %6096 = vmatpush1.bf16.msra.mxu1 %v6095_v21  ;;  %v1211_v21 = vld [vmem:[%s7803_s29 + $0x1c20] sm:$0xff] }
 0x3f8   : > { %7120 = vmatpush1.bf16.msra.mxu0 %v7119_v17  ;;  %6098 = vmatprep.subr.bf16.mxu1 %v6097_v18  ;;  %v1213_v17 = vld [vmem:[%s7803_s29 + $0x1c30] sm:$0xff]  ;;  %v2235_v18 = vld [vmem:[%s7803_s29 + $0x3c20] sm:$0xff] }
 0x3f9   : > { %7122 = vmatprep.subr.bf16.mxu0 %v7121_v23  ;;  %v1218_v23 = vld [vmem:[%s7803_s29 + $0x1c58] sm:$0xff]  ;;  %v6115_v32 = vpack.c.bf16 %v1213_v17, %v1211_v21  ;;  %v7139_v33 = vpack.c.bf16 %v2237_v28, %v2235_v18  ;;  %v1232_v21 = vld [vmem:[%s7803_s29 + $0x1cc8] sm:$0xff] }
 0x3fa   : > { %v1234_v17 = vld [vmem:[%s7803_s29 + $0x1cd8] sm:$0xff]  ;;  %v2256_v18 = vld [vmem:[%s7803_s29 + $0x3cc8] sm:$0xff] }
 0x3fb   : > { %6100 = vmatpush1.bf16.msra.mxu1 %v6099_v34  ;;  %v6117_v34 = vpack.c.bf16 %v1218_v23, %v1216_v22  ;;  %v6133_v23 = vpack.c.bf16 %v1234_v17, %v1232_v21  ;;  %v1247_v21 = vld [vmem:[%s7803_s29 + $0x1d40] sm:$0xff]  ;;  %v1249_v17 = vld [vmem:[%s7803_s29 + $0x1d50] sm:$0xff] }
 0x3fc   : > { %7124 = vmatpush1.bf16.msra.mxu0 %v7123_v19  ;;  %6102 = vmatprep.subr.bf16.mxu1 %v6101_v36  ;;  %v1215_v19 = vld [vmem:[%s7803_s29 + $0x1c40] sm:$0xff]  ;;  %v1217_v36 = vld [vmem:[%s7803_s29 + $0x1c50] sm:$0xff] }
 0x3fd   : > { %7126 = vmatprep.subr.bf16.mxu0 %v7125_v24  ;;  %v1220_v24 = vld [vmem:[%s7803_s29 + $0x1c68] sm:$0xff]  ;;  %v6119_v30 = vpack.c.bf16 %v1217_v36, %v1215_v19  ;;  %v2262_v36 = vld [vmem:[%s7803_s29 + $0x3cf8] sm:$0xff] }
 0x3fe   : > { %v6121_v44 = vpack.c.bf16 %v1222_v55, %v1220_v24  ;;  %v2260_v19 = vld [vmem:[%s7803_s29 + $0x3ce8] sm:$0xff]  ;;  %v1235_v24 = vld [vmem:[%s7803_s29 + $0x1ce0] sm:$0xff]  ;;  %v1237_v55 = vld [vmem:[%s7803_s29 + $0x1cf0] sm:$0xff] }
 0x3ff   : > { %6104 = vmatpush1.bf16.msra.mxu1 %v6103_v45  ;;  %v1219_v45 = vld [vmem:[%s7803_s29 + $0x1c60] sm:$0xff]  ;;  %v7161_v41 = vpack.c.bf16 %v2262_v36, %v2260_v19 }
 0x400   : > { %7128 = vmatpush1.bf16.msra.mxu0 %v7127_v46  ;;  %6106 = vmatprep.subr.bf16.mxu1 %v6105_v35  ;;  %v1221_v46 = vld [vmem:[%s7803_s29 + $0x1c70] sm:$0xff]  ;;  %v2243_v35 = vld [vmem:[%s7803_s29 + $0x3c60] sm:$0xff] }
 0x401   : > { %7130 = vmatprep.subr.bf16.mxu0 %v7129_v52  ;;  %v1226_v52 = vld [vmem:[%s7803_s29 + $0x1c98] sm:$0xff]  ;;  %v6123_v58 = vpack.c.bf16 %v1221_v46, %v1219_v45  ;;  %v7147_v59 = vpack.c.bf16 %v2245_v49, %v2243_v35  ;;  %v2264_v45 = vld [vmem:[%s7803_s29 + $0x3d08] sm:$0xff]  ;;  %v6139_v35 = vpack.c.bf16 %v1237_v55, %v1235_v24  ;;  %v2275_v19 = vld [vmem:[%s7803_s29 + $0x3d60] sm:$0xff] }
 0x402   : > { %v6125_v62 = vpack.c.bf16 %v1226_v52, %v1224_v51  ;;  %v2266_v46 = vld [vmem:[%s7803_s29 + $0x3d18] sm:$0xff]  ;;  %v1239_v51 = vld [vmem:[%s7803_s29 + $0x1d00] sm:$0xff]  ;;  %v1241_v52 = vld [vmem:[%s7803_s29 + $0x1d10] sm:$0xff] }
 0x403   : > { %6108 = vmatpush1.bf16.msra.mxu1 %v6107_v63  ;;  %v1223_v63 = vld [vmem:[%s7803_s29 + $0x1c80] sm:$0xff]  ;;  %v7165_v57 = vpack.c.bf16 %v2266_v46, %v2264_v45  ;;  %v2280_v24 = vld [vmem:[%s7803_s29 + $0x3d88] sm:$0xff]  ;;  %v2282_v55 = vld [vmem:[%s7803_s29 + $0x3d98] sm:$0xff] }
 0x404   : > { %7132 = vmatpush1.bf16.msra.mxu0 %v7131_v50  ;;  %6110 = vmatprep.subr.bf16.mxu1 %v6109_v0  ;;  %v1225_v50 = vld [vmem:[%s7803_s29 + $0x1c90] sm:$0xff]  ;;  %v2247_v0 = vld [vmem:[%s7803_s29 + $0x3c80] sm:$0xff]  ;;  %v7181_v46 = vpack.c.bf16 %v2282_v55, %v2280_v24 }
 0x405   : > { %7134 = vmatprep.subr.bf16.mxu0 %v7133_v27  ;;  %v1230_v27 = vld [vmem:[%s7803_s29 + $0x1cb8] sm:$0xff]  ;;  %v6127_v7 = vpack.c.bf16 %v1225_v50, %v1223_v63  ;;  %v2268_v63 = vld [vmem:[%s7803_s29 + $0x3d28] sm:$0xff]  ;;  %v2279_v45 = vld [vmem:[%s7803_s29 + $0x3d80] sm:$0xff] }
 0x406   : > { %3675 = vmatmul.mubr.f32.vlgmr.msra.gmra.mrb[0].mxu1 %v2474_v9  ;;  %v7151_v9 = vpack.c.bf16 %v2249_v3, %v2247_v0  ;;  %v6129_v12 = vpack.c.bf16 %v1230_v27, %v1228_v4  ;;  %v2270_v50 = vld [vmem:[%s7803_s29 + $0x3d38] sm:$0xff]  ;;  %v6143_v0 = vpack.c.bf16 %v1241_v52, %v1239_v51  ;;  %v1243_v4 = vld [vmem:[%s7803_s29 + $0x1d20] sm:$0xff]  ;;  %v1245_v27 = vld [vmem:[%s7803_s29 + $0x1d30] sm:$0xff] }
 0x407   : > { %6112 = vmatpush1.bf16.msra.mxu1 %v6111_v13  ;;  %4811 = vmatmul.mubr.f32.vlgmr.msra.gmra.mrb[0].mxu0 %v2602_v15  ;;  %v1229_v13 = vld [vmem:[%s7803_s29 + $0x1cb0] sm:$0xff]  ;;  %v2251_v15 = vld [vmem:[%s7803_s29 + $0x3ca0] sm:$0xff]  ;;  %v2284_v51 = vld [vmem:[%s7803_s29 + $0x3da8] sm:$0xff] }
 0x408   : > { %7136 = vmatpush1.bf16.msra.mxu0 %v7135_v16  ;;  %6114 = vmatprep.subr.bf16.mxu1 %v6113_v6  ;;  %v7153_v16 = vpack.c.bf16 %v2254_v5, %v2252_v56  ;;  %v2253_v6 = vld [vmem:[%s7803_s29 + $0x3cb0] sm:$0xff]  ;;  %v6131_v28 = vpack.c.bf16 %v1229_v13, %v1227_v25  ;;  %v2267_v56 = vld [vmem:[%s7803_s29 + $0x3d20] sm:$0xff]  ;;  %v7169_v5 = vpack.c.bf16 %v2270_v50, %v2268_v63  ;;  %v2272_v25 = vld [vmem:[%s7803_s29 + $0x3d48] sm:$0xff] }
 0x409   : > { %7138 = vmatprep.subr.bf16.mxu0 %v7137_v11  ;;  %3745 = vmatprep.mubr.f32.mxu1 %v2486_v26  ;;  %v2258_v11 = vld [vmem:[%s7803_s29 + $0x3cd8] sm:$0xff]  ;;  %v7155_v22 = vpack.c.bf16 %v2253_v6, %v2251_v15  ;;  %v1231_v26 = vld [vmem:[%s7803_s29 + $0x1cc0] sm:$0xff]  ;;  %v6147_v15 = vpack.c.bf16 %v1245_v27, %v1243_v4  ;;  %v2288_v4 = vld [vmem:[%s7803_s29 + $0x3dc8] sm:$0xff] }
 0x40a   : > { %4881 = vmatprep.mubr.f32.mxu0 %v2614_v31  ;;  %v7157_v31 = vpack.c.bf16 %v2258_v11, %v2256_v18  ;;  %v6135_v37 = vpack.c.bf16 %v1233_v43, %v1231_v26  ;;  %v2274_v13 = vld [vmem:[%s7803_s29 + $0x3d58] sm:$0xff]  ;;  %v2271_v18 = vld [vmem:[%s7803_s29 + $0x3d40] sm:$0xff]  ;;  %v2276_v26 = vld [vmem:[%s7803_s29 + $0x3d68] sm:$0xff] }
 0x40b   : > { %6116 = vmatpush1.bf16.msra.mxu1 %v6115_v32  ;;  %v2257_v32 = vld [vmem:[%s7803_s29 + $0x3cd0] sm:$0xff]  ;;  %v7173_v11 = vpack.c.bf16 %v2274_v13, %v2272_v25  ;;  %v2278_v43 = vld [vmem:[%s7803_s29 + $0x3d78] sm:$0xff]  ;;  %v2283_v63 = vld [vmem:[%s7803_s29 + $0x3da0] sm:$0xff] }
 0x40c   : > { %7140 = vmatpush1.bf16.msra.mxu0 %v7139_v33  ;;  %6118 = vmatprep.subr.bf16.mxu1 %v6117_v34  ;;  %v1236_v33 = vld [vmem:[%s7803_s29 + $0x1ce8] sm:$0xff]  ;;  %v1238_v34 = vld [vmem:[%s7803_s29 + $0x1cf8] sm:$0xff]  ;;  %v7177_v36 = vpack.c.bf16 %v2278_v43, %v2276_v26  ;;  %v2287_v25 = vld [vmem:[%s7803_s29 + $0x3dc0] sm:$0xff] }
 0x40d   : > { %7142 = vmatprep.subr.bf16.mxu0 %v7141_v38  ;;  %v7159_v38 = vpack.c.bf16 %v2257_v32, %v2255_v29  ;;  %v6137_v39 = vpack.c.bf16 %v1238_v34, %v1236_v33  ;;  %v6151_v29 = vpack.c.bf16 %v1249_v17, %v1247_v21  ;;  %v1251_v33 = vld [vmem:[%s7803_s29 + $0x1d60] sm:$0xff]  ;;  %v1253_v34 = vld [vmem:[%s7803_s29 + $0x1d70] sm:$0xff]  ;;  %v2286_v52 = vld [vmem:[%s7803_s29 + $0x3db8] sm:$0xff] }
 0x40e   : > { %v7185_v50 = vpack.c.bf16 %v2286_v52, %v2284_v51  ;;  %v2290_v27 = vld [vmem:[%s7803_s29 + $0x3dd8] sm:$0xff]  ;;  %v2292_v21 = vld [vmem:[%s7803_s29 + $0x3de8] sm:$0xff]  ;;  %v2291_v26 = vld [vmem:[%s7803_s29 + $0x3de0] sm:$0xff] }
 0x40f   : > { %6120 = vmatpush1.bf16.msra.mxu1 %v6119_v30  ;;  %v2261_v30 = vld [vmem:[%s7803_s29 + $0x3cf0] sm:$0xff]  ;;  %v7189_v13 = vpack.c.bf16 %v2290_v27, %v2288_v4  ;;  %v2294_v17 = vld [vmem:[%s7803_s29 + $0x3df8] sm:$0xff]  ;;  %v2295_v24 = vld [vmem:[%s7803_s29 + $0x3e00] sm:$0xff] }
 0x410   : > { %7144 = vmatpush1.bf16.msra.mxu0 %v7143_v42  ;;  %6122 = vmatprep.subr.bf16.mxu1 %v6121_v44  ;;  %v1240_v42 = vld [vmem:[%s7803_s29 + $0x1d08] sm:$0xff]  ;;  %v1242_v44 = vld [vmem:[%s7803_s29 + $0x1d18] sm:$0xff]  ;;  %v7193_v43 = vpack.c.bf16 %v2294_v17, %v2292_v21  ;;  %v1275_v51 = vld [vmem:[%s7803_s29 + $0x1e20] sm:$0xff] }
 0x411   : > { %7146 = vmatprep.subr.bf16.mxu0 %v7145_v47  ;;  %v7163_v47 = vpack.c.bf16 %v2261_v30, %v2259_v40  ;;  %v6141_v49 = vpack.c.bf16 %v1242_v44, %v1240_v42  ;;  %v6155_v40 = vpack.c.bf16 %v1253_v34, %v1251_v33  ;;  %v1255_v42 = vld [vmem:[%s7803_s29 + $0x1d80] sm:$0xff]  ;;  %v1257_v44 = vld [vmem:[%s7803_s29 + $0x1d90] sm:$0xff]  ;;  %v2296_v33 = vld [vmem:[%s7803_s29 + $0x3e08] sm:$0xff] }
 0x412   : > { %v2298_v34 = vld [vmem:[%s7803_s29 + $0x3e18] sm:$0xff]  ;;  %v1277_v52 = vld [vmem:[%s7803_s29 + $0x1e30] sm:$0xff]  ;;  %v1279_v27 = vld [vmem:[%s7803_s29 + $0x1e40] sm:$0xff] }
 0x413   : > { %6124 = vmatpush1.bf16.msra.mxu1 %v6123_v58  ;;  %v2265_v58 = vld [vmem:[%s7803_s29 + $0x3d10] sm:$0xff]  ;;  %v7197_v55 = vpack.c.bf16 %v2298_v34, %v2296_v33  ;;  %v2307_v21 = vld [vmem:[%s7803_s29 + $0x3e60] sm:$0xff] }
 0x414   : > { %7148 = vmatpush1.bf16.msra.mxu0 %v7147_v59  ;;  %6126 = vmatprep.subr.bf16.mxu1 %v6125_v62  ;;  %v1244_v59 = vld [vmem:[%s7803_s29 + $0x1d28] sm:$0xff]  ;;  %v1246_v62 = vld [vmem:[%s7803_s29 + $0x1d38] sm:$0xff]  ;;  %v2311_v33 = vld [vmem:[%s7803_s29 + $0x3e80] sm:$0xff] }
 0x415   : > { %7150 = vmatprep.subr.bf16.mxu0 %v7149_v2  ;;  %v7167_v2 = vpack.c.bf16 %v2265_v58, %v2263_v53  ;;  %v6145_v3 = vpack.c.bf16 %v1246_v62, %v1244_v59  ;;  %v6159_v53 = vpack.c.bf16 %v1257_v44, %v1255_v42  ;;  %v1259_v59 = vld [vmem:[%s7803_s29 + $0x1da0] sm:$0xff]  ;;  %v1261_v62 = vld [vmem:[%s7803_s29 + $0x1db0] sm:$0xff]  ;;  %v2482_v42 = vrot.slane %v9809_v60, %v8262_v8  ;;  %v2300_v44 = vld [vmem:[%s7803_s29 + $0x3e28] sm:$0xff] }
 0x417   : > { %6128 = vmatpush1.bf16.msra.mxu1 %v6127_v7  ;;  %v2269_v7 = vld [vmem:[%s7803_s29 + $0x3d30] sm:$0xff] }
 0x418   : > { %7152 = vmatpush1.bf16.msra.mxu0 %v7151_v9  ;;  %6130 = vmatprep.subr.bf16.mxu1 %v6129_v12  ;;  %v1248_v9 = vld [vmem:[%s7803_s29 + $0x1d48] sm:$0xff]  ;;  %v1250_v12 = vld [vmem:[%s7803_s29 + $0x1d58] sm:$0xff] }
 0x419   : > { %7154 = vmatprep.subr.bf16.mxu0 %v7153_v16  ;;  %v7171_v16 = vpack.c.bf16 %v2269_v7, %v2267_v56  ;;  %v6149_v6 = vpack.c.bf16 %v1250_v12, %v1248_v9  ;;  %v6163_v56 = vpack.c.bf16 %v1261_v62, %v1259_v59  ;;  %v1263_v9 = vld [vmem:[%s7803_s29 + $0x1dc0] sm:$0xff]  ;;  %v1265_v12 = vld [vmem:[%s7803_s29 + $0x1dd0] sm:$0xff]  ;;  %v1280_v59 = vld [vmem:[%s7803_s29 + $0x1e48] sm:$0xff] }
 0x41a   : > { %v1282_v62 = vld [vmem:[%s7803_s29 + $0x1e58] sm:$0xff] }
 0x41b   : > { %6132 = vmatpush1.bf16.msra.mxu1 %v6131_v28  ;;  %v2273_v28 = vld [vmem:[%s7803_s29 + $0x3d50] sm:$0xff]  ;;  %v6181_v4 = vpack.c.bf16 %v1282_v62, %v1280_v59  ;;  %v2319_v59 = vld [vmem:[%s7803_s29 + $0x3ec0] sm:$0xff] }
 0x41c   : > { %7156 = vmatpush1.bf16.msra.mxu0 %v7155_v22  ;;  %6134 = vmatprep.subr.bf16.mxu1 %v6133_v23  ;;  %v1252_v22 = vld [vmem:[%s7803_s29 + $0x1d68] sm:$0xff]  ;;  %v1254_v23 = vld [vmem:[%s7803_s29 + $0x1d78] sm:$0xff] }
 0x41d   : > { %7158 = vmatprep.subr.bf16.mxu0 %v7157_v31  ;;  %v7175_v31 = vpack.c.bf16 %v2273_v28, %v2271_v18  ;;  %v6153_v32 = vpack.c.bf16 %v1254_v23, %v1252_v22  ;;  %v6167_v18 = vpack.c.bf16 %v1265_v12, %v1263_v9  ;;  %v1267_v22 = vld [vmem:[%s7803_s29 + $0x1de0] sm:$0xff]  ;;  %v1269_v23 = vld [vmem:[%s7803_s29 + $0x1df0] sm:$0xff]  ;;  %v1284_v9 = vld [vmem:[%s7803_s29 + $0x1e68] sm:$0xff] }
 0x41e   : > { %v2310_v12 = vld [vmem:[%s7803_s29 + $0x3e78] sm:$0xff] }
 0x41f   : > { %6136 = vmatpush1.bf16.msra.mxu1 %v6135_v37  ;;  %v2277_v37 = vld [vmem:[%s7803_s29 + $0x3d70] sm:$0xff] }
 0x420   : > { %7160 = vmatpush1.bf16.msra.mxu0 %v7159_v38  ;;  %6138 = vmatprep.subr.bf16.mxu1 %v6137_v39  ;;  %v1256_v38 = vld [vmem:[%s7803_s29 + $0x1d88] sm:$0xff]  ;;  %v1258_v39 = vld [vmem:[%s7803_s29 + $0x1d98] sm:$0xff] }
 0x421   : > { %7162 = vmatprep.subr.bf16.mxu0 %v7161_v41  ;;  %v7179_v41 = vpack.c.bf16 %v2277_v37, %v2275_v19  ;;  %v6157_v30 = vpack.c.bf16 %v1258_v39, %v1256_v38  ;;  %v6171_v19 = vpack.c.bf16 %v1269_v23, %v1267_v22  ;;  %v1271_v38 = vld [vmem:[%s7803_s29 + $0x1e00] sm:$0xff]  ;;  %v1273_v39 = vld [vmem:[%s7803_s29 + $0x1e10] sm:$0xff]  ;;  %v2312_v22 = vld [vmem:[%s7803_s29 + $0x3e88] sm:$0xff] }
 0x422   : > { %v2314_v23 = vld [vmem:[%s7803_s29 + $0x3e98] sm:$0xff] }
 0x423   : > { %6140 = vmatpush1.bf16.msra.mxu1 %v6139_v35  ;;  %v2281_v35 = vld [vmem:[%s7803_s29 + $0x3d90] sm:$0xff]  ;;  %v7213_v34 = vpack.c.bf16 %v2314_v23, %v2312_v22  ;;  %v1310_v22 = vld [vmem:[%s7803_s29 + $0x1f38] sm:$0xff]  ;;  %v2332_v23 = vld [vmem:[%s7803_s29 + $0x3f28] sm:$0xff] }
 0x424   : > { %7164 = vmatpush1.bf16.msra.mxu0 %v7163_v47  ;;  %6142 = vmatprep.subr.bf16.mxu1 %v6141_v49  ;;  %v1260_v47 = vld [vmem:[%s7803_s29 + $0x1da8] sm:$0xff]  ;;  %v1262_v49 = vld [vmem:[%s7803_s29 + $0x1db8] sm:$0xff] }
 0x425   : > { %7166 = vmatprep.subr.bf16.mxu0 %v7165_v57  ;;  %v7183_v57 = vpack.c.bf16 %v2281_v35, %v2279_v45  ;;  %v6161_v58 = vpack.c.bf16 %v1262_v49, %v1260_v47  ;;  %v2302_v45 = vld [vmem:[%s7803_s29 + $0x3e38] sm:$0xff]  ;;  %v2610_v35 = vrot.slane %v9816_v1, %v8262_v8  ;;  %v2304_v8 = vld [vmem:[%s7803_s29 + $0x3e48] sm:$0xff] }
 0x427   : > { %6144 = vmatpush1.bf16.msra.mxu1 %v6143_v0  ;;  %v2285_v0 = vld [vmem:[%s7803_s29 + $0x3db0] sm:$0xff] }
 0x428   : > { %7168 = vmatpush1.bf16.msra.mxu0 %v7167_v2  ;;  %6146 = vmatprep.subr.bf16.mxu1 %v6145_v3  ;;  %v1264_v2 = vld [vmem:[%s7803_s29 + $0x1dc8] sm:$0xff]  ;;  %v1266_v3 = vld [vmem:[%s7803_s29 + $0x1dd8] sm:$0xff] }
 0x429   : > { %7170 = vmatprep.subr.bf16.mxu0 %v7169_v5  ;;  %v7187_v5 = vpack.c.bf16 %v2285_v0, %v2283_v63  ;;  %v6165_v7 = vpack.c.bf16 %v1266_v3, %v1264_v2  ;;  %v2494_v63 = vrot.slane %v9809_v60, %v8271_v20  ;;  %v2622_v0 = vrot.slane %v9816_v1, %v8271_v20  ;;  %v1281_v60 = vld [vmem:[%s7803_s29 + $0x1e50] sm:$0xff]  ;;  %v1286_v20 = vld [vmem:[%s7803_s29 + $0x1e78] sm:$0xff]  ;;  %v2308_v1 = vld [vmem:[%s7803_s29 + $0x3e68] sm:$0xff] }
 0x42a   : > { %v6179_v2 = vpack.c.bf16 %v1277_v52, %v1275_v51  ;;  %v7209_v17 = vpack.c.bf16 %v2310_v12, %v2308_v1  ;;  %v1306_v1 = vld [vmem:[%s7803_s29 + $0x1f18] sm:$0xff]  ;;  %v2328_v12 = vld [vmem:[%s7803_s29 + $0x3f08] sm:$0xff] }
 0x42b   : > { %6148 = vmatpush1.bf16.msra.mxu1 %v6147_v15  ;;  %v2289_v15 = vld [vmem:[%s7803_s29 + $0x3dd0] sm:$0xff] }
 0x42c   : > { %7172 = vmatpush1.bf16.msra.mxu0 %v7171_v16  ;;  %6150 = vmatprep.subr.bf16.mxu1 %v6149_v6  ;;  %v1268_v16 = vld [vmem:[%s7803_s29 + $0x1de8] sm:$0xff]  ;;  %v1270_v6 = vld [vmem:[%s7803_s29 + $0x1df8] sm:$0xff] }
 0x42d   : > { %7174 = vmatprep.subr.bf16.mxu0 %v7173_v11  ;;  %v7191_v11 = vpack.c.bf16 %v2289_v15, %v2287_v25  ;;  %v6169_v28 = vpack.c.bf16 %v1270_v6, %v1268_v16  ;;  %v6183_v25 = vpack.c.bf16 %v1281_v60, %v1279_v27  ;;  %v6185_v15 = vpack.c.bf16 %v1286_v20, %v1284_v9  ;;  %v1283_v16 = vld [vmem:[%s7803_s29 + $0x1e60] sm:$0xff]  ;;  %v1285_v6 = vld [vmem:[%s7803_s29 + $0x1e70] sm:$0xff]  ;;  %v1304_v20 = vld [vmem:[%s7803_s29 + $0x1f08] sm:$0xff] }
 0x42e   : > { %v1299_v60 = vld [vmem:[%s7803_s29 + $0x1ee0] sm:$0xff]  ;;  %v2325_v9 = vld [vmem:[%s7803_s29 + $0x3ef0] sm:$0xff] }
 0x42f   : > { %6152 = vmatpush1.bf16.msra.mxu1 %v6151_v29  ;;  %v2293_v29 = vld [vmem:[%s7803_s29 + $0x3df0] sm:$0xff] }
 0x430   : > { %7176 = vmatpush1.bf16.msra.mxu0 %v7175_v31  ;;  %6154 = vmatprep.subr.bf16.mxu1 %v6153_v32  ;;  %v1272_v31 = vld [vmem:[%s7803_s29 + $0x1e08] sm:$0xff]  ;;  %v1274_v32 = vld [vmem:[%s7803_s29 + $0x1e18] sm:$0xff] }
 0x431   : > { %7178 = vmatprep.subr.bf16.mxu0 %v7177_v36  ;;  %v7195_v36 = vpack.c.bf16 %v2293_v29, %v2291_v26  ;;  %v6173_v37 = vpack.c.bf16 %v1274_v32, %v1272_v31  ;;  %v6187_v26 = vpack.c.bf16 %v1285_v6, %v1283_v16  ;;  %v1287_v31 = vld [vmem:[%s7803_s29 + $0x1e80] sm:$0xff]  ;;  %v1289_v32 = vld [vmem:[%s7803_s29 + $0x1e90] sm:$0xff]  ;;  %v6205_v16 = vpack.c.bf16 %v1306_v1, %v1304_v20  ;;  %v1324_v1 = vld [vmem:[%s7803_s29 + $0x1fa8] sm:$0xff] }
 0x432   : > { %v1303_v6 = vld [vmem:[%s7803_s29 + $0x1f00] sm:$0xff]  ;;  %v2345_v20 = vld [vmem:[%s7803_s29 + $0x3f90] sm:$0xff] }
 0x433   : > { %6156 = vmatpush1.bf16.msra.mxu1 %v6155_v40  ;;  %v2297_v40 = vld [vmem:[%s7803_s29 + $0x3e10] sm:$0xff] }
 0x434   : > { %7180 = vmatpush1.bf16.msra.mxu0 %v7179_v41  ;;  %6158 = vmatprep.subr.bf16.mxu1 %v6157_v30  ;;  %v1276_v41 = vld [vmem:[%s7803_s29 + $0x1e28] sm:$0xff]  ;;  %v1278_v30 = vld [vmem:[%s7803_s29 + $0x1e38] sm:$0xff]  ;;  %v7199_v47 = vpack.c.bf16 %v2297_v40, %v2295_v24  ;;  %v6191_v24 = vpack.c.bf16 %v1289_v32, %v1287_v31  ;;  %v1307_v32 = vld [vmem:[%s7803_s29 + $0x1f20] sm:$0xff] }
 0x435   : > { %7182 = vmatprep.subr.bf16.mxu0 %v7181_v46  ;;  %v6175_v46 = vpack.c.bf16 %v1273_v39, %v1271_v38  ;;  %v6177_v49 = vpack.c.bf16 %v1278_v30, %v1276_v41  ;;  %v2316_v38 = vld [vmem:[%s7803_s29 + $0x3ea8] sm:$0xff]  ;;  %v2318_v39 = vld [vmem:[%s7803_s29 + $0x3eb8] sm:$0xff]  ;;  %v1291_v41 = vld [vmem:[%s7803_s29 + $0x1ea0] sm:$0xff] }
 0x436   : > { %v1293_v30 = vld [vmem:[%s7803_s29 + $0x1eb0] sm:$0xff] }
 0x437   : > { %6160 = vmatpush1.bf16.msra.mxu1 %v6159_v53  ;;  %v2299_v53 = vld [vmem:[%s7803_s29 + $0x3e20] sm:$0xff]  ;;  %v6195_v51 = vpack.c.bf16 %v1293_v30, %v1291_v41 }
 0x438   : > { %7184 = vmatpush1.bf16.msra.mxu0 %v7183_v57  ;;  %6162 = vmatprep.subr.bf16.mxu1 %v6161_v58  ;;  %v7201_v57 = vpack.c.bf16 %v2302_v45, %v2300_v44  ;;  %v2301_v58 = vld [vmem:[%s7803_s29 + $0x3e30] sm:$0xff]  ;;  %v7217_v44 = vpack.c.bf16 %v2318_v39, %v2316_v38  ;;  %v1314_v38 = vld [vmem:[%s7803_s29 + $0x1f58] sm:$0xff]  ;;  %v2336_v39 = vld [vmem:[%s7803_s29 + $0x3f48] sm:$0xff] }
 0x439   : > { %7186 = vmatprep.subr.bf16.mxu0 %v7185_v50  ;;  %v2306_v50 = vld [vmem:[%s7803_s29 + $0x3e58] sm:$0xff]  ;;  %v7203_v3 = vpack.c.bf16 %v2301_v58, %v2299_v53  ;;  %v2317_v45 = vld [vmem:[%s7803_s29 + $0x3eb0] sm:$0xff]  ;;  %v1311_v30 = vld [vmem:[%s7803_s29 + $0x1f40] sm:$0xff] }
 0x43a   : > { %v1297_v58 = vld [vmem:[%s7803_s29 + $0x1ed0] sm:$0xff] }
 0x43b   : > { %6164 = vmatpush1.bf16.msra.mxu1 %v6163_v56  ;;  %v2303_v56 = vld [vmem:[%s7803_s29 + $0x3e40] sm:$0xff] }
 0x43c   : > { %7188 = vmatpush1.bf16.msra.mxu0 %v7187_v5  ;;  %6166 = vmatprep.subr.bf16.mxu1 %v6165_v7  ;;  %v7205_v5 = vpack.c.bf16 %v2306_v50, %v2304_v8  ;;  %v2305_v7 = vld [vmem:[%s7803_s29 + $0x3e50] sm:$0xff]  ;;  %v1300_v8 = vld [vmem:[%s7803_s29 + $0x1ee8] sm:$0xff]  ;;  %v1302_v50 = vld [vmem:[%s7803_s29 + $0x1ef8] sm:$0xff] }
 0x43d   : > { %7190 = vmatprep.subr.bf16.mxu0 %v7189_v13  ;;  %v7207_v13 = vpack.c.bf16 %v2305_v7, %v2303_v56  ;;  %v6201_v27 = vpack.c.bf16 %v1302_v50, %v1300_v8  ;;  %v1301_v56 = vld [vmem:[%s7803_s29 + $0x1ef0] sm:$0xff]  ;;  %v1320_v50 = vld [vmem:[%s7803_s29 + $0x1f88] sm:$0xff] }
 0x43e   : > { %v2341_v8 = vld [vmem:[%s7803_s29 + $0x3f70] sm:$0xff] }
 0x43f   : > { %6168 = vmatpush1.bf16.msra.mxu1 %v6167_v18  ;;  %v2309_v18 = vld [vmem:[%s7803_s29 + $0x3e70] sm:$0xff] }
 0x440   : > { %7192 = vmatpush1.bf16.msra.mxu0 %v7191_v11  ;;  %6170 = vmatprep.subr.bf16.mxu1 %v6169_v28  ;;  %v1288_v11 = vld [vmem:[%s7803_s29 + $0x1e88] sm:$0xff]  ;;  %v1290_v28 = vld [vmem:[%s7803_s29 + $0x1e98] sm:$0xff] }
 0x441   : > { %7194 = vmatprep.subr.bf16.mxu0 %v7193_v43  ;;  %v7211_v43 = vpack.c.bf16 %v2309_v18, %v2307_v21  ;;  %v6189_v29 = vpack.c.bf16 %v1290_v28, %v1288_v11  ;;  %v1305_v21 = vld [vmem:[%s7803_s29 + $0x1f10] sm:$0xff]  ;;  %v1308_v28 = vld [vmem:[%s7803_s29 + $0x1f28] sm:$0xff] }
 0x442   : > { %v2329_v11 = vld [vmem:[%s7803_s29 + $0x3f10] sm:$0xff]  ;;  %v6209_v31 = vpack.c.bf16 %v1310_v22, %v1308_v28  ;;  %v1328_v22 = vld [vmem:[%s7803_s29 + $0x1fc8] sm:$0xff] }
 0x443   : > { %6172 = vmatpush1.bf16.msra.mxu1 %v6171_v19  ;;  %v2313_v19 = vld [vmem:[%s7803_s29 + $0x3e90] sm:$0xff] }
 0x444   : > { %7196 = vmatpush1.bf16.msra.mxu0 %v7195_v36  ;;  %6174 = vmatprep.subr.bf16.mxu1 %v6173_v37  ;;  %v1292_v36 = vld [vmem:[%s7803_s29 + $0x1ea8] sm:$0xff]  ;;  %v1294_v37 = vld [vmem:[%s7803_s29 + $0x1eb8] sm:$0xff]  ;;  %v2349_v28 = vld [vmem:[%s7803_s29 + $0x3fb0] sm:$0xff] }
 0x445   : > { %7198 = vmatprep.subr.bf16.mxu0 %v7197_v55  ;;  %v7215_v55 = vpack.c.bf16 %v2313_v19, %v2311_v33  ;;  %v6193_v40 = vpack.c.bf16 %v1294_v37, %v1292_v36  ;;  %v1309_v33 = vld [vmem:[%s7803_s29 + $0x1f30] sm:$0xff]  ;;  %v1312_v37 = vld [vmem:[%s7803_s29 + $0x1f48] sm:$0xff] }
 0x446   : > { %3746 = vmatmul.mubr.f32.vlgmr.msra.gmra.mrb[0].mxu1 %v2482_v42  ;;  %v2315_v42 = vld [vmem:[%s7803_s29 + $0x3ea0] sm:$0xff]  ;;  %v2333_v36 = vld [vmem:[%s7803_s29 + $0x3f30] sm:$0xff]  ;;  %v6213_v41 = vpack.c.bf16 %v1314_v38, %v1312_v37  ;;  %v1332_v38 = vld [vmem:[%s7803_s29 + $0x1fe8] sm:$0xff] }
 0x447   : > { %6176 = vmatpush1.bf16.msra.mxu1 %v6175_v46  ;;  %4882 = vmatmul.mubr.f32.vlgmr.msra.gmra.mrb[0].mxu0 %v2610_v35  ;;  %v1296_v46 = vld [vmem:[%s7803_s29 + $0x1ec8] sm:$0xff]  ;;  %v1298_v35 = vld [vmem:[%s7803_s29 + $0x1ed8] sm:$0xff]  ;;  %v7219_v52 = vpack.c.bf16 %v2317_v45, %v2315_v42  ;;  %v1313_v42 = vld [vmem:[%s7803_s29 + $0x1f50] sm:$0xff] }
 0x448   : > { %7200 = vmatpush1.bf16.msra.mxu0 %v7199_v47  ;;  %6178 = vmatprep.subr.bf16.mxu1 %v6177_v49  ;;  %v2320_v47 = vld [vmem:[%s7803_s29 + $0x3ec8] sm:$0xff]  ;;  %v2322_v49 = vld [vmem:[%s7803_s29 + $0x3ed8] sm:$0xff]  ;;  %v6197_v53 = vpack.c.bf16 %v1298_v35, %v1296_v46  ;;  %v2337_v46 = vld [vmem:[%s7803_s29 + $0x3f50] sm:$0xff] }
 0x449   : > { %7202 = vmatprep.subr.bf16.mxu0 %v7201_v57  ;;  %3816 = vmatprep.mubr.f32.mxu1 %v2494_v63  ;;  %v1295_v57 = vld [vmem:[%s7803_s29 + $0x1ec0] sm:$0xff]  ;;  %v7221_v62 = vpack.c.bf16 %v2322_v49, %v2320_v47  ;;  %v2321_v63 = vld [vmem:[%s7803_s29 + $0x3ed0] sm:$0xff]  ;;  %v1316_v35 = vld [vmem:[%s7803_s29 + $0x1f68] sm:$0xff] }
 0x44a   : > { %4952 = vmatprep.mubr.f32.mxu0 %v2622_v0  ;;  %v2324_v0 = vld [vmem:[%s7803_s29 + $0x3ee8] sm:$0xff]  ;;  %v1318_v47 = vld [vmem:[%s7803_s29 + $0x1f78] sm:$0xff]  ;;  %v2353_v37 = vld [vmem:[%s7803_s29 + $0x3fd0] sm:$0xff] }
 0x44b   : > { %6180 = vmatpush1.bf16.msra.mxu1 %v6179_v2  ;;  %v2326_v2 = vld [vmem:[%s7803_s29 + $0x3ef8] sm:$0xff]  ;;  %v2340_v49 = vld [vmem:[%s7803_s29 + $0x3f68] sm:$0xff] }
 0x44c   : > { %7204 = vmatpush1.bf16.msra.mxu0 %v7203_v3  ;;  %6182 = vmatprep.subr.bf16.mxu1 %v6181_v4  ;;  %v6199_v3 = vpack.c.bf16 %v1297_v58, %v1295_v57  ;;  %v7223_v4 = vpack.c.bf16 %v2321_v63, %v2319_v59  ;;  %v7225_v7 = vpack.c.bf16 %v2326_v2, %v2324_v0  ;;  %v1315_v58 = vld [vmem:[%s7803_s29 + $0x1f60] sm:$0xff]  ;;  %v1317_v59 = vld [vmem:[%s7803_s29 + $0x1f70] sm:$0xff]  ;;  %v1322_v0 = vld [vmem:[%s7803_s29 + $0x1f98] sm:$0xff] }
 0x44d   : > { %7206 = vmatprep.subr.bf16.mxu0 %v7205_v5  ;;  %v2323_v5 = vld [vmem:[%s7803_s29 + $0x3ee0] sm:$0xff]  ;;  %v6217_v57 = vpack.c.bf16 %v1318_v47, %v1316_v35  ;;  %v2344_v2 = vld [vmem:[%s7803_s29 + $0x3f88] sm:$0xff]  ;;  %v2357_v35 = vld [vmem:[%s7803_s29 + $0x3ff0] sm:$0xff] }
 0x44f   : > { %6184 = vmatpush1.bf16.msra.mxu1 %v6183_v25  ;;  %v2330_v25 = vld [vmem:[%s7803_s29 + $0x3f18] sm:$0xff] }
 0x450   : > { %7208 = vmatpush1.bf16.msra.mxu0 %v7207_v13  ;;  %6186 = vmatprep.subr.bf16.mxu1 %v6185_v15  ;;  %v6203_v13 = vpack.c.bf16 %v1301_v56, %v1299_v60  ;;  %v7227_v15 = vpack.c.bf16 %v2325_v9, %v2323_v5  ;;  %v7229_v18 = vpack.c.bf16 %v2330_v25, %v2328_v12  ;;  %v1319_v56 = vld [vmem:[%s7803_s29 + $0x1f80] sm:$0xff]  ;;  %v1321_v5 = vld [vmem:[%s7803_s29 + $0x1f90] sm:$0xff]  ;;  %v1326_v12 = vld [vmem:[%s7803_s29 + $0x1fb8] sm:$0xff] }
 0x451   : > { %7210 = vmatprep.subr.bf16.mxu0 %v7209_v17  ;;  %v2327_v17 = vld [vmem:[%s7803_s29 + $0x3f00] sm:$0xff]  ;;  %v6221_v60 = vpack.c.bf16 %v1322_v0, %v1320_v50  ;;  %v2348_v25 = vld [vmem:[%s7803_s29 + $0x3fa8] sm:$0xff] }
 0x453   : > { %6188 = vmatpush1.bf16.msra.mxu1 %v6187_v26  ;;  %v2334_v26 = vld [vmem:[%s7803_s29 + $0x3f38] sm:$0xff] }
 0x454   : > { %7212 = vmatpush1.bf16.msra.mxu0 %v7211_v43  ;;  %6190 = vmatprep.subr.bf16.mxu1 %v6189_v29  ;;  %v6207_v43 = vpack.c.bf16 %v1305_v21, %v1303_v6  ;;  %v7231_v29 = vpack.c.bf16 %v2329_v11, %v2327_v17  ;;  %v7233_v19 = vpack.c.bf16 %v2334_v26, %v2332_v23  ;;  %v1323_v21 = vld [vmem:[%s7803_s29 + $0x1fa0] sm:$0xff]  ;;  %v1325_v17 = vld [vmem:[%s7803_s29 + $0x1fb0] sm:$0xff]  ;;  %v1330_v23 = vld [vmem:[%s7803_s29 + $0x1fd8] sm:$0xff] }
 0x455   : > { %7214 = vmatprep.subr.bf16.mxu0 %v7213_v34  ;;  %v2331_v34 = vld [vmem:[%s7803_s29 + $0x3f20] sm:$0xff]  ;;  %v6225_v6 = vpack.c.bf16 %v1326_v12, %v1324_v1  ;;  %v2352_v26 = vld [vmem:[%s7803_s29 + $0x3fc8] sm:$0xff] }
 0x457   : > { %6192 = vmatpush1.bf16.msra.mxu1 %v6191_v24  ;;  %v2338_v24 = vld [vmem:[%s7803_s29 + $0x3f58] sm:$0xff] }
 0x458   : > { %7216 = vmatpush1.bf16.msra.mxu0 %v7215_v55  ;;  %6194 = vmatprep.subr.bf16.mxu1 %v6193_v40  ;;  %v6211_v55 = vpack.c.bf16 %v1309_v33, %v1307_v32  ;;  %v7235_v40 = vpack.c.bf16 %v2333_v36, %v2331_v34  ;;  %v7237_v45 = vpack.c.bf16 %v2338_v24, %v2336_v39  ;;  %v1327_v33 = vld [vmem:[%s7803_s29 + $0x1fc0] sm:$0xff]  ;;  %v1329_v34 = vld [vmem:[%s7803_s29 + $0x1fd0] sm:$0xff]  ;;  %v1334_v39 = vld [vmem:[%s7803_s29 + $0x1ff8] sm:$0xff] }
 0x459   : > { %7218 = vmatprep.subr.bf16.mxu0 %v7217_v44  ;;  %v2335_v44 = vld [vmem:[%s7803_s29 + $0x3f40] sm:$0xff]  ;;  %v6229_v32 = vpack.c.bf16 %v1330_v23, %v1328_v22  ;;  %v2356_v24 = vld [vmem:[%s7803_s29 + $0x3fe8] sm:$0xff] }
 0x45b   : > { %6196 = vmatpush1.bf16.msra.mxu1 %v6195_v51  ;;  %v2342_v51 = vld [vmem:[%s7803_s29 + $0x3f78] sm:$0xff] }
 0x45c   : > { %7220 = vmatpush1.bf16.msra.mxu0 %v7219_v52  ;;  %6198 = vmatprep.subr.bf16.mxu1 %v6197_v53  ;;  %v6215_v52 = vpack.c.bf16 %v1313_v42, %v1311_v30  ;;  %v7239_v53 = vpack.c.bf16 %v2337_v46, %v2335_v44  ;;  %v7241_v63 = vpack.c.bf16 %v2342_v51, %v2340_v49  ;;  %v1331_v42 = vld [vmem:[%s7803_s29 + $0x1fe0] sm:$0xff]  ;;  %v1333_v44 = vld [vmem:[%s7803_s29 + $0x1ff0] sm:$0xff] }
 0x45d   : > { %7222 = vmatprep.subr.bf16.mxu0 %v7221_v62  ;;  %v2339_v62 = vld [vmem:[%s7803_s29 + $0x3f60] sm:$0xff]  ;;  %v6233_v30 = vpack.c.bf16 %v1334_v39, %v1332_v38  ;;  %v6235_v47 = vpack.c.bf16 %v1333_v44, %v1331_v42  ;;  %v7431_v51 = vld [vmem:[%s7931_s26 + $0x30] ss:$2 sm:$0xff] }
 0x45e   : > { %v2355_v46 = vld [vmem:[%s7803_s29 + $0x3fe0] sm:$0xff] }
 0x45f   : > { %6200 = vmatpush1.bf16.msra.mxu1 %v6199_v3  ;;  %v2346_v3 = vld [vmem:[%s7803_s29 + $0x3f98] sm:$0xff]  ;;  %v7259_v49 = vpack.c.bf16 %v2357_v35, %v2355_v46 }
 0x460   : > { %7224 = vmatpush1.bf16.msra.mxu0 %v7223_v4  ;;  %6202 = vmatprep.subr.bf16.mxu1 %v6201_v27  ;;  %v6219_v4 = vpack.c.bf16 %v1317_v59, %v1315_v58  ;;  %v7243_v27 = vpack.c.bf16 %v2341_v8, %v2339_v62  ;;  %v7245_v9 = vpack.c.bf16 %v2346_v3, %v2344_v2  ;;  %v7601_v58 = vmov 1966171168  }
 0x461   : > { %7226 = vmatprep.subr.bf16.mxu0 %v7225_v7  ;;  %v2343_v7 = vld [vmem:[%s7803_s29 + $0x3f80] sm:$0xff]  ;;  %v4963_v59 = vunpack.c.l.s4 %v7601_v58 }
 0x463   : > { %6204 = vmatpush1.bf16.msra.mxu1 %v6203_v13  ;;  %v2350_v13 = vld [vmem:[%s7803_s29 + $0x3fb8] sm:$0xff]  ;;  %v4964_v62 = vunpack.c.0.s8 %v4963_v59 }
 0x464   : > { %7228 = vmatpush1.bf16.msra.mxu0 %v7227_v15  ;;  %6206 = vmatprep.subr.bf16.mxu1 %v6205_v16  ;;  %v6223_v15 = vpack.c.bf16 %v1321_v5, %v1319_v56  ;;  %v7247_v16 = vpack.c.bf16 %v2345_v20, %v2343_v7  ;;  %v7249_v11 = vpack.c.bf16 %v2350_v13, %v2348_v25  ;;  %v310_v56 = vld [vmem:[#allocation2] sm:$0x3] }
 0x465   : > { %7230 = vmatprep.subr.bf16.mxu0 %v7229_v18  ;;  %v2347_v18 = vld [vmem:[%s7803_s29 + $0x3fa0] sm:$0xff] }
 0x467   : > { %6208 = vmatpush1.bf16.msra.mxu1 %v6207_v43  ;;  %v2354_v43 = vld [vmem:[%s7803_s29 + $0x3fd8] sm:$0xff] }
 0x468   : > { %7232 = vmatpush1.bf16.msra.mxu0 %v7231_v29  ;;  %6210 = vmatprep.subr.bf16.mxu1 %v6209_v31  ;;  %v6227_v29 = vpack.c.bf16 %v1325_v17, %v1323_v21  ;;  %v7251_v31 = vpack.c.bf16 %v2349_v28, %v2347_v18  ;;  %v7253_v36 = vpack.c.bf16 %v2354_v43, %v2352_v26 }
 0x469   : > { %7234 = vmatprep.subr.bf16.mxu0 %v7233_v19  ;;  %v2351_v19 = vld [vmem:[%s7803_s29 + $0x3fc0] sm:$0xff] }
 0x46b   : > { %6212 = vmatpush1.bf16.msra.mxu1 %v6211_v55  ;;  %v2358_v55 = vld [vmem:[%s7803_s29 + $0x3ff8] sm:$0xff] }
 0x46c   : > { %7236 = vmatpush1.bf16.msra.mxu0 %v7235_v40  ;;  %6214 = vmatprep.subr.bf16.mxu1 %v6213_v41  ;;  %v6231_v40 = vpack.c.bf16 %v1329_v34, %v1327_v33  ;;  %v7255_v41 = vpack.c.bf16 %v2353_v37, %v2351_v19 }
 0x46d   : > { %7238 = vmatprep.subr.bf16.mxu0 %v7237_v45  ;;  %v7257_v45 = vpack.c.bf16 %v2358_v55, %v2356_v24 }
 0x46f   : > { %6216 = vmatpush1.bf16.msra.mxu1 %v6215_v52  ;;  %v2490_v52 = vrot.slane %v7431_v51, %v8410_v54 }
 0x470   : > { %7240 = vmatpush1.bf16.msra.mxu0 %v7239_v53  ;;  %6218 = vmatprep.subr.bf16.mxu1 %v6217_v57  ;;  %v7432_v53 = vld [vmem:[%s7931_s26 + $0x70] ss:$2 sm:$0xff] }
 0x471   : > { %7242 = vmatprep.subr.bf16.mxu0 %v7241_v63  ;;  %v2618_v57 = vrot.slane %v7432_v53, %v8410_v54 }
 0x473   : > { %6220 = vmatpush1.bf16.msra.mxu1 %v6219_v4  ;;  %v4967_v4 = vsub.s32 %v4964_v62, %v7909_v61 }
 0x474   : > { %7244 = vmatpush1.bf16.msra.mxu0 %v7243_v27  ;;  %6222 = vmatprep.subr.bf16.mxu1 %v6221_v60 }
 0x475   : > { %7246 = vmatprep.subr.bf16.mxu0 %v7245_v9  ;;  %v4988_v9 = vld [vmem:[#allocation7] sm:$0x3] (!%p5201_p9) }
 0x477   : > { %6224 = vmatpush1.bf16.msra.mxu1 %v6223_v15 }
 0x478   : > { %7248 = vmatpush1.bf16.msra.mxu0 %v7247_v16  ;;  %6226 = vmatprep.subr.bf16.mxu1 %v6225_v6 }
 0x479   : > { %7250 = vmatprep.subr.bf16.mxu0 %v7249_v11 }
 0x47b   : > { %6228 = vmatpush1.bf16.msra.mxu1 %v6227_v29 }
 0x47c   : > { %7252 = vmatpush1.bf16.msra.mxu0 %v7251_v31  ;;  %6230 = vmatprep.subr.bf16.mxu1 %v6229_v32 }
 0x47d   : > { %7254 = vmatprep.subr.bf16.mxu0 %v7253_v36 }
 0x47f   : > { %6232 = vmatpush1.bf16.msra.mxu1 %v6231_v40 }
 0x480   : > { %7256 = vmatpush1.bf16.msra.mxu0 %v7255_v41  ;;  %6234 = vmatprep.subr.bf16.mxu1 %v6233_v30 }
 0x481   : > { %7258 = vmatprep.subr.bf16.mxu0 %v7257_v45 }
 0x483   : > { %6236 = vmatpush1.bf16.msra.mxu1 %v6235_v47 }
 0x484   : > { %7260 = vmatpush1.bf16.msra.mxu0 %v7259_v49 }
 0x486   : > { %3817 = vmatmul.mubr.f32.vlgmr.msra.gmra.mrb[0].mxu1 %v2490_v52 }
 0x487   : > { %4953 = vmatmul.mubr.f32.vlgmr.msra.gmra.mrb[0].mxu0 %v2618_v57 }
 0x559   : > { %v3818_v63 = vpop.f32.mrb[0].mxu1 }
 0x55a   : > { %v4954_v8 = vpop.f32.mrb[0].mxu0  ;;  %v3820_v50 = vpop.f32.mrb[1].mxu1 }
 0x55b   : > { %v7261_v0 = vadd.f32 %v4954_v8, %v3818_v63  ;;  %v4956_v2 = vpop.f32.mrb[1].mxu0 }
 0x55c   : > { %v7262_v3 = vadd.f32 %v4956_v2, %v3820_v50 }
 0x55e   : > { %v4961_v27 = vcombine.low %v7261_v0, %v7262_v3 }
 0x560   : > { %v4968_v60 = vrot.slane %v4961_v27, %v4967_v4  ;;  %4986 = sbr.rel (%p5201_p9) target bundleno = 1540 (0x604), region = 52 }
 0x562   : > { %v4975_v5 = vrot.slane %v4968_v60, %v4967_v4 }
 0x564   : > { %v4977_v54 = vadd.f32 %v4975_v5, %v310_v56 }
 0x566   : > { %4982 = vst.msk [vmem:[#allocation2] sm:$0x3] %vm4980_vm1, %v4977_v54 }
 0x56d   : > { %v4987_v7 = vld [vmem:[#allocation2] sm:$0x3] }
 0x56e   : > { %v4989_v20 = vmul.f32 %v4988_v9, %v4987_v7 }
 0x570   : > { %v4994_v1 = vrot.slane %v4989_v20, %v7978_v14  ;;  %v4998_v61 = vrot.slane %v4989_v20, %v7922_v10 }
 0x572   : > { %v5002_v12 = vsel %vm5001_vm2, %v4994_v1, 0.0  ;;  %v5003_v25 = vsel %vm5001_vm2, %v4998_v61, 0.0 }
 0x573   : > { %v5004_v13 = vadd.f32 %v5003_v25, %v5002_v12 }
 0x575   : > { %5005 = vadd.xlane.f32.xlu0 %v5004_v13 }
 0x602   : > { %v5006_v48 = vpop.xlane.xlu0 %5005 }
 0x603   : > { %5008 = vst.msk [vmem:[%s254_s28] sm:$0x1] %vm5007_vm3, %v5006_v48 }
 0x604 PF: > { %s17_s19 = sadd.s32 1, %s7593_s19   ;;  %s10137_s30 = smov %s10146_s12 }
 0x605   : > { %p14_p10 = scmp.ge.s32.totalorder %s17_s19, 6   ;;  %s10138_s12 = smov %s7569_s13 }
 0x606   : > { %s10139_s13 = smov %s7573_s14  ;;  %s10140_s14 = smov %s7764_s5 }
 0x607   : > { %s10141_s15 = smov %s7585_s17  ;;  %s10142_s16 = smov %s7589_s18 }
 0x608   : > { %s10143_s17 = smov %s10137_s30  ;;  %s10144_s18 = smov %s10150_s11 }
 0x609   :  { %16 = sbr.rel (!%p14_p10) target bundleno = 8 (0x8), region = 97 }
 0x610   :  { %5034 = vsyncpa [#allocation4], 1 }
 0x611   :  { %5036 = vsyncpa [#allocation4 + $0x1], 1 }
 0x612   :  { %5037 = vsyncpa [#allocation6], 1 }
 0x613   :  { %5039 = vsyncpa [#allocation6 + $0x1], 1 }

</bundles_post_ra>
